<compile_context>
chip_gen: v7x
topology: tpu7x:2x2x1
jax: 0.10.0
libtpu: 0.0.40
codegen_flags: <defaults>
</compile_context>

<pallas_src>
import functools

import jax
import jax.numpy as jnp
from jax.experimental import pallas as pl
from jax.experimental.pallas import tpu as pltpu

IN_DIM = 661501                 # AudioNet fc1 in_features
F1, F2, F3 = 120, 84, 10        # AudioNet layer widths
OUT_LANES = 128                 # lane-dense padded fc3 output width


def audionet_kernel(x_ref, w1_ref, b1_ref, w2_ref, b2_ref, w3_ref, b3_ref,
                    out_ref, acc_ref):
    k = pl.program_id(1)

    @pl.when(k == 0)
    def _():
        acc_ref[...] = jnp.zeros_like(acc_ref)

    # fc1 partial accumulation over the K (input-feature) grid axis.
    acc_ref[...] += jnp.dot(x_ref[...], w1_ref[...],
                            preferred_element_type=jnp.float32)

    @pl.when(k == pl.num_programs(1) - 1)
    def _():
        h1 = jnp.maximum(acc_ref[...] + b1_ref[...], 0.0)            # ReLU(fc1)
        h2 = jnp.maximum(
            jnp.dot(h1, w2_ref[...], preferred_element_type=jnp.float32)
            + b2_ref[...], 0.0)                                       # ReLU(fc2)
        out_ref[...] = (jnp.dot(h2, w3_ref[...],
                                preferred_element_type=jnp.float32)
                        + b3_ref[...]).astype(out_ref.dtype)          # fc3 (lane-padded)


@functools.partial(jax.jit, static_argnames=("tile_b", "tile_k"))
def audionet_forward(x, params, *, tile_b=8, tile_k=16384):
    w1, b1 = params["w1"], params["b1"]
    w2, b2 = params["w2"], params["b2"]
    w3, b3 = params["w3"], params["b3"]
    B, K = x.shape

    nb = pl.cdiv(B, tile_b)
    nk = pl.cdiv(K, tile_k)
    B_pad, K_pad = nb * tile_b, nk * tile_k

    # Zero-pad batch / K to tile multiples and fc3 to a lane-dense 128-wide slab.
    x_p = jnp.pad(x, ((0, B_pad - B), (0, K_pad - K)))
    w1_p = jnp.pad(w1, ((0, K_pad - K), (0, 0)))
    w3_p = jnp.pad(w3, ((0, 0), (0, OUT_LANES - F3)))
    b3_p = jnp.pad(b3, ((0, 0), (0, OUT_LANES - F3)))

    const = lambda b, k: (0, 0)

    cost = pl.CostEstimate(
        flops=(2 * B_pad * K_pad * F1
               + 2 * B_pad * F1 * F2
               + 2 * B_pad * F2 * OUT_LANES),
        transcendentals=0,
        bytes_accessed=4 * (x_p.size + w1_p.size + w2.size + w3_p.size
                            + b1.size + b2.size + b3_p.size
                            + B_pad * OUT_LANES),
    )

    out_padded = pl.pallas_call(
        audionet_kernel,
        out_shape=jax.ShapeDtypeStruct((B_pad, OUT_LANES), jnp.float32),
        grid_spec=pltpu.PrefetchScalarGridSpec(
            num_scalar_prefetch=0,
            grid=(nb, nk),
            in_specs=[
                pl.BlockSpec((tile_b, tile_k), lambda b, k: (b, k)),   # x tile
                pl.BlockSpec((tile_k, F1), lambda b, k: (k, 0)),       # w1 tile
                pl.BlockSpec((1, F1), const),                          # b1
                pl.BlockSpec((F1, F2), const),                         # w2
                pl.BlockSpec((1, F2), const),                          # b2
                pl.BlockSpec((F2, OUT_LANES), const),                  # w3 (lane-padded)
                pl.BlockSpec((1, OUT_LANES), const),                   # b3 (lane-padded)
            ],
            out_specs=pl.BlockSpec((tile_b, OUT_LANES), lambda b, k: (b, 0)),
            scratch_shapes=[pltpu.VMEM((tile_b, F1), jnp.float32)],
        ),
        compiler_params=pltpu.CompilerParams(
            dimension_semantics=("parallel", "arbitrary"),
            vmem_limit_bytes=40 * 1024 * 1024,
        ),
        cost_estimate=cost,
    )(x_p, w1_p, b1, w2, b2, w3_p, b3_p)

    return out_padded[:B, :F3]


def init_params(key):
    ks = jax.random.split(key, 6)

    def linear(kw, kb, fan_in, fan_out):
        bound = 1.0 / (fan_in ** 0.5)        # PyTorch nn.Linear default init bound
        w = jax.random.uniform(kw, (fan_in, fan_out), jnp.float32, -bound, bound)
        b = jax.random.uniform(kb, (1, fan_out), jnp.float32, -bound, bound)
        return w, b

    w1, b1 = linear(ks[0], ks[1], IN_DIM, F1)
    w2, b2 = linear(ks[2], ks[3], F1, F2)
    w3, b3 = linear(ks[4], ks[5], F2, F3)
    return {"w1": w1, "b1": b1, "w2": w2, "b2": b2, "w3": w3, "b3": b3}


def reference_forward(x, p):
    hp = jax.lax.Precision.HIGHEST
    h1 = jnp.maximum(jnp.dot(x, p["w1"], precision=hp) + p["b1"], 0.0)
    h2 = jnp.maximum(jnp.dot(h1, p["w2"], precision=hp) + p["b2"], 0.0)
    return jnp.dot(h2, p["w3"], precision=hp) + p["b3"]


if __name__ == "__main__":
    key = jax.random.PRNGKey(0)
    k_x, k_p = jax.random.split(key)

    batch = 2
    x = jax.random.normal(k_x, (batch, IN_DIM), jnp.float32)
    params = init_params(k_p)

    out = audionet_forward(x, params)
    out = jax.block_until_ready(out)

    ref = reference_forward(x, params)
    assert out.shape == (batch, F3)
    assert jnp.allclose(out, ref, atol=2e-3, rtol=2e-3), \
        float(jnp.max(jnp.abs(out - ref)))
    print("KERNEL_OK")
</pallas_src>

<mosaic_0001>
module attributes {stable_mosaic.version = 11 : i64} {
  func.func private @main(%arg0: i32) attributes {dimension_semantics = [#tpu.dimension_semantics<core_parallel>], iteration_bounds = array<i64: 2>, tpu.core_type = #tpu.core_type<sc_scalar_subcore>, window_params = []} {
    return
  }
}

module attributes {stable_mosaic.version = 11 : i64} {
  func.func private @main(%arg0: i32) attributes {dimension_semantics = [#tpu.dimension_semantics<core_parallel>], iteration_bounds = array<i64: 2>, tpu.core_type = #tpu.core_type<sc_scalar_subcore>, window_params = []} {
    return
  }
}

module attributes {stable_mosaic.version = 11 : i64} {
  func.func @audionet_kernel(%arg0: i32, %arg1: i32, %arg2: memref<8x16384xf32, #tpu.memory_space<vmem>>, %arg3: memref<16384x120xf32, #tpu.memory_space<vmem>>, %arg4: memref<1x120xf32, #tpu.memory_space<vmem>>, %arg5: memref<120x84xf32, #tpu.memory_space<vmem>>, %arg6: memref<1x84xf32, #tpu.memory_space<vmem>>, %arg7: memref<84x128xf32, #tpu.memory_space<vmem>>, %arg8: memref<1x128xf32, #tpu.memory_space<vmem>>, %arg9: memref<8x128xf32, #tpu.memory_space<vmem>>, %arg10: memref<8x120xf32, #tpu.memory_space<vmem>>) attributes {dimension_semantics = [#tpu.dimension_semantics<parallel>, #tpu.dimension_semantics<arbitrary>], iteration_bounds = array<i64: 1, 41>, scalar_prefetch = 0 : i64, scratch_operands = 1 : i64, tpu.core_type = #tpu.core_type<tc>, window_params = [{transform_indices = @transform_0, window_bounds = array<i64: 8, 16384>}, {transform_indices = @transform_1, window_bounds = array<i64: 16384, 120>}, {pipeline_mode = #tpu.pipeline_mode<synchronous>, transform_indices = @transform_2, window_bounds = array<i64: 1, 120>}, {pipeline_mode = #tpu.pipeline_mode<synchronous>, transform_indices = @transform_3, window_bounds = array<i64: 120, 84>}, {pipeline_mode = #tpu.pipeline_mode<synchronous>, transform_indices = @transform_4, window_bounds = array<i64: 1, 84>}, {pipeline_mode = #tpu.pipeline_mode<synchronous>, transform_indices = @transform_5, window_bounds = array<i64: 84, 128>}, {pipeline_mode = #tpu.pipeline_mode<synchronous>, transform_indices = @transform_6, window_bounds = array<i64: 1, 128>}, {transform_indices = @transform_7, window_bounds = array<i64: 8, 128>}]} {
    %c0_i32 = arith.constant 0 : i32
    %0 = arith.cmpi eq, %arg1, %c0_i32 : i32
    %1 = arith.extui %0 : i1 to i32
    %c0_i32_0 = arith.constant 0 : i32
    %2 = arith.cmpi ne, %1, %c0_i32_0 : i32
    scf.if %2 {
      %cst_9 = arith.constant 0.000000e+00 : f32
      %12 = vector.broadcast %cst_9 : f32 to vector<8x120xf32>
      %c0_10 = arith.constant 0 : index
      %c0_11 = arith.constant 0 : index
      %13 = vector.load %arg10[%c0_10, %c0_11] : memref<8x120xf32, #tpu.memory_space<vmem>>, vector<8x120xf32>
      tpu.vector_store %arg10[%c0_10, %c0_11], %12 {strides = array<i32>} : memref<8x120xf32, #tpu.memory_space<vmem>>, vector<8x120xf32>,
    } else {
    }
    %c0 = arith.constant 0 : index
    %c0_1 = arith.constant 0 : index
    %3 = vector.load %arg10[%c0, %c0_1] : memref<8x120xf32, #tpu.memory_space<vmem>>, vector<8x120xf32>
    %c0_2 = arith.constant 0 : index
    %c0_3 = arith.constant 0 : index
    %4 = vector.load %arg2[%c0_2, %c0_3] : memref<8x16384xf32, #tpu.memory_space<vmem>>, vector<8x16384xf32>
    %c0_4 = arith.constant 0 : index
    %c0_5 = arith.constant 0 : index
    %5 = vector.load %arg3[%c0_4, %c0_5] : memref<16384x120xf32, #tpu.memory_space<vmem>>, vector<16384x120xf32>
    %cst = arith.constant dense<0.000000e+00> : vector<8x120xf32>
    %6 = tpu.matmul %4, %5, %cst {dimension_numbers = #tpu.dot_dimension_numbers<[1], [0], [0], [1], [0, 0, 1, 1], [], []>} : vector<8x16384xf32>, vector<16384x120xf32>, vector<8x120xf32> -> vector<8x120xf32>
    %7 = arith.addf %3, %6 : vector<8x120xf32>
    %c0_6 = arith.constant 0 : index
    %c0_7 = arith.constant 0 : index
    %8 = vector.load %arg10[%c0_6, %c0_7] : memref<8x120xf32, #tpu.memory_space<vmem>>, vector<8x120xf32>
    tpu.vector_store %arg10[%c0_6, %c0_7], %7 {strides = array<i32>} : memref<8x120xf32, #tpu.memory_space<vmem>>, vector<8x120xf32>,
    %c40_i32 = arith.constant 40 : i32
    %9 = arith.cmpi eq, %arg1, %c40_i32 : i32
    %10 = arith.extui %9 : i1 to i32
    %c0_i32_8 = arith.constant 0 : i32
    %11 = arith.cmpi ne, %10, %c0_i32_8 : i32
    scf.if %11 {
      %c0_9 = arith.constant 0 : index
      %c0_10 = arith.constant 0 : index
      %12 = vector.load %arg10[%c0_9, %c0_10] : memref<8x120xf32, #tpu.memory_space<vmem>>, vector<8x120xf32>
      %c0_11 = arith.constant 0 : index
      %c0_12 = arith.constant 0 : index
      %13 = vector.load %arg4[%c0_11, %c0_12] : memref<1x120xf32, #tpu.memory_space<vmem>>, vector<1x120xf32>
      %14 = vector.broadcast %13 : vector<1x120xf32> to vector<8x120xf32>
      %15 = arith.addf %12, %14 : vector<8x120xf32>
      %cst_13 = arith.constant 0.000000e+00 : f32
      %16 = vector.broadcast %cst_13 : f32 to vector<8x120xf32>
      %17 = arith.maximumf %15, %16 : vector<8x120xf32>
      %c0_14 = arith.constant 0 : index
      %c0_15 = arith.constant 0 : index
      %18 = vector.load %arg5[%c0_14, %c0_15] : memref<120x84xf32, #tpu.memory_space<vmem>>, vector<120x84xf32>
      %cst_16 = arith.constant dense<0.000000e+00> : vector<8x84xf32>
      %19 = tpu.matmul %17, %18, %cst_16 {dimension_numbers = #tpu.dot_dimension_numbers<[1], [0], [0], [1], [0, 0, 1, 1], [], []>} : vector<8x120xf32>, vector<120x84xf32>, vector<8x84xf32> -> vector<8x84xf32>
      %c0_17 = arith.constant 0 : index
      %c0_18 = arith.constant 0 : index
      %20 = vector.load %arg6[%c0_17, %c0_18] : memref<1x84xf32, #tpu.memory_space<vmem>>, vector<1x84xf32>
      %21 = vector.broadcast %20 : vector<1x84xf32> to vector<8x84xf32>
      %22 = arith.addf %19, %21 : vector<8x84xf32>
      %cst_19 = arith.constant 0.000000e+00 : f32
      %23 = vector.broadcast %cst_19 : f32 to vector<8x84xf32>
      %24 = arith.maximumf %22, %23 : vector<8x84xf32>
      %c0_20 = arith.constant 0 : index
      %c0_21 = arith.constant 0 : index
      %25 = vector.load %arg7[%c0_20, %c0_21] : memref<84x128xf32, #tpu.memory_space<vmem>>, vector<84x128xf32>
      %cst_22 = arith.constant dense<0.000000e+00> : vector<8x128xf32>
      %26 = tpu.matmul %24, %25, %cst_22 {dimension_numbers = #tpu.dot_dimension_numbers<[1], [0], [0], [1], [0, 0, 1, 1], [], []>} : vector<8x84xf32>, vector<84x128xf32>, vector<8x128xf32> -> vector<8x128xf32>
      %c0_23 = arith.constant 0 : index
      %c0_24 = arith.constant 0 : index
      %27 = vector.load %arg8[%c0_23, %c0_24] : memref<1x128xf32, #tpu.memory_space<vmem>>, vector<1x128xf32>
      %28 = vector.broadcast %27 : vector<1x128xf32> to vector<8x128xf32>
      %29 = arith.addf %26, %28 : vector<8x128xf32>
      %c0_25 = arith.constant 0 : index
      %c0_26 = arith.constant 0 : index
      %30 = vector.load %arg9[%c0_25, %c0_26] : memref<8x128xf32, #tpu.memory_space<vmem>>, vector<8x128xf32>
      tpu.vector_store %arg9[%c0_25, %c0_26], %29 {strides = array<i32>} : memref<8x128xf32, #tpu.memory_space<vmem>>, vector<8x128xf32>,
    } else {
    }
    return
  }
  func.func @transform_0(%arg0: i32, %arg1: i32) -> (i32, i32) {
    %c0_i32 = arith.constant 0 : i32
    return %arg0, %arg1 : i32, i32
  }
  func.func @transform_1(%arg0: i32, %arg1: i32) -> (i32, i32) {
    %c0_i32 = arith.constant 0 : i32
    %c0_i32_0 = arith.constant 0 : i32
    return %arg1, %c0_i32 : i32, i32
  }
  func.func @transform_2(%arg0: i32, %arg1: i32) -> (i32, i32) {
    %c0_i32 = arith.constant 0 : i32
    %c0_i32_0 = arith.constant 0 : i32
    %c0_i32_1 = arith.constant 0 : i32
    return %c0_i32, %c0_i32_0 : i32, i32
  }
  func.func @transform_3(%arg0: i32, %arg1: i32) -> (i32, i32) {
    %c0_i32 = arith.constant 0 : i32
    %c0_i32_0 = arith.constant 0 : i32
    %c0_i32_1 = arith.constant 0 : i32
    return %c0_i32, %c0_i32_0 : i32, i32
  }
  func.func @transform_4(%arg0: i32, %arg1: i32) -> (i32, i32) {
    %c0_i32 = arith.constant 0 : i32
    %c0_i32_0 = arith.constant 0 : i32
    %c0_i32_1 = arith.constant 0 : i32
    return %c0_i32, %c0_i32_0 : i32, i32
  }
  func.func @transform_5(%arg0: i32, %arg1: i32) -> (i32, i32) {
    %c0_i32 = arith.constant 0 : i32
    %c0_i32_0 = arith.constant 0 : i32
    %c0_i32_1 = arith.constant 0 : i32
    return %c0_i32, %c0_i32_0 : i32, i32
  }
  func.func @transform_6(%arg0: i32, %arg1: i32) -> (i32, i32) {
    %c0_i32 = arith.constant 0 : i32
    %c0_i32_0 = arith.constant 0 : i32
    %c0_i32_1 = arith.constant 0 : i32
    return %c0_i32, %c0_i32_0 : i32, i32
  }
  func.func @transform_7(%arg0: i32, %arg1: i32) -> (i32, i32) {
    %c0_i32 = arith.constant 0 : i32
    %c0_i32_0 = arith.constant 0 : i32
    return %arg0, %c0_i32 : i32, i32
  }
}

</mosaic_0001>

<bundles_post_ra>
// kernel: audionet_forward.1
= control target key start
LH: loop header
LB: loop body
LE: loop exit
PB: predicated region body
PF: predicated region fallthrough
CT: control target
= control target key end

     0   :  { %12 = vsyncpa [#allocation4], 0  ;;  %s14402_s0 = inlined_call_operand.vmem [shape: f32[8,671744], index: 0, kind: input, shape index: {}]   ;;  %s14403_s1 = inlined_call_operand.hbm [shape: f32[671744,120], index: 1, kind: input, shape index: {}]   ;;  %s14404_s2 = inlined_call_operand.vmem [shape: f32[1,120], index: 2, kind: input, shape index: {}]   ;;  %s14405_s3 = inlined_call_operand.vmem [shape: f32[120,84], index: 3, kind: input, shape index: {}]   ;;  %s14406_s4 = inlined_call_operand.vmem [shape: f32[1,84], index: 4, kind: input, shape index: {}]   ;;  %s14407_s5 = inlined_call_operand.vmem [shape: f32[84,128], index: 5, kind: input, shape index: {}]   ;;  %s14408_s6 = inlined_call_operand.vmem [shape: f32[1,128], index: 6, kind: input, shape index: {}]   ;;  %s14409_s7 = inlined_call_operand.vmem [shape: f32[8,128], index: 7, kind: output, shape index: {}]  }
   0x1   :  { %14 = vsyncpa [#allocation4 + $0x1], 0  ;;  %s11929_s24 = smov 0   ;;  %s11931_s25 = smov 0  }
   0x2   :  { %s11933_s26 = smov 0   ;;  %s11935_s27 = smov 0  }
   0x3   :  { %s11937_s28 = smov 0   ;;  %s11939_s29 = smov 0  }
   0x4 LB: > { %s7307_s30 = sadd.s32 4294967295, %s11880_s29   ;;  %s29_s8 = sadd.s32 1, %s11876_s28  ;;  %s11880_s29 = sphi %s11939_s29, %s20_s29   ;;  %s11876_s28 = sphi %s11937_s28, %s14417_s28   ;;  %s11872_s27 = sphi %s11935_s27, %s14416_s27   ;;  %s11868_s26 = sphi %s11933_s26, %s14415_s26   ;;  %s11864_s25 = sphi %s11931_s25, %s14414_s25   ;;  %s11860_s24 = sphi %s11929_s24, %s14413_s24  }
   0x5   : > { %p30_p0 = scmp.ge.s32.totalorder %s29_s8, 41  ;;  %s67_s9 = sadd.s32 1, %s11868_s26 }
   0x6   : > { %p74_p1 = scmp.ne.s32.totalorder %s11868_s26, %s11864_s25  ;;  %p75_p2 = scmp.eq.s32.totalorder %s11880_s29, 0 }
   0x7   : > { %s14419_s8 = smov (%p30_p0, %s29_s8), 0  ;;  %p80_p4 = scmp.ne.s32.totalorder %s11864_s25, %s11860_s24 }
   0x8   : > { %p11965_p3 = por %p75_p2, %p74_p1  ;;  %s64_s11 = ssub.s32 %s11876_s28, %s14419_s8 }
   0x9   : > { %p81_p5 = scmp.eq.s32.totalorder %s7307_s30, 0  ;;  %p65_p6 = scmp.eq.s32.totalorder %s64_s11, 0 }
   0xa   : > { %p11745_p8 = scmp.lt.s32.totalorder %s11880_s29, 41  ;;  %s263_s14 = sand.u32 1, %s11868_s26  }
   0xb   : > { %p11972_p7 = por %p81_p5, %p80_p4  ;;  %s7328_s15 = sshll.u32 %s11876_s28, 18 }
   0xc   : > { %s11978_s13 = scalar_select %p65_p6, %s11868_s26, %s67_s9  }
   0xd   : > { %s7310_s16 = sshll.u32 %s263_s14, 14  ;;  %s11985_s19 = scalar_lea.hbm %s14403_s1, %s7328_s15 }
   0xe   : > { %s267_s20 = scalar_lea.vmem [#allocation3], %s7310_s16  ;;  %p11989_p9 = pnand %p11745_p8, %p11965_p3 }
   0xf   : > { %s274_s21 = sshll.u32 %s267_s20, 4  ;;  %s11995_s23 = scalar_lea.sflag [#allocation4], %s263_s14  ;;  %s11993_s21 = int_to_ptr.vmem [resolvable:$true] %s274_s21 }
  0x10   : > { %s11800_s24 = scalar_lea.hbm %s11985_s19, 262144  ;;  %p11802_p11 = pneg %p11989_p9 }
  0x11   : > { %p11801_p10 = scmp.ne.s32.totalorder %s11985_s19, %s11800_s24  ;;  %s11805_s10 = scalar_lea.hbm %s14403_s1, 10747904 }
  0x12   : > { %p11806_p0 = scmp.lt.u32.totalorder %s11985_s19, %s14403_s1  ;;  %p11807_p1 = scmp.lt.u32.totalorder %s11805_s10, %s11800_s24 }
  0x13   : > { %p11803_p12 = pnand %p11802_p11, %p11801_p10  ;;  %p11809_p3 = scmp.lt.u32.totalorder %s11800_s24, %s11985_s19 }
  0x14   : > { %p11808_p2 = por %p11807_p1, %p11806_p0 }
  0x15   : > { %p11804_p13 = pneg %p11803_p12 }
  0x16   : > { %p11810_p4 = por %p11809_p3, %p11808_p2 }
  0x18   : > { %p11811_p5 = pnand %p11810_p4, %p11804_p13 }
  0x1a   : > { %11814 = shalt.err (!%p11811_p5)
}
  0x1b   : > { %s11815_s14 = scalar_lea.vmem %s11993_s21, 262144  ;;  %s11882_s16 = smov [#allocation3]  }
  0x1c   : > { %p11816_p6 = scmp.ne.s32.totalorder %s11993_s21, %s11815_s14  ;;  %s11820_s17 = sshll.u32 %s11882_s16, 4  ;;  %s11821_s17 = int_to_ptr.vmem [resolvable:$false] %s11820_s17 }
  0x1d   : > { %s11822_s18 = scalar_lea.vmem %s11821_s17, 524288  ;;  %p11823_p12 = scmp.lt.s32.totalorder %s11993_s21, %s11821_s17 }
  0x1e   : > { %p11818_p8 = pnand %p11816_p6, %p11802_p11  ;;  %p11824_p0 = scmp.lt.s32.totalorder %s11822_s18, %s11815_s14 }
  0x20   : > { %p11819_p10 = pneg %p11818_p8  ;;  %p11825_p1 = por %p11824_p0, %p11823_p12 }
  0x22   : > { %p11826_p2 = pnand %p11825_p1, %p11819_p10 }
  0x24   : > { %11829 = shalt.err (!%p11826_p2)
}
  0x25   : > { %s11883_s20 = smov 128   ;;  %s11884_s24 = smov 8  }
  0x26   : > { %11744 = dma.hbm_to_vmem [thread:$0]  (!%p11989_p9), %s11985_s19, 262144, %s11993_s21, %s11995_s23, %s11883_s20, %s11883_s20, %s11884_s24  }
  0x27   : > { %p7313_p11 = scmp.ge.s32.totalorder %s11880_s29, 1  ;;  %p282_p13 = scmp.lt.s32.totalorder %s11880_s29, 42 }
  0x29   : > { %p283_p3 = pnand %p7313_p11, %p282_p13 }
  0x2a   : > { %s288_s30 = sand.u32 (!%p283_p3), 1, %s11864_s25  }
  0x2b   : > { %286 = sbr.rel (%p283_p3) target bundleno = 1752 (0x6d8), region = 48  ;;  %s7314_s9 = sshll.u32 (!%p283_p3), %s288_s30, 14 }
  0x2c   : > { %s289_s10 = scalar_lea.sflag (!%p283_p3), [#allocation4], %s288_s30  ;;  %s12026_s11 = scalar_lea.vmem (!%p283_p3), [#allocation3], %s7314_s9 }
  0x32   : > { %11855 = dma.done.wait (%p11972_p7), %s289_s10, 262144  }
  0x33   : > { %11857 = vsyncadd (%p11972_p7), %s289_s10, 4294705152  ;;  %s7315_s15 = sshll.u32 %s11872_s27, 7  ;;  %p7317_p9 = scmp.ne.s32.totalorder %s11872_s27, 0 }
  0x34   : > { %p334_p4 = scmp.lt.s32.totalorder %s7315_s15, 5247  ;;  %vm350_vm0 = vcmask (!%p7317_p9), 982016   ;;  %v11885_v0 = vmov (!%p7317_p9), 0.0  }
  0x35   : > { %349 = sbr.rel (%p7317_p9) target bundleno = 60 (0x3c), region = 56  ;;  %351 = vst.msk [vmem:[#allocation2] sm:$0xff] (!%p7317_p9), %vm350_vm0, %v11885_v0 }
  0x36   : > { %s14421_s15 = smov (!%p334_p4, %s7315_s15), 5247 }
  0x37   : > { %s7316_s19 = sshll.u32 %s14421_s15, 3 }
  0x38   : > { %s12036_s23 = scalar_lea.vmem %s14402_s0, %s7316_s19 }
  0x3c PF: > { %v497_v1 = vld [vmem:[%s12026_s11 + $0x80] sm:$0xff]  ;;  %v498_v2 = vld [vmem:[%s12026_s11 + $0x88] sm:$0xff]  ;;  %v499_v12 = vld [vmem:[%s12026_s11 + $0x90] sm:$0xff]  ;;  %vm7010_vm1 = vcmask 982016   ;;  %p7318_p7 = scmp.ne.s32.totalorder %s11872_s27, 40 }
  0x3d   : > { %v529_v3 = vld [vmem:[%s12026_s11 + $0x180] sm:$0xff]  ;;  %v9655_v4 = vpack.c.bf16 %v498_v2, %v497_v1  ;;  %v530_v5 = vld [vmem:[%s12026_s11 + $0x188] sm:$0xff]  ;;  %v500_v14 = vld [vmem:[%s12026_s11 + $0x98] sm:$0xff]  ;;  %vm11887_vm2 = vmmov (!%p7318_p7), 0   ;;  %vm7144_vm3 = vcmask (!%p7318_p7), 1043456   ;;  %vm7140_vm4 = vcmask (!%p7318_p7), 687104  }
  0x3e   : > { %v481_v6 = vld [vmem:[%s12026_s11] sm:$0xff]  ;;  %v482_v7 = vld [vmem:[%s12026_s11 + $0x8] sm:$0xff]  ;;  %v9687_v8 = vpack.c.bf16 %v530_v5, %v529_v3  ;;  %v531_v15 = vld [vmem:[%s12026_s11 + $0x190] sm:$0xff]  ;;  %v9659_v17 = vpack.c.bf16 %v500_v14, %v499_v12 }
  0x3f   : > { %v9657_v9 = vpack.c.bf16 %v482_v7, %v481_v6  ;;  %v513_v10 = vld [vmem:[%s12026_s11 + $0x100] sm:$0xff]  ;;  %v514_v11 = vld [vmem:[%s12026_s11 + $0x108] sm:$0xff]  ;;  %9656 = vmatprep.subr.bf16.mxu0 %v9655_v4  ;;  %v532_v16 = vld [vmem:[%s12026_s11 + $0x198] sm:$0xff] }
  0x40   : > { %v9689_v13 = vpack.c.bf16 %v514_v11, %v513_v10  ;;  %9688 = vmatprep.subr.bf16.mxu1 %v9687_v8  ;;  %v9691_v18 = vpack.c.bf16 %v532_v16, %v531_v15  ;;  %v483_v19 = vld [vmem:[%s12026_s11 + $0x10] sm:$0xff]  ;;  %v484_v20 = vld [vmem:[%s12026_s11 + $0x18] sm:$0xff]  ;;  %v501_v24 = vld [vmem:[%s12026_s11 + $0xa0] sm:$0xff] }
  0x41   : > { %9658 = vmatpush3.bf16.msra.mxu0 %v9657_v9  ;;  %v515_v21 = vld [vmem:[%s12026_s11 + $0x110] sm:$0xff]  ;;  %v9661_v22 = vpack.c.bf16 %v484_v20, %v483_v19  ;;  %v516_v23 = vld [vmem:[%s12026_s11 + $0x118] sm:$0xff]  ;;  %v502_v25 = vld [vmem:[%s12026_s11 + $0xa8] sm:$0xff] }
  0x42   : > { %9690 = vmatpush3.bf16.msra.mxu1 %v9689_v13  ;;  %9660 = vmatprep.subr.bf16.mxu0 %v9659_v17  ;;  %v9693_v26 = vpack.c.bf16 %v516_v23, %v515_v21  ;;  %v9663_v27 = vpack.c.bf16 %v502_v25, %v501_v24  ;;  %v533_v28 = vld [vmem:[%s12026_s11 + $0x1a0] sm:$0xff]  ;;  %v534_v29 = vld [vmem:[%s12026_s11 + $0x1a8] sm:$0xff]  ;;  %v503_v36 = vld [vmem:[%s12026_s11 + $0xb0] sm:$0xff] }
  0x43   : > { %9692 = vmatprep.subr.bf16.mxu1 %v9691_v18  ;;  %v485_v30 = vld [vmem:[%s12026_s11 + $0x20] sm:$0xff]  ;;  %v9695_v31 = vpack.c.bf16 %v534_v29, %v533_v28  ;;  %v486_v32 = vld [vmem:[%s12026_s11 + $0x28] sm:$0xff]  ;;  %v504_v37 = vld [vmem:[%s12026_s11 + $0xb8] sm:$0xff] }
  0x44   : > { %v517_v33 = vld [vmem:[%s12026_s11 + $0x120] sm:$0xff]  ;;  %v518_v34 = vld [vmem:[%s12026_s11 + $0x128] sm:$0xff]  ;;  %v9665_v35 = vpack.c.bf16 %v486_v32, %v485_v30  ;;  %v535_v38 = vld [vmem:[%s12026_s11 + $0x1b0] sm:$0xff]  ;;  %v9667_v40 = vpack.c.bf16 %v504_v37, %v503_v36 }
  0x45   : > { %9662 = vmatpush3.bf16.msra.mxu0 %v9661_v22  ;;  %v9697_v39 = vpack.c.bf16 %v518_v34, %v517_v33  ;;  %v536_v41 = vld [vmem:[%s12026_s11 + $0x1b8] sm:$0xff]  ;;  %v487_v42 = vld [vmem:[%s12026_s11 + $0x30] sm:$0xff]  ;;  %v505_v47 = vld [vmem:[%s12026_s11 + $0xc0] sm:$0xff] }
  0x46   : > { %9694 = vmatpush3.bf16.msra.mxu1 %v9693_v26  ;;  %9664 = vmatprep.subr.bf16.mxu0 %v9663_v27  ;;  %v488_v43 = vld [vmem:[%s12026_s11 + $0x38] sm:$0xff]  ;;  %v9699_v44 = vpack.c.bf16 %v536_v41, %v535_v38  ;;  %v519_v45 = vld [vmem:[%s12026_s11 + $0x130] sm:$0xff]  ;;  %v506_v48 = vld [vmem:[%s12026_s11 + $0xc8] sm:$0xff] }
  0x47   : > { %9696 = vmatprep.subr.bf16.mxu1 %v9695_v31  ;;  %v520_v46 = vld [vmem:[%s12026_s11 + $0x138] sm:$0xff]  ;;  %v537_v49 = vld [vmem:[%s12026_s11 + $0x1c0] sm:$0xff]  ;;  %v538_v50 = vld [vmem:[%s12026_s11 + $0x1c8] sm:$0xff]  ;;  %v9669_v51 = vpack.c.bf16 %v488_v43, %v487_v42  ;;  %v9671_v53 = vpack.c.bf16 %v506_v48, %v505_v47 }
  0x48   : > { %v9701_v52 = vpack.c.bf16 %v520_v46, %v519_v45  ;;  %v489_v54 = vld [vmem:[%s12026_s11 + $0x40] sm:$0xff]  ;;  %v490_v55 = vld [vmem:[%s12026_s11 + $0x48] sm:$0xff]  ;;  %v9703_v57 = vpack.c.bf16 %v538_v50, %v537_v49  ;;  %v507_v59 = vld [vmem:[%s12026_s11 + $0xd0] sm:$0xff] }
  0x49   : > { %9666 = vmatpush3.bf16.msra.mxu0 %v9665_v35  ;;  %v521_v56 = vld [vmem:[%s12026_s11 + $0x140] sm:$0xff]  ;;  %v522_v58 = vld [vmem:[%s12026_s11 + $0x148] sm:$0xff]  ;;  %v508_v60 = vld [vmem:[%s12026_s11 + $0xd8] sm:$0xff]  ;;  %v9673_v63 = vpack.c.bf16 %v490_v55, %v489_v54 }
  0x4a   : > { %9698 = vmatpush3.bf16.msra.mxu1 %v9697_v39  ;;  %9668 = vmatprep.subr.bf16.mxu0 %v9667_v40  ;;  %v539_v61 = vld [vmem:[%s12026_s11 + $0x1d0] sm:$0xff]  ;;  %v540_v62 = vld [vmem:[%s12026_s11 + $0x1d8] sm:$0xff]  ;;  %v9705_v0 = vpack.c.bf16 %v522_v58, %v521_v56  ;;  %v9675_v1 = vpack.c.bf16 %v508_v60, %v507_v59  ;;  %v509_v7 = vld [vmem:[%s12026_s11 + $0xe0] sm:$0xff] }
  0x4b   : > { %9700 = vmatprep.subr.bf16.mxu1 %v9699_v44  ;;  %v491_v2 = vld [vmem:[%s12026_s11 + $0x50] sm:$0xff]  ;;  %v492_v3 = vld [vmem:[%s12026_s11 + $0x58] sm:$0xff]  ;;  %v9707_v5 = vpack.c.bf16 %v540_v62, %v539_v61  ;;  %v510_v8 = vld [vmem:[%s12026_s11 + $0xe8] sm:$0xff] }
  0x4c   : > { %v523_v4 = vld [vmem:[%s12026_s11 + $0x150] sm:$0xff]  ;;  %v524_v6 = vld [vmem:[%s12026_s11 + $0x158] sm:$0xff]  ;;  %v541_v9 = vld [vmem:[%s12026_s11 + $0x1e0] sm:$0xff]  ;;  %v9677_v11 = vpack.c.bf16 %v492_v3, %v491_v2  ;;  %v9679_v15 = vpack.c.bf16 %v510_v8, %v509_v7 }
  0x4d   : > { %9670 = vmatpush3.bf16.msra.mxu0 %v9669_v51  ;;  %v542_v10 = vld [vmem:[%s12026_s11 + $0x1e8] sm:$0xff]  ;;  %v493_v12 = vld [vmem:[%s12026_s11 + $0x60] sm:$0xff]  ;;  %v9709_v14 = vpack.c.bf16 %v524_v6, %v523_v4  ;;  %v356_v18 = vld [vmem:[%s12036_s23 + $0x18] sm:$0xff] }
  0x4e   : > { %9702 = vmatpush3.bf16.msra.mxu1 %v9701_v52  ;;  %9672 = vmatprep.subr.bf16.mxu0 %v9671_v53  ;;  %v494_v13 = vld [vmem:[%s12026_s11 + $0x68] sm:$0xff]  ;;  %v525_v16 = vld [vmem:[%s12026_s11 + $0x160] sm:$0xff]  ;;  %v9711_v19 = vpack.c.bf16 %v542_v10, %v541_v9  ;;  %v511_v21 = vld [vmem:[%s12026_s11 + $0xf0] sm:$0xff] }
  0x4f   : > { %9704 = vmatprep.subr.bf16.mxu1 %v9703_v57  ;;  %v354_v17 = vld [vmem:[%s12036_s23 + $0x8] sm:$0xff]  ;;  %v526_v20 = vld [vmem:[%s12026_s11 + $0x168] sm:$0xff]  ;;  %v512_v22 = vld [vmem:[%s12026_s11 + $0xf8] sm:$0xff]  ;;  %2663 = vmatprep.mubr.f32.mxu1 %v356_v18  ;;  %v9681_v25 = vpack.c.bf16 %v494_v13, %v493_v12 }
  0x50   : > { %2593 = vmatprep.mubr.f32.mxu0 %v354_v17  ;;  %v543_v23 = vld [vmem:[%s12026_s11 + $0x1f0] sm:$0xff]  ;;  %v544_v24 = vld [vmem:[%s12026_s11 + $0x1f8] sm:$0xff]  ;;  %v9713_v26 = vpack.c.bf16 %v526_v20, %v525_v16  ;;  %v9683_v27 = vpack.c.bf16 %v512_v22, %v511_v21  ;;  %v561_v33 = vld [vmem:[%s12026_s11 + $0x280] sm:$0xff] }
  0x51   : > { %9674 = vmatpush3.bf16.msra.mxu0 %v9673_v63  ;;  %v495_v28 = vld [vmem:[%s12026_s11 + $0x70] sm:$0xff]  ;;  %v496_v29 = vld [vmem:[%s12026_s11 + $0x78] sm:$0xff]  ;;  %v9715_v31 = vpack.c.bf16 %v544_v24, %v543_v23  ;;  %v562_v34 = vld [vmem:[%s12026_s11 + $0x288] sm:$0xff] }
  0x52   : > { %9706 = vmatpush3.bf16.msra.mxu1 %v9705_v0  ;;  %9676 = vmatprep.subr.bf16.mxu0 %v9675_v1  ;;  %v527_v30 = vld [vmem:[%s12026_s11 + $0x170] sm:$0xff]  ;;  %v528_v32 = vld [vmem:[%s12026_s11 + $0x178] sm:$0xff]  ;;  %v593_v35 = vld [vmem:[%s12026_s11 + $0x380] sm:$0xff]  ;;  %v9685_v37 = vpack.c.bf16 %v496_v29, %v495_v28  ;;  %v9719_v39 = vpack.c.bf16 %v562_v34, %v561_v33 }
  0x53   : > { %9708 = vmatprep.subr.bf16.mxu1 %v9707_v5  ;;  %v594_v36 = vld [vmem:[%s12026_s11 + $0x388] sm:$0xff]  ;;  %v9717_v38 = vpack.c.bf16 %v528_v32, %v527_v30  ;;  %v545_v40 = vld [vmem:[%s12026_s11 + $0x200] sm:$0xff]  ;;  %v563_v45 = vld [vmem:[%s12026_s11 + $0x290] sm:$0xff] }
  0x54   : > { %v546_v41 = vld [vmem:[%s12026_s11 + $0x208] sm:$0xff]  ;;  %v577_v42 = vld [vmem:[%s12026_s11 + $0x300] sm:$0xff]  ;;  %v9751_v43 = vpack.c.bf16 %v594_v36, %v593_v35  ;;  %v564_v46 = vld [vmem:[%s12026_s11 + $0x298] sm:$0xff] }
  0x55   : > { %9678 = vmatpush3.bf16.msra.mxu0 %v9677_v11  ;;  %v578_v44 = vld [vmem:[%s12026_s11 + $0x308] sm:$0xff]  ;;  %v595_v47 = vld [vmem:[%s12026_s11 + $0x390] sm:$0xff]  ;;  %v596_v48 = vld [vmem:[%s12026_s11 + $0x398] sm:$0xff]  ;;  %v9721_v51 = vpack.c.bf16 %v546_v41, %v545_v40  ;;  %v9723_v53 = vpack.c.bf16 %v564_v46, %v563_v45 }
  0x56   : > { %9710 = vmatpush3.bf16.msra.mxu1 %v9709_v14  ;;  %9680 = vmatprep.subr.bf16.mxu0 %v9679_v15  ;;  %v353_v49 = vld [vmem:[%s12036_s23] sm:$0xff]  ;;  %v355_v50 = vld [vmem:[%s12036_s23 + $0x10] sm:$0xff]  ;;  %v9753_v52 = vpack.c.bf16 %v578_v44, %v577_v42  ;;  %v547_v54 = vld [vmem:[%s12026_s11 + $0x210] sm:$0xff]  ;;  %v9755_v57 = vpack.c.bf16 %v596_v48, %v595_v47 }
  0x57   : > { %9712 = vmatprep.subr.bf16.mxu1 %v9711_v19  ;;  %v548_v55 = vld [vmem:[%s12026_s11 + $0x218] sm:$0xff]  ;;  %v579_v56 = vld [vmem:[%s12026_s11 + $0x310] sm:$0xff]  ;;  %v565_v59 = vld [vmem:[%s12026_s11 + $0x2a0] sm:$0xff] }
  0x58   : > { %v580_v58 = vld [vmem:[%s12026_s11 + $0x318] sm:$0xff]  ;;  %v566_v60 = vld [vmem:[%s12026_s11 + $0x2a8] sm:$0xff]  ;;  %v597_v61 = vld [vmem:[%s12026_s11 + $0x3a0] sm:$0xff]  ;;  %v9725_v63 = vpack.c.bf16 %v548_v55, %v547_v54 }
  0x59   : > { %9682 = vmatpush3.bf16.msra.mxu0 %v9681_v25  ;;  %v598_v62 = vld [vmem:[%s12026_s11 + $0x3a8] sm:$0xff]  ;;  %v9757_v0 = vpack.c.bf16 %v580_v58, %v579_v56  ;;  %v9727_v1 = vpack.c.bf16 %v566_v60, %v565_v59  ;;  %v549_v2 = vld [vmem:[%s12026_s11 + $0x220] sm:$0xff]  ;;  %v567_v7 = vld [vmem:[%s12026_s11 + $0x2b0] sm:$0xff] }
  0x5a   : > { %9714 = vmatpush3.bf16.msra.mxu1 %v9713_v26  ;;  %9684 = vmatprep.subr.bf16.mxu0 %v9683_v27  ;;  %v550_v3 = vld [vmem:[%s12026_s11 + $0x228] sm:$0xff]  ;;  %v581_v4 = vld [vmem:[%s12026_s11 + $0x320] sm:$0xff]  ;;  %v9759_v5 = vpack.c.bf16 %v598_v62, %v597_v61  ;;  %v568_v8 = vld [vmem:[%s12026_s11 + $0x2b8] sm:$0xff] }
  0x5b   : > { %9716 = vmatprep.subr.bf16.mxu1 %v9715_v31  ;;  %v582_v6 = vld [vmem:[%s12026_s11 + $0x328] sm:$0xff]  ;;  %v599_v9 = vld [vmem:[%s12026_s11 + $0x3b0] sm:$0xff]  ;;  %v600_v10 = vld [vmem:[%s12026_s11 + $0x3b8] sm:$0xff]  ;;  %v9729_v11 = vpack.c.bf16 %v550_v3, %v549_v2  ;;  %v9731_v13 = vpack.c.bf16 %v568_v8, %v567_v7 }
  0x5c   : > { %v9761_v12 = vpack.c.bf16 %v582_v6, %v581_v4  ;;  %v551_v14 = vld [vmem:[%s12026_s11 + $0x230] sm:$0xff]  ;;  %v552_v15 = vld [vmem:[%s12026_s11 + $0x238] sm:$0xff]  ;;  %v9763_v17 = vpack.c.bf16 %v600_v10, %v599_v9  ;;  %v569_v19 = vld [vmem:[%s12026_s11 + $0x2c0] sm:$0xff] }
  0x5d   : > { %9686 = vmatpush3.bf16.msra.mxu0 %v9685_v37  ;;  %v583_v16 = vld [vmem:[%s12026_s11 + $0x330] sm:$0xff]  ;;  %v584_v18 = vld [vmem:[%s12026_s11 + $0x338] sm:$0xff]  ;;  %v570_v20 = vld [vmem:[%s12026_s11 + $0x2c8] sm:$0xff]  ;;  %v9733_v23 = vpack.c.bf16 %v552_v15, %v551_v14 }
  0x5e   : > { %9718 = vmatpush3.bf16.msra.mxu1 %v9717_v38  ;;  %9720 = vmatprep.subr.bf16.mxu0 %v9719_v39  ;;  %v601_v21 = vld [vmem:[%s12026_s11 + $0x3c0] sm:$0xff]  ;;  %v602_v22 = vld [vmem:[%s12026_s11 + $0x3c8] sm:$0xff]  ;;  %v9765_v26 = vpack.c.bf16 %v584_v18, %v583_v16  ;;  %v9735_v27 = vpack.c.bf16 %v570_v20, %v569_v19  ;;  %v360_v30 = vld [vmem:[%s12036_s23 + $0x38] sm:$0xff] }
  0x5f   : > { %9752 = vmatprep.subr.bf16.mxu1 %v9751_v43  ;;  %v553_v24 = vld [vmem:[%s12026_s11 + $0x240] sm:$0xff]  ;;  %v554_v28 = vld [vmem:[%s12026_s11 + $0x248] sm:$0xff]  ;;  %v9767_v31 = vpack.c.bf16 %v602_v22, %v601_v21  ;;  %v571_v33 = vld [vmem:[%s12026_s11 + $0x2d0] sm:$0xff] }
  0x60   : > { %2594 = vmatmul.mubr.f32.vlgmr.msra.gmra.mrb[0].mxu0 %v353_v49  ;;  %v358_v25 = vld [vmem:[%s12036_s23 + $0x28] sm:$0xff]  ;;  %v586_v32 = vld [vmem:[%s12026_s11 + $0x348] sm:$0xff]  ;;  %v572_v34 = vld [vmem:[%s12026_s11 + $0x2d8] sm:$0xff]  ;;  %v9737_v37 = vpack.c.bf16 %v554_v28, %v553_v24 }
  0x61   : > { %2664 = vmatmul.mubr.f32.vlgmr.msra.gmra.mrb[0].mxu1 %v355_v50  ;;  %9722 = vmatpush3.bf16.msra.mxu0 %v9721_v51  ;;  %v585_v29 = vld [vmem:[%s12026_s11 + $0x340] sm:$0xff]  ;;  %v603_v35 = vld [vmem:[%s12026_s11 + $0x3d0] sm:$0xff]  ;;  %v604_v36 = vld [vmem:[%s12026_s11 + $0x3d8] sm:$0xff]  ;;  %v9739_v39 = vpack.c.bf16 %v572_v34, %v571_v33 }
  0x62   : > { %9754 = vmatpush3.bf16.msra.mxu1 %v9753_v52  ;;  %9724 = vmatprep.subr.bf16.mxu0 %v9723_v53  ;;  %v9769_v38 = vpack.c.bf16 %v586_v32, %v585_v29  ;;  %v555_v40 = vld [vmem:[%s12026_s11 + $0x250] sm:$0xff]  ;;  %v556_v41 = vld [vmem:[%s12026_s11 + $0x258] sm:$0xff]  ;;  %v9771_v43 = vpack.c.bf16 %v604_v36, %v603_v35  ;;  %v573_v45 = vld [vmem:[%s12026_s11 + $0x2e0] sm:$0xff] }
  0x63   : > { %9756 = vmatprep.subr.bf16.mxu1 %v9755_v57  ;;  %2733 = vmatprep.mubr.f32.mxu0 %v358_v25  ;;  %v587_v42 = vld [vmem:[%s12026_s11 + $0x350] sm:$0xff]  ;;  %v588_v44 = vld [vmem:[%s12026_s11 + $0x358] sm:$0xff]  ;;  %v574_v46 = vld [vmem:[%s12026_s11 + $0x2e8] sm:$0xff]  ;;  %v9741_v49 = vpack.c.bf16 %v556_v41, %v555_v40 }
  0x64   : > { %2803 = vmatprep.mubr.f32.mxu1 %v360_v30  ;;  %v605_v47 = vld [vmem:[%s12026_s11 + $0x3e0] sm:$0xff]  ;;  %v606_v48 = vld [vmem:[%s12026_s11 + $0x3e8] sm:$0xff]  ;;  %v9773_v50 = vpack.c.bf16 %v588_v44, %v587_v42  ;;  %v9743_v51 = vpack.c.bf16 %v574_v46, %v573_v45  ;;  %v575_v57 = vld [vmem:[%s12026_s11 + $0x2f0] sm:$0xff] }
  0x65   : > { %9726 = vmatpush3.bf16.msra.mxu0 %v9725_v63  ;;  %v557_v52 = vld [vmem:[%s12026_s11 + $0x260] sm:$0xff]  ;;  %v558_v53 = vld [vmem:[%s12026_s11 + $0x268] sm:$0xff]  ;;  %v9775_v55 = vpack.c.bf16 %v606_v48, %v605_v47  ;;  %v576_v58 = vld [vmem:[%s12026_s11 + $0x2f8] sm:$0xff] }
  0x66   : > { %9758 = vmatpush3.bf16.msra.mxu1 %v9757_v0  ;;  %9728 = vmatprep.subr.bf16.mxu0 %v9727_v1  ;;  %v589_v54 = vld [vmem:[%s12026_s11 + $0x360] sm:$0xff]  ;;  %v590_v56 = vld [vmem:[%s12026_s11 + $0x368] sm:$0xff]  ;;  %v607_v59 = vld [vmem:[%s12026_s11 + $0x3f0] sm:$0xff]  ;;  %v9745_v61 = vpack.c.bf16 %v558_v53, %v557_v52  ;;  %v9747_v63 = vpack.c.bf16 %v576_v58, %v575_v57 }
  0x67   : > { %9760 = vmatprep.subr.bf16.mxu1 %v9759_v5  ;;  %v608_v60 = vld [vmem:[%s12026_s11 + $0x3f8] sm:$0xff]  ;;  %v9777_v62 = vpack.c.bf16 %v590_v56, %v589_v54  ;;  %v559_v0 = vld [vmem:[%s12026_s11 + $0x270] sm:$0xff]  ;;  %v625_v5 = vld [vmem:[%s12026_s11 + $0x480] sm:$0xff] }
  0x68   : > { %v560_v1 = vld [vmem:[%s12026_s11 + $0x278] sm:$0xff]  ;;  %v591_v2 = vld [vmem:[%s12026_s11 + $0x370] sm:$0xff]  ;;  %v9779_v3 = vpack.c.bf16 %v608_v60, %v607_v59  ;;  %v626_v6 = vld [vmem:[%s12026_s11 + $0x488] sm:$0xff] }
  0x69   : > { %9730 = vmatpush3.bf16.msra.mxu0 %v9729_v11  ;;  %v592_v4 = vld [vmem:[%s12026_s11 + $0x378] sm:$0xff]  ;;  %v657_v7 = vld [vmem:[%s12026_s11 + $0x580] sm:$0xff]  ;;  %v658_v8 = vld [vmem:[%s12026_s11 + $0x588] sm:$0xff]  ;;  %v9749_v9 = vpack.c.bf16 %v560_v1, %v559_v0  ;;  %v9783_v11 = vpack.c.bf16 %v626_v6, %v625_v5 }
  0x6a   : > { %9762 = vmatpush3.bf16.msra.mxu1 %v9761_v12  ;;  %9732 = vmatprep.subr.bf16.mxu0 %v9731_v13  ;;  %v9781_v10 = vpack.c.bf16 %v592_v4, %v591_v2  ;;  %v609_v12 = vld [vmem:[%s12026_s11 + $0x400] sm:$0xff]  ;;  %v610_v13 = vld [vmem:[%s12026_s11 + $0x408] sm:$0xff]  ;;  %v9815_v15 = vpack.c.bf16 %v658_v8, %v657_v7  ;;  %v628_v18 = vld [vmem:[%s12026_s11 + $0x498] sm:$0xff] }
  0x6b   : > { %9764 = vmatprep.subr.bf16.mxu1 %v9763_v17  ;;  %v641_v14 = vld [vmem:[%s12026_s11 + $0x500] sm:$0xff]  ;;  %v642_v16 = vld [vmem:[%s12026_s11 + $0x508] sm:$0xff]  ;;  %v627_v17 = vld [vmem:[%s12026_s11 + $0x490] sm:$0xff]  ;;  %v9785_v22 = vpack.c.bf16 %v610_v13, %v609_v12 }
  0x6c   : > { %v659_v19 = vld [vmem:[%s12026_s11 + $0x590] sm:$0xff]  ;;  %v660_v20 = vld [vmem:[%s12026_s11 + $0x598] sm:$0xff]  ;;  %v9817_v24 = vpack.c.bf16 %v642_v16, %v641_v14  ;;  %v9787_v25 = vpack.c.bf16 %v628_v18, %v627_v17  ;;  %v630_v32 = vld [vmem:[%s12026_s11 + $0x4a8] sm:$0xff] }
  0x6d   : > { %9734 = vmatpush3.bf16.msra.mxu0 %v9733_v23  ;;  %v357_v21 = vld [vmem:[%s12036_s23 + $0x20] sm:$0xff]  ;;  %v359_v23 = vld [vmem:[%s12036_s23 + $0x30] sm:$0xff]  ;;  %v643_v28 = vld [vmem:[%s12026_s11 + $0x510] sm:$0xff]  ;;  %v9819_v29 = vpack.c.bf16 %v660_v20, %v659_v19 }
  0x6e   : > { %9766 = vmatpush3.bf16.msra.mxu1 %v9765_v26  ;;  %9736 = vmatprep.subr.bf16.mxu0 %v9735_v27  ;;  %v611_v26 = vld [vmem:[%s12026_s11 + $0x410] sm:$0xff]  ;;  %v612_v27 = vld [vmem:[%s12026_s11 + $0x418] sm:$0xff]  ;;  %v661_v33 = vld [vmem:[%s12026_s11 + $0x5a0] sm:$0xff] }
  0x6f   : > { %9768 = vmatprep.subr.bf16.mxu1 %v9767_v31  ;;  %v644_v30 = vld [vmem:[%s12026_s11 + $0x518] sm:$0xff]  ;;  %v629_v31 = vld [vmem:[%s12026_s11 + $0x4a0] sm:$0xff]  ;;  %v662_v34 = vld [vmem:[%s12026_s11 + $0x5a8] sm:$0xff]  ;;  %v9789_v36 = vpack.c.bf16 %v612_v27, %v611_v26 }
  0x70   : > { %v362_v35 = vld [vmem:[%s12036_s23 + $0x48] sm:$0xff]  ;;  %v614_v41 = vld [vmem:[%s12026_s11 + $0x428] sm:$0xff]  ;;  %v631_v45 = vld [vmem:[%s12026_s11 + $0x4b0] sm:$0xff] }
  0x71   : > { %9738 = vmatpush3.bf16.msra.mxu0 %v9737_v37  ;;  %v364_v37 = vld [vmem:[%s12036_s23 + $0x58] sm:$0xff]  ;;  %v613_v40 = vld [vmem:[%s12026_s11 + $0x420] sm:$0xff]  ;;  %v646_v44 = vld [vmem:[%s12026_s11 + $0x528] sm:$0xff] }
  0x72   : > { %9770 = vmatpush3.bf16.msra.mxu1 %v9769_v38  ;;  %9740 = vmatprep.subr.bf16.mxu0 %v9739_v39  ;;  %v9821_v38 = vpack.c.bf16 %v644_v30, %v643_v28  ;;  %v9791_v39 = vpack.c.bf16 %v630_v32, %v629_v31  ;;  %v645_v42 = vld [vmem:[%s12026_s11 + $0x520] sm:$0xff]  ;;  %v632_v46 = vld [vmem:[%s12026_s11 + $0x4b8] sm:$0xff]  ;;  %v663_v47 = vld [vmem:[%s12026_s11 + $0x5b0] sm:$0xff] }
  0x73   : > { %9772 = vmatprep.subr.bf16.mxu1 %v9771_v43  ;;  %v9823_v43 = vpack.c.bf16 %v662_v34, %v661_v33  ;;  %v664_v48 = vld [vmem:[%s12026_s11 + $0x5b8] sm:$0xff]  ;;  %v615_v52 = vld [vmem:[%s12026_s11 + $0x430] sm:$0xff]  ;;  %v633_v57 = vld [vmem:[%s12026_s11 + $0x4c0] sm:$0xff] }
  0x74   : > { %v616_v53 = vld [vmem:[%s12026_s11 + $0x438] sm:$0xff]  ;;  %v647_v54 = vld [vmem:[%s12026_s11 + $0x530] sm:$0xff]  ;;  %v634_v58 = vld [vmem:[%s12026_s11 + $0x4c8] sm:$0xff] }
  0x75   : > { %9742 = vmatpush3.bf16.msra.mxu0 %v9741_v49  ;;  %v9793_v49 = vpack.c.bf16 %v614_v41, %v613_v40  ;;  %v648_v56 = vld [vmem:[%s12026_s11 + $0x538] sm:$0xff]  ;;  %v665_v59 = vld [vmem:[%s12026_s11 + $0x5c0] sm:$0xff]  ;;  %v666_v60 = vld [vmem:[%s12026_s11 + $0x5c8] sm:$0xff] }
  0x76   : > { %9774 = vmatpush3.bf16.msra.mxu1 %v9773_v50  ;;  %9744 = vmatprep.subr.bf16.mxu0 %v9743_v51  ;;  %v9825_v50 = vpack.c.bf16 %v646_v44, %v645_v42  ;;  %v9795_v51 = vpack.c.bf16 %v632_v46, %v631_v45  ;;  %v617_v0 = vld [vmem:[%s12026_s11 + $0x440] sm:$0xff]  ;;  %v618_v1 = vld [vmem:[%s12026_s11 + $0x448] sm:$0xff]  ;;  %v635_v5 = vld [vmem:[%s12026_s11 + $0x4d0] sm:$0xff] }
  0x77   : > { %9776 = vmatprep.subr.bf16.mxu1 %v9775_v55  ;;  %v9827_v55 = vpack.c.bf16 %v664_v48, %v663_v47  ;;  %v649_v2 = vld [vmem:[%s12026_s11 + $0x540] sm:$0xff]  ;;  %v650_v4 = vld [vmem:[%s12026_s11 + $0x548] sm:$0xff]  ;;  %v636_v6 = vld [vmem:[%s12026_s11 + $0x4d8] sm:$0xff] }
  0x78   : > { %v667_v7 = vld [vmem:[%s12026_s11 + $0x5d0] sm:$0xff]  ;;  %v668_v8 = vld [vmem:[%s12026_s11 + $0x5d8] sm:$0xff]  ;;  %v637_v17 = vld [vmem:[%s12026_s11 + $0x4e0] sm:$0xff] }
  0x79   : > { %9746 = vmatpush3.bf16.msra.mxu0 %v9745_v61  ;;  %v9797_v61 = vpack.c.bf16 %v616_v53, %v615_v52  ;;  %v619_v12 = vld [vmem:[%s12026_s11 + $0x450] sm:$0xff]  ;;  %v620_v13 = vld [vmem:[%s12026_s11 + $0x458] sm:$0xff]  ;;  %v638_v18 = vld [vmem:[%s12026_s11 + $0x4e8] sm:$0xff] }
  0x7a   : > { %9778 = vmatpush3.bf16.msra.mxu1 %v9777_v62  ;;  %9748 = vmatprep.subr.bf16.mxu0 %v9747_v63  ;;  %v9829_v62 = vpack.c.bf16 %v648_v56, %v647_v54  ;;  %v9799_v63 = vpack.c.bf16 %v634_v58, %v633_v57  ;;  %v651_v14 = vld [vmem:[%s12026_s11 + $0x550] sm:$0xff]  ;;  %v652_v16 = vld [vmem:[%s12026_s11 + $0x558] sm:$0xff]  ;;  %v669_v19 = vld [vmem:[%s12026_s11 + $0x5e0] sm:$0xff] }
  0x7b   : > { %9780 = vmatprep.subr.bf16.mxu1 %v9779_v3  ;;  %v9831_v3 = vpack.c.bf16 %v666_v60, %v665_v59  ;;  %v670_v20 = vld [vmem:[%s12026_s11 + $0x5e8] sm:$0xff]  ;;  %v653_v26 = vld [vmem:[%s12026_s11 + $0x560] sm:$0xff]  ;;  %v640_v30 = vld [vmem:[%s12026_s11 + $0x4f8] sm:$0xff] }
  0x7c   : > { %v9839_v27 = vpack.c.bf16 %v670_v20, %v669_v19  ;;  %v654_v28 = vld [vmem:[%s12026_s11 + $0x568] sm:$0xff]  ;;  %v671_v31 = vld [vmem:[%s12026_s11 + $0x5f0] sm:$0xff]  ;;  %v672_v32 = vld [vmem:[%s12026_s11 + $0x5f8] sm:$0xff] }
  0x7d   : > { %9750 = vmatpush3.bf16.msra.mxu0 %v9749_v9  ;;  %v9801_v9 = vpack.c.bf16 %v618_v1, %v617_v0  ;;  %v9841_v34 = vpack.c.bf16 %v654_v28, %v653_v26  ;;  %v656_v40 = vld [vmem:[%s12026_s11 + $0x578] sm:$0xff]  ;;  %v689_v41 = vld [vmem:[%s12026_s11 + $0x680] sm:$0xff]  ;;  %v690_v42 = vld [vmem:[%s12026_s11 + $0x688] sm:$0xff] }
  0x7e   : > { %9782 = vmatpush3.bf16.msra.mxu1 %v9781_v10  ;;  %9784 = vmatprep.subr.bf16.mxu0 %v9783_v11  ;;  %v9833_v10 = vpack.c.bf16 %v650_v4, %v649_v2  ;;  %v9803_v11 = vpack.c.bf16 %v636_v6, %v635_v5  ;;  %v722_v44 = vld [vmem:[%s12026_s11 + $0x788] sm:$0xff]  ;;  %v9847_v47 = vpack.c.bf16 %v690_v42, %v689_v41  ;;  %v673_v48 = vld [vmem:[%s12026_s11 + $0x600] sm:$0xff]  ;;  %v691_v53 = vld [vmem:[%s12026_s11 + $0x690] sm:$0xff] }
  0x7f   : > { %9816 = vmatprep.subr.bf16.mxu1 %v9815_v15  ;;  %v9835_v15 = vpack.c.bf16 %v668_v8, %v667_v7  ;;  %v706_v52 = vld [vmem:[%s12026_s11 + $0x708] sm:$0xff]  ;;  %v692_v54 = vld [vmem:[%s12026_s11 + $0x698] sm:$0xff]  ;;  %v707_v0 = vld [vmem:[%s12026_s11 + $0x710] sm:$0xff] }
  0x80   : > { %2734 = vmatmul.mubr.f32.vlgmr.msra.gmra.mrb[2].mxu0 %v357_v21  ;;  %v9805_v21 = vpack.c.bf16 %v620_v13, %v619_v12  ;;  %v724_v56 = vld [vmem:[%s12026_s11 + $0x798] sm:$0xff]  ;;  %v363_v59 = vld [vmem:[%s12036_s23 + $0x50] sm:$0xff]  ;;  %v725_v5 = vld [vmem:[%s12026_s11 + $0x7a0] sm:$0xff] }
  0x81   : > { %9786 = vmatpush3.bf16.msra.mxu0 %v9785_v22  ;;  %2804 = vmatmul.mubr.f32.vlgmr.msra.gmra.mrb[2].mxu1 %v359_v23  ;;  %v9837_v22 = vpack.c.bf16 %v652_v16, %v651_v14  ;;  %v9807_v23 = vpack.c.bf16 %v638_v18, %v637_v17  ;;  %v361_v57 = vld [vmem:[%s12036_s23 + $0x40] sm:$0xff]  ;;  %v694_v4 = vld [vmem:[%s12026_s11 + $0x6a8] sm:$0xff]  ;;  %v366_v7 = vld [vmem:[%s12036_s23 + $0x68] sm:$0xff] }
  0x82   : > { %9818 = vmatpush3.bf16.msra.mxu1 %v9817_v24  ;;  %9788 = vmatprep.subr.bf16.mxu0 %v9787_v25  ;;  %v621_v24 = vld [vmem:[%s12026_s11 + $0x460] sm:$0xff]  ;;  %v622_v25 = vld [vmem:[%s12026_s11 + $0x468] sm:$0xff]  ;;  %v708_v2 = vld [vmem:[%s12026_s11 + $0x718] sm:$0xff] }
  0x83   : > { %9820 = vmatprep.subr.bf16.mxu1 %v9819_v29  ;;  %2873 = vmatprep.mubr.f32.mxu0 %v362_v35  ;;  %v639_v29 = vld [vmem:[%s12026_s11 + $0x4f0] sm:$0xff]  ;;  %v9809_v33 = vpack.c.bf16 %v622_v25, %v621_v24  ;;  %v726_v6 = vld [vmem:[%s12026_s11 + $0x7a8] sm:$0xff]  ;;  %v677_v12 = vld [vmem:[%s12026_s11 + $0x620] sm:$0xff] }
  0x84   : > { %2943 = vmatprep.mubr.f32.mxu1 %v364_v37  ;;  %v9811_v35 = vpack.c.bf16 %v640_v30, %v639_v29  ;;  %v624_v37 = vld [vmem:[%s12026_s11 + $0x478] sm:$0xff]  ;;  %v678_v13 = vld [vmem:[%s12026_s11 + $0x628] sm:$0xff]  ;;  %v709_v14 = vld [vmem:[%s12026_s11 + $0x720] sm:$0xff] }
  0x85   : > { %9790 = vmatpush3.bf16.msra.mxu0 %v9789_v36  ;;  %v623_v36 = vld [vmem:[%s12026_s11 + $0x470] sm:$0xff]  ;;  %v710_v16 = vld [vmem:[%s12026_s11 + $0x728] sm:$0xff]  ;;  %v696_v18 = vld [vmem:[%s12026_s11 + $0x6b8] sm:$0xff] }
  0x86   : > { %9822 = vmatpush3.bf16.msra.mxu1 %v9821_v38  ;;  %9792 = vmatprep.subr.bf16.mxu0 %v9791_v39  ;;  %v655_v38 = vld [vmem:[%s12026_s11 + $0x570] sm:$0xff]  ;;  %v9843_v39 = vpack.c.bf16 %v672_v32, %v671_v31  ;;  %v9813_v45 = vpack.c.bf16 %v624_v37, %v623_v36  ;;  %v728_v20 = vld [vmem:[%s12026_s11 + $0x7b8] sm:$0xff]  ;;  %v697_v29 = vld [vmem:[%s12026_s11 + $0x6c0] sm:$0xff] }
  0x87   : > { %9824 = vmatprep.subr.bf16.mxu1 %v9823_v43  ;;  %v721_v43 = vld [vmem:[%s12026_s11 + $0x780] sm:$0xff]  ;;  %v9845_v46 = vpack.c.bf16 %v656_v40, %v655_v38  ;;  %v695_v17 = vld [vmem:[%s12026_s11 + $0x6b0] sm:$0xff]  ;;  %v680_v25 = vld [vmem:[%s12026_s11 + $0x638] sm:$0xff] }
  0x88   : > { %v727_v19 = vld [vmem:[%s12026_s11 + $0x7b0] sm:$0xff]  ;;  %v712_v28 = vld [vmem:[%s12026_s11 + $0x738] sm:$0xff]  ;;  %v698_v30 = vld [vmem:[%s12026_s11 + $0x6c8] sm:$0xff] }
  0x89   : > { %9794 = vmatpush3.bf16.msra.mxu0 %v9793_v49  ;;  %v674_v49 = vld [vmem:[%s12026_s11 + $0x608] sm:$0xff]  ;;  %v679_v24 = vld [vmem:[%s12026_s11 + $0x630] sm:$0xff]  ;;  %v729_v31 = vld [vmem:[%s12026_s11 + $0x7c0] sm:$0xff] }
  0x8a   : > { %9826 = vmatpush3.bf16.msra.mxu1 %v9825_v50  ;;  %9796 = vmatprep.subr.bf16.mxu0 %v9795_v51  ;;  %v705_v50 = vld [vmem:[%s12026_s11 + $0x700] sm:$0xff]  ;;  %v9879_v51 = vpack.c.bf16 %v722_v44, %v721_v43  ;;  %v9849_v58 = vpack.c.bf16 %v674_v49, %v673_v48  ;;  %v711_v26 = vld [vmem:[%s12026_s11 + $0x730] sm:$0xff]  ;;  %v730_v32 = vld [vmem:[%s12026_s11 + $0x7c8] sm:$0xff] }
  0x8b   : > { %9828 = vmatprep.subr.bf16.mxu1 %v9827_v55  ;;  %v723_v55 = vld [vmem:[%s12026_s11 + $0x790] sm:$0xff]  ;;  %v9881_v60 = vpack.c.bf16 %v706_v52, %v705_v50  ;;  %v681_v36 = vld [vmem:[%s12026_s11 + $0x640] sm:$0xff]  ;;  %v682_v37 = vld [vmem:[%s12026_s11 + $0x648] sm:$0xff] }
  0x8c   : > { %v9883_v1 = vpack.c.bf16 %v724_v56, %v723_v55  ;;  %v713_v38 = vld [vmem:[%s12026_s11 + $0x740] sm:$0xff]  ;;  %v714_v40 = vld [vmem:[%s12026_s11 + $0x748] sm:$0xff]  ;;  %v699_v41 = vld [vmem:[%s12026_s11 + $0x6d0] sm:$0xff] }
  0x8d   : > { %9798 = vmatpush3.bf16.msra.mxu0 %v9797_v61  ;;  %v9851_v61 = vpack.c.bf16 %v692_v54, %v691_v53  ;;  %v700_v42 = vld [vmem:[%s12026_s11 + $0x6d8] sm:$0xff]  ;;  %v731_v43 = vld [vmem:[%s12026_s11 + $0x7d0] sm:$0xff]  ;;  %v701_v53 = vld [vmem:[%s12026_s11 + $0x6e0] sm:$0xff] }
  0x8e   : > { %9830 = vmatpush3.bf16.msra.mxu1 %v9829_v62  ;;  %9800 = vmatprep.subr.bf16.mxu0 %v9799_v63  ;;  %v675_v62 = vld [vmem:[%s12026_s11 + $0x610] sm:$0xff]  ;;  %v676_v63 = vld [vmem:[%s12026_s11 + $0x618] sm:$0xff]  ;;  %v702_v54 = vld [vmem:[%s12026_s11 + $0x6e8] sm:$0xff] }
  0x8f   : > { %9832 = vmatprep.subr.bf16.mxu1 %v9831_v3  ;;  %v693_v3 = vld [vmem:[%s12026_s11 + $0x6a0] sm:$0xff]  ;;  %v9853_v8 = vpack.c.bf16 %v676_v63, %v675_v62  ;;  %v732_v44 = vld [vmem:[%s12026_s11 + $0x7d8] sm:$0xff]  ;;  %v683_v48 = vld [vmem:[%s12026_s11 + $0x650] sm:$0xff] }
  0x90   : > { %v684_v49 = vld [vmem:[%s12026_s11 + $0x658] sm:$0xff]  ;;  %v715_v50 = vld [vmem:[%s12026_s11 + $0x750] sm:$0xff]  ;;  %v733_v55 = vld [vmem:[%s12026_s11 + $0x7e0] sm:$0xff] }
  0x91   : > { %9802 = vmatpush3.bf16.msra.mxu0 %v9801_v9  ;;  %v368_v9 = vld [vmem:[%s12036_s23 + $0x78] sm:$0xff]  ;;  %v716_v52 = vld [vmem:[%s12026_s11 + $0x758] sm:$0xff]  ;;  %v734_v56 = vld [vmem:[%s12026_s11 + $0x7e8] sm:$0xff] }
  0x92   : > { %9834 = vmatpush3.bf16.msra.mxu1 %v9833_v10  ;;  %9804 = vmatprep.subr.bf16.mxu0 %v9803_v11  ;;  %v9885_v10 = vpack.c.bf16 %v708_v2, %v707_v0  ;;  %v9855_v11 = vpack.c.bf16 %v694_v4, %v693_v3  ;;  %v717_v62 = vld [vmem:[%s12026_s11 + $0x760] sm:$0xff]  ;;  %v9903_v63 = vpack.c.bf16 %v734_v56, %v733_v55  ;;  %v718_v0 = vld [vmem:[%s12026_s11 + $0x768] sm:$0xff]  ;;  %v704_v2 = vld [vmem:[%s12026_s11 + $0x6f8] sm:$0xff] }
  0x93   : > { %9836 = vmatprep.subr.bf16.mxu1 %v9835_v15  ;;  %v9887_v15 = vpack.c.bf16 %v726_v6, %v725_v5  ;;  %v735_v3 = vld [vmem:[%s12026_s11 + $0x7f0] sm:$0xff]  ;;  %v736_v4 = vld [vmem:[%s12026_s11 + $0x7f8] sm:$0xff]  ;;  %v9905_v6 = vpack.c.bf16 %v718_v0, %v717_v62 }
  0x94   : > { %v791_v55 = vld [vmem:[%s12026_s11 + $0x9b0] sm:$0xff]  ;;  %v792_v56 = vld [vmem:[%s12026_s11 + $0x9b8] sm:$0xff] }
  0x95   : > { %9806 = vmatpush3.bf16.msra.mxu0 %v9805_v21  ;;  %v9857_v21 = vpack.c.bf16 %v678_v13, %v677_v12  ;;  %v720_v12 = vld [vmem:[%s12026_s11 + $0x778] sm:$0xff]  ;;  %v753_v13 = vld [vmem:[%s12026_s11 + $0x880] sm:$0xff]  ;;  %v775_v62 = vld [vmem:[%s12026_s11 + $0x930] sm:$0xff] }
  0x96   : > { %9838 = vmatpush3.bf16.msra.mxu1 %v9837_v22  ;;  %9808 = vmatprep.subr.bf16.mxu0 %v9807_v23  ;;  %v9889_v22 = vpack.c.bf16 %v710_v16, %v709_v14  ;;  %v9859_v23 = vpack.c.bf16 %v696_v18, %v695_v17  ;;  %v754_v14 = vld [vmem:[%s12026_s11 + $0x888] sm:$0xff]  ;;  %v776_v0 = vld [vmem:[%s12026_s11 + $0x938] sm:$0xff] }
  0x97   : > { %9840 = vmatprep.subr.bf16.mxu1 %v9839_v27  ;;  %v9891_v27 = vpack.c.bf16 %v728_v20, %v727_v19  ;;  %v786_v16 = vld [vmem:[%s12026_s11 + $0x988] sm:$0xff]  ;;  %v9911_v19 = vpack.c.bf16 %v754_v14, %v753_v13  ;;  %v737_v20 = vld [vmem:[%s12026_s11 + $0x800] sm:$0xff]  ;;  %v763_v13 = vld [vmem:[%s12026_s11 + $0x8d0] sm:$0xff] }
  0x98   : > { %v764_v14 = vld [vmem:[%s12026_s11 + $0x8d8] sm:$0xff] }
  0x99   : > { %9810 = vmatpush3.bf16.msra.mxu0 %v9809_v33  ;;  %v9861_v33 = vpack.c.bf16 %v680_v25, %v679_v24  ;;  %v770_v24 = vld [vmem:[%s12026_s11 + $0x908] sm:$0xff]  ;;  %v755_v25 = vld [vmem:[%s12026_s11 + $0x890] sm:$0xff] }
  0x9a   : > { %9842 = vmatpush3.bf16.msra.mxu1 %v9841_v34  ;;  %9812 = vmatprep.subr.bf16.mxu0 %v9811_v35  ;;  %v9893_v34 = vpack.c.bf16 %v712_v28, %v711_v26  ;;  %v9863_v35 = vpack.c.bf16 %v698_v30, %v697_v29  ;;  %v756_v26 = vld [vmem:[%s12026_s11 + $0x898] sm:$0xff] }
  0x9b   : > { %9844 = vmatprep.subr.bf16.mxu1 %v9843_v39  ;;  %v9895_v39 = vpack.c.bf16 %v730_v32, %v729_v31  ;;  %v788_v28 = vld [vmem:[%s12026_s11 + $0x998] sm:$0xff]  ;;  %v367_v31 = vld [vmem:[%s12036_s23 + $0x70] sm:$0xff] }
  0x9c   : > { %v365_v29 = vld [vmem:[%s12036_s23 + $0x60] sm:$0xff] }
  0x9d   : > { %9814 = vmatpush3.bf16.msra.mxu0 %v9813_v45  ;;  %v9865_v45 = vpack.c.bf16 %v682_v37, %v681_v36  ;;  %v771_v36 = vld [vmem:[%s12026_s11 + $0x910] sm:$0xff] }
  0x9e   : > { %9846 = vmatpush3.bf16.msra.mxu1 %v9845_v46  ;;  %9848 = vmatprep.subr.bf16.mxu0 %v9847_v47  ;;  %v9897_v46 = vpack.c.bf16 %v714_v40, %v713_v38  ;;  %v9867_v47 = vpack.c.bf16 %v700_v42, %v699_v41  ;;  %v772_v38 = vld [vmem:[%s12026_s11 + $0x918] sm:$0xff]  ;;  %v758_v40 = vld [vmem:[%s12026_s11 + $0x8a8] sm:$0xff]  ;;  %v789_v41 = vld [vmem:[%s12026_s11 + $0x9a0] sm:$0xff] }
  0x9f   : > { %9880 = vmatprep.subr.bf16.mxu1 %v9879_v51  ;;  %v9899_v51 = vpack.c.bf16 %v732_v44, %v731_v43  ;;  %v790_v42 = vld [vmem:[%s12026_s11 + $0x9a8] sm:$0xff]  ;;  %v370_v43 = vld [vmem:[%s12036_s23 + $0x88] sm:$0xff] }
  0xa0   : > { %2874 = vmatmul.mubr.f32.vlgmr.msra.gmra.mrb[4].mxu0 %v361_v57  ;;  %v9869_v57 = vpack.c.bf16 %v684_v49, %v683_v48  ;;  %v741_v48 = vld [vmem:[%s12026_s11 + $0x820] sm:$0xff]  ;;  %v742_v49 = vld [vmem:[%s12026_s11 + $0x828] sm:$0xff] }
  0xa1   : > { %9850 = vmatpush3.bf16.msra.mxu0 %v9849_v58  ;;  %2944 = vmatmul.mubr.f32.vlgmr.msra.gmra.mrb[4].mxu1 %v363_v59  ;;  %v9901_v58 = vpack.c.bf16 %v716_v52, %v715_v50  ;;  %v9871_v59 = vpack.c.bf16 %v702_v54, %v701_v53  ;;  %v773_v50 = vld [vmem:[%s12026_s11 + $0x920] sm:$0xff]  ;;  %v774_v52 = vld [vmem:[%s12026_s11 + $0x928] sm:$0xff]  ;;  %v759_v53 = vld [vmem:[%s12026_s11 + $0x8b0] sm:$0xff] }
  0xa2   : > { %9882 = vmatpush3.bf16.msra.mxu1 %v9881_v60  ;;  %9852 = vmatprep.subr.bf16.mxu0 %v9851_v61  ;;  %v685_v60 = vld [vmem:[%s12026_s11 + $0x660] sm:$0xff]  ;;  %v686_v61 = vld [vmem:[%s12026_s11 + $0x668] sm:$0xff]  ;;  %v760_v54 = vld [vmem:[%s12026_s11 + $0x8b8] sm:$0xff] }
  0xa3   : > { %9884 = vmatprep.subr.bf16.mxu1 %v9883_v1  ;;  %3013 = vmatprep.mubr.f32.mxu0 %v366_v7  ;;  %v703_v1 = vld [vmem:[%s12026_s11 + $0x6f0] sm:$0xff]  ;;  %v9873_v5 = vpack.c.bf16 %v686_v61, %v685_v60  ;;  %v744_v61 = vld [vmem:[%s12026_s11 + $0x838] sm:$0xff] }
  0xa4   : > { %3083 = vmatprep.mubr.f32.mxu1 %v368_v9  ;;  %v9875_v7 = vpack.c.bf16 %v704_v2, %v703_v1  ;;  %v688_v9 = vld [vmem:[%s12026_s11 + $0x678] sm:$0xff]  ;;  %v743_v60 = vld [vmem:[%s12026_s11 + $0x830] sm:$0xff]  ;;  %v761_v1 = vld [vmem:[%s12026_s11 + $0x8c0] sm:$0xff] }
  0xa5   : > { %9854 = vmatpush3.bf16.msra.mxu0 %v9853_v8  ;;  %v687_v8 = vld [vmem:[%s12026_s11 + $0x670] sm:$0xff]  ;;  %v762_v2 = vld [vmem:[%s12026_s11 + $0x8c8] sm:$0xff] }
  0xa6   : > { %9886 = vmatpush3.bf16.msra.mxu1 %v9885_v10  ;;  %9856 = vmatprep.subr.bf16.mxu0 %v9855_v11  ;;  %v719_v10 = vld [vmem:[%s12026_s11 + $0x770] sm:$0xff]  ;;  %v9907_v11 = vpack.c.bf16 %v736_v4, %v735_v3  ;;  %v9877_v17 = vpack.c.bf16 %v688_v9, %v687_v8  ;;  %v793_v3 = vld [vmem:[%s12026_s11 + $0x9c0] sm:$0xff]  ;;  %v794_v4 = vld [vmem:[%s12026_s11 + $0x9c8] sm:$0xff] }
  0xa7   : > { %9888 = vmatprep.subr.bf16.mxu1 %v9887_v15  ;;  %v785_v15 = vld [vmem:[%s12026_s11 + $0x980] sm:$0xff]  ;;  %v9909_v18 = vpack.c.bf16 %v720_v12, %v719_v10  ;;  %v746_v9 = vld [vmem:[%s12026_s11 + $0x848] sm:$0xff] }
  0xa8   : > { %v745_v8 = vld [vmem:[%s12026_s11 + $0x840] sm:$0xff]  ;;  %v778_v12 = vld [vmem:[%s12026_s11 + $0x948] sm:$0xff] }
  0xa9   : > { %9858 = vmatpush3.bf16.msra.mxu0 %v9857_v21  ;;  %v738_v21 = vld [vmem:[%s12026_s11 + $0x808] sm:$0xff]  ;;  %v777_v10 = vld [vmem:[%s12026_s11 + $0x940] sm:$0xff] }
  0xaa   : > { %9890 = vmatpush3.bf16.msra.mxu1 %v9889_v22  ;;  %9860 = vmatprep.subr.bf16.mxu0 %v9859_v23  ;;  %v769_v22 = vld [vmem:[%s12026_s11 + $0x900] sm:$0xff]  ;;  %v9943_v23 = vpack.c.bf16 %v786_v16, %v785_v15  ;;  %v9913_v30 = vpack.c.bf16 %v738_v21, %v737_v20  ;;  %v795_v15 = vld [vmem:[%s12026_s11 + $0x9d0] sm:$0xff]  ;;  %v796_v16 = vld [vmem:[%s12026_s11 + $0x9d8] sm:$0xff] }
  0xab   : > { %9892 = vmatprep.subr.bf16.mxu1 %v9891_v27  ;;  %v787_v27 = vld [vmem:[%s12026_s11 + $0x990] sm:$0xff]  ;;  %v9945_v32 = vpack.c.bf16 %v770_v24, %v769_v22  ;;  %v748_v21 = vld [vmem:[%s12026_s11 + $0x858] sm:$0xff] }
  0xac   : > { %v9947_v37 = vpack.c.bf16 %v788_v28, %v787_v27  ;;  %v747_v20 = vld [vmem:[%s12026_s11 + $0x850] sm:$0xff]  ;;  %v780_v24 = vld [vmem:[%s12026_s11 + $0x958] sm:$0xff]  ;;  %v797_v27 = vld [vmem:[%s12026_s11 + $0x9e0] sm:$0xff] }
  0xad   : > { %9862 = vmatpush3.bf16.msra.mxu0 %v9861_v33  ;;  %v9915_v33 = vpack.c.bf16 %v756_v26, %v755_v25  ;;  %v779_v22 = vld [vmem:[%s12026_s11 + $0x950] sm:$0xff]  ;;  %v765_v25 = vld [vmem:[%s12026_s11 + $0x8e0] sm:$0xff]  ;;  %v766_v26 = vld [vmem:[%s12026_s11 + $0x8e8] sm:$0xff] }
  0xae   : > { %9894 = vmatpush3.bf16.msra.mxu1 %v9893_v34  ;;  %9864 = vmatprep.subr.bf16.mxu0 %v9863_v35  ;;  %v739_v34 = vld [vmem:[%s12026_s11 + $0x810] sm:$0xff]  ;;  %v740_v35 = vld [vmem:[%s12026_s11 + $0x818] sm:$0xff]  ;;  %v798_v28 = vld [vmem:[%s12026_s11 + $0x9e8] sm:$0xff] }
  0xaf   : > { %9896 = vmatprep.subr.bf16.mxu1 %v9895_v39  ;;  %v757_v39 = vld [vmem:[%s12026_s11 + $0x8a0] sm:$0xff]  ;;  %v9917_v44 = vpack.c.bf16 %v740_v35, %v739_v34  ;;  %v9967_v35 = vpack.c.bf16 %v798_v28, %v797_v27  ;;  %v855_v27 = vld [vmem:[%s12026_s11 + $0xbb0] sm:$0xff]  ;;  %v856_v28 = vld [vmem:[%s12026_s11 + $0xbb8] sm:$0xff] }
  0xb0   : > { %v781_v34 = vld [vmem:[%s12026_s11 + $0x960] sm:$0xff] }
  0xb1   : > { %9866 = vmatpush3.bf16.msra.mxu0 %v9865_v45  ;;  %v372_v45 = vld [vmem:[%s12036_s23 + $0x98] sm:$0xff] }
  0xb2   : > { %9898 = vmatpush3.bf16.msra.mxu1 %v9897_v46  ;;  %9868 = vmatprep.subr.bf16.mxu0 %v9867_v47  ;;  %v9949_v46 = vpack.c.bf16 %v772_v38, %v771_v36  ;;  %v9919_v47 = vpack.c.bf16 %v758_v40, %v757_v39  ;;  %v782_v36 = vld [vmem:[%s12026_s11 + $0x968] sm:$0xff]  ;;  %v768_v38 = vld [vmem:[%s12026_s11 + $0x8f8] sm:$0xff]  ;;  %v799_v39 = vld [vmem:[%s12026_s11 + $0x9f0] sm:$0xff] }
  0xb3   : > { %9900 = vmatprep.subr.bf16.mxu1 %v9899_v51  ;;  %v9951_v51 = vpack.c.bf16 %v790_v42, %v789_v41  ;;  %v800_v40 = vld [vmem:[%s12026_s11 + $0x9f8] sm:$0xff]  ;;  %v9969_v42 = vpack.c.bf16 %v782_v36, %v781_v34  ;;  %v839_v34 = vld [vmem:[%s12026_s11 + $0xb30] sm:$0xff] }
  0xb4   : > { %v840_v36 = vld [vmem:[%s12026_s11 + $0xb38] sm:$0xff] }
  0xb5   : > { %9870 = vmatpush3.bf16.msra.mxu0 %v9869_v57  ;;  %v9921_v57 = vpack.c.bf16 %v742_v49, %v741_v48  ;;  %v784_v48 = vld [vmem:[%s12026_s11 + $0x978] sm:$0xff]  ;;  %v817_v49 = vld [vmem:[%s12026_s11 + $0xa80] sm:$0xff] }
  0xb6   : > { %9902 = vmatpush3.bf16.msra.mxu1 %v9901_v58  ;;  %9872 = vmatprep.subr.bf16.mxu0 %v9871_v59  ;;  %v9953_v58 = vpack.c.bf16 %v774_v52, %v773_v50  ;;  %v9923_v59 = vpack.c.bf16 %v760_v54, %v759_v53  ;;  %v818_v50 = vld [vmem:[%s12026_s11 + $0xa88] sm:$0xff] }
  0xb7   : > { %9904 = vmatprep.subr.bf16.mxu1 %v9903_v63  ;;  %v9955_v63 = vpack.c.bf16 %v792_v56, %v791_v55  ;;  %v850_v52 = vld [vmem:[%s12026_s11 + $0xb88] sm:$0xff]  ;;  %v9975_v55 = vpack.c.bf16 %v818_v50, %v817_v49  ;;  %v801_v56 = vld [vmem:[%s12026_s11 + $0xa00] sm:$0xff]  ;;  %v827_v49 = vld [vmem:[%s12026_s11 + $0xad0] sm:$0xff] }
  0xb8   : > { %v828_v50 = vld [vmem:[%s12026_s11 + $0xad8] sm:$0xff] }
  0xb9   : > { %9874 = vmatpush3.bf16.msra.mxu0 %v9873_v5  ;;  %v9925_v5 = vpack.c.bf16 %v744_v61, %v743_v60  ;;  %v834_v60 = vld [vmem:[%s12026_s11 + $0xb08] sm:$0xff]  ;;  %v819_v61 = vld [vmem:[%s12026_s11 + $0xa90] sm:$0xff] }
  0xba   : > { %9906 = vmatpush3.bf16.msra.mxu1 %v9905_v6  ;;  %9876 = vmatprep.subr.bf16.mxu0 %v9875_v7  ;;  %v9957_v6 = vpack.c.bf16 %v776_v0, %v775_v62  ;;  %v9927_v7 = vpack.c.bf16 %v762_v2, %v761_v1  ;;  %v820_v62 = vld [vmem:[%s12026_s11 + $0xa98] sm:$0xff] }
  0xbb   : > { %9908 = vmatprep.subr.bf16.mxu1 %v9907_v11  ;;  %v9959_v11 = vpack.c.bf16 %v794_v4, %v793_v3  ;;  %v852_v0 = vld [vmem:[%s12026_s11 + $0xb98] sm:$0xff]  ;;  %v371_v3 = vld [vmem:[%s12036_s23 + $0x90] sm:$0xff] }
  0xbc   : > { %v369_v1 = vld [vmem:[%s12036_s23 + $0x80] sm:$0xff] }
  0xbd   : > { %9878 = vmatpush3.bf16.msra.mxu0 %v9877_v17  ;;  %v9929_v17 = vpack.c.bf16 %v746_v9, %v745_v8  ;;  %v835_v8 = vld [vmem:[%s12026_s11 + $0xb10] sm:$0xff] }
  0xbe   : > { %9910 = vmatpush3.bf16.msra.mxu1 %v9909_v18  ;;  %9912 = vmatprep.subr.bf16.mxu0 %v9911_v19  ;;  %v9961_v18 = vpack.c.bf16 %v778_v12, %v777_v10  ;;  %v9931_v19 = vpack.c.bf16 %v764_v14, %v763_v13  ;;  %v836_v10 = vld [vmem:[%s12026_s11 + $0xb18] sm:$0xff]  ;;  %v822_v12 = vld [vmem:[%s12026_s11 + $0xaa8] sm:$0xff]  ;;  %v853_v13 = vld [vmem:[%s12026_s11 + $0xba0] sm:$0xff] }
  0xbf   : > { %9944 = vmatprep.subr.bf16.mxu1 %v9943_v23  ;;  %v9963_v23 = vpack.c.bf16 %v796_v16, %v795_v15  ;;  %v854_v14 = vld [vmem:[%s12026_s11 + $0xba8] sm:$0xff]  ;;  %v374_v15 = vld [vmem:[%s12036_s23 + $0xa8] sm:$0xff] }
  0xc0   : > { %3014 = vmatmul.mubr.f32.vlgmr.msra.gmra.mrb[6].mxu0 %v365_v29  ;;  %v9933_v29 = vpack.c.bf16 %v748_v21, %v747_v20  ;;  %v805_v20 = vld [vmem:[%s12026_s11 + $0xa20] sm:$0xff]  ;;  %v806_v21 = vld [vmem:[%s12026_s11 + $0xa28] sm:$0xff] }
  0xc1   : > { %9914 = vmatpush3.bf16.msra.mxu0 %v9913_v30  ;;  %3084 = vmatmul.mubr.f32.vlgmr.msra.gmra.mrb[6].mxu1 %v367_v31  ;;  %v9965_v30 = vpack.c.bf16 %v780_v24, %v779_v22  ;;  %v9935_v31 = vpack.c.bf16 %v766_v26, %v765_v25  ;;  %v837_v22 = vld [vmem:[%s12026_s11 + $0xb20] sm:$0xff]  ;;  %v838_v24 = vld [vmem:[%s12026_s11 + $0xb28] sm:$0xff]  ;;  %v823_v25 = vld [vmem:[%s12026_s11 + $0xab0] sm:$0xff] }
  0xc2   : > { %9946 = vmatpush3.bf16.msra.mxu1 %v9945_v32  ;;  %9916 = vmatprep.subr.bf16.mxu0 %v9915_v33  ;;  %v749_v32 = vld [vmem:[%s12026_s11 + $0x860] sm:$0xff]  ;;  %v750_v33 = vld [vmem:[%s12026_s11 + $0x868] sm:$0xff]  ;;  %v824_v26 = vld [vmem:[%s12026_s11 + $0xab8] sm:$0xff] }
  0xc3   : > { %9948 = vmatprep.subr.bf16.mxu1 %v9947_v37  ;;  %3153 = vmatprep.mubr.f32.mxu0 %v370_v43  ;;  %v767_v37 = vld [vmem:[%s12026_s11 + $0x8f0] sm:$0xff]  ;;  %v9937_v41 = vpack.c.bf16 %v750_v33, %v749_v32  ;;  %v808_v33 = vld [vmem:[%s12026_s11 + $0xa38] sm:$0xff] }
  0xc4   : > { %3223 = vmatprep.mubr.f32.mxu1 %v372_v45  ;;  %v9939_v43 = vpack.c.bf16 %v768_v38, %v767_v37  ;;  %v752_v45 = vld [vmem:[%s12026_s11 + $0x878] sm:$0xff]  ;;  %v807_v32 = vld [vmem:[%s12026_s11 + $0xa30] sm:$0xff]  ;;  %v825_v37 = vld [vmem:[%s12026_s11 + $0xac0] sm:$0xff] }
  0xc5   : > { %9918 = vmatpush3.bf16.msra.mxu0 %v9917_v44  ;;  %v751_v44 = vld [vmem:[%s12026_s11 + $0x870] sm:$0xff]  ;;  %v826_v38 = vld [vmem:[%s12026_s11 + $0xac8] sm:$0xff] }
  0xc6   : > { %9950 = vmatpush3.bf16.msra.mxu1 %v9949_v46  ;;  %9920 = vmatprep.subr.bf16.mxu0 %v9919_v47  ;;  %v783_v46 = vld [vmem:[%s12026_s11 + $0x970] sm:$0xff]  ;;  %v9971_v47 = vpack.c.bf16 %v800_v40, %v799_v39  ;;  %v9941_v53 = vpack.c.bf16 %v752_v45, %v751_v44  ;;  %v857_v39 = vld [vmem:[%s12026_s11 + $0xbc0] sm:$0xff]  ;;  %v858_v40 = vld [vmem:[%s12026_s11 + $0xbc8] sm:$0xff] }
  0xc7   : > { %9952 = vmatprep.subr.bf16.mxu1 %v9951_v51  ;;  %v849_v51 = vld [vmem:[%s12026_s11 + $0xb80] sm:$0xff]  ;;  %v9973_v54 = vpack.c.bf16 %v784_v48, %v783_v46  ;;  %v810_v45 = vld [vmem:[%s12026_s11 + $0xa48] sm:$0xff] }
  0xc8   : > { %v809_v44 = vld [vmem:[%s12026_s11 + $0xa40] sm:$0xff]  ;;  %v842_v48 = vld [vmem:[%s12026_s11 + $0xb48] sm:$0xff] }
  0xc9   : > { %9922 = vmatpush3.bf16.msra.mxu0 %v9921_v57  ;;  %v802_v57 = vld [vmem:[%s12026_s11 + $0xa08] sm:$0xff]  ;;  %v841_v46 = vld [vmem:[%s12026_s11 + $0xb40] sm:$0xff] }
  0xca   : > { %9954 = vmatpush3.bf16.msra.mxu1 %v9953_v58  ;;  %9924 = vmatprep.subr.bf16.mxu0 %v9923_v59  ;;  %v833_v58 = vld [vmem:[%s12026_s11 + $0xb00] sm:$0xff]  ;;  %v10007_v59 = vpack.c.bf16 %v850_v52, %v849_v51  ;;  %v9977_v2 = vpack.c.bf16 %v802_v57, %v801_v56  ;;  %v859_v51 = vld [vmem:[%s12026_s11 + $0xbd0] sm:$0xff]  ;;  %v860_v52 = vld [vmem:[%s12026_s11 + $0xbd8] sm:$0xff] }
  0xcb   : > { %9956 = vmatprep.subr.bf16.mxu1 %v9955_v63  ;;  %v851_v63 = vld [vmem:[%s12026_s11 + $0xb90] sm:$0xff]  ;;  %v10009_v4 = vpack.c.bf16 %v834_v60, %v833_v58  ;;  %v812_v57 = vld [vmem:[%s12026_s11 + $0xa58] sm:$0xff] }
  0xcc   : > { %v10011_v9 = vpack.c.bf16 %v852_v0, %v851_v63  ;;  %v811_v56 = vld [vmem:[%s12026_s11 + $0xa50] sm:$0xff]  ;;  %v844_v60 = vld [vmem:[%s12026_s11 + $0xb58] sm:$0xff]  ;;  %v861_v63 = vld [vmem:[%s12026_s11 + $0xbe0] sm:$0xff] }
  0xcd   : > { %9926 = vmatpush3.bf16.msra.mxu0 %v9925_v5  ;;  %v9979_v5 = vpack.c.bf16 %v820_v62, %v819_v61  ;;  %v843_v58 = vld [vmem:[%s12026_s11 + $0xb50] sm:$0xff]  ;;  %v829_v61 = vld [vmem:[%s12026_s11 + $0xae0] sm:$0xff]  ;;  %v830_v62 = vld [vmem:[%s12026_s11 + $0xae8] sm:$0xff] }
  0xce   : > { %9958 = vmatpush3.bf16.msra.mxu1 %v9957_v6  ;;  %9928 = vmatprep.subr.bf16.mxu0 %v9927_v7  ;;  %v803_v6 = vld [vmem:[%s12026_s11 + $0xa10] sm:$0xff]  ;;  %v804_v7 = vld [vmem:[%s12026_s11 + $0xa18] sm:$0xff]  ;;  %v862_v0 = vld [vmem:[%s12026_s11 + $0xbe8] sm:$0xff] }
  0xcf   : > { %9960 = vmatprep.subr.bf16.mxu1 %v9959_v11  ;;  %v821_v11 = vld [vmem:[%s12026_s11 + $0xaa0] sm:$0xff]  ;;  %v9981_v16 = vpack.c.bf16 %v804_v7, %v803_v6  ;;  %v10031_v7 = vpack.c.bf16 %v862_v0, %v861_v63  ;;  %v919_v63 = vld [vmem:[%s12026_s11 + $0xdb0] sm:$0xff]  ;;  %v920_v0 = vld [vmem:[%s12026_s11 + $0xdb8] sm:$0xff] }
  0xd0   : > { %v845_v6 = vld [vmem:[%s12026_s11 + $0xb60] sm:$0xff] }
  0xd1   : > { %9930 = vmatpush3.bf16.msra.mxu0 %v9929_v17  ;;  %v376_v17 = vld [vmem:[%s12036_s23 + $0xb8] sm:$0xff] }
  0xd2   : > { %9962 = vmatpush3.bf16.msra.mxu1 %v9961_v18  ;;  %9932 = vmatprep.subr.bf16.mxu0 %v9931_v19  ;;  %v10013_v18 = vpack.c.bf16 %v836_v10, %v835_v8  ;;  %v9983_v19 = vpack.c.bf16 %v822_v12, %v821_v11  ;;  %v846_v8 = vld [vmem:[%s12026_s11 + $0xb68] sm:$0xff]  ;;  %v832_v10 = vld [vmem:[%s12026_s11 + $0xaf8] sm:$0xff]  ;;  %v863_v11 = vld [vmem:[%s12026_s11 + $0xbf0] sm:$0xff] }
  0xd3   : > { %9964 = vmatprep.subr.bf16.mxu1 %v9963_v23  ;;  %v10015_v23 = vpack.c.bf16 %v854_v14, %v853_v13  ;;  %v864_v12 = vld [vmem:[%s12026_s11 + $0xbf8] sm:$0xff]  ;;  %v10033_v14 = vpack.c.bf16 %v846_v8, %v845_v6  ;;  %v903_v6 = vld [vmem:[%s12026_s11 + $0xd30] sm:$0xff] }
  0xd4   : > { %v904_v8 = vld [vmem:[%s12026_s11 + $0xd38] sm:$0xff] }
  0xd5   : > { %9934 = vmatpush3.bf16.msra.mxu0 %v9933_v29  ;;  %v9985_v29 = vpack.c.bf16 %v806_v21, %v805_v20  ;;  %v848_v20 = vld [vmem:[%s12026_s11 + $0xb78] sm:$0xff]  ;;  %v881_v21 = vld [vmem:[%s12026_s11 + $0xc80] sm:$0xff] }
  0xd6   : > { %9966 = vmatpush3.bf16.msra.mxu1 %v9965_v30  ;;  %9936 = vmatprep.subr.bf16.mxu0 %v9935_v31  ;;  %v10017_v30 = vpack.c.bf16 %v838_v24, %v837_v22  ;;  %v9987_v31 = vpack.c.bf16 %v824_v26, %v823_v25  ;;  %v882_v22 = vld [vmem:[%s12026_s11 + $0xc88] sm:$0xff] }
  0xd7   : > { %9968 = vmatprep.subr.bf16.mxu1 %v9967_v35  ;;  %v10019_v35 = vpack.c.bf16 %v856_v28, %v855_v27  ;;  %v914_v24 = vld [vmem:[%s12026_s11 + $0xd88] sm:$0xff]  ;;  %v10039_v27 = vpack.c.bf16 %v882_v22, %v881_v21  ;;  %v865_v28 = vld [vmem:[%s12026_s11 + $0xc00] sm:$0xff]  ;;  %v891_v21 = vld [vmem:[%s12026_s11 + $0xcd0] sm:$0xff] }
  0xd8   : > { %v892_v22 = vld [vmem:[%s12026_s11 + $0xcd8] sm:$0xff] }
  0xd9   : > { %9938 = vmatpush3.bf16.msra.mxu0 %v9937_v41  ;;  %v9989_v41 = vpack.c.bf16 %v808_v33, %v807_v32  ;;  %v898_v32 = vld [vmem:[%s12026_s11 + $0xd08] sm:$0xff]  ;;  %v883_v33 = vld [vmem:[%s12026_s11 + $0xc90] sm:$0xff] }
  0xda   : > { %9970 = vmatpush3.bf16.msra.mxu1 %v9969_v42  ;;  %9940 = vmatprep.subr.bf16.mxu0 %v9939_v43  ;;  %v10021_v42 = vpack.c.bf16 %v840_v36, %v839_v34  ;;  %v9991_v43 = vpack.c.bf16 %v826_v38, %v825_v37  ;;  %v884_v34 = vld [vmem:[%s12026_s11 + $0xc98] sm:$0xff] }
  0xdb   : > { %9972 = vmatprep.subr.bf16.mxu1 %v9971_v47  ;;  %v10023_v47 = vpack.c.bf16 %v858_v40, %v857_v39  ;;  %v916_v36 = vld [vmem:[%s12026_s11 + $0xd98] sm:$0xff]  ;;  %v375_v39 = vld [vmem:[%s12036_s23 + $0xb0] sm:$0xff] }
  0xdc   : > { %v373_v37 = vld [vmem:[%s12036_s23 + $0xa0] sm:$0xff] }
  0xdd   : > { %9942 = vmatpush3.bf16.msra.mxu0 %v9941_v53  ;;  %v9993_v53 = vpack.c.bf16 %v810_v45, %v809_v44  ;;  %v899_v44 = vld [vmem:[%s12026_s11 + $0xd10] sm:$0xff] }
  0xde   : > { %9974 = vmatpush3.bf16.msra.mxu1 %v9973_v54  ;;  %9976 = vmatprep.subr.bf16.mxu0 %v9975_v55  ;;  %v10025_v54 = vpack.c.bf16 %v842_v48, %v841_v46  ;;  %v9995_v55 = vpack.c.bf16 %v828_v50, %v827_v49  ;;  %v900_v46 = vld [vmem:[%s12026_s11 + $0xd18] sm:$0xff]  ;;  %v886_v48 = vld [vmem:[%s12026_s11 + $0xca8] sm:$0xff]  ;;  %v917_v49 = vld [vmem:[%s12026_s11 + $0xda0] sm:$0xff] }
  0xdf   : > { %10008 = vmatprep.subr.bf16.mxu1 %v10007_v59  ;;  %v10027_v59 = vpack.c.bf16 %v860_v52, %v859_v51  ;;  %v918_v50 = vld [vmem:[%s12026_s11 + $0xda8] sm:$0xff]  ;;  %v378_v51 = vld [vmem:[%s12036_s23 + $0xc8] sm:$0xff] }
  0xe0   : > { %3154 = vmatmul.mubr.f32.vlgmr.msra.gmra.mrb[8].mxu0 %v369_v1  ;;  %v9997_v1 = vpack.c.bf16 %v812_v57, %v811_v56  ;;  %v869_v56 = vld [vmem:[%s12026_s11 + $0xc20] sm:$0xff]  ;;  %v870_v57 = vld [vmem:[%s12026_s11 + $0xc28] sm:$0xff] }
  0xe1   : > { %9978 = vmatpush3.bf16.msra.mxu0 %v9977_v2  ;;  %3224 = vmatmul.mubr.f32.vlgmr.msra.gmra.mrb[8].mxu1 %v371_v3  ;;  %v10029_v2 = vpack.c.bf16 %v844_v60, %v843_v58  ;;  %v9999_v3 = vpack.c.bf16 %v830_v62, %v829_v61  ;;  %v901_v58 = vld [vmem:[%s12026_s11 + $0xd20] sm:$0xff]  ;;  %v902_v60 = vld [vmem:[%s12026_s11 + $0xd28] sm:$0xff]  ;;  %v887_v61 = vld [vmem:[%s12026_s11 + $0xcb0] sm:$0xff] }
  0xe2   : > { %10010 = vmatpush3.bf16.msra.mxu1 %v10009_v4  ;;  %9980 = vmatprep.subr.bf16.mxu0 %v9979_v5  ;;  %v813_v4 = vld [vmem:[%s12026_s11 + $0xa60] sm:$0xff]  ;;  %v814_v5 = vld [vmem:[%s12026_s11 + $0xa68] sm:$0xff]  ;;  %v888_v62 = vld [vmem:[%s12026_s11 + $0xcb8] sm:$0xff] }
  0xe3   : > { %10012 = vmatprep.subr.bf16.mxu1 %v10011_v9  ;;  %3293 = vmatprep.mubr.f32.mxu0 %v374_v15  ;;  %v831_v9 = vld [vmem:[%s12026_s11 + $0xaf0] sm:$0xff]  ;;  %v10001_v13 = vpack.c.bf16 %v814_v5, %v813_v4  ;;  %v872_v5 = vld [vmem:[%s12026_s11 + $0xc38] sm:$0xff] }
  0xe4   : > { %3363 = vmatprep.mubr.f32.mxu1 %v376_v17  ;;  %v10003_v15 = vpack.c.bf16 %v832_v10, %v831_v9  ;;  %v816_v17 = vld [vmem:[%s12026_s11 + $0xa78] sm:$0xff]  ;;  %v871_v4 = vld [vmem:[%s12026_s11 + $0xc30] sm:$0xff]  ;;  %v889_v9 = vld [vmem:[%s12026_s11 + $0xcc0] sm:$0xff] }
  0xe5   : > { %9982 = vmatpush3.bf16.msra.mxu0 %v9981_v16  ;;  %v815_v16 = vld [vmem:[%s12026_s11 + $0xa70] sm:$0xff]  ;;  %v890_v10 = vld [vmem:[%s12026_s11 + $0xcc8] sm:$0xff] }
  0xe6   : > { %10014 = vmatpush3.bf16.msra.mxu1 %v10013_v18  ;;  %9984 = vmatprep.subr.bf16.mxu0 %v9983_v19  ;;  %v847_v18 = vld [vmem:[%s12026_s11 + $0xb70] sm:$0xff]  ;;  %v10035_v19 = vpack.c.bf16 %v864_v12, %v863_v11  ;;  %v10005_v25 = vpack.c.bf16 %v816_v17, %v815_v16  ;;  %v921_v11 = vld [vmem:[%s12026_s11 + $0xdc0] sm:$0xff]  ;;  %v922_v12 = vld [vmem:[%s12026_s11 + $0xdc8] sm:$0xff] }
  0xe7   : > { %10016 = vmatprep.subr.bf16.mxu1 %v10015_v23  ;;  %v913_v23 = vld [vmem:[%s12026_s11 + $0xd80] sm:$0xff]  ;;  %v10037_v26 = vpack.c.bf16 %v848_v20, %v847_v18  ;;  %v874_v17 = vld [vmem:[%s12026_s11 + $0xc48] sm:$0xff] }
  0xe8   : > { %v873_v16 = vld [vmem:[%s12026_s11 + $0xc40] sm:$0xff]  ;;  %v906_v20 = vld [vmem:[%s12026_s11 + $0xd48] sm:$0xff] }
  0xe9   : > { %9986 = vmatpush3.bf16.msra.mxu0 %v9985_v29  ;;  %v866_v29 = vld [vmem:[%s12026_s11 + $0xc08] sm:$0xff]  ;;  %v905_v18 = vld [vmem:[%s12026_s11 + $0xd40] sm:$0xff] }
  0xea   : > { %10018 = vmatpush3.bf16.msra.mxu1 %v10017_v30  ;;  %9988 = vmatprep.subr.bf16.mxu0 %v9987_v31  ;;  %v897_v30 = vld [vmem:[%s12026_s11 + $0xd00] sm:$0xff]  ;;  %v10071_v31 = vpack.c.bf16 %v914_v24, %v913_v23  ;;  %v10041_v38 = vpack.c.bf16 %v866_v29, %v865_v28  ;;  %v923_v23 = vld [vmem:[%s12026_s11 + $0xdd0] sm:$0xff]  ;;  %v924_v24 = vld [vmem:[%s12026_s11 + $0xdd8] sm:$0xff] }
  0xeb   : > { %10020 = vmatprep.subr.bf16.mxu1 %v10019_v35  ;;  %v915_v35 = vld [vmem:[%s12026_s11 + $0xd90] sm:$0xff]  ;;  %v10073_v40 = vpack.c.bf16 %v898_v32, %v897_v30  ;;  %v876_v29 = vld [vmem:[%s12026_s11 + $0xc58] sm:$0xff] }
  0xec   : > { %v10075_v45 = vpack.c.bf16 %v916_v36, %v915_v35  ;;  %v875_v28 = vld [vmem:[%s12026_s11 + $0xc50] sm:$0xff]  ;;  %v908_v32 = vld [vmem:[%s12026_s11 + $0xd58] sm:$0xff]  ;;  %v925_v35 = vld [vmem:[%s12026_s11 + $0xde0] sm:$0xff] }
  0xed   : > { %9990 = vmatpush3.bf16.msra.mxu0 %v9989_v41  ;;  %v10043_v41 = vpack.c.bf16 %v884_v34, %v883_v33  ;;  %v907_v30 = vld [vmem:[%s12026_s11 + $0xd50] sm:$0xff]  ;;  %v893_v33 = vld [vmem:[%s12026_s11 + $0xce0] sm:$0xff]  ;;  %v894_v34 = vld [vmem:[%s12026_s11 + $0xce8] sm:$0xff] }
  0xee   : > { %10022 = vmatpush3.bf16.msra.mxu1 %v10021_v42  ;;  %9992 = vmatprep.subr.bf16.mxu0 %v9991_v43  ;;  %v867_v42 = vld [vmem:[%s12026_s11 + $0xc10] sm:$0xff]  ;;  %v868_v43 = vld [vmem:[%s12026_s11 + $0xc18] sm:$0xff]  ;;  %v926_v36 = vld [vmem:[%s12026_s11 + $0xde8] sm:$0xff] }
  0xef   : > { %10024 = vmatprep.subr.bf16.mxu1 %v10023_v47  ;;  %v885_v47 = vld [vmem:[%s12026_s11 + $0xca0] sm:$0xff]  ;;  %v10045_v52 = vpack.c.bf16 %v868_v43, %v867_v42  ;;  %v10095_v43 = vpack.c.bf16 %v926_v36, %v925_v35  ;;  %v983_v35 = vld [vmem:[%s12026_s11 + $0xfb0] sm:$0xff]  ;;  %v984_v36 = vld [vmem:[%s12026_s11 + $0xfb8] sm:$0xff] }
  0xf0   : > { %v909_v42 = vld [vmem:[%s12026_s11 + $0xd60] sm:$0xff] }
  0xf1   : > { %9994 = vmatpush3.bf16.msra.mxu0 %v9993_v53  ;;  %v380_v53 = vld [vmem:[%s12036_s23 + $0xd8] sm:$0xff] }
  0xf2   : > { %10026 = vmatpush3.bf16.msra.mxu1 %v10025_v54  ;;  %9996 = vmatprep.subr.bf16.mxu0 %v9995_v55  ;;  %v10077_v54 = vpack.c.bf16 %v900_v46, %v899_v44  ;;  %v10047_v55 = vpack.c.bf16 %v886_v48, %v885_v47  ;;  %v910_v44 = vld [vmem:[%s12026_s11 + $0xd68] sm:$0xff]  ;;  %v896_v46 = vld [vmem:[%s12026_s11 + $0xcf8] sm:$0xff]  ;;  %v927_v47 = vld [vmem:[%s12026_s11 + $0xdf0] sm:$0xff] }
  0xf3   : > { %10028 = vmatprep.subr.bf16.mxu1 %v10027_v59  ;;  %v10079_v59 = vpack.c.bf16 %v918_v50, %v917_v49  ;;  %v928_v48 = vld [vmem:[%s12026_s11 + $0xdf8] sm:$0xff]  ;;  %v10097_v50 = vpack.c.bf16 %v910_v44, %v909_v42  ;;  %v967_v42 = vld [vmem:[%s12026_s11 + $0xf30] sm:$0xff] }
  0xf4   : > { %v968_v44 = vld [vmem:[%s12026_s11 + $0xf38] sm:$0xff] }
  0xf5   : > { %9998 = vmatpush3.bf16.msra.mxu0 %v9997_v1  ;;  %v10049_v1 = vpack.c.bf16 %v870_v57, %v869_v56  ;;  %v912_v56 = vld [vmem:[%s12026_s11 + $0xd78] sm:$0xff]  ;;  %v945_v57 = vld [vmem:[%s12026_s11 + $0xe80] sm:$0xff] }
  0xf6   : > { %10030 = vmatpush3.bf16.msra.mxu1 %v10029_v2  ;;  %10000 = vmatprep.subr.bf16.mxu0 %v9999_v3  ;;  %v10081_v2 = vpack.c.bf16 %v902_v60, %v901_v58  ;;  %v10051_v3 = vpack.c.bf16 %v888_v62, %v887_v61  ;;  %v946_v58 = vld [vmem:[%s12026_s11 + $0xe88] sm:$0xff] }
  0xf7   : > { %10032 = vmatprep.subr.bf16.mxu1 %v10031_v7  ;;  %v10083_v7 = vpack.c.bf16 %v920_v0, %v919_v63  ;;  %v978_v60 = vld [vmem:[%s12026_s11 + $0xf88] sm:$0xff]  ;;  %v10103_v63 = vpack.c.bf16 %v946_v58, %v945_v57  ;;  %v929_v0 = vld [vmem:[%s12026_s11 + $0xe00] sm:$0xff]  ;;  %v955_v57 = vld [vmem:[%s12026_s11 + $0xed0] sm:$0xff] }
  0xf8   : > { %v956_v58 = vld [vmem:[%s12026_s11 + $0xed8] sm:$0xff] }
  0xf9   : > { %10002 = vmatpush3.bf16.msra.mxu0 %v10001_v13  ;;  %v10053_v13 = vpack.c.bf16 %v872_v5, %v871_v4  ;;  %v962_v4 = vld [vmem:[%s12026_s11 + $0xf08] sm:$0xff]  ;;  %v947_v5 = vld [vmem:[%s12026_s11 + $0xe90] sm:$0xff] }
  0xfa   : > { %10034 = vmatpush3.bf16.msra.mxu1 %v10033_v14  ;;  %10004 = vmatprep.subr.bf16.mxu0 %v10003_v15  ;;  %v10085_v14 = vpack.c.bf16 %v904_v8, %v903_v6  ;;  %v10055_v15 = vpack.c.bf16 %v890_v10, %v889_v9  ;;  %v948_v6 = vld [vmem:[%s12026_s11 + $0xe98] sm:$0xff] }
  0xfb   : > { %10036 = vmatprep.subr.bf16.mxu1 %v10035_v19  ;;  %v10087_v19 = vpack.c.bf16 %v922_v12, %v921_v11  ;;  %v980_v8 = vld [vmem:[%s12026_s11 + $0xf98] sm:$0xff]  ;;  %v379_v11 = vld [vmem:[%s12036_s23 + $0xd0] sm:$0xff] }
  0xfc   : > { %v377_v9 = vld [vmem:[%s12036_s23 + $0xc0] sm:$0xff] }
  0xfd   : > { %10006 = vmatpush3.bf16.msra.mxu0 %v10005_v25  ;;  %v10057_v25 = vpack.c.bf16 %v874_v17, %v873_v16  ;;  %v963_v16 = vld [vmem:[%s12026_s11 + $0xf10] sm:$0xff] }
  0xfe   : > { %10038 = vmatpush3.bf16.msra.mxu1 %v10037_v26  ;;  %10040 = vmatprep.subr.bf16.mxu0 %v10039_v27  ;;  %v10089_v26 = vpack.c.bf16 %v906_v20, %v905_v18  ;;  %v10059_v27 = vpack.c.bf16 %v892_v22, %v891_v21  ;;  %v964_v18 = vld [vmem:[%s12026_s11 + $0xf18] sm:$0xff]  ;;  %v950_v20 = vld [vmem:[%s12026_s11 + $0xea8] sm:$0xff]  ;;  %v981_v21 = vld [vmem:[%s12026_s11 + $0xfa0] sm:$0xff] }
  0xff   : > { %10072 = vmatprep.subr.bf16.mxu1 %v10071_v31  ;;  %v10091_v31 = vpack.c.bf16 %v924_v24, %v923_v23  ;;  %v982_v22 = vld [vmem:[%s12026_s11 + $0xfa8] sm:$0xff]  ;;  %v382_v23 = vld [vmem:[%s12036_s23 + $0xe8] sm:$0xff] }
 0x100   : > { %3294 = vmatmul.mubr.f32.vlgmr.msra.gmra.mrb[10].mxu0 %v373_v37  ;;  %v10061_v37 = vpack.c.bf16 %v876_v29, %v875_v28  ;;  %v933_v28 = vld [vmem:[%s12026_s11 + $0xe20] sm:$0xff]  ;;  %v934_v29 = vld [vmem:[%s12026_s11 + $0xe28] sm:$0xff] }
 0x101   : > { %10042 = vmatpush3.bf16.msra.mxu0 %v10041_v38  ;;  %3364 = vmatmul.mubr.f32.vlgmr.msra.gmra.mrb[10].mxu1 %v375_v39  ;;  %v10093_v38 = vpack.c.bf16 %v908_v32, %v907_v30  ;;  %v10063_v39 = vpack.c.bf16 %v894_v34, %v893_v33  ;;  %v965_v30 = vld [vmem:[%s12026_s11 + $0xf20] sm:$0xff]  ;;  %v966_v32 = vld [vmem:[%s12026_s11 + $0xf28] sm:$0xff]  ;;  %v951_v33 = vld [vmem:[%s12026_s11 + $0xeb0] sm:$0xff] }
 0x102   : > { %10074 = vmatpush3.bf16.msra.mxu1 %v10073_v40  ;;  %10044 = vmatprep.subr.bf16.mxu0 %v10043_v41  ;;  %v877_v40 = vld [vmem:[%s12026_s11 + $0xc60] sm:$0xff]  ;;  %v878_v41 = vld [vmem:[%s12026_s11 + $0xc68] sm:$0xff]  ;;  %v952_v34 = vld [vmem:[%s12026_s11 + $0xeb8] sm:$0xff] }
 0x103   : > { %10076 = vmatprep.subr.bf16.mxu1 %v10075_v45  ;;  %3433 = vmatprep.mubr.f32.mxu0 %v378_v51  ;;  %v895_v45 = vld [vmem:[%s12026_s11 + $0xcf0] sm:$0xff]  ;;  %v10065_v49 = vpack.c.bf16 %v878_v41, %v877_v40  ;;  %v936_v41 = vld [vmem:[%s12026_s11 + $0xe38] sm:$0xff] }
 0x104   : > { %3503 = vmatprep.mubr.f32.mxu1 %v380_v53  ;;  %v10067_v51 = vpack.c.bf16 %v896_v46, %v895_v45  ;;  %v880_v53 = vld [vmem:[%s12026_s11 + $0xc78] sm:$0xff]  ;;  %v935_v40 = vld [vmem:[%s12026_s11 + $0xe30] sm:$0xff]  ;;  %v953_v45 = vld [vmem:[%s12026_s11 + $0xec0] sm:$0xff] }
 0x105   : > { %10046 = vmatpush3.bf16.msra.mxu0 %v10045_v52  ;;  %v879_v52 = vld [vmem:[%s12026_s11 + $0xc70] sm:$0xff]  ;;  %v954_v46 = vld [vmem:[%s12026_s11 + $0xec8] sm:$0xff] }
 0x106   : > { %10078 = vmatpush3.bf16.msra.mxu1 %v10077_v54  ;;  %10048 = vmatprep.subr.bf16.mxu0 %v10047_v55  ;;  %v911_v54 = vld [vmem:[%s12026_s11 + $0xd70] sm:$0xff]  ;;  %v10099_v55 = vpack.c.bf16 %v928_v48, %v927_v47  ;;  %v10069_v61 = vpack.c.bf16 %v880_v53, %v879_v52  ;;  %v985_v47 = vld [vmem:[%s12026_s11 + $0xfc0] sm:$0xff]  ;;  %v986_v48 = vld [vmem:[%s12026_s11 + $0xfc8] sm:$0xff] }
 0x107   : > { %10080 = vmatprep.subr.bf16.mxu1 %v10079_v59  ;;  %v977_v59 = vld [vmem:[%s12026_s11 + $0xf80] sm:$0xff]  ;;  %v10101_v62 = vpack.c.bf16 %v912_v56, %v911_v54  ;;  %v938_v53 = vld [vmem:[%s12026_s11 + $0xe48] sm:$0xff] }
 0x108   : > { %v937_v52 = vld [vmem:[%s12026_s11 + $0xe40] sm:$0xff]  ;;  %v970_v56 = vld [vmem:[%s12026_s11 + $0xf48] sm:$0xff] }
 0x109   : > { %10050 = vmatpush3.bf16.msra.mxu0 %v10049_v1  ;;  %v930_v1 = vld [vmem:[%s12026_s11 + $0xe08] sm:$0xff]  ;;  %v969_v54 = vld [vmem:[%s12026_s11 + $0xf40] sm:$0xff] }
 0x10a   : > { %10082 = vmatpush3.bf16.msra.mxu1 %v10081_v2  ;;  %10052 = vmatprep.subr.bf16.mxu0 %v10051_v3  ;;  %v961_v2 = vld [vmem:[%s12026_s11 + $0xf00] sm:$0xff]  ;;  %v10135_v3 = vpack.c.bf16 %v978_v60, %v977_v59  ;;  %v10105_v10 = vpack.c.bf16 %v930_v1, %v929_v0  ;;  %v987_v59 = vld [vmem:[%s12026_s11 + $0xfd0] sm:$0xff]  ;;  %v988_v60 = vld [vmem:[%s12026_s11 + $0xfd8] sm:$0xff] }
 0x10b   : > { %10084 = vmatprep.subr.bf16.mxu1 %v10083_v7  ;;  %v979_v7 = vld [vmem:[%s12026_s11 + $0xf90] sm:$0xff]  ;;  %v10137_v12 = vpack.c.bf16 %v962_v4, %v961_v2  ;;  %v940_v1 = vld [vmem:[%s12026_s11 + $0xe58] sm:$0xff] }
 0x10c   : > { %v10139_v17 = vpack.c.bf16 %v980_v8, %v979_v7  ;;  %v939_v0 = vld [vmem:[%s12026_s11 + $0xe50] sm:$0xff]  ;;  %v972_v4 = vld [vmem:[%s12026_s11 + $0xf58] sm:$0xff]  ;;  %v989_v7 = vld [vmem:[%s12026_s11 + $0xfe0] sm:$0xff] }
 0x10d   : > { %10054 = vmatpush3.bf16.msra.mxu0 %v10053_v13  ;;  %v10107_v13 = vpack.c.bf16 %v948_v6, %v947_v5  ;;  %v971_v2 = vld [vmem:[%s12026_s11 + $0xf50] sm:$0xff]  ;;  %v957_v5 = vld [vmem:[%s12026_s11 + $0xee0] sm:$0xff]  ;;  %v958_v6 = vld [vmem:[%s12026_s11 + $0xee8] sm:$0xff] }
 0x10e   : > { %10086 = vmatpush3.bf16.msra.mxu1 %v10085_v14  ;;  %10056 = vmatprep.subr.bf16.mxu0 %v10055_v15  ;;  %v931_v14 = vld [vmem:[%s12026_s11 + $0xe10] sm:$0xff]  ;;  %v932_v15 = vld [vmem:[%s12026_s11 + $0xe18] sm:$0xff]  ;;  %v990_v8 = vld [vmem:[%s12026_s11 + $0xfe8] sm:$0xff] }
 0x10f   : > { %10088 = vmatprep.subr.bf16.mxu1 %v10087_v19  ;;  %v949_v19 = vld [vmem:[%s12026_s11 + $0xea0] sm:$0xff]  ;;  %v10109_v24 = vpack.c.bf16 %v932_v15, %v931_v14 }
 0x110   : > { %v973_v14 = vld [vmem:[%s12026_s11 + $0xf60] sm:$0xff] }
 0x111   : > { %10058 = vmatpush3.bf16.msra.mxu0 %v10057_v25  ;;  %v384_v25 = vld [vmem:[%s12036_s23 + $0xf8] sm:$0xff] }
 0x112   : > { %10090 = vmatpush3.bf16.msra.mxu1 %v10089_v26  ;;  %10060 = vmatprep.subr.bf16.mxu0 %v10059_v27  ;;  %v10141_v26 = vpack.c.bf16 %v964_v18, %v963_v16  ;;  %v10111_v27 = vpack.c.bf16 %v950_v20, %v949_v19  ;;  %v10159_v16 = vpack.c.bf16 %v990_v8, %v989_v7  ;;  %v959_v18 = vld [vmem:[%s12026_s11 + $0xef0] sm:$0xff]  ;;  %v960_v19 = vld [vmem:[%s12026_s11 + $0xef8] sm:$0xff]  ;;  %v997_v7 = vld [vmem:[%s12026_s11 + $0x1020] sm:$0xff] }
 0x113   : > { %10092 = vmatprep.subr.bf16.mxu1 %v10091_v31  ;;  %v10143_v31 = vpack.c.bf16 %v982_v22, %v981_v21  ;;  %v991_v22 = vld [vmem:[%s12026_s11 + $0xff0] sm:$0xff]  ;;  %v998_v8 = vld [vmem:[%s12026_s11 + $0x1028] sm:$0xff] }
 0x115   : > { %10062 = vmatpush3.bf16.msra.mxu0 %v10061_v37  ;;  %v10113_v37 = vpack.c.bf16 %v934_v29, %v933_v28  ;;  %v10131_v29 = vpack.c.bf16 %v960_v19, %v959_v18  ;;  %v999_v19 = vld [vmem:[%s12026_s11 + $0x1030] sm:$0xff] }
 0x116   : > { %10094 = vmatpush3.bf16.msra.mxu1 %v10093_v38  ;;  %10064 = vmatprep.subr.bf16.mxu0 %v10063_v39  ;;  %v10145_v38 = vpack.c.bf16 %v966_v32, %v965_v30  ;;  %v10115_v39 = vpack.c.bf16 %v952_v34, %v951_v33  ;;  %v943_v30 = vld [vmem:[%s12026_s11 + $0xe70] sm:$0xff]  ;;  %v976_v34 = vld [vmem:[%s12026_s11 + $0xf78] sm:$0xff] }
 0x117   : > { %10096 = vmatprep.subr.bf16.mxu1 %v10095_v43  ;;  %v10147_v43 = vpack.c.bf16 %v984_v36, %v983_v35  ;;  %v975_v32 = vld [vmem:[%s12026_s11 + $0xf70] sm:$0xff]  ;;  %v1009_v35 = vld [vmem:[%s12026_s11 + $0x1080] sm:$0xff]  ;;  %v1010_v36 = vld [vmem:[%s12026_s11 + $0x1088] sm:$0xff] }
 0x119   : > { %10066 = vmatpush3.bf16.msra.mxu0 %v10065_v49  ;;  %v10117_v49 = vpack.c.bf16 %v936_v41, %v935_v40  ;;  %v10165_v41 = vpack.c.bf16 %v976_v34, %v975_v32  ;;  %v1002_v32 = vld [vmem:[%s12026_s11 + $0x1048] sm:$0xff] }
 0x11a   : > { %10098 = vmatpush3.bf16.msra.mxu1 %v10097_v50  ;;  %10068 = vmatprep.subr.bf16.mxu0 %v10067_v51  ;;  %v10149_v50 = vpack.c.bf16 %v968_v44, %v967_v42  ;;  %v10119_v51 = vpack.c.bf16 %v954_v46, %v953_v45  ;;  %v10167_v42 = vpack.c.bf16 %v1010_v36, %v1009_v35  ;;  %v994_v44 = vld [vmem:[%s12026_s11 + $0x1008] sm:$0xff]  ;;  %v1025_v45 = vld [vmem:[%s12026_s11 + $0x1100] sm:$0xff]  ;;  %v1019_v36 = vld [vmem:[%s12026_s11 + $0x10d0] sm:$0xff] }
 0x11b   : > { %10100 = vmatprep.subr.bf16.mxu1 %v10099_v55  ;;  %v10151_v55 = vpack.c.bf16 %v986_v48, %v985_v47  ;;  %v1026_v47 = vld [vmem:[%s12026_s11 + $0x1108] sm:$0xff]  ;;  %v1011_v48 = vld [vmem:[%s12026_s11 + $0x1090] sm:$0xff] }
 0x11c   : > { %v1034_v35 = vld [vmem:[%s12026_s11 + $0x1148] sm:$0xff] }
 0x11d   : > { %10070 = vmatpush3.bf16.msra.mxu0 %v10069_v61  ;;  %v10121_v61 = vpack.c.bf16 %v938_v53, %v937_v52  ;;  %v381_v52 = vld [vmem:[%s12036_s23 + $0xe0] sm:$0xff] }
 0x11e   : > { %10102 = vmatpush3.bf16.msra.mxu1 %v10101_v62  ;;  %10104 = vmatprep.subr.bf16.mxu0 %v10103_v63  ;;  %v10153_v62 = vpack.c.bf16 %v970_v56, %v969_v54  ;;  %v10123_v63 = vpack.c.bf16 %v956_v58, %v955_v57  ;;  %v383_v54 = vld [vmem:[%s12036_s23 + $0xf0] sm:$0xff]  ;;  %v995_v57 = vld [vmem:[%s12026_s11 + $0x1010] sm:$0xff]  ;;  %v996_v58 = vld [vmem:[%s12026_s11 + $0x1018] sm:$0xff] }
 0x11f   : > { %10136 = vmatprep.subr.bf16.mxu1 %v10135_v3  ;;  %v10155_v3 = vpack.c.bf16 %v988_v60, %v987_v59  ;;  %v1027_v59 = vld [vmem:[%s12026_s11 + $0x1110] sm:$0xff] }
 0x120   : > { %3434 = vmatmul.mubr.f32.vlgmr.msra.gmra.mrb[12].mxu0 %v377_v9  ;;  %v10125_v9 = vpack.c.bf16 %v940_v1, %v939_v0  ;;  %v1045_v0 = vld [vmem:[%s12026_s11 + $0x11a0] sm:$0xff]  ;;  %v1046_v1 = vld [vmem:[%s12026_s11 + $0x11a8] sm:$0xff] }
 0x121   : > { %10106 = vmatpush3.bf16.msra.mxu0 %v10105_v10  ;;  %3504 = vmatmul.mubr.f32.vlgmr.msra.gmra.mrb[12].mxu1 %v379_v11  ;;  %v10157_v10 = vpack.c.bf16 %v972_v4, %v971_v2  ;;  %v10127_v11 = vpack.c.bf16 %v958_v6, %v957_v5  ;;  %v386_v2 = vld [vmem:[%s12036_s23 + $0x108] sm:$0xff]  ;;  %v388_v4 = vld [vmem:[%s12036_s23 + $0x118] sm:$0xff] }
 0x122   : > { %10138 = vmatpush3.bf16.msra.mxu1 %v10137_v12  ;;  %10108 = vmatprep.subr.bf16.mxu0 %v10107_v13  ;;  %v941_v12 = vld [vmem:[%s12026_s11 + $0xe60] sm:$0xff]  ;;  %v942_v13 = vld [vmem:[%s12026_s11 + $0xe68] sm:$0xff] }
 0x123   : > { %10140 = vmatprep.subr.bf16.mxu1 %v10139_v17  ;;  %3573 = vmatprep.mubr.f32.mxu0 %v382_v23  ;;  %v974_v17 = vld [vmem:[%s12026_s11 + $0xf68] sm:$0xff]  ;;  %v992_v23 = vld [vmem:[%s12026_s11 + $0xff8] sm:$0xff] }
 0x124   : > { %3643 = vmatprep.mubr.f32.mxu1 %v384_v25  ;;  %v10161_v28 = vpack.c.bf16 %v974_v17, %v973_v14  ;;  %v10163_v33 = vpack.c.bf16 %v992_v23, %v991_v22  ;;  %v1047_v14 = vld [vmem:[%s12026_s11 + $0x11b0] sm:$0xff]  ;;  %v1032_v23 = vld [vmem:[%s12026_s11 + $0x1138] sm:$0xff] }
 0x125   : > { %10110 = vmatpush3.bf16.msra.mxu0 %v10109_v24 }
 0x126   : > { %10142 = vmatpush3.bf16.msra.mxu1 %v10141_v26  ;;  %10112 = vmatprep.subr.bf16.mxu0 %v10111_v27  ;;  %v10129_v26 = vpack.c.bf16 %v942_v13, %v941_v12  ;;  %v1015_v12 = vld [vmem:[%s12026_s11 + $0x10b0] sm:$0xff]  ;;  %v1016_v13 = vld [vmem:[%s12026_s11 + $0x10b8] sm:$0xff] }
 0x127   : > { %10144 = vmatprep.subr.bf16.mxu1 %v10143_v31  ;;  %v944_v31 = vld [vmem:[%s12026_s11 + $0xe78] sm:$0xff]  ;;  %v10179_v18 = vpack.c.bf16 %v1016_v13, %v1015_v12  ;;  %v1039_v12 = vld [vmem:[%s12026_s11 + $0x1170] sm:$0xff] }
 0x128   : > { %v10133_v40 = vpack.c.bf16 %v944_v31, %v943_v30  ;;  %v1001_v31 = vld [vmem:[%s12026_s11 + $0x1040] sm:$0xff] }
 0x129   : > { %10114 = vmatpush3.bf16.msra.mxu0 %v10113_v37 }
 0x12a   : > { %10146 = vmatpush3.bf16.msra.mxu1 %v10145_v38  ;;  %10116 = vmatprep.subr.bf16.mxu0 %v10115_v39  ;;  %v1041_v38 = vld [vmem:[%s12026_s11 + $0x1180] sm:$0xff]  ;;  %v1042_v39 = vld [vmem:[%s12026_s11 + $0x1188] sm:$0xff] }
 0x12b   : > { %10148 = vmatprep.subr.bf16.mxu1 %v10147_v43  ;;  %v993_v43 = vld [vmem:[%s12026_s11 + $0x1000] sm:$0xff]  ;;  %v10199_v46 = vpack.c.bf16 %v1042_v39, %v1041_v38  ;;  %v1020_v38 = vld [vmem:[%s12026_s11 + $0x10d8] sm:$0xff]  ;;  %v1051_v39 = vld [vmem:[%s12026_s11 + $0x11d0] sm:$0xff] }
 0x12c   : > { %v10169_v53 = vpack.c.bf16 %v994_v44, %v993_v43  ;;  %v10187_v43 = vpack.c.bf16 %v1020_v38, %v1019_v36  ;;  %v1003_v44 = vld [vmem:[%s12026_s11 + $0x1050] sm:$0xff] }
 0x12d   : > { %10118 = vmatpush3.bf16.msra.mxu0 %v10117_v49  ;;  %v1012_v49 = vld [vmem:[%s12026_s11 + $0x1098] sm:$0xff]  ;;  %v1059_v38 = vld [vmem:[%s12026_s11 + $0x1210] sm:$0xff] }
 0x12e   : > { %10150 = vmatpush3.bf16.msra.mxu1 %v10149_v50  ;;  %10120 = vmatprep.subr.bf16.mxu0 %v10119_v51  ;;  %v1043_v50 = vld [vmem:[%s12026_s11 + $0x1190] sm:$0xff]  ;;  %v1044_v51 = vld [vmem:[%s12026_s11 + $0x1198] sm:$0xff]  ;;  %v10171_v56 = vpack.c.bf16 %v1012_v49, %v1011_v48  ;;  %v1021_v49 = vld [vmem:[%s12026_s11 + $0x10e0] sm:$0xff] }
 0x12f   : > { %10152 = vmatprep.subr.bf16.mxu1 %v10151_v55  ;;  %v10201_v55 = vpack.c.bf16 %v1026_v47, %v1025_v45  ;;  %v10203_v60 = vpack.c.bf16 %v1044_v51, %v1043_v50  ;;  %v1004_v45 = vld [vmem:[%s12026_s11 + $0x1058] sm:$0xff]  ;;  %v1022_v50 = vld [vmem:[%s12026_s11 + $0x10e8] sm:$0xff]  ;;  %v1053_v51 = vld [vmem:[%s12026_s11 + $0x11e0] sm:$0xff] }
 0x130   : > { %v1036_v48 = vld [vmem:[%s12026_s11 + $0x1158] sm:$0xff] }
 0x131   : > { %10122 = vmatpush3.bf16.msra.mxu0 %v10121_v61  ;;  %v1028_v61 = vld [vmem:[%s12026_s11 + $0x1118] sm:$0xff] }
 0x132   : > { %10154 = vmatpush3.bf16.msra.mxu1 %v10153_v62  ;;  %10124 = vmatprep.subr.bf16.mxu0 %v10123_v63  ;;  %v1013_v62 = vld [vmem:[%s12026_s11 + $0x10a0] sm:$0xff]  ;;  %v1014_v63 = vld [vmem:[%s12026_s11 + $0x10a8] sm:$0xff]  ;;  %v10205_v5 = vpack.c.bf16 %v1028_v61, %v1027_v59 }
 0x133   : > { %v7361_v15 = vpop.f32.mrb[0].mxu0  ;;  %10156 = vmatprep.subr.bf16.mxu1 %v10155_v3  ;;  %v10173_v3 = vpack.c.bf16 %v996_v58, %v995_v57  ;;  %v10175_v6 = vpack.c.bf16 %v1014_v63, %v1013_v62  ;;  %v1006_v57 = vld [vmem:[%s12026_s11 + $0x1068] sm:$0xff]  ;;  %v1037_v58 = vld [vmem:[%s12026_s11 + $0x1160] sm:$0xff]  ;;  %v1023_v62 = vld [vmem:[%s12026_s11 + $0x10f0] sm:$0xff] }
 0x134   : > { %v7396_v20 = vpop.f32.mrb[0].mxu1  ;;  %v7362_v21 = vpop.f32.mrb[1].mxu0  ;;  %v1038_v61 = vld [vmem:[%s12026_s11 + $0x1168] sm:$0xff]  ;;  %v1024_v63 = vld [vmem:[%s12026_s11 + $0x10f8] sm:$0xff] }
 0x135   : > { %v7363_v24 = vadd.f32 %v7362_v21, %v7361_v15  ;;  %v7397_v25 = vpop.f32.mrb[1].mxu1  ;;  %10126 = vmatpush3.bf16.msra.mxu0 %v10125_v9  ;;  %v1029_v9 = vld [vmem:[%s12026_s11 + $0x1120] sm:$0xff]  ;;  %v1048_v15 = vld [vmem:[%s12026_s11 + $0x11b8] sm:$0xff]  ;;  %v1031_v21 = vld [vmem:[%s12026_s11 + $0x1130] sm:$0xff] }
 0x136   : > { %v7398_v27 = vadd.f32 %v7397_v25, %v7396_v20  ;;  %10158 = vmatpush3.bf16.msra.mxu1 %v10157_v10  ;;  %10128 = vmatprep.subr.bf16.mxu0 %v10127_v11  ;;  %v10207_v10 = vpack.c.bf16 %v1046_v1, %v1045_v0  ;;  %v1030_v11 = vld [vmem:[%s12026_s11 + $0x1128] sm:$0xff]  ;;  %v1000_v20 = vld [vmem:[%s12026_s11 + $0x1038] sm:$0xff]  ;;  %v10211_v22 = vpack.c.bf16 %v1048_v15, %v1047_v14 }
 0x137   : > { %10160 = vmatprep.subr.bf16.mxu1 %v10159_v16  ;;  %v10177_v16 = vpack.c.bf16 %v998_v8, %v997_v7  ;;  %v10209_v17 = vpack.c.bf16 %v1030_v11, %v1029_v9  ;;  %v1018_v25 = vld [vmem:[%s12026_s11 + $0x10c8] sm:$0xff]  ;;  %v10225_v8 = vpack.c.bf16 %v1038_v61, %v1037_v58  ;;  %v10195_v9 = vpack.c.bf16 %v1024_v63, %v1023_v62  ;;  %v1008_v11 = vld [vmem:[%s12026_s11 + $0x1078] sm:$0xff] }
 0x138   : > { %v12583_v37 = vadd.f32 %v7398_v27, %v7363_v24  ;;  %v1017_v24 = vld [vmem:[%s12026_s11 + $0x10c0] sm:$0xff]  ;;  %v1050_v27 = vld [vmem:[%s12026_s11 + $0x11c8] sm:$0xff]  ;;  %v1040_v15 = vld [vmem:[%s12026_s11 + $0x1178] sm:$0xff] }
 0x139   : > { %10130 = vmatpush3.bf16.msra.mxu0 %v10129_v26  ;;  %v1049_v26 = vld [vmem:[%s12026_s11 + $0x11c0] sm:$0xff]  ;;  %v10183_v30 = vpack.c.bf16 %v1018_v25, %v1017_v24  ;;  %v1058_v24 = vld [vmem:[%s12026_s11 + $0x1208] sm:$0xff]  ;;  %v1080_v58 = vld [vmem:[%s12026_s11 + $0x12b8] sm:$0xff] }
 0x13a   : > { %10162 = vmatpush3.bf16.msra.mxu1 %v10161_v28  ;;  %10132 = vmatprep.subr.bf16.mxu0 %v10131_v29  ;;  %v10181_v28 = vpack.c.bf16 %v1000_v20, %v999_v19  ;;  %v10213_v29 = vpack.c.bf16 %v1032_v23, %v1031_v21  ;;  %v10215_v34 = vpack.c.bf16 %v1050_v27, %v1049_v26  ;;  %v1106_v19 = vld [vmem:[%s12026_s11 + $0x1388] sm:$0xff]  ;;  %v1057_v23 = vld [vmem:[%s12026_s11 + $0x1200] sm:$0xff] }
 0x13b   : > { %10164 = vmatprep.subr.bf16.mxu1 %v10163_v33  ;;  %v1033_v33 = vld [vmem:[%s12026_s11 + $0x1140] sm:$0xff]  ;;  %v1090_v27 = vld [vmem:[%s12026_s11 + $0x1308] sm:$0xff] }
 0x13c   : > { %v1089_v25 = vld [vmem:[%s12026_s11 + $0x1300] sm:$0xff] }
 0x13d   : > { %10134 = vmatpush3.bf16.msra.mxu0 %v10133_v40  ;;  %v1052_v40 = vld [vmem:[%s12026_s11 + $0x11d8] sm:$0xff] }
 0x13e   : > { %10166 = vmatpush3.bf16.msra.mxu1 %v10165_v41  ;;  %10168 = vmatprep.subr.bf16.mxu0 %v10167_v42  ;;  %v10185_v41 = vpack.c.bf16 %v1002_v32, %v1001_v31  ;;  %v10217_v42 = vpack.c.bf16 %v1034_v35, %v1033_v33  ;;  %v10219_v47 = vpack.c.bf16 %v1052_v40, %v1051_v39  ;;  %v1108_v31 = vld [vmem:[%s12026_s11 + $0x1398] sm:$0xff]  ;;  %v1091_v40 = vld [vmem:[%s12026_s11 + $0x1310] sm:$0xff] }
 0x13f   : > { %10200 = vmatprep.subr.bf16.mxu1 %v10199_v46  ;;  %v1035_v46 = vld [vmem:[%s12026_s11 + $0x1150] sm:$0xff]  ;;  %v385_v32 = vld [vmem:[%s12036_s23 + $0x100] sm:$0xff]  ;;  %v10233_v33 = vpack.c.bf16 %v1058_v24, %v1057_v23  ;;  %v10265_v35 = vpack.c.bf16 %v1090_v27, %v1089_v25 }
 0x140   : > { %3574 = vmatmul.mubr.f32.vlgmr.msra.gmra.mrb[14].mxu0 %v381_v52  ;;  %v1054_v52 = vld [vmem:[%s12026_s11 + $0x11e8] sm:$0xff]  ;;  %v1060_v39 = vld [vmem:[%s12026_s11 + $0x1218] sm:$0xff]  ;;  %v1067_v24 = vld [vmem:[%s12026_s11 + $0x1250] sm:$0xff] }
 0x141   : > { %10170 = vmatpush3.bf16.msra.mxu0 %v10169_v53  ;;  %3644 = vmatmul.mubr.f32.vlgmr.msra.gmra.mrb[14].mxu1 %v383_v54  ;;  %v10189_v53 = vpack.c.bf16 %v1004_v45, %v1003_v44  ;;  %v10221_v54 = vpack.c.bf16 %v1036_v48, %v1035_v46  ;;  %v1078_v44 = vld [vmem:[%s12026_s11 + $0x12a8] sm:$0xff]  ;;  %v1109_v45 = vld [vmem:[%s12026_s11 + $0x13a0] sm:$0xff]  ;;  %v10237_v48 = vpack.c.bf16 %v1060_v39, %v1059_v38  ;;  %v1068_v25 = vld [vmem:[%s12026_s11 + $0x1258] sm:$0xff] }
 0x142   : > { %10202 = vmatpush3.bf16.msra.mxu1 %v10201_v55  ;;  %10172 = vmatprep.subr.bf16.mxu0 %v10171_v56  ;;  %v10191_v55 = vpack.c.bf16 %v1022_v50, %v1021_v49  ;;  %v1005_v56 = vld [vmem:[%s12026_s11 + $0x1060] sm:$0xff]  ;;  %v1110_v46 = vld [vmem:[%s12026_s11 + $0x13a8] sm:$0xff]  ;;  %v392_v49 = vld [vmem:[%s12036_s23 + $0x138] sm:$0xff] }
 0x143   : > { %10204 = vmatprep.subr.bf16.mxu1 %v10203_v60  ;;  %3713 = vmatprep.mubr.f32.mxu0 %v386_v2  ;;  %v10223_v60 = vpack.c.bf16 %v1054_v52, %v1053_v51  ;;  %v1055_v2 = vld [vmem:[%s12026_s11 + $0x11f0] sm:$0xff]  ;;  %v1061_v52 = vld [vmem:[%s12026_s11 + $0x1220] sm:$0xff]  ;;  %v1070_v38 = vld [vmem:[%s12026_s11 + $0x1268] sm:$0xff] }
 0x144   : > { %3783 = vmatprep.mubr.f32.mxu1 %v388_v4  ;;  %v1101_v39 = vld [vmem:[%s12026_s11 + $0x1360] sm:$0xff] }
 0x145   : > { %10174 = vmatpush3.bf16.msra.mxu0 %v10173_v3  ;;  %v1056_v3 = vld [vmem:[%s12026_s11 + $0x11f8] sm:$0xff] }
 0x146   : > { %10206 = vmatpush3.bf16.msra.mxu1 %v10205_v5  ;;  %10176 = vmatprep.subr.bf16.mxu0 %v10175_v6  ;;  %v10193_v6 = vpack.c.bf16 %v1006_v57, %v1005_v56  ;;  %v10227_v14 = vpack.c.bf16 %v1056_v3, %v1055_v2  ;;  %v1094_v56 = vld [vmem:[%s12026_s11 + $0x1328] sm:$0xff]  ;;  %v1079_v57 = vld [vmem:[%s12026_s11 + $0x12b0] sm:$0xff] }
 0x147   : > { %10208 = vmatprep.subr.bf16.mxu1 %v10207_v10  ;;  %v1007_v10 = vld [vmem:[%s12026_s11 + $0x1070] sm:$0xff]  ;;  %v10243_v63 = vpack.c.bf16 %v1080_v58, %v1079_v57 }
 0x148   : > { %v10197_v21 = vpack.c.bf16 %v1008_v11, %v1007_v10  ;;  %v1095_v2 = vld [vmem:[%s12026_s11 + $0x1330] sm:$0xff] }
 0x149   : > { %10178 = vmatpush3.bf16.msra.mxu0 %v10177_v16  ;;  %v1073_v16 = vld [vmem:[%s12026_s11 + $0x1280] sm:$0xff]  ;;  %v1103_v57 = vld [vmem:[%s12026_s11 + $0x1370] sm:$0xff] }
 0x14a   : > { %10210 = vmatpush3.bf16.msra.mxu1 %v10209_v17  ;;  %10180 = vmatprep.subr.bf16.mxu0 %v10179_v18  ;;  %v1074_v17 = vld [vmem:[%s12026_s11 + $0x1288] sm:$0xff]  ;;  %v1105_v18 = vld [vmem:[%s12026_s11 + $0x1380] sm:$0xff] }
 0x14b   : > { %10212 = vmatprep.subr.bf16.mxu1 %v10211_v22  ;;  %v10231_v22 = vpack.c.bf16 %v1074_v17, %v1073_v16  ;;  %v10263_v26 = vpack.c.bf16 %v1106_v19, %v1105_v18  ;;  %v1098_v16 = vld [vmem:[%s12026_s11 + $0x1348] sm:$0xff]  ;;  %v1083_v17 = vld [vmem:[%s12026_s11 + $0x12d0] sm:$0xff]  ;;  %v1084_v18 = vld [vmem:[%s12026_s11 + $0x12d8] sm:$0xff] }
 0x14c   : > { %v1115_v19 = vld [vmem:[%s12026_s11 + $0x13d0] sm:$0xff]  ;;  %v10251_v23 = vpack.c.bf16 %v1084_v18, %v1083_v17 }
 0x14d   : > { %10182 = vmatpush3.bf16.msra.mxu0 %v10181_v28  ;;  %v1075_v28 = vld [vmem:[%s12026_s11 + $0x1290] sm:$0xff] }
 0x14e   : > { %10214 = vmatpush3.bf16.msra.mxu1 %v10213_v29  ;;  %10184 = vmatprep.subr.bf16.mxu0 %v10183_v30  ;;  %v1076_v29 = vld [vmem:[%s12026_s11 + $0x1298] sm:$0xff]  ;;  %v1107_v30 = vld [vmem:[%s12026_s11 + $0x1390] sm:$0xff] }
 0x14f   : > { %10216 = vmatprep.subr.bf16.mxu1 %v10215_v34  ;;  %v387_v34 = vld [vmem:[%s12036_s23 + $0x110] sm:$0xff]  ;;  %v10235_v36 = vpack.c.bf16 %v1076_v29, %v1075_v28  ;;  %v1100_v28 = vld [vmem:[%s12026_s11 + $0x1358] sm:$0xff]  ;;  %v1085_v29 = vld [vmem:[%s12026_s11 + $0x12e0] sm:$0xff] }
 0x150   : > { %v1123_v18 = vld [vmem:[%s12026_s11 + $0x1410] sm:$0xff] }
 0x151   : > { %10186 = vmatpush3.bf16.msra.mxu0 %v10185_v41  ;;  %v10267_v41 = vpack.c.bf16 %v1108_v31, %v1107_v30  ;;  %v1086_v30 = vld [vmem:[%s12026_s11 + $0x12e8] sm:$0xff]  ;;  %v1117_v31 = vld [vmem:[%s12026_s11 + $0x13e0] sm:$0xff] }
 0x152   : > { %10218 = vmatpush3.bf16.msra.mxu1 %v10217_v42  ;;  %10188 = vmatprep.subr.bf16.mxu0 %v10187_v43  ;;  %v1092_v42 = vld [vmem:[%s12026_s11 + $0x1318] sm:$0xff]  ;;  %v1077_v43 = vld [vmem:[%s12026_s11 + $0x12a0] sm:$0xff] }
 0x153   : > { %v7431_v59 = vpop.f32.mrb[2].mxu0  ;;  %10220 = vmatprep.subr.bf16.mxu1 %v10219_v47  ;;  %v390_v47 = vld [vmem:[%s12036_s23 + $0x128] sm:$0xff]  ;;  %v10269_v50 = vpack.c.bf16 %v1092_v42, %v1091_v40  ;;  %v10239_v51 = vpack.c.bf16 %v1078_v44, %v1077_v43  ;;  %v1102_v42 = vld [vmem:[%s12026_s11 + $0x1368] sm:$0xff]  ;;  %v1087_v43 = vld [vmem:[%s12026_s11 + $0x12f0] sm:$0xff] }
 0x154   : > { %v7432_v0 = vpop.f32.mrb[3].mxu0  ;;  %v7466_v1 = vpop.f32.mrb[2].mxu1  ;;  %v1088_v44 = vld [vmem:[%s12026_s11 + $0x12f8] sm:$0xff] }
 0x155   : > { %v7433_v4 = vadd.f32 %v7432_v0, %v7431_v59  ;;  %10190 = vmatpush3.bf16.msra.mxu0 %v10189_v53  ;;  %v7467_v5 = vpop.f32.mrb[3].mxu1  ;;  %v1062_v53 = vld [vmem:[%s12026_s11 + $0x1228] sm:$0xff]  ;;  %v1111_v59 = vld [vmem:[%s12026_s11 + $0x13b0] sm:$0xff] }
 0x156   : > { %v7468_v7 = vadd.f32 %v7467_v5, %v7466_v1  ;;  %10222 = vmatpush3.bf16.msra.mxu1 %v10221_v54  ;;  %10192 = vmatprep.subr.bf16.mxu0 %v10191_v55  ;;  %v1093_v54 = vld [vmem:[%s12026_s11 + $0x1320] sm:$0xff]  ;;  %v10271_v55 = vpack.c.bf16 %v1110_v46, %v1109_v45  ;;  %v10241_v61 = vpack.c.bf16 %v1062_v53, %v1061_v52  ;;  %v1063_v0 = vld [vmem:[%s12026_s11 + $0x1230] sm:$0xff]  ;;  %v1064_v1 = vld [vmem:[%s12026_s11 + $0x1238] sm:$0xff] }
 0x157   : > { %v2736_v13 = vadd.f32 %v7433_v4, %v12583_v37  ;;  %10224 = vmatprep.subr.bf16.mxu1 %v10223_v60  ;;  %v10229_v37 = vpack.c.bf16 %v1040_v15, %v1039_v12  ;;  %v1112_v60 = vld [vmem:[%s12026_s11 + $0x13b8] sm:$0xff]  ;;  %v10273_v62 = vpack.c.bf16 %v1094_v56, %v1093_v54  ;;  %v1081_v5 = vld [vmem:[%s12026_s11 + $0x12c0] sm:$0xff]  ;;  %v10289_v53 = vpack.c.bf16 %v1102_v42, %v1101_v39 }
 0x158   : > { %v10275_v3 = vpack.c.bf16 %v1112_v60, %v1111_v59  ;;  %v1096_v4 = vld [vmem:[%s12026_s11 + $0x1338] sm:$0xff]  ;;  %v1065_v12 = vld [vmem:[%s12026_s11 + $0x1240] sm:$0xff]  ;;  %v10259_v54 = vpack.c.bf16 %v1088_v44, %v1087_v43 }
 0x159   : > { %v12656_v20 = vadd.f32 %v7468_v7, %v2736_v13  ;;  %10194 = vmatpush3.bf16.msra.mxu0 %v10193_v6  ;;  %v1082_v6 = vld [vmem:[%s12026_s11 + $0x12c8] sm:$0xff]  ;;  %v1113_v7 = vld [vmem:[%s12026_s11 + $0x13c0] sm:$0xff]  ;;  %v10277_v10 = vpack.c.bf16 %v1096_v4, %v1095_v2  ;;  %v1072_v56 = vld [vmem:[%s12026_s11 + $0x1278] sm:$0xff] }
 0x15a   : > { %10226 = vmatpush3.bf16.msra.mxu1 %v10225_v8  ;;  %10196 = vmatprep.subr.bf16.mxu0 %v10195_v9  ;;  %v1114_v8 = vld [vmem:[%s12026_s11 + $0x13c8] sm:$0xff]  ;;  %v10245_v9 = vpack.c.bf16 %v1064_v1, %v1063_v0  ;;  %v10247_v11 = vpack.c.bf16 %v1082_v6, %v1081_v5  ;;  %v1104_v60 = vld [vmem:[%s12026_s11 + $0x1378] sm:$0xff]  ;;  %v1121_v4 = vld [vmem:[%s12026_s11 + $0x1400] sm:$0xff] }
 0x15b   : > { %10228 = vmatprep.subr.bf16.mxu1 %v10227_v14  ;;  %v1066_v13 = vld [vmem:[%s12026_s11 + $0x1248] sm:$0xff]  ;;  %v1097_v14 = vld [vmem:[%s12026_s11 + $0x1340] sm:$0xff]  ;;  %v10279_v15 = vpack.c.bf16 %v1114_v8, %v1113_v7  ;;  %v1144_v39 = vld [vmem:[%s12026_s11 + $0x14b8] sm:$0xff] }
 0x15c   : > { %v1170_v0 = vld [vmem:[%s12026_s11 + $0x1588] sm:$0xff]  ;;  %v1153_v6 = vld [vmem:[%s12026_s11 + $0x1500] sm:$0xff] }
 0x15d   : > { %10198 = vmatpush3.bf16.msra.mxu0 %v10197_v21  ;;  %v1116_v21 = vld [vmem:[%s12026_s11 + $0x13d8] sm:$0xff]  ;;  %v1122_v5 = vld [vmem:[%s12026_s11 + $0x1408] sm:$0xff] }
 0x15e   : > { %10230 = vmatpush3.bf16.msra.mxu1 %v10229_v37  ;;  %10232 = vmatprep.subr.bf16.mxu0 %v10231_v22  ;;  %v10249_v37 = vpack.c.bf16 %v1066_v13, %v1065_v12  ;;  %v10281_v22 = vpack.c.bf16 %v1098_v16, %v1097_v14  ;;  %v10283_v27 = vpack.c.bf16 %v1116_v21, %v1115_v19  ;;  %v1154_v8 = vld [vmem:[%s12026_s11 + $0x1508] sm:$0xff]  ;;  %v1172_v12 = vld [vmem:[%s12026_s11 + $0x1598] sm:$0xff]  ;;  %v1155_v21 = vld [vmem:[%s12026_s11 + $0x1510] sm:$0xff] }
 0x15f   : > { %10264 = vmatprep.subr.bf16.mxu1 %v10263_v26  ;;  %v1099_v26 = vld [vmem:[%s12026_s11 + $0x1350] sm:$0xff]  ;;  %v389_v13 = vld [vmem:[%s12036_s23 + $0x120] sm:$0xff]  ;;  %v10297_v14 = vpack.c.bf16 %v1122_v5, %v1121_v4  ;;  %v10329_v16 = vpack.c.bf16 %v1154_v8, %v1153_v6 }
 0x160   : > { %3714 = vmatmul.mubr.f32.vlgmr.msra.gmra.mrb[16].mxu0 %v385_v32  ;;  %v1118_v32 = vld [vmem:[%s12026_s11 + $0x13e8] sm:$0xff]  ;;  %v1124_v19 = vld [vmem:[%s12026_s11 + $0x1418] sm:$0xff]  ;;  %v1131_v5 = vld [vmem:[%s12026_s11 + $0x1450] sm:$0xff] }
 0x161   : > { %10234 = vmatpush3.bf16.msra.mxu0 %v10233_v33  ;;  %3784 = vmatmul.mubr.f32.vlgmr.msra.gmra.mrb[16].mxu1 %v387_v34  ;;  %v10253_v33 = vpack.c.bf16 %v1068_v25, %v1067_v24  ;;  %v10285_v34 = vpack.c.bf16 %v1100_v28, %v1099_v26  ;;  %v1142_v24 = vld [vmem:[%s12026_s11 + $0x14a8] sm:$0xff]  ;;  %v1173_v25 = vld [vmem:[%s12026_s11 + $0x15a0] sm:$0xff]  ;;  %v10301_v28 = vpack.c.bf16 %v1124_v19, %v1123_v18  ;;  %v1132_v6 = vld [vmem:[%s12026_s11 + $0x1458] sm:$0xff] }
 0x162   : > { %10266 = vmatpush3.bf16.msra.mxu1 %v10265_v35  ;;  %10236 = vmatprep.subr.bf16.mxu0 %v10235_v36  ;;  %v10255_v35 = vpack.c.bf16 %v1086_v30, %v1085_v29  ;;  %v1069_v36 = vld [vmem:[%s12026_s11 + $0x1260] sm:$0xff]  ;;  %v1174_v26 = vld [vmem:[%s12026_s11 + $0x15a8] sm:$0xff]  ;;  %v396_v29 = vld [vmem:[%s12036_s23 + $0x158] sm:$0xff] }
 0x163   : > { %10268 = vmatprep.subr.bf16.mxu1 %v10267_v41  ;;  %3853 = vmatprep.mubr.f32.mxu0 %v390_v47  ;;  %v10287_v41 = vpack.c.bf16 %v1118_v32, %v1117_v31  ;;  %v1119_v47 = vld [vmem:[%s12026_s11 + $0x13f0] sm:$0xff]  ;;  %v1125_v32 = vld [vmem:[%s12026_s11 + $0x1420] sm:$0xff]  ;;  %v1134_v18 = vld [vmem:[%s12026_s11 + $0x1468] sm:$0xff] }
 0x164   : > { %3923 = vmatprep.mubr.f32.mxu1 %v392_v49  ;;  %v1165_v19 = vld [vmem:[%s12026_s11 + $0x1560] sm:$0xff] }
 0x165   : > { %10238 = vmatpush3.bf16.msra.mxu0 %v10237_v48  ;;  %v1120_v48 = vld [vmem:[%s12026_s11 + $0x13f8] sm:$0xff] }
 0x166   : > { %10270 = vmatpush3.bf16.msra.mxu1 %v10269_v50  ;;  %10240 = vmatprep.subr.bf16.mxu0 %v10239_v51  ;;  %v10257_v51 = vpack.c.bf16 %v1070_v38, %v1069_v36  ;;  %v10291_v59 = vpack.c.bf16 %v1120_v48, %v1119_v47  ;;  %v1158_v36 = vld [vmem:[%s12026_s11 + $0x1528] sm:$0xff]  ;;  %v1143_v38 = vld [vmem:[%s12026_s11 + $0x14b0] sm:$0xff] }
 0x167   : > { %10272 = vmatprep.subr.bf16.mxu1 %v10271_v55  ;;  %v1071_v55 = vld [vmem:[%s12026_s11 + $0x1270] sm:$0xff]  ;;  %v10307_v44 = vpack.c.bf16 %v1144_v39, %v1143_v38 }
 0x168   : > { %v10261_v2 = vpack.c.bf16 %v1072_v56, %v1071_v55  ;;  %v1159_v47 = vld [vmem:[%s12026_s11 + $0x1530] sm:$0xff] }
 0x169   : > { %10242 = vmatpush3.bf16.msra.mxu0 %v10241_v61  ;;  %v1137_v61 = vld [vmem:[%s12026_s11 + $0x1480] sm:$0xff]  ;;  %v1167_v38 = vld [vmem:[%s12026_s11 + $0x1570] sm:$0xff] }
 0x16a   : > { %10274 = vmatpush3.bf16.msra.mxu1 %v10273_v62  ;;  %10244 = vmatprep.subr.bf16.mxu0 %v10243_v63  ;;  %v1138_v62 = vld [vmem:[%s12026_s11 + $0x1488] sm:$0xff]  ;;  %v1169_v63 = vld [vmem:[%s12026_s11 + $0x1580] sm:$0xff] }
 0x16b   : > { %10276 = vmatprep.subr.bf16.mxu1 %v10275_v3  ;;  %v10295_v3 = vpack.c.bf16 %v1138_v62, %v1137_v61  ;;  %v10327_v7 = vpack.c.bf16 %v1170_v0, %v1169_v63  ;;  %v1162_v61 = vld [vmem:[%s12026_s11 + $0x1548] sm:$0xff]  ;;  %v1147_v62 = vld [vmem:[%s12026_s11 + $0x14d0] sm:$0xff]  ;;  %v1148_v63 = vld [vmem:[%s12026_s11 + $0x14d8] sm:$0xff] }
 0x16c   : > { %v1179_v0 = vld [vmem:[%s12026_s11 + $0x15d0] sm:$0xff]  ;;  %v10315_v4 = vpack.c.bf16 %v1148_v63, %v1147_v62 }
 0x16d   : > { %10246 = vmatpush3.bf16.msra.mxu0 %v10245_v9  ;;  %v1139_v9 = vld [vmem:[%s12026_s11 + $0x1490] sm:$0xff] }
 0x16e   : > { %10278 = vmatpush3.bf16.msra.mxu1 %v10277_v10  ;;  %10248 = vmatprep.subr.bf16.mxu0 %v10247_v11  ;;  %v1140_v10 = vld [vmem:[%s12026_s11 + $0x1498] sm:$0xff]  ;;  %v1171_v11 = vld [vmem:[%s12026_s11 + $0x1590] sm:$0xff] }
 0x16f   : > { %10280 = vmatprep.subr.bf16.mxu1 %v10279_v15  ;;  %v391_v15 = vld [vmem:[%s12036_s23 + $0x130] sm:$0xff]  ;;  %v10299_v17 = vpack.c.bf16 %v1140_v10, %v1139_v9  ;;  %v1164_v9 = vld [vmem:[%s12026_s11 + $0x1558] sm:$0xff]  ;;  %v1149_v10 = vld [vmem:[%s12026_s11 + $0x14e0] sm:$0xff] }
 0x170   : > { %v1187_v63 = vld [vmem:[%s12026_s11 + $0x1610] sm:$0xff] }
 0x171   : > { %10250 = vmatpush3.bf16.msra.mxu0 %v10249_v37  ;;  %v10331_v37 = vpack.c.bf16 %v1172_v12, %v1171_v11  ;;  %v1150_v11 = vld [vmem:[%s12026_s11 + $0x14e8] sm:$0xff]  ;;  %v1181_v12 = vld [vmem:[%s12026_s11 + $0x15e0] sm:$0xff] }
 0x172   : > { %10282 = vmatpush3.bf16.msra.mxu1 %v10281_v22  ;;  %10252 = vmatprep.subr.bf16.mxu0 %v10251_v23  ;;  %v1156_v22 = vld [vmem:[%s12026_s11 + $0x1518] sm:$0xff]  ;;  %v1141_v23 = vld [vmem:[%s12026_s11 + $0x14a0] sm:$0xff] }
 0x173   : > { %v7501_v40 = vpop.f32.mrb[4].mxu0  ;;  %10284 = vmatprep.subr.bf16.mxu1 %v10283_v27  ;;  %v394_v27 = vld [vmem:[%s12036_s23 + $0x148] sm:$0xff]  ;;  %v10333_v30 = vpack.c.bf16 %v1156_v22, %v1155_v21  ;;  %v10303_v31 = vpack.c.bf16 %v1142_v24, %v1141_v23  ;;  %v1166_v22 = vld [vmem:[%s12026_s11 + $0x1568] sm:$0xff]  ;;  %v1151_v23 = vld [vmem:[%s12026_s11 + $0x14f0] sm:$0xff] }
 0x174   : > { %v7502_v45 = vpop.f32.mrb[5].mxu0  ;;  %v7536_v46 = vpop.f32.mrb[4].mxu1  ;;  %v1152_v24 = vld [vmem:[%s12026_s11 + $0x14f8] sm:$0xff] }
 0x175   : > { %v7503_v49 = vadd.f32 %v7502_v45, %v7501_v40  ;;  %10254 = vmatpush3.bf16.msra.mxu0 %v10253_v33  ;;  %v7537_v50 = vpop.f32.mrb[5].mxu1  ;;  %v1126_v33 = vld [vmem:[%s12026_s11 + $0x1428] sm:$0xff]  ;;  %v1175_v40 = vld [vmem:[%s12026_s11 + $0x15b0] sm:$0xff] }
 0x176   : > { %v7538_v52 = vadd.f32 %v7537_v50, %v7536_v46  ;;  %10286 = vmatpush3.bf16.msra.mxu1 %v10285_v34  ;;  %10256 = vmatprep.subr.bf16.mxu0 %v10255_v35  ;;  %v1157_v34 = vld [vmem:[%s12026_s11 + $0x1520] sm:$0xff]  ;;  %v10335_v35 = vpack.c.bf16 %v1174_v26, %v1173_v25  ;;  %v10305_v42 = vpack.c.bf16 %v1126_v33, %v1125_v32  ;;  %v1127_v45 = vld [vmem:[%s12026_s11 + $0x1430] sm:$0xff]  ;;  %v1128_v46 = vld [vmem:[%s12026_s11 + $0x1438] sm:$0xff] }
 0x177   : > { %v2876_v58 = vadd.f32 %v7503_v49, %v12656_v20  ;;  %10288 = vmatprep.subr.bf16.mxu1 %v10287_v41  ;;  %v10293_v20 = vpack.c.bf16 %v1104_v60, %v1103_v57  ;;  %v1176_v41 = vld [vmem:[%s12026_s11 + $0x15b8] sm:$0xff]  ;;  %v10337_v43 = vpack.c.bf16 %v1158_v36, %v1157_v34  ;;  %v1145_v50 = vld [vmem:[%s12026_s11 + $0x14c0] sm:$0xff]  ;;  %v10353_v33 = vpack.c.bf16 %v1166_v22, %v1165_v19 }
 0x178   : > { %v10339_v48 = vpack.c.bf16 %v1176_v41, %v1175_v40  ;;  %v1160_v49 = vld [vmem:[%s12026_s11 + $0x1538] sm:$0xff]  ;;  %v1129_v57 = vld [vmem:[%s12026_s11 + $0x1440] sm:$0xff]  ;;  %v10323_v34 = vpack.c.bf16 %v1152_v24, %v1151_v23 }
 0x179   : > { %v12727_v1 = vadd.f32 %v7538_v52, %v2876_v58  ;;  %10258 = vmatpush3.bf16.msra.mxu0 %v10257_v51  ;;  %v1146_v51 = vld [vmem:[%s12026_s11 + $0x14c8] sm:$0xff]  ;;  %v1177_v52 = vld [vmem:[%s12026_s11 + $0x15c0] sm:$0xff]  ;;  %v10341_v55 = vpack.c.bf16 %v1160_v49, %v1159_v47  ;;  %v1136_v36 = vld [vmem:[%s12026_s11 + $0x1478] sm:$0xff] }
 0x17a   : > { %10290 = vmatpush3.bf16.msra.mxu1 %v10289_v53  ;;  %10260 = vmatprep.subr.bf16.mxu0 %v10259_v54  ;;  %v1178_v53 = vld [vmem:[%s12026_s11 + $0x15c8] sm:$0xff]  ;;  %v10309_v54 = vpack.c.bf16 %v1128_v46, %v1127_v45  ;;  %v10311_v56 = vpack.c.bf16 %v1146_v51, %v1145_v50  ;;  %v1168_v41 = vld [vmem:[%s12026_s11 + $0x1578] sm:$0xff]  ;;  %v1185_v49 = vld [vmem:[%s12026_s11 + $0x1600] sm:$0xff] }
 0x17b   : > { %10292 = vmatprep.subr.bf16.mxu1 %v10291_v59  ;;  %v1130_v58 = vld [vmem:[%s12026_s11 + $0x1448] sm:$0xff]  ;;  %v1161_v59 = vld [vmem:[%s12026_s11 + $0x1540] sm:$0xff]  ;;  %v10343_v60 = vpack.c.bf16 %v1178_v53, %v1177_v52  ;;  %v1208_v19 = vld [vmem:[%s12026_s11 + $0x16b8] sm:$0xff] }
 0x17c   : > { %v1234_v45 = vld [vmem:[%s12026_s11 + $0x1788] sm:$0xff]  ;;  %v1217_v51 = vld [vmem:[%s12026_s11 + $0x1700] sm:$0xff] }
 0x17d   : > { %10262 = vmatpush3.bf16.msra.mxu0 %v10261_v2  ;;  %v1180_v2 = vld [vmem:[%s12026_s11 + $0x15d8] sm:$0xff]  ;;  %v1186_v50 = vld [vmem:[%s12026_s11 + $0x1608] sm:$0xff] }
 0x17e   : > { %10294 = vmatpush3.bf16.msra.mxu1 %v10293_v20  ;;  %10296 = vmatprep.subr.bf16.mxu0 %v10295_v3  ;;  %v10313_v20 = vpack.c.bf16 %v1130_v58, %v1129_v57  ;;  %v10345_v3 = vpack.c.bf16 %v1162_v61, %v1161_v59  ;;  %v10347_v8 = vpack.c.bf16 %v1180_v2, %v1179_v0  ;;  %v1218_v53 = vld [vmem:[%s12026_s11 + $0x1708] sm:$0xff]  ;;  %v1236_v57 = vld [vmem:[%s12026_s11 + $0x1798] sm:$0xff]  ;;  %v1219_v2 = vld [vmem:[%s12026_s11 + $0x1710] sm:$0xff] }
 0x17f   : > { %10328 = vmatprep.subr.bf16.mxu1 %v10327_v7  ;;  %v1163_v7 = vld [vmem:[%s12026_s11 + $0x1550] sm:$0xff]  ;;  %v393_v58 = vld [vmem:[%s12036_s23 + $0x140] sm:$0xff]  ;;  %v10361_v59 = vpack.c.bf16 %v1186_v50, %v1185_v49  ;;  %v10393_v61 = vpack.c.bf16 %v1218_v53, %v1217_v51 }
 0x180   : > { %3854 = vmatmul.mubr.f32.vlgmr.msra.gmra.mrb[18].mxu0 %v389_v13  ;;  %v1182_v13 = vld [vmem:[%s12026_s11 + $0x15e8] sm:$0xff]  ;;  %v1188_v0 = vld [vmem:[%s12026_s11 + $0x1618] sm:$0xff]  ;;  %v1195_v50 = vld [vmem:[%s12026_s11 + $0x1650] sm:$0xff] }
 0x181   : > { %10298 = vmatpush3.bf16.msra.mxu0 %v10297_v14  ;;  %3924 = vmatmul.mubr.f32.vlgmr.msra.gmra.mrb[18].mxu1 %v391_v15  ;;  %v10317_v14 = vpack.c.bf16 %v1132_v6, %v1131_v5  ;;  %v10349_v15 = vpack.c.bf16 %v1164_v9, %v1163_v7  ;;  %v1206_v5 = vld [vmem:[%s12026_s11 + $0x16a8] sm:$0xff]  ;;  %v1237_v6 = vld [vmem:[%s12026_s11 + $0x17a0] sm:$0xff]  ;;  %v10365_v9 = vpack.c.bf16 %v1188_v0, %v1187_v63  ;;  %v1196_v51 = vld [vmem:[%s12026_s11 + $0x1658] sm:$0xff] }
 0x182   : > { %10330 = vmatpush3.bf16.msra.mxu1 %v10329_v16  ;;  %10300 = vmatprep.subr.bf16.mxu0 %v10299_v17  ;;  %v10319_v16 = vpack.c.bf16 %v1150_v11, %v1149_v10  ;;  %v1133_v17 = vld [vmem:[%s12026_s11 + $0x1460] sm:$0xff]  ;;  %v1238_v7 = vld [vmem:[%s12026_s11 + $0x17a8] sm:$0xff]  ;;  %v400_v10 = vld [vmem:[%s12036_s23 + $0x178] sm:$0xff] }
 0x183   : > { %10332 = vmatprep.subr.bf16.mxu1 %v10331_v37  ;;  %3993 = vmatprep.mubr.f32.mxu0 %v394_v27  ;;  %v10351_v37 = vpack.c.bf16 %v1182_v13, %v1181_v12  ;;  %v1183_v27 = vld [vmem:[%s12026_s11 + $0x15f0] sm:$0xff]  ;;  %v1189_v13 = vld [vmem:[%s12026_s11 + $0x1620] sm:$0xff]  ;;  %v1198_v63 = vld [vmem:[%s12026_s11 + $0x1668] sm:$0xff] }
 0x184   : > { %4063 = vmatprep.mubr.f32.mxu1 %v396_v29  ;;  %v1229_v0 = vld [vmem:[%s12026_s11 + $0x1760] sm:$0xff] }
 0x185   : > { %10302 = vmatpush3.bf16.msra.mxu0 %v10301_v28  ;;  %v1184_v28 = vld [vmem:[%s12026_s11 + $0x15f8] sm:$0xff] }
 0x186   : > { %10334 = vmatpush3.bf16.msra.mxu1 %v10333_v30  ;;  %10304 = vmatprep.subr.bf16.mxu0 %v10303_v31  ;;  %v10321_v31 = vpack.c.bf16 %v1134_v18, %v1133_v17  ;;  %v10355_v40 = vpack.c.bf16 %v1184_v28, %v1183_v27  ;;  %v1222_v17 = vld [vmem:[%s12026_s11 + $0x1728] sm:$0xff]  ;;  %v1207_v18 = vld [vmem:[%s12026_s11 + $0x16b0] sm:$0xff] }
 0x187   : > { %10336 = vmatprep.subr.bf16.mxu1 %v10335_v35  ;;  %v1135_v35 = vld [vmem:[%s12026_s11 + $0x1470] sm:$0xff]  ;;  %v10371_v24 = vpack.c.bf16 %v1208_v19, %v1207_v18 }
 0x188   : > { %v10325_v47 = vpack.c.bf16 %v1136_v36, %v1135_v35  ;;  %v1223_v27 = vld [vmem:[%s12026_s11 + $0x1730] sm:$0xff] }
 0x189   : > { %10306 = vmatpush3.bf16.msra.mxu0 %v10305_v42  ;;  %v1201_v42 = vld [vmem:[%s12026_s11 + $0x1680] sm:$0xff]  ;;  %v1231_v18 = vld [vmem:[%s12026_s11 + $0x1770] sm:$0xff] }
 0x18a   : > { %10338 = vmatpush3.bf16.msra.mxu1 %v10337_v43  ;;  %10308 = vmatprep.subr.bf16.mxu0 %v10307_v44  ;;  %v1202_v43 = vld [vmem:[%s12026_s11 + $0x1688] sm:$0xff]  ;;  %v1233_v44 = vld [vmem:[%s12026_s11 + $0x1780] sm:$0xff] }
 0x18b   : > { %10340 = vmatprep.subr.bf16.mxu1 %v10339_v48  ;;  %v10359_v48 = vpack.c.bf16 %v1202_v43, %v1201_v42  ;;  %v10391_v52 = vpack.c.bf16 %v1234_v45, %v1233_v44  ;;  %v1226_v42 = vld [vmem:[%s12026_s11 + $0x1748] sm:$0xff]  ;;  %v1211_v43 = vld [vmem:[%s12026_s11 + $0x16d0] sm:$0xff]  ;;  %v1212_v44 = vld [vmem:[%s12026_s11 + $0x16d8] sm:$0xff] }
 0x18c   : > { %v1243_v45 = vld [vmem:[%s12026_s11 + $0x17d0] sm:$0xff]  ;;  %v10379_v49 = vpack.c.bf16 %v1212_v44, %v1211_v43 }
 0x18d   : > { %10310 = vmatpush3.bf16.msra.mxu0 %v10309_v54  ;;  %v1203_v54 = vld [vmem:[%s12026_s11 + $0x1690] sm:$0xff] }
 0x18e   : > { %10342 = vmatpush3.bf16.msra.mxu1 %v10341_v55  ;;  %10312 = vmatprep.subr.bf16.mxu0 %v10311_v56  ;;  %v1204_v55 = vld [vmem:[%s12026_s11 + $0x1698] sm:$0xff]  ;;  %v1235_v56 = vld [vmem:[%s12026_s11 + $0x1790] sm:$0xff] }
 0x18f   : > { %10344 = vmatprep.subr.bf16.mxu1 %v10343_v60  ;;  %v395_v60 = vld [vmem:[%s12036_s23 + $0x150] sm:$0xff]  ;;  %v10363_v62 = vpack.c.bf16 %v1204_v55, %v1203_v54  ;;  %v1228_v54 = vld [vmem:[%s12026_s11 + $0x1758] sm:$0xff]  ;;  %v1213_v55 = vld [vmem:[%s12026_s11 + $0x16e0] sm:$0xff] }
 0x190   : > { %v1251_v44 = vld [vmem:[%s12026_s11 + $0x1810] sm:$0xff] }
 0x191   : > { %10314 = vmatpush3.bf16.msra.mxu0 %v10313_v20  ;;  %v10395_v20 = vpack.c.bf16 %v1236_v57, %v1235_v56  ;;  %v1214_v56 = vld [vmem:[%s12026_s11 + $0x16e8] sm:$0xff]  ;;  %v1245_v57 = vld [vmem:[%s12026_s11 + $0x17e0] sm:$0xff] }
 0x192   : > { %10346 = vmatpush3.bf16.msra.mxu1 %v10345_v3  ;;  %10316 = vmatprep.subr.bf16.mxu0 %v10315_v4  ;;  %v1220_v3 = vld [vmem:[%s12026_s11 + $0x1718] sm:$0xff]  ;;  %v1205_v4 = vld [vmem:[%s12026_s11 + $0x16a0] sm:$0xff] }
 0x193   : > { %v7571_v21 = vpop.f32.mrb[6].mxu0  ;;  %10348 = vmatprep.subr.bf16.mxu1 %v10347_v8  ;;  %v398_v8 = vld [vmem:[%s12036_s23 + $0x168] sm:$0xff]  ;;  %v10397_v11 = vpack.c.bf16 %v1220_v3, %v1219_v2  ;;  %v10367_v12 = vpack.c.bf16 %v1206_v5, %v1205_v4  ;;  %v1230_v3 = vld [vmem:[%s12026_s11 + $0x1768] sm:$0xff]  ;;  %v1215_v4 = vld [vmem:[%s12026_s11 + $0x16f0] sm:$0xff] }
 0x194   : > { %v7572_v25 = vpop.f32.mrb[7].mxu0  ;;  %v7606_v26 = vpop.f32.mrb[6].mxu1  ;;  %v1216_v5 = vld [vmem:[%s12026_s11 + $0x16f8] sm:$0xff] }
 0x195   : > { %v7573_v29 = vadd.f32 %v7572_v25, %v7571_v21  ;;  %10318 = vmatpush3.bf16.msra.mxu0 %v10317_v14  ;;  %v7607_v30 = vpop.f32.mrb[7].mxu1  ;;  %v1190_v14 = vld [vmem:[%s12026_s11 + $0x1628] sm:$0xff]  ;;  %v1239_v21 = vld [vmem:[%s12026_s11 + $0x17b0] sm:$0xff] }
 0x196   : > { %v7608_v32 = vadd.f32 %v7607_v30, %v7606_v26  ;;  %10350 = vmatpush3.bf16.msra.mxu1 %v10349_v15  ;;  %10320 = vmatprep.subr.bf16.mxu0 %v10319_v16  ;;  %v1221_v15 = vld [vmem:[%s12026_s11 + $0x1720] sm:$0xff]  ;;  %v10399_v16 = vpack.c.bf16 %v1238_v7, %v1237_v6  ;;  %v10369_v22 = vpack.c.bf16 %v1190_v14, %v1189_v13  ;;  %v1191_v25 = vld [vmem:[%s12026_s11 + $0x1630] sm:$0xff]  ;;  %v1192_v26 = vld [vmem:[%s12026_s11 + $0x1638] sm:$0xff] }
 0x197   : > { %v3016_v39 = vadd.f32 %v7573_v29, %v12727_v1  ;;  %10352 = vmatprep.subr.bf16.mxu1 %v10351_v37  ;;  %v10357_v1 = vpack.c.bf16 %v1168_v41, %v1167_v38  ;;  %v1240_v37 = vld [vmem:[%s12026_s11 + $0x17b8] sm:$0xff]  ;;  %v10401_v23 = vpack.c.bf16 %v1222_v17, %v1221_v15  ;;  %v1209_v30 = vld [vmem:[%s12026_s11 + $0x16c0] sm:$0xff]  ;;  %v10417_v14 = vpack.c.bf16 %v1230_v3, %v1229_v0 }
 0x198   : > { %v10403_v28 = vpack.c.bf16 %v1240_v37, %v1239_v21  ;;  %v1224_v29 = vld [vmem:[%s12026_s11 + $0x1738] sm:$0xff]  ;;  %v1193_v38 = vld [vmem:[%s12026_s11 + $0x1640] sm:$0xff]  ;;  %v10387_v15 = vpack.c.bf16 %v1216_v5, %v1215_v4 }
 0x199   : > { %v12798_v46 = vadd.f32 %v7608_v32, %v3016_v39  ;;  %10322 = vmatpush3.bf16.msra.mxu0 %v10321_v31  ;;  %v1210_v31 = vld [vmem:[%s12026_s11 + $0x16c8] sm:$0xff]  ;;  %v1241_v32 = vld [vmem:[%s12026_s11 + $0x17c0] sm:$0xff]  ;;  %v10405_v35 = vpack.c.bf16 %v1224_v29, %v1223_v27  ;;  %v1200_v17 = vld [vmem:[%s12026_s11 + $0x1678] sm:$0xff] }
 0x19a   : > { %10354 = vmatpush3.bf16.msra.mxu1 %v10353_v33  ;;  %10324 = vmatprep.subr.bf16.mxu0 %v10323_v34  ;;  %v1242_v33 = vld [vmem:[%s12026_s11 + $0x17c8] sm:$0xff]  ;;  %v10373_v34 = vpack.c.bf16 %v1192_v26, %v1191_v25  ;;  %v10375_v36 = vpack.c.bf16 %v1210_v31, %v1209_v30  ;;  %v1232_v37 = vld [vmem:[%s12026_s11 + $0x1778] sm:$0xff]  ;;  %v1249_v29 = vld [vmem:[%s12026_s11 + $0x1800] sm:$0xff] }
 0x19b   : > { %10356 = vmatprep.subr.bf16.mxu1 %v10355_v40  ;;  %v1194_v39 = vld [vmem:[%s12026_s11 + $0x1648] sm:$0xff]  ;;  %v1225_v40 = vld [vmem:[%s12026_s11 + $0x1740] sm:$0xff]  ;;  %v10407_v41 = vpack.c.bf16 %v1242_v33, %v1241_v32  ;;  %v1272_v0 = vld [vmem:[%s12026_s11 + $0x18b8] sm:$0xff] }
 0x19c   : > { %v1298_v25 = vld [vmem:[%s12026_s11 + $0x1988] sm:$0xff]  ;;  %v1281_v31 = vld [vmem:[%s12026_s11 + $0x1900] sm:$0xff] }
 0x19d   : > { %10326 = vmatpush3.bf16.msra.mxu0 %v10325_v47  ;;  %v1244_v47 = vld [vmem:[%s12026_s11 + $0x17d8] sm:$0xff]  ;;  %v1250_v30 = vld [vmem:[%s12026_s11 + $0x1808] sm:$0xff] }
 0x19e   : > { %10358 = vmatpush3.bf16.msra.mxu1 %v10357_v1  ;;  %10360 = vmatprep.subr.bf16.mxu0 %v10359_v48  ;;  %v10377_v1 = vpack.c.bf16 %v1194_v39, %v1193_v38  ;;  %v10409_v48 = vpack.c.bf16 %v1226_v42, %v1225_v40  ;;  %v10411_v53 = vpack.c.bf16 %v1244_v47, %v1243_v45  ;;  %v1282_v33 = vld [vmem:[%s12026_s11 + $0x1908] sm:$0xff]  ;;  %v1300_v38 = vld [vmem:[%s12026_s11 + $0x1998] sm:$0xff]  ;;  %v1283_v47 = vld [vmem:[%s12026_s11 + $0x1910] sm:$0xff] }
 0x19f   : > { %10392 = vmatprep.subr.bf16.mxu1 %v10391_v52  ;;  %v1227_v52 = vld [vmem:[%s12026_s11 + $0x1750] sm:$0xff]  ;;  %v397_v39 = vld [vmem:[%s12036_s23 + $0x160] sm:$0xff]  ;;  %v10425_v40 = vpack.c.bf16 %v1250_v30, %v1249_v29  ;;  %v10457_v42 = vpack.c.bf16 %v1282_v33, %v1281_v31 }
 0x1a0   : > { %3994 = vmatmul.mubr.f32.vlgmr.msra.gmra.mrb[20].mxu0 %v393_v58  ;;  %v1246_v58 = vld [vmem:[%s12026_s11 + $0x17e8] sm:$0xff]  ;;  %v1252_v45 = vld [vmem:[%s12026_s11 + $0x1818] sm:$0xff]  ;;  %v1259_v30 = vld [vmem:[%s12026_s11 + $0x1850] sm:$0xff] }
 0x1a1   : > { %10362 = vmatpush3.bf16.msra.mxu0 %v10361_v59  ;;  %4064 = vmatmul.mubr.f32.vlgmr.msra.gmra.mrb[20].mxu1 %v395_v60  ;;  %v10381_v59 = vpack.c.bf16 %v1196_v51, %v1195_v50  ;;  %v10413_v60 = vpack.c.bf16 %v1228_v54, %v1227_v52  ;;  %v1270_v50 = vld [vmem:[%s12026_s11 + $0x18a8] sm:$0xff]  ;;  %v1301_v51 = vld [vmem:[%s12026_s11 + $0x19a0] sm:$0xff]  ;;  %v10429_v54 = vpack.c.bf16 %v1252_v45, %v1251_v44  ;;  %v1260_v31 = vld [vmem:[%s12026_s11 + $0x1858] sm:$0xff] }
 0x1a2   : > { %10394 = vmatpush3.bf16.msra.mxu1 %v10393_v61  ;;  %10364 = vmatprep.subr.bf16.mxu0 %v10363_v62  ;;  %v10383_v61 = vpack.c.bf16 %v1214_v56, %v1213_v55  ;;  %v1197_v62 = vld [vmem:[%s12026_s11 + $0x1660] sm:$0xff]  ;;  %v1302_v52 = vld [vmem:[%s12026_s11 + $0x19a8] sm:$0xff]  ;;  %v404_v55 = vld [vmem:[%s12036_s23 + $0x198] sm:$0xff] }
 0x1a3   : > { %10396 = vmatprep.subr.bf16.mxu1 %v10395_v20  ;;  %4133 = vmatprep.mubr.f32.mxu0 %v398_v8  ;;  %v10415_v20 = vpack.c.bf16 %v1246_v58, %v1245_v57  ;;  %v1247_v8 = vld [vmem:[%s12026_s11 + $0x17f0] sm:$0xff]  ;;  %v1253_v58 = vld [vmem:[%s12026_s11 + $0x1820] sm:$0xff]  ;;  %v1262_v44 = vld [vmem:[%s12026_s11 + $0x1868] sm:$0xff] }
 0x1a4   : > { %4203 = vmatprep.mubr.f32.mxu1 %v400_v10  ;;  %v1293_v45 = vld [vmem:[%s12026_s11 + $0x1960] sm:$0xff] }
 0x1a5   : > { %10366 = vmatpush3.bf16.msra.mxu0 %v10365_v9  ;;  %v1248_v9 = vld [vmem:[%s12026_s11 + $0x17f8] sm:$0xff] }
 0x1a6   : > { %10398 = vmatpush3.bf16.msra.mxu1 %v10397_v11  ;;  %10368 = vmatprep.subr.bf16.mxu0 %v10367_v12  ;;  %v10385_v12 = vpack.c.bf16 %v1198_v63, %v1197_v62  ;;  %v10419_v21 = vpack.c.bf16 %v1248_v9, %v1247_v8  ;;  %v1286_v62 = vld [vmem:[%s12026_s11 + $0x1928] sm:$0xff]  ;;  %v1271_v63 = vld [vmem:[%s12026_s11 + $0x18b0] sm:$0xff] }
 0x1a7   : > { %10400 = vmatprep.subr.bf16.mxu1 %v10399_v16  ;;  %v1199_v16 = vld [vmem:[%s12026_s11 + $0x1670] sm:$0xff]  ;;  %v10435_v5 = vpack.c.bf16 %v1272_v0, %v1271_v63 }
 0x1a8   : > { %v10389_v27 = vpack.c.bf16 %v1200_v17, %v1199_v16  ;;  %v1287_v8 = vld [vmem:[%s12026_s11 + $0x1930] sm:$0xff] }
 0x1a9   : > { %10370 = vmatpush3.bf16.msra.mxu0 %v10369_v22  ;;  %v1265_v22 = vld [vmem:[%s12026_s11 + $0x1880] sm:$0xff]  ;;  %v1295_v63 = vld [vmem:[%s12026_s11 + $0x1970] sm:$0xff] }
 0x1aa   : > { %10402 = vmatpush3.bf16.msra.mxu1 %v10401_v23  ;;  %10372 = vmatprep.subr.bf16.mxu0 %v10371_v24  ;;  %v1266_v23 = vld [vmem:[%s12026_s11 + $0x1888] sm:$0xff]  ;;  %v1297_v24 = vld [vmem:[%s12026_s11 + $0x1980] sm:$0xff] }
 0x1ab   : > { %10404 = vmatprep.subr.bf16.mxu1 %v10403_v28  ;;  %v10423_v28 = vpack.c.bf16 %v1266_v23, %v1265_v22  ;;  %v10455_v32 = vpack.c.bf16 %v1298_v25, %v1297_v24  ;;  %v1290_v22 = vld [vmem:[%s12026_s11 + $0x1948] sm:$0xff]  ;;  %v1275_v23 = vld [vmem:[%s12026_s11 + $0x18d0] sm:$0xff]  ;;  %v1276_v24 = vld [vmem:[%s12026_s11 + $0x18d8] sm:$0xff] }
 0x1ac   : > { %v1307_v25 = vld [vmem:[%s12026_s11 + $0x19d0] sm:$0xff]  ;;  %v10443_v29 = vpack.c.bf16 %v1276_v24, %v1275_v23 }
 0x1ad   : > { %10374 = vmatpush3.bf16.msra.mxu0 %v10373_v34  ;;  %v1267_v34 = vld [vmem:[%s12026_s11 + $0x1890] sm:$0xff] }
 0x1ae   : > { %10406 = vmatpush3.bf16.msra.mxu1 %v10405_v35  ;;  %10376 = vmatprep.subr.bf16.mxu0 %v10375_v36  ;;  %v1268_v35 = vld [vmem:[%s12026_s11 + $0x1898] sm:$0xff]  ;;  %v1299_v36 = vld [vmem:[%s12026_s11 + $0x1990] sm:$0xff] }
 0x1af   : > { %10408 = vmatprep.subr.bf16.mxu1 %v10407_v41  ;;  %v399_v41 = vld [vmem:[%s12036_s23 + $0x170] sm:$0xff]  ;;  %v10427_v43 = vpack.c.bf16 %v1268_v35, %v1267_v34  ;;  %v1292_v34 = vld [vmem:[%s12026_s11 + $0x1958] sm:$0xff]  ;;  %v1277_v35 = vld [vmem:[%s12026_s11 + $0x18e0] sm:$0xff] }
 0x1b0   : > { %v1315_v24 = vld [vmem:[%s12026_s11 + $0x1a10] sm:$0xff] }
 0x1b1   : > { %10378 = vmatpush3.bf16.msra.mxu0 %v10377_v1  ;;  %v10459_v1 = vpack.c.bf16 %v1300_v38, %v1299_v36  ;;  %v1278_v36 = vld [vmem:[%s12026_s11 + $0x18e8] sm:$0xff]  ;;  %v1309_v38 = vld [vmem:[%s12026_s11 + $0x19e0] sm:$0xff] }
 0x1b2   : > { %10410 = vmatpush3.bf16.msra.mxu1 %v10409_v48  ;;  %10380 = vmatprep.subr.bf16.mxu0 %v10379_v49  ;;  %v1284_v48 = vld [vmem:[%s12026_s11 + $0x1918] sm:$0xff]  ;;  %v1269_v49 = vld [vmem:[%s12026_s11 + $0x18a0] sm:$0xff] }
 0x1b3   : > { %v7641_v2 = vpop.f32.mrb[8].mxu0  ;;  %10412 = vmatprep.subr.bf16.mxu1 %v10411_v53  ;;  %v402_v53 = vld [vmem:[%s12036_s23 + $0x188] sm:$0xff]  ;;  %v10461_v56 = vpack.c.bf16 %v1284_v48, %v1283_v47  ;;  %v10431_v57 = vpack.c.bf16 %v1270_v50, %v1269_v49  ;;  %v1294_v48 = vld [vmem:[%s12026_s11 + $0x1968] sm:$0xff]  ;;  %v1279_v49 = vld [vmem:[%s12026_s11 + $0x18f0] sm:$0xff] }
 0x1b4   : > { %v7642_v6 = vpop.f32.mrb[9].mxu0  ;;  %v7676_v7 = vpop.f32.mrb[8].mxu1  ;;  %v1280_v50 = vld [vmem:[%s12026_s11 + $0x18f8] sm:$0xff] }
 0x1b5   : > { %v7643_v10 = vadd.f32 %v7642_v6, %v7641_v2  ;;  %10382 = vmatpush3.bf16.msra.mxu0 %v10381_v59  ;;  %v7677_v11 = vpop.f32.mrb[9].mxu1  ;;  %v1254_v59 = vld [vmem:[%s12026_s11 + $0x1828] sm:$0xff]  ;;  %v1303_v2 = vld [vmem:[%s12026_s11 + $0x19b0] sm:$0xff] }
 0x1b6   : > { %v7678_v13 = vadd.f32 %v7677_v11, %v7676_v7  ;;  %10414 = vmatpush3.bf16.msra.mxu1 %v10413_v60  ;;  %10384 = vmatprep.subr.bf16.mxu0 %v10383_v61  ;;  %v1285_v60 = vld [vmem:[%s12026_s11 + $0x1920] sm:$0xff]  ;;  %v10463_v61 = vpack.c.bf16 %v1302_v52, %v1301_v51  ;;  %v10433_v3 = vpack.c.bf16 %v1254_v59, %v1253_v58  ;;  %v1255_v6 = vld [vmem:[%s12026_s11 + $0x1830] sm:$0xff]  ;;  %v1256_v7 = vld [vmem:[%s12026_s11 + $0x1838] sm:$0xff] }
 0x1b7   : > { %v3156_v19 = vadd.f32 %v7643_v10, %v12798_v46  ;;  %10416 = vmatprep.subr.bf16.mxu1 %v10415_v20  ;;  %v10421_v46 = vpack.c.bf16 %v1232_v37, %v1231_v18  ;;  %v1304_v20 = vld [vmem:[%s12026_s11 + $0x19b8] sm:$0xff]  ;;  %v10465_v4 = vpack.c.bf16 %v1286_v62, %v1285_v60  ;;  %v1273_v11 = vld [vmem:[%s12026_s11 + $0x18c0] sm:$0xff]  ;;  %v10481_v59 = vpack.c.bf16 %v1294_v48, %v1293_v45 }
 0x1b8   : > { %v10467_v9 = vpack.c.bf16 %v1304_v20, %v1303_v2  ;;  %v1288_v10 = vld [vmem:[%s12026_s11 + $0x1938] sm:$0xff]  ;;  %v1257_v18 = vld [vmem:[%s12026_s11 + $0x1840] sm:$0xff]  ;;  %v10451_v60 = vpack.c.bf16 %v1280_v50, %v1279_v49 }
 0x1b9   : > { %v12869_v26 = vadd.f32 %v7678_v13, %v3156_v19  ;;  %10386 = vmatpush3.bf16.msra.mxu0 %v10385_v12  ;;  %v1274_v12 = vld [vmem:[%s12026_s11 + $0x18c8] sm:$0xff]  ;;  %v1305_v13 = vld [vmem:[%s12026_s11 + $0x19c0] sm:$0xff]  ;;  %v10469_v16 = vpack.c.bf16 %v1288_v10, %v1287_v8  ;;  %v1264_v62 = vld [vmem:[%s12026_s11 + $0x1878] sm:$0xff] }
 0x1ba   : > { %10418 = vmatpush3.bf16.msra.mxu1 %v10417_v14  ;;  %10388 = vmatprep.subr.bf16.mxu0 %v10387_v15  ;;  %v1306_v14 = vld [vmem:[%s12026_s11 + $0x19c8] sm:$0xff]  ;;  %v10437_v15 = vpack.c.bf16 %v1256_v7, %v1255_v6  ;;  %v10439_v17 = vpack.c.bf16 %v1274_v12, %v1273_v11  ;;  %v1296_v20 = vld [vmem:[%s12026_s11 + $0x1978] sm:$0xff]  ;;  %v1313_v10 = vld [vmem:[%s12026_s11 + $0x1a00] sm:$0xff] }
 0x1bb   : > { %10420 = vmatprep.subr.bf16.mxu1 %v10419_v21  ;;  %v1258_v19 = vld [vmem:[%s12026_s11 + $0x1848] sm:$0xff]  ;;  %v1289_v21 = vld [vmem:[%s12026_s11 + $0x1940] sm:$0xff]  ;;  %v10471_v37 = vpack.c.bf16 %v1306_v14, %v1305_v13  ;;  %v1336_v45 = vld [vmem:[%s12026_s11 + $0x1ab8] sm:$0xff] }
 0x1bc   : > { %v1362_v6 = vld [vmem:[%s12026_s11 + $0x1b88] sm:$0xff]  ;;  %v1345_v12 = vld [vmem:[%s12026_s11 + $0x1b00] sm:$0xff] }
 0x1bd   : > { %10390 = vmatpush3.bf16.msra.mxu0 %v10389_v27  ;;  %v1308_v27 = vld [vmem:[%s12026_s11 + $0x19d8] sm:$0xff]  ;;  %v1314_v11 = vld [vmem:[%s12026_s11 + $0x1a08] sm:$0xff] }
 0x1be   : > { %10422 = vmatpush3.bf16.msra.mxu1 %v10421_v46  ;;  %10424 = vmatprep.subr.bf16.mxu0 %v10423_v28  ;;  %v10441_v46 = vpack.c.bf16 %v1258_v19, %v1257_v18  ;;  %v10473_v28 = vpack.c.bf16 %v1290_v22, %v1289_v21  ;;  %v10475_v33 = vpack.c.bf16 %v1308_v27, %v1307_v25  ;;  %v1346_v14 = vld [vmem:[%s12026_s11 + $0x1b08] sm:$0xff]  ;;  %v1364_v18 = vld [vmem:[%s12026_s11 + $0x1b98] sm:$0xff]  ;;  %v1347_v27 = vld [vmem:[%s12026_s11 + $0x1b10] sm:$0xff] }
 0x1bf   : > { %10456 = vmatprep.subr.bf16.mxu1 %v10455_v32  ;;  %v1291_v32 = vld [vmem:[%s12026_s11 + $0x1950] sm:$0xff]  ;;  %v401_v19 = vld [vmem:[%s12036_s23 + $0x180] sm:$0xff]  ;;  %v10489_v21 = vpack.c.bf16 %v1314_v11, %v1313_v10  ;;  %v10521_v22 = vpack.c.bf16 %v1346_v14, %v1345_v12 }
 0x1c0   : > { %4134 = vmatmul.mubr.f32.vlgmr.msra.gmra.mrb[22].mxu0 %v397_v39  ;;  %v1310_v39 = vld [vmem:[%s12026_s11 + $0x19e8] sm:$0xff]  ;;  %v1316_v25 = vld [vmem:[%s12026_s11 + $0x1a18] sm:$0xff]  ;;  %v1323_v11 = vld [vmem:[%s12026_s11 + $0x1a50] sm:$0xff] }
 0x1c1   : > { %10426 = vmatpush3.bf16.msra.mxu0 %v10425_v40  ;;  %4204 = vmatmul.mubr.f32.vlgmr.msra.gmra.mrb[22].mxu1 %v399_v41  ;;  %v10445_v40 = vpack.c.bf16 %v1260_v31, %v1259_v30  ;;  %v10477_v41 = vpack.c.bf16 %v1292_v34, %v1291_v32  ;;  %v1334_v30 = vld [vmem:[%s12026_s11 + $0x1aa8] sm:$0xff]  ;;  %v1365_v31 = vld [vmem:[%s12026_s11 + $0x1ba0] sm:$0xff]  ;;  %v10493_v34 = vpack.c.bf16 %v1316_v25, %v1315_v24  ;;  %v1324_v12 = vld [vmem:[%s12026_s11 + $0x1a58] sm:$0xff] }
 0x1c2   : > { %10458 = vmatpush3.bf16.msra.mxu1 %v10457_v42  ;;  %10428 = vmatprep.subr.bf16.mxu0 %v10427_v43  ;;  %v10447_v42 = vpack.c.bf16 %v1278_v36, %v1277_v35  ;;  %v1261_v43 = vld [vmem:[%s12026_s11 + $0x1860] sm:$0xff]  ;;  %v1366_v32 = vld [vmem:[%s12026_s11 + $0x1ba8] sm:$0xff]  ;;  %v408_v35 = vld [vmem:[%s12036_s23 + $0x1b8] sm:$0xff] }
 0x1c3   : > { %10460 = vmatprep.subr.bf16.mxu1 %v10459_v1  ;;  %4273 = vmatprep.mubr.f32.mxu0 %v402_v53  ;;  %v10479_v1 = vpack.c.bf16 %v1310_v39, %v1309_v38  ;;  %v1311_v53 = vld [vmem:[%s12026_s11 + $0x19f0] sm:$0xff]  ;;  %v1317_v39 = vld [vmem:[%s12026_s11 + $0x1a20] sm:$0xff]  ;;  %v1326_v24 = vld [vmem:[%s12026_s11 + $0x1a68] sm:$0xff] }
 0x1c4   : > { %4343 = vmatprep.mubr.f32.mxu1 %v404_v55  ;;  %v1357_v25 = vld [vmem:[%s12026_s11 + $0x1b60] sm:$0xff] }
 0x1c5   : > { %10430 = vmatpush3.bf16.msra.mxu0 %v10429_v54  ;;  %v1312_v54 = vld [vmem:[%s12026_s11 + $0x19f8] sm:$0xff] }
 0x1c6   : > { %10462 = vmatpush3.bf16.msra.mxu1 %v10461_v56  ;;  %10432 = vmatprep.subr.bf16.mxu0 %v10431_v57  ;;  %v10449_v57 = vpack.c.bf16 %v1262_v44, %v1261_v43  ;;  %v10483_v2 = vpack.c.bf16 %v1312_v54, %v1311_v53  ;;  %v1350_v43 = vld [vmem:[%s12026_s11 + $0x1b28] sm:$0xff]  ;;  %v1335_v44 = vld [vmem:[%s12026_s11 + $0x1ab0] sm:$0xff] }
 0x1c7   : > { %10464 = vmatprep.subr.bf16.mxu1 %v10463_v61  ;;  %v1263_v61 = vld [vmem:[%s12026_s11 + $0x1870] sm:$0xff]  ;;  %v10499_v50 = vpack.c.bf16 %v1336_v45, %v1335_v44 }
 0x1c8   : > { %v10453_v8 = vpack.c.bf16 %v1264_v62, %v1263_v61  ;;  %v1351_v53 = vld [vmem:[%s12026_s11 + $0x1b30] sm:$0xff] }
 0x1c9   : > { %10434 = vmatpush3.bf16.msra.mxu0 %v10433_v3  ;;  %v1329_v3 = vld [vmem:[%s12026_s11 + $0x1a80] sm:$0xff]  ;;  %v1359_v44 = vld [vmem:[%s12026_s11 + $0x1b70] sm:$0xff] }
 0x1ca   : > { %10466 = vmatpush3.bf16.msra.mxu1 %v10465_v4  ;;  %10436 = vmatprep.subr.bf16.mxu0 %v10435_v5  ;;  %v1330_v4 = vld [vmem:[%s12026_s11 + $0x1a88] sm:$0xff]  ;;  %v1361_v5 = vld [vmem:[%s12026_s11 + $0x1b80] sm:$0xff] }
 0x1cb   : > { %10468 = vmatprep.subr.bf16.mxu1 %v10467_v9  ;;  %v10487_v9 = vpack.c.bf16 %v1330_v4, %v1329_v3  ;;  %v10519_v13 = vpack.c.bf16 %v1362_v6, %v1361_v5  ;;  %v1354_v3 = vld [vmem:[%s12026_s11 + $0x1b48] sm:$0xff]  ;;  %v1339_v4 = vld [vmem:[%s12026_s11 + $0x1ad0] sm:$0xff]  ;;  %v1340_v5 = vld [vmem:[%s12026_s11 + $0x1ad8] sm:$0xff] }
 0x1cc   : > { %v1371_v6 = vld [vmem:[%s12026_s11 + $0x1bd0] sm:$0xff]  ;;  %v10507_v10 = vpack.c.bf16 %v1340_v5, %v1339_v4 }
 0x1cd   : > { %10438 = vmatpush3.bf16.msra.mxu0 %v10437_v15  ;;  %v1331_v15 = vld [vmem:[%s12026_s11 + $0x1a90] sm:$0xff] }
 0x1ce   : > { %10470 = vmatpush3.bf16.msra.mxu1 %v10469_v16  ;;  %10440 = vmatprep.subr.bf16.mxu0 %v10439_v17  ;;  %v1332_v16 = vld [vmem:[%s12026_s11 + $0x1a98] sm:$0xff]  ;;  %v1363_v17 = vld [vmem:[%s12026_s11 + $0x1b90] sm:$0xff] }
 0x1cf   : > { %10472 = vmatprep.subr.bf16.mxu1 %v10471_v37  ;;  %v403_v37 = vld [vmem:[%s12036_s23 + $0x190] sm:$0xff]  ;;  %v10491_v23 = vpack.c.bf16 %v1332_v16, %v1331_v15  ;;  %v1356_v15 = vld [vmem:[%s12026_s11 + $0x1b58] sm:$0xff]  ;;  %v1341_v16 = vld [vmem:[%s12026_s11 + $0x1ae0] sm:$0xff] }
 0x1d0   : > { %v1379_v5 = vld [vmem:[%s12026_s11 + $0x1c10] sm:$0xff] }
 0x1d1   : > { %10442 = vmatpush3.bf16.msra.mxu0 %v10441_v46  ;;  %v10523_v46 = vpack.c.bf16 %v1364_v18, %v1363_v17  ;;  %v1342_v17 = vld [vmem:[%s12026_s11 + $0x1ae8] sm:$0xff]  ;;  %v1373_v18 = vld [vmem:[%s12026_s11 + $0x1be0] sm:$0xff] }
 0x1d2   : > { %10474 = vmatpush3.bf16.msra.mxu1 %v10473_v28  ;;  %10444 = vmatprep.subr.bf16.mxu0 %v10443_v29  ;;  %v1348_v28 = vld [vmem:[%s12026_s11 + $0x1b18] sm:$0xff]  ;;  %v1333_v29 = vld [vmem:[%s12026_s11 + $0x1aa0] sm:$0xff] }
 0x1d3   : > { %v7711_v47 = vpop.f32.mrb[10].mxu0  ;;  %10476 = vmatprep.subr.bf16.mxu1 %v10475_v33  ;;  %v406_v33 = vld [vmem:[%s12036_s23 + $0x1a8] sm:$0xff]  ;;  %v10525_v36 = vpack.c.bf16 %v1348_v28, %v1347_v27  ;;  %v10495_v38 = vpack.c.bf16 %v1334_v30, %v1333_v29  ;;  %v1358_v28 = vld [vmem:[%s12026_s11 + $0x1b68] sm:$0xff]  ;;  %v1343_v29 = vld [vmem:[%s12026_s11 + $0x1af0] sm:$0xff] }
 0x1d4   : > { %v7712_v51 = vpop.f32.mrb[11].mxu0  ;;  %v7746_v52 = vpop.f32.mrb[10].mxu1  ;;  %v1344_v30 = vld [vmem:[%s12026_s11 + $0x1af8] sm:$0xff] }
 0x1d5   : > { %v7713_v55 = vadd.f32 %v7712_v51, %v7711_v47  ;;  %10446 = vmatpush3.bf16.msra.mxu0 %v10445_v40  ;;  %v7747_v56 = vpop.f32.mrb[11].mxu1  ;;  %v1318_v40 = vld [vmem:[%s12026_s11 + $0x1a28] sm:$0xff]  ;;  %v1367_v47 = vld [vmem:[%s12026_s11 + $0x1bb0] sm:$0xff] }
 0x1d6   : > { %v7748_v58 = vadd.f32 %v7747_v56, %v7746_v52  ;;  %10478 = vmatpush3.bf16.msra.mxu1 %v10477_v41  ;;  %10448 = vmatprep.subr.bf16.mxu0 %v10447_v42  ;;  %v1349_v41 = vld [vmem:[%s12026_s11 + $0x1b20] sm:$0xff]  ;;  %v10527_v42 = vpack.c.bf16 %v1366_v32, %v1365_v31  ;;  %v10497_v48 = vpack.c.bf16 %v1318_v40, %v1317_v39  ;;  %v1319_v51 = vld [vmem:[%s12026_s11 + $0x1a30] sm:$0xff]  ;;  %v1320_v52 = vld [vmem:[%s12026_s11 + $0x1a38] sm:$0xff] }
 0x1d7   : > { %v3296_v0 = vadd.f32 %v7713_v55, %v12869_v26  ;;  %10480 = vmatprep.subr.bf16.mxu1 %v10479_v1  ;;  %v10485_v26 = vpack.c.bf16 %v1296_v20, %v1295_v63  ;;  %v1368_v1 = vld [vmem:[%s12026_s11 + $0x1bb8] sm:$0xff]  ;;  %v10529_v49 = vpack.c.bf16 %v1350_v43, %v1349_v41  ;;  %v1337_v56 = vld [vmem:[%s12026_s11 + $0x1ac0] sm:$0xff]  ;;  %v10545_v40 = vpack.c.bf16 %v1358_v28, %v1357_v25 }
 0x1d8   : > { %v10531_v54 = vpack.c.bf16 %v1368_v1, %v1367_v47  ;;  %v1352_v55 = vld [vmem:[%s12026_s11 + $0x1b38] sm:$0xff]  ;;  %v1321_v63 = vld [vmem:[%s12026_s11 + $0x1a40] sm:$0xff]  ;;  %v10515_v41 = vpack.c.bf16 %v1344_v30, %v1343_v29 }
 0x1d9   : > { %v12940_v7 = vadd.f32 %v7748_v58, %v3296_v0  ;;  %10450 = vmatpush3.bf16.msra.mxu0 %v10449_v57  ;;  %v1338_v57 = vld [vmem:[%s12026_s11 + $0x1ac8] sm:$0xff]  ;;  %v1369_v58 = vld [vmem:[%s12026_s11 + $0x1bc0] sm:$0xff]  ;;  %v10533_v61 = vpack.c.bf16 %v1352_v55, %v1351_v53  ;;  %v1328_v43 = vld [vmem:[%s12026_s11 + $0x1a78] sm:$0xff] }
 0x1da   : > { %10482 = vmatpush3.bf16.msra.mxu1 %v10481_v59  ;;  %10452 = vmatprep.subr.bf16.mxu0 %v10451_v60  ;;  %v1370_v59 = vld [vmem:[%s12026_s11 + $0x1bc8] sm:$0xff]  ;;  %v10501_v60 = vpack.c.bf16 %v1320_v52, %v1319_v51  ;;  %v10503_v62 = vpack.c.bf16 %v1338_v57, %v1337_v56  ;;  %v1360_v1 = vld [vmem:[%s12026_s11 + $0x1b78] sm:$0xff]  ;;  %v1377_v55 = vld [vmem:[%s12026_s11 + $0x1c00] sm:$0xff] }
 0x1db   : > { %10484 = vmatprep.subr.bf16.mxu1 %v10483_v2  ;;  %v1322_v0 = vld [vmem:[%s12026_s11 + $0x1a48] sm:$0xff]  ;;  %v1353_v2 = vld [vmem:[%s12026_s11 + $0x1b40] sm:$0xff]  ;;  %v10535_v20 = vpack.c.bf16 %v1370_v59, %v1369_v58  ;;  %v1400_v25 = vld [vmem:[%s12026_s11 + $0x1cb8] sm:$0xff] }
 0x1dc   : > { %v1426_v51 = vld [vmem:[%s12026_s11 + $0x1d88] sm:$0xff]  ;;  %v1409_v57 = vld [vmem:[%s12026_s11 + $0x1d00] sm:$0xff] }
 0x1dd   : > { %10454 = vmatpush3.bf16.msra.mxu0 %v10453_v8  ;;  %v1372_v8 = vld [vmem:[%s12026_s11 + $0x1bd8] sm:$0xff]  ;;  %v1378_v56 = vld [vmem:[%s12026_s11 + $0x1c08] sm:$0xff] }
 0x1de   : > { %10486 = vmatpush3.bf16.msra.mxu1 %v10485_v26  ;;  %10488 = vmatprep.subr.bf16.mxu0 %v10487_v9  ;;  %v10505_v26 = vpack.c.bf16 %v1322_v0, %v1321_v63  ;;  %v10537_v9 = vpack.c.bf16 %v1354_v3, %v1353_v2  ;;  %v10539_v14 = vpack.c.bf16 %v1372_v8, %v1371_v6  ;;  %v1410_v59 = vld [vmem:[%s12026_s11 + $0x1d08] sm:$0xff]  ;;  %v1428_v63 = vld [vmem:[%s12026_s11 + $0x1d98] sm:$0xff]  ;;  %v1411_v8 = vld [vmem:[%s12026_s11 + $0x1d10] sm:$0xff] }
 0x1df   : > { %10520 = vmatprep.subr.bf16.mxu1 %v10519_v13  ;;  %v1355_v13 = vld [vmem:[%s12026_s11 + $0x1b50] sm:$0xff]  ;;  %v405_v0 = vld [vmem:[%s12036_s23 + $0x1a0] sm:$0xff]  ;;  %v10553_v2 = vpack.c.bf16 %v1378_v56, %v1377_v55  ;;  %v10585_v3 = vpack.c.bf16 %v1410_v59, %v1409_v57 }
 0x1e0   : > { %4274 = vmatmul.mubr.f32.vlgmr.msra.gmra.mrb[24].mxu0 %v401_v19  ;;  %v1374_v19 = vld [vmem:[%s12026_s11 + $0x1be8] sm:$0xff]  ;;  %v1380_v6 = vld [vmem:[%s12026_s11 + $0x1c18] sm:$0xff]  ;;  %v1387_v56 = vld [vmem:[%s12026_s11 + $0x1c50] sm:$0xff] }
 0x1e1   : > { %10490 = vmatpush3.bf16.msra.mxu0 %v10489_v21  ;;  %4344 = vmatmul.mubr.f32.vlgmr.msra.gmra.mrb[24].mxu1 %v403_v37  ;;  %v10509_v21 = vpack.c.bf16 %v1324_v12, %v1323_v11  ;;  %v10541_v37 = vpack.c.bf16 %v1356_v15, %v1355_v13  ;;  %v1398_v11 = vld [vmem:[%s12026_s11 + $0x1ca8] sm:$0xff]  ;;  %v1429_v12 = vld [vmem:[%s12026_s11 + $0x1da0] sm:$0xff]  ;;  %v10557_v15 = vpack.c.bf16 %v1380_v6, %v1379_v5  ;;  %v1388_v57 = vld [vmem:[%s12026_s11 + $0x1c58] sm:$0xff] }
 0x1e2   : > { %10522 = vmatpush3.bf16.msra.mxu1 %v10521_v22  ;;  %10492 = vmatprep.subr.bf16.mxu0 %v10491_v23  ;;  %v10511_v22 = vpack.c.bf16 %v1342_v17, %v1341_v16  ;;  %v1325_v23 = vld [vmem:[%s12026_s11 + $0x1a60] sm:$0xff]  ;;  %v1430_v13 = vld [vmem:[%s12026_s11 + $0x1da8] sm:$0xff]  ;;  %v412_v16 = vld [vmem:[%s12036_s23 + $0x1d8] sm:$0xff] }
 0x1e3   : > { %10524 = vmatprep.subr.bf16.mxu1 %v10523_v46  ;;  %4413 = vmatprep.mubr.f32.mxu0 %v406_v33  ;;  %v10543_v46 = vpack.c.bf16 %v1374_v19, %v1373_v18  ;;  %v1375_v33 = vld [vmem:[%s12026_s11 + $0x1bf0] sm:$0xff]  ;;  %v1381_v19 = vld [vmem:[%s12026_s11 + $0x1c20] sm:$0xff]  ;;  %v1390_v5 = vld [vmem:[%s12026_s11 + $0x1c68] sm:$0xff] }
 0x1e4   : > { %4483 = vmatprep.mubr.f32.mxu1 %v408_v35  ;;  %v1421_v6 = vld [vmem:[%s12026_s11 + $0x1d60] sm:$0xff] }
 0x1e5   : > { %10494 = vmatpush3.bf16.msra.mxu0 %v10493_v34  ;;  %v1376_v34 = vld [vmem:[%s12026_s11 + $0x1bf8] sm:$0xff] }
 0x1e6   : > { %10526 = vmatpush3.bf16.msra.mxu1 %v10525_v36  ;;  %10496 = vmatprep.subr.bf16.mxu0 %v10495_v38  ;;  %v10513_v38 = vpack.c.bf16 %v1326_v24, %v1325_v23  ;;  %v10547_v47 = vpack.c.bf16 %v1376_v34, %v1375_v33  ;;  %v1414_v23 = vld [vmem:[%s12026_s11 + $0x1d28] sm:$0xff]  ;;  %v1399_v24 = vld [vmem:[%s12026_s11 + $0x1cb0] sm:$0xff] }
 0x1e7   : > { %10528 = vmatprep.subr.bf16.mxu1 %v10527_v42  ;;  %v1327_v42 = vld [vmem:[%s12026_s11 + $0x1a70] sm:$0xff]  ;;  %v10563_v30 = vpack.c.bf16 %v1400_v25, %v1399_v24 }
 0x1e8   : > { %v10517_v53 = vpack.c.bf16 %v1328_v43, %v1327_v42  ;;  %v1415_v33 = vld [vmem:[%s12026_s11 + $0x1d30] sm:$0xff] }
 0x1e9   : > { %10498 = vmatpush3.bf16.msra.mxu0 %v10497_v48  ;;  %v1393_v48 = vld [vmem:[%s12026_s11 + $0x1c80] sm:$0xff]  ;;  %v1423_v24 = vld [vmem:[%s12026_s11 + $0x1d70] sm:$0xff] }
 0x1ea   : > { %10530 = vmatpush3.bf16.msra.mxu1 %v10529_v49  ;;  %10500 = vmatprep.subr.bf16.mxu0 %v10499_v50  ;;  %v1394_v49 = vld [vmem:[%s12026_s11 + $0x1c88] sm:$0xff]  ;;  %v1425_v50 = vld [vmem:[%s12026_s11 + $0x1d80] sm:$0xff] }
 0x1eb   : > { %10532 = vmatprep.subr.bf16.mxu1 %v10531_v54  ;;  %v10551_v54 = vpack.c.bf16 %v1394_v49, %v1393_v48  ;;  %v10583_v58 = vpack.c.bf16 %v1426_v51, %v1425_v50  ;;  %v1418_v48 = vld [vmem:[%s12026_s11 + $0x1d48] sm:$0xff]  ;;  %v1403_v49 = vld [vmem:[%s12026_s11 + $0x1cd0] sm:$0xff]  ;;  %v1404_v50 = vld [vmem:[%s12026_s11 + $0x1cd8] sm:$0xff] }
 0x1ec   : > { %v1435_v51 = vld [vmem:[%s12026_s11 + $0x1dd0] sm:$0xff]  ;;  %v10571_v55 = vpack.c.bf16 %v1404_v50, %v1403_v49 }
 0x1ed   : > { %10502 = vmatpush3.bf16.msra.mxu0 %v10501_v60  ;;  %v1395_v60 = vld [vmem:[%s12026_s11 + $0x1c90] sm:$0xff] }
 0x1ee   : > { %10534 = vmatpush3.bf16.msra.mxu1 %v10533_v61  ;;  %10504 = vmatprep.subr.bf16.mxu0 %v10503_v62  ;;  %v1396_v61 = vld [vmem:[%s12026_s11 + $0x1c98] sm:$0xff]  ;;  %v1427_v62 = vld [vmem:[%s12026_s11 + $0x1d90] sm:$0xff] }
 0x1ef   : > { %10536 = vmatprep.subr.bf16.mxu1 %v10535_v20  ;;  %v407_v20 = vld [vmem:[%s12036_s23 + $0x1b0] sm:$0xff]  ;;  %v10555_v4 = vpack.c.bf16 %v1396_v61, %v1395_v60  ;;  %v1420_v60 = vld [vmem:[%s12026_s11 + $0x1d58] sm:$0xff]  ;;  %v1405_v61 = vld [vmem:[%s12026_s11 + $0x1ce0] sm:$0xff] }
 0x1f0   : > { %v1443_v50 = vld [vmem:[%s12026_s11 + $0x1e10] sm:$0xff] }
 0x1f1   : > { %10506 = vmatpush3.bf16.msra.mxu0 %v10505_v26  ;;  %v10587_v26 = vpack.c.bf16 %v1428_v63, %v1427_v62  ;;  %v1406_v62 = vld [vmem:[%s12026_s11 + $0x1ce8] sm:$0xff]  ;;  %v1437_v63 = vld [vmem:[%s12026_s11 + $0x1de0] sm:$0xff] }
 0x1f2   : > { %10538 = vmatpush3.bf16.msra.mxu1 %v10537_v9  ;;  %10508 = vmatprep.subr.bf16.mxu0 %v10507_v10  ;;  %v1412_v9 = vld [vmem:[%s12026_s11 + $0x1d18] sm:$0xff]  ;;  %v1397_v10 = vld [vmem:[%s12026_s11 + $0x1ca0] sm:$0xff] }
 0x1f3   : > { %v7781_v27 = vpop.f32.mrb[12].mxu0  ;;  %10540 = vmatprep.subr.bf16.mxu1 %v10539_v14  ;;  %v410_v14 = vld [vmem:[%s12036_s23 + $0x1c8] sm:$0xff]  ;;  %v10589_v17 = vpack.c.bf16 %v1412_v9, %v1411_v8  ;;  %v10559_v18 = vpack.c.bf16 %v1398_v11, %v1397_v10  ;;  %v1422_v9 = vld [vmem:[%s12026_s11 + $0x1d68] sm:$0xff]  ;;  %v1407_v10 = vld [vmem:[%s12026_s11 + $0x1cf0] sm:$0xff] }
 0x1f4   : > { %v7782_v31 = vpop.f32.mrb[13].mxu0  ;;  %v7816_v32 = vpop.f32.mrb[12].mxu1  ;;  %v1408_v11 = vld [vmem:[%s12026_s11 + $0x1cf8] sm:$0xff] }
 0x1f5   : > { %v7783_v35 = vadd.f32 %v7782_v31, %v7781_v27  ;;  %10510 = vmatpush3.bf16.msra.mxu0 %v10509_v21  ;;  %v7817_v36 = vpop.f32.mrb[13].mxu1  ;;  %v1382_v21 = vld [vmem:[%s12026_s11 + $0x1c28] sm:$0xff]  ;;  %v1431_v27 = vld [vmem:[%s12026_s11 + $0x1db0] sm:$0xff] }
 0x1f6   : > { %v7818_v39 = vadd.f32 %v7817_v36, %v7816_v32  ;;  %10542 = vmatpush3.bf16.msra.mxu1 %v10541_v37  ;;  %10512 = vmatprep.subr.bf16.mxu0 %v10511_v22  ;;  %v1413_v37 = vld [vmem:[%s12026_s11 + $0x1d20] sm:$0xff]  ;;  %v10591_v22 = vpack.c.bf16 %v1430_v13, %v1429_v12  ;;  %v10561_v28 = vpack.c.bf16 %v1382_v21, %v1381_v19  ;;  %v1383_v31 = vld [vmem:[%s12026_s11 + $0x1c30] sm:$0xff]  ;;  %v1384_v32 = vld [vmem:[%s12026_s11 + $0x1c38] sm:$0xff] }
 0x1f7   : > { %v3436_v45 = vadd.f32 %v7783_v35, %v12940_v7  ;;  %10544 = vmatprep.subr.bf16.mxu1 %v10543_v46  ;;  %v10549_v7 = vpack.c.bf16 %v1360_v1, %v1359_v44  ;;  %v1432_v46 = vld [vmem:[%s12026_s11 + $0x1db8] sm:$0xff]  ;;  %v10593_v29 = vpack.c.bf16 %v1414_v23, %v1413_v37  ;;  %v1401_v36 = vld [vmem:[%s12026_s11 + $0x1cc0] sm:$0xff]  ;;  %v10609_v21 = vpack.c.bf16 %v1422_v9, %v1421_v6 }
 0x1f8   : > { %v10595_v34 = vpack.c.bf16 %v1432_v46, %v1431_v27  ;;  %v1416_v35 = vld [vmem:[%s12026_s11 + $0x1d38] sm:$0xff]  ;;  %v1385_v44 = vld [vmem:[%s12026_s11 + $0x1c40] sm:$0xff]  ;;  %v10579_v37 = vpack.c.bf16 %v1408_v11, %v1407_v10 }
 0x1f9   : > { %v13011_v52 = vadd.f32 %v7818_v39, %v3436_v45  ;;  %10514 = vmatpush3.bf16.msra.mxu0 %v10513_v38  ;;  %v1402_v38 = vld [vmem:[%s12026_s11 + $0x1cc8] sm:$0xff]  ;;  %v1433_v39 = vld [vmem:[%s12026_s11 + $0x1dc0] sm:$0xff]  ;;  %v10597_v42 = vpack.c.bf16 %v1416_v35, %v1415_v33  ;;  %v1392_v23 = vld [vmem:[%s12026_s11 + $0x1c78] sm:$0xff] }
 0x1fa   : > { %10546 = vmatpush3.bf16.msra.mxu1 %v10545_v40  ;;  %10516 = vmatprep.subr.bf16.mxu0 %v10515_v41  ;;  %v1434_v40 = vld [vmem:[%s12026_s11 + $0x1dc8] sm:$0xff]  ;;  %v10565_v41 = vpack.c.bf16 %v1384_v32, %v1383_v31  ;;  %v10567_v43 = vpack.c.bf16 %v1402_v38, %v1401_v36  ;;  %v1424_v46 = vld [vmem:[%s12026_s11 + $0x1d78] sm:$0xff]  ;;  %v1441_v35 = vld [vmem:[%s12026_s11 + $0x1e00] sm:$0xff] }
 0x1fb   : > { %10548 = vmatprep.subr.bf16.mxu1 %v10547_v47  ;;  %v1386_v45 = vld [vmem:[%s12026_s11 + $0x1c48] sm:$0xff]  ;;  %v1417_v47 = vld [vmem:[%s12026_s11 + $0x1d40] sm:$0xff]  ;;  %v10599_v1 = vpack.c.bf16 %v1434_v40, %v1433_v39  ;;  %v1464_v6 = vld [vmem:[%s12026_s11 + $0x1eb8] sm:$0xff] }
 0x1fc   : > { %v1490_v31 = vld [vmem:[%s12026_s11 + $0x1f88] sm:$0xff]  ;;  %v1473_v38 = vld [vmem:[%s12026_s11 + $0x1f00] sm:$0xff] }
 0x1fd   : > { %10518 = vmatpush3.bf16.msra.mxu0 %v10517_v53  ;;  %v1436_v53 = vld [vmem:[%s12026_s11 + $0x1dd8] sm:$0xff]  ;;  %v1442_v36 = vld [vmem:[%s12026_s11 + $0x1e08] sm:$0xff] }
 0x1fe   : > { %10550 = vmatpush3.bf16.msra.mxu1 %v10549_v7  ;;  %10552 = vmatprep.subr.bf16.mxu0 %v10551_v54  ;;  %v10569_v7 = vpack.c.bf16 %v1386_v45, %v1385_v44  ;;  %v10601_v54 = vpack.c.bf16 %v1418_v48, %v1417_v47  ;;  %v10603_v59 = vpack.c.bf16 %v1436_v53, %v1435_v51  ;;  %v1474_v40 = vld [vmem:[%s12026_s11 + $0x1f08] sm:$0xff]  ;;  %v1492_v44 = vld [vmem:[%s12026_s11 + $0x1f98] sm:$0xff]  ;;  %v1475_v53 = vld [vmem:[%s12026_s11 + $0x1f10] sm:$0xff] }
 0x1ff   : > { %10584 = vmatprep.subr.bf16.mxu1 %v10583_v58  ;;  %v1419_v58 = vld [vmem:[%s12026_s11 + $0x1d50] sm:$0xff]  ;;  %v409_v45 = vld [vmem:[%s12036_s23 + $0x1c0] sm:$0xff]  ;;  %v10617_v47 = vpack.c.bf16 %v1442_v36, %v1441_v35  ;;  %v10649_v48 = vpack.c.bf16 %v1474_v40, %v1473_v38 }
 0x200   : > { %4414 = vmatmul.mubr.f32.vlgmr.msra.gmra.mrb[26].mxu0 %v405_v0  ;;  %v1438_v0 = vld [vmem:[%s12026_s11 + $0x1de8] sm:$0xff]  ;;  %v1444_v51 = vld [vmem:[%s12026_s11 + $0x1e18] sm:$0xff]  ;;  %v1451_v36 = vld [vmem:[%s12026_s11 + $0x1e50] sm:$0xff] }
 0x201   : > { %10554 = vmatpush3.bf16.msra.mxu0 %v10553_v2  ;;  %4484 = vmatmul.mubr.f32.vlgmr.msra.gmra.mrb[26].mxu1 %v407_v20  ;;  %v10573_v2 = vpack.c.bf16 %v1388_v57, %v1387_v56  ;;  %v10605_v20 = vpack.c.bf16 %v1420_v60, %v1419_v58  ;;  %v1462_v56 = vld [vmem:[%s12026_s11 + $0x1ea8] sm:$0xff]  ;;  %v1493_v57 = vld [vmem:[%s12026_s11 + $0x1fa0] sm:$0xff]  ;;  %v10621_v60 = vpack.c.bf16 %v1444_v51, %v1443_v50  ;;  %v1452_v38 = vld [vmem:[%s12026_s11 + $0x1e58] sm:$0xff] }
 0x202   : > { %10586 = vmatpush3.bf16.msra.mxu1 %v10585_v3  ;;  %10556 = vmatprep.subr.bf16.mxu0 %v10555_v4  ;;  %v10575_v3 = vpack.c.bf16 %v1406_v62, %v1405_v61  ;;  %v1389_v4 = vld [vmem:[%s12026_s11 + $0x1c60] sm:$0xff]  ;;  %v1494_v58 = vld [vmem:[%s12026_s11 + $0x1fa8] sm:$0xff]  ;;  %v416_v61 = vld [vmem:[%s12036_s23 + $0x1f8] sm:$0xff] }
 0x203   : > { %10588 = vmatprep.subr.bf16.mxu1 %v10587_v26  ;;  %4553 = vmatprep.mubr.f32.mxu0 %v410_v14  ;;  %v10607_v26 = vpack.c.bf16 %v1438_v0, %v1437_v63  ;;  %v1439_v14 = vld [vmem:[%s12026_s11 + $0x1df0] sm:$0xff]  ;;  %v1445_v0 = vld [vmem:[%s12026_s11 + $0x1e20] sm:$0xff]  ;;  %v1454_v50 = vld [vmem:[%s12026_s11 + $0x1e68] sm:$0xff] }
 0x204   : > { %4623 = vmatprep.mubr.f32.mxu1 %v412_v16  ;;  %v1485_v51 = vld [vmem:[%s12026_s11 + $0x1f60] sm:$0xff] }
 0x205   : > { %10558 = vmatpush3.bf16.msra.mxu0 %v10557_v15  ;;  %v1440_v15 = vld [vmem:[%s12026_s11 + $0x1df8] sm:$0xff] }
 0x206   : > { %10590 = vmatpush3.bf16.msra.mxu1 %v10589_v17  ;;  %10560 = vmatprep.subr.bf16.mxu0 %v10559_v18  ;;  %v10577_v18 = vpack.c.bf16 %v1390_v5, %v1389_v4  ;;  %v10611_v27 = vpack.c.bf16 %v1440_v15, %v1439_v14  ;;  %v1478_v4 = vld [vmem:[%s12026_s11 + $0x1f28] sm:$0xff]  ;;  %v1463_v5 = vld [vmem:[%s12026_s11 + $0x1eb0] sm:$0xff] }
 0x207   : > { %10592 = vmatprep.subr.bf16.mxu1 %v10591_v22  ;;  %v1391_v22 = vld [vmem:[%s12026_s11 + $0x1c70] sm:$0xff]  ;;  %v10627_v11 = vpack.c.bf16 %v1464_v6, %v1463_v5 }
 0x208   : > { %v10581_v33 = vpack.c.bf16 %v1392_v23, %v1391_v22  ;;  %v1479_v14 = vld [vmem:[%s12026_s11 + $0x1f30] sm:$0xff] }
 0x209   : > { %10562 = vmatpush3.bf16.msra.mxu0 %v10561_v28  ;;  %v1457_v28 = vld [vmem:[%s12026_s11 + $0x1e80] sm:$0xff]  ;;  %v1487_v5 = vld [vmem:[%s12026_s11 + $0x1f70] sm:$0xff] }
 0x20a   : > { %10594 = vmatpush3.bf16.msra.mxu1 %v10593_v29  ;;  %10564 = vmatprep.subr.bf16.mxu0 %v10563_v30  ;;  %v1458_v29 = vld [vmem:[%s12026_s11 + $0x1e88] sm:$0xff]  ;;  %v1489_v30 = vld [vmem:[%s12026_s11 + $0x1f80] sm:$0xff] }
 0x20b   : > { %10596 = vmatprep.subr.bf16.mxu1 %v10595_v34  ;;  %v10615_v34 = vpack.c.bf16 %v1458_v29, %v1457_v28  ;;  %v10647_v39 = vpack.c.bf16 %v1490_v31, %v1489_v30  ;;  %v1482_v28 = vld [vmem:[%s12026_s11 + $0x1f48] sm:$0xff]  ;;  %v1467_v29 = vld [vmem:[%s12026_s11 + $0x1ed0] sm:$0xff]  ;;  %v1468_v30 = vld [vmem:[%s12026_s11 + $0x1ed8] sm:$0xff] }
 0x20c   : > { %v1499_v31 = vld [vmem:[%s12026_s11 + $0x1fd0] sm:$0xff]  ;;  %v10635_v35 = vpack.c.bf16 %v1468_v30, %v1467_v29 }
 0x20d   : > { %10566 = vmatpush3.bf16.msra.mxu0 %v10565_v41  ;;  %v1459_v41 = vld [vmem:[%s12026_s11 + $0x1e90] sm:$0xff] }
 0x20e   : > { %10598 = vmatpush3.bf16.msra.mxu1 %v10597_v42  ;;  %10568 = vmatprep.subr.bf16.mxu0 %v10567_v43  ;;  %v1460_v42 = vld [vmem:[%s12026_s11 + $0x1e98] sm:$0xff]  ;;  %v1491_v43 = vld [vmem:[%s12026_s11 + $0x1f90] sm:$0xff] }
 0x20f   : > { %10600 = vmatprep.subr.bf16.mxu1 %v10599_v1  ;;  %v411_v1 = vld [vmem:[%s12036_s23 + $0x1d0] sm:$0xff]  ;;  %v10619_v49 = vpack.c.bf16 %v1460_v42, %v1459_v41  ;;  %v1484_v41 = vld [vmem:[%s12026_s11 + $0x1f58] sm:$0xff]  ;;  %v1469_v42 = vld [vmem:[%s12026_s11 + $0x1ee0] sm:$0xff] }
 0x210   : > { %v1507_v30 = vld [vmem:[%s12026_s11 + $0x2010] sm:$0xff] }
 0x211   : > { %10570 = vmatpush3.bf16.msra.mxu0 %v10569_v7  ;;  %v10651_v7 = vpack.c.bf16 %v1492_v44, %v1491_v43  ;;  %v1470_v43 = vld [vmem:[%s12026_s11 + $0x1ee8] sm:$0xff]  ;;  %v1501_v44 = vld [vmem:[%s12026_s11 + $0x1fe0] sm:$0xff] }
 0x212   : > { %10602 = vmatpush3.bf16.msra.mxu1 %v10601_v54  ;;  %10572 = vmatprep.subr.bf16.mxu0 %v10571_v55  ;;  %v1476_v54 = vld [vmem:[%s12026_s11 + $0x1f18] sm:$0xff]  ;;  %v1461_v55 = vld [vmem:[%s12026_s11 + $0x1ea0] sm:$0xff] }
 0x213   : > { %v7851_v8 = vpop.f32.mrb[14].mxu0  ;;  %10604 = vmatprep.subr.bf16.mxu1 %v10603_v59  ;;  %v414_v59 = vld [vmem:[%s12036_s23 + $0x1e8] sm:$0xff]  ;;  %v10653_v62 = vpack.c.bf16 %v1476_v54, %v1475_v53  ;;  %v10623_v63 = vpack.c.bf16 %v1462_v56, %v1461_v55  ;;  %v1486_v54 = vld [vmem:[%s12026_s11 + $0x1f68] sm:$0xff]  ;;  %v1471_v55 = vld [vmem:[%s12026_s11 + $0x1ef0] sm:$0xff] }
 0x214   : > { %v7852_v12 = vpop.f32.mrb[15].mxu0  ;;  %v7886_v13 = vpop.f32.mrb[14].mxu1  ;;  %v1472_v56 = vld [vmem:[%s12026_s11 + $0x1ef8] sm:$0xff] }
 0x215   : > { %v7853_v16 = vadd.f32 %v7852_v12, %v7851_v8  ;;  %10574 = vmatpush3.bf16.msra.mxu0 %v10573_v2  ;;  %v7887_v17 = vpop.f32.mrb[15].mxu1  ;;  %v1446_v2 = vld [vmem:[%s12026_s11 + $0x1e28] sm:$0xff]  ;;  %v1495_v8 = vld [vmem:[%s12026_s11 + $0x1fb0] sm:$0xff] }
 0x216   : > { %v7888_v19 = vadd.f32 %v7887_v17, %v7886_v13  ;;  %10606 = vmatpush3.bf16.msra.mxu1 %v10605_v20  ;;  %10576 = vmatprep.subr.bf16.mxu0 %v10575_v3  ;;  %v1477_v20 = vld [vmem:[%s12026_s11 + $0x1f20] sm:$0xff]  ;;  %v10655_v3 = vpack.c.bf16 %v1494_v58, %v1493_v57  ;;  %v10625_v9 = vpack.c.bf16 %v1446_v2, %v1445_v0  ;;  %v1447_v12 = vld [vmem:[%s12026_s11 + $0x1e30] sm:$0xff]  ;;  %v1448_v13 = vld [vmem:[%s12026_s11 + $0x1e38] sm:$0xff] }
 0x217   : > { %v3576_v25 = vadd.f32 %v7853_v16, %v13011_v52  ;;  %10608 = vmatprep.subr.bf16.mxu1 %v10607_v26  ;;  %v10613_v52 = vpack.c.bf16 %v1424_v46, %v1423_v24  ;;  %v1496_v26 = vld [vmem:[%s12026_s11 + $0x1fb8] sm:$0xff]  ;;  %v10657_v10 = vpack.c.bf16 %v1478_v4, %v1477_v20  ;;  %v1465_v17 = vld [vmem:[%s12026_s11 + $0x1ec0] sm:$0xff]  ;;  %v10673_v2 = vpack.c.bf16 %v1486_v54, %v1485_v51 }
 0x218   : > { %v10659_v15 = vpack.c.bf16 %v1496_v26, %v1495_v8  ;;  %v1480_v16 = vld [vmem:[%s12026_s11 + $0x1f38] sm:$0xff]  ;;  %v1449_v24 = vld [vmem:[%s12026_s11 + $0x1e40] sm:$0xff]  ;;  %v10643_v20 = vpack.c.bf16 %v1472_v56, %v1471_v55 }
 0x219   : > { %v13082_v32 = vadd.f32 %v7888_v19, %v3576_v25  ;;  %10578 = vmatpush3.bf16.msra.mxu0 %v10577_v18  ;;  %v1466_v18 = vld [vmem:[%s12026_s11 + $0x1ec8] sm:$0xff]  ;;  %v1497_v19 = vld [vmem:[%s12026_s11 + $0x1fc0] sm:$0xff]  ;;  %v10661_v22 = vpack.c.bf16 %v1480_v16, %v1479_v14  ;;  %v1456_v4 = vld [vmem:[%s12026_s11 + $0x1e78] sm:$0xff] }
 0x21a   : > { %10610 = vmatpush3.bf16.msra.mxu1 %v10609_v21  ;;  %10580 = vmatprep.subr.bf16.mxu0 %v10579_v37  ;;  %v1498_v21 = vld [vmem:[%s12026_s11 + $0x1fc8] sm:$0xff]  ;;  %v10629_v37 = vpack.c.bf16 %v1448_v13, %v1447_v12  ;;  %v10631_v23 = vpack.c.bf16 %v1466_v18, %v1465_v17  ;;  %v1488_v26 = vld [vmem:[%s12026_s11 + $0x1f78] sm:$0xff]  ;;  %v1505_v16 = vld [vmem:[%s12026_s11 + $0x2000] sm:$0xff] }
 0x21b   : > { %10612 = vmatprep.subr.bf16.mxu1 %v10611_v27  ;;  %v1450_v25 = vld [vmem:[%s12026_s11 + $0x1e48] sm:$0xff]  ;;  %v1481_v27 = vld [vmem:[%s12026_s11 + $0x1f40] sm:$0xff]  ;;  %v10663_v46 = vpack.c.bf16 %v1498_v21, %v1497_v19  ;;  %v1528_v51 = vld [vmem:[%s12026_s11 + $0x20b8] sm:$0xff] }
 0x21c   : > { %v1554_v12 = vld [vmem:[%s12026_s11 + $0x2188] sm:$0xff]  ;;  %v1537_v18 = vld [vmem:[%s12026_s11 + $0x2100] sm:$0xff] }
 0x21d   : > { %10582 = vmatpush3.bf16.msra.mxu0 %v10581_v33  ;;  %v1500_v33 = vld [vmem:[%s12026_s11 + $0x1fd8] sm:$0xff]  ;;  %v1506_v17 = vld [vmem:[%s12026_s11 + $0x2008] sm:$0xff] }
 0x21e   : > { %10614 = vmatpush3.bf16.msra.mxu1 %v10613_v52  ;;  %10616 = vmatprep.subr.bf16.mxu0 %v10615_v34  ;;  %v10633_v52 = vpack.c.bf16 %v1450_v25, %v1449_v24  ;;  %v10665_v34 = vpack.c.bf16 %v1482_v28, %v1481_v27  ;;  %v10667_v40 = vpack.c.bf16 %v1500_v33, %v1499_v31  ;;  %v1538_v21 = vld [vmem:[%s12026_s11 + $0x2108] sm:$0xff]  ;;  %v1556_v24 = vld [vmem:[%s12026_s11 + $0x2198] sm:$0xff]  ;;  %v1539_v33 = vld [vmem:[%s12026_s11 + $0x2110] sm:$0xff] }
 0x21f   : > { %10648 = vmatprep.subr.bf16.mxu1 %v10647_v39  ;;  %v1483_v39 = vld [vmem:[%s12026_s11 + $0x1f50] sm:$0xff]  ;;  %v413_v25 = vld [vmem:[%s12036_s23 + $0x1e0] sm:$0xff]  ;;  %v10681_v27 = vpack.c.bf16 %v1506_v17, %v1505_v16  ;;  %v10713_v28 = vpack.c.bf16 %v1538_v21, %v1537_v18 }
 0x220   : > { %4554 = vmatmul.mubr.f32.vlgmr.msra.gmra.mrb[28].mxu0 %v409_v45  ;;  %v1502_v45 = vld [vmem:[%s12026_s11 + $0x1fe8] sm:$0xff]  ;;  %v1508_v31 = vld [vmem:[%s12026_s11 + $0x2018] sm:$0xff]  ;;  %v1515_v17 = vld [vmem:[%s12026_s11 + $0x2050] sm:$0xff] }
 0x221   : > { %10618 = vmatpush3.bf16.msra.mxu0 %v10617_v47  ;;  %4624 = vmatmul.mubr.f32.vlgmr.msra.gmra.mrb[28].mxu1 %v411_v1  ;;  %v10637_v47 = vpack.c.bf16 %v1452_v38, %v1451_v36  ;;  %v10669_v1 = vpack.c.bf16 %v1484_v41, %v1483_v39  ;;  %v1526_v36 = vld [vmem:[%s12026_s11 + $0x20a8] sm:$0xff]  ;;  %v1557_v38 = vld [vmem:[%s12026_s11 + $0x21a0] sm:$0xff]  ;;  %v10685_v41 = vpack.c.bf16 %v1508_v31, %v1507_v30  ;;  %v1516_v18 = vld [vmem:[%s12026_s11 + $0x2058] sm:$0xff] }
 0x222   : > { %10650 = vmatpush3.bf16.msra.mxu1 %v10649_v48  ;;  %10620 = vmatprep.subr.bf16.mxu0 %v10619_v49  ;;  %v10639_v48 = vpack.c.bf16 %v1470_v43, %v1469_v42  ;;  %v1453_v49 = vld [vmem:[%s12026_s11 + $0x1e60] sm:$0xff]  ;;  %v1558_v39 = vld [vmem:[%s12026_s11 + $0x21a8] sm:$0xff]  ;;  %v420_v42 = vld [vmem:[%s12036_s23 + $0x218] sm:$0xff] }
 0x223   : > { %10652 = vmatprep.subr.bf16.mxu1 %v10651_v7  ;;  %4693 = vmatprep.mubr.f32.mxu0 %v414_v59  ;;  %v10671_v7 = vpack.c.bf16 %v1502_v45, %v1501_v44  ;;  %v1503_v59 = vld [vmem:[%s12026_s11 + $0x1ff0] sm:$0xff]  ;;  %v1509_v45 = vld [vmem:[%s12026_s11 + $0x2020] sm:$0xff]  ;;  %v1518_v30 = vld [vmem:[%s12026_s11 + $0x2068] sm:$0xff] }
 0x224   : > { %4763 = vmatprep.mubr.f32.mxu1 %v416_v61  ;;  %v1549_v31 = vld [vmem:[%s12026_s11 + $0x2160] sm:$0xff] }
 0x225   : > { %10622 = vmatpush3.bf16.msra.mxu0 %v10621_v60  ;;  %v1504_v60 = vld [vmem:[%s12026_s11 + $0x1ff8] sm:$0xff] }
 0x226   : > { %10654 = vmatpush3.bf16.msra.mxu1 %v10653_v62  ;;  %10624 = vmatprep.subr.bf16.mxu0 %v10623_v63  ;;  %v10641_v63 = vpack.c.bf16 %v1454_v50, %v1453_v49  ;;  %v10675_v8 = vpack.c.bf16 %v1504_v60, %v1503_v59  ;;  %v1542_v49 = vld [vmem:[%s12026_s11 + $0x2128] sm:$0xff]  ;;  %v1527_v50 = vld [vmem:[%s12026_s11 + $0x20b0] sm:$0xff] }
 0x227   : > { %10656 = vmatprep.subr.bf16.mxu1 %v10655_v3  ;;  %v1455_v3 = vld [vmem:[%s12026_s11 + $0x1e70] sm:$0xff]  ;;  %v10691_v56 = vpack.c.bf16 %v1528_v51, %v1527_v50 }
 0x228   : > { %v10645_v14 = vpack.c.bf16 %v1456_v4, %v1455_v3  ;;  %v1543_v59 = vld [vmem:[%s12026_s11 + $0x2130] sm:$0xff] }
 0x229   : > { %10626 = vmatpush3.bf16.msra.mxu0 %v10625_v9  ;;  %v1521_v9 = vld [vmem:[%s12026_s11 + $0x2080] sm:$0xff]  ;;  %v1551_v50 = vld [vmem:[%s12026_s11 + $0x2170] sm:$0xff] }
 0x22a   : > { %10658 = vmatpush3.bf16.msra.mxu1 %v10657_v10  ;;  %10628 = vmatprep.subr.bf16.mxu0 %v10627_v11  ;;  %v1522_v10 = vld [vmem:[%s12026_s11 + $0x2088] sm:$0xff]  ;;  %v1553_v11 = vld [vmem:[%s12026_s11 + $0x2180] sm:$0xff] }
 0x22b   : > { %10660 = vmatprep.subr.bf16.mxu1 %v10659_v15  ;;  %v10679_v15 = vpack.c.bf16 %v1522_v10, %v1521_v9  ;;  %v10711_v19 = vpack.c.bf16 %v1554_v12, %v1553_v11  ;;  %v1546_v9 = vld [vmem:[%s12026_s11 + $0x2148] sm:$0xff]  ;;  %v1531_v10 = vld [vmem:[%s12026_s11 + $0x20d0] sm:$0xff]  ;;  %v1532_v11 = vld [vmem:[%s12026_s11 + $0x20d8] sm:$0xff] }
 0x22c   : > { %v1563_v12 = vld [vmem:[%s12026_s11 + $0x21d0] sm:$0xff]  ;;  %v10699_v16 = vpack.c.bf16 %v1532_v11, %v1531_v10 }
 0x22d   : > { %10630 = vmatpush3.bf16.msra.mxu0 %v10629_v37  ;;  %v1523_v37 = vld [vmem:[%s12026_s11 + $0x2090] sm:$0xff] }
 0x22e   : > { %10662 = vmatpush3.bf16.msra.mxu1 %v10661_v22  ;;  %10632 = vmatprep.subr.bf16.mxu0 %v10631_v23  ;;  %v1524_v22 = vld [vmem:[%s12026_s11 + $0x2098] sm:$0xff]  ;;  %v1555_v23 = vld [vmem:[%s12026_s11 + $0x2190] sm:$0xff] }
 0x22f   : > { %10664 = vmatprep.subr.bf16.mxu1 %v10663_v46  ;;  %v415_v46 = vld [vmem:[%s12036_s23 + $0x1f0] sm:$0xff]  ;;  %v10683_v29 = vpack.c.bf16 %v1524_v22, %v1523_v37  ;;  %v1548_v37 = vld [vmem:[%s12026_s11 + $0x2158] sm:$0xff]  ;;  %v1533_v22 = vld [vmem:[%s12026_s11 + $0x20e0] sm:$0xff] }
 0x230   : > { %v1571_v11 = vld [vmem:[%s12026_s11 + $0x2210] sm:$0xff] }
 0x231   : > { %10634 = vmatpush3.bf16.msra.mxu0 %v10633_v52  ;;  %v10715_v52 = vpack.c.bf16 %v1556_v24, %v1555_v23  ;;  %v1534_v23 = vld [vmem:[%s12026_s11 + $0x20e8] sm:$0xff]  ;;  %v1565_v24 = vld [vmem:[%s12026_s11 + $0x21e0] sm:$0xff] }
 0x232   : > { %10666 = vmatpush3.bf16.msra.mxu1 %v10665_v34  ;;  %10636 = vmatprep.subr.bf16.mxu0 %v10635_v35  ;;  %v1540_v34 = vld [vmem:[%s12026_s11 + $0x2118] sm:$0xff]  ;;  %v1525_v35 = vld [vmem:[%s12026_s11 + $0x20a0] sm:$0xff] }
 0x233   : > { %v7921_v53 = vpop.f32.mrb[16].mxu0  ;;  %10668 = vmatprep.subr.bf16.mxu1 %v10667_v40  ;;  %v418_v40 = vld [vmem:[%s12036_s23 + $0x208] sm:$0xff]  ;;  %v10717_v43 = vpack.c.bf16 %v1540_v34, %v1539_v33  ;;  %v10687_v44 = vpack.c.bf16 %v1526_v36, %v1525_v35  ;;  %v1550_v34 = vld [vmem:[%s12026_s11 + $0x2168] sm:$0xff]  ;;  %v1535_v35 = vld [vmem:[%s12026_s11 + $0x20f0] sm:$0xff] }
 0x234   : > { %v7922_v57 = vpop.f32.mrb[17].mxu0  ;;  %v7956_v58 = vpop.f32.mrb[16].mxu1  ;;  %v1536_v36 = vld [vmem:[%s12026_s11 + $0x20f8] sm:$0xff] }
 0x235   : > { %v7923_v61 = vadd.f32 %v7922_v57, %v7921_v53  ;;  %10638 = vmatpush3.bf16.msra.mxu0 %v10637_v47  ;;  %v7957_v62 = vpop.f32.mrb[17].mxu1  ;;  %v1510_v47 = vld [vmem:[%s12026_s11 + $0x2028] sm:$0xff]  ;;  %v1559_v53 = vld [vmem:[%s12026_s11 + $0x21b0] sm:$0xff] }
 0x236   : > { %v7958_v0 = vadd.f32 %v7957_v62, %v7956_v58  ;;  %10670 = vmatpush3.bf16.msra.mxu1 %v10669_v1  ;;  %10640 = vmatprep.subr.bf16.mxu0 %v10639_v48  ;;  %v1541_v1 = vld [vmem:[%s12026_s11 + $0x2120] sm:$0xff]  ;;  %v10719_v48 = vpack.c.bf16 %v1558_v39, %v1557_v38  ;;  %v10689_v54 = vpack.c.bf16 %v1510_v47, %v1509_v45  ;;  %v1511_v57 = vld [vmem:[%s12026_s11 + $0x2030] sm:$0xff]  ;;  %v1512_v58 = vld [vmem:[%s12026_s11 + $0x2038] sm:$0xff] }
 0x237   : > { %v3716_v6 = vadd.f32 %v7923_v61, %v13082_v32  ;;  %10672 = vmatprep.subr.bf16.mxu1 %v10671_v7  ;;  %v10677_v32 = vpack.c.bf16 %v1488_v26, %v1487_v5  ;;  %v1560_v7 = vld [vmem:[%s12026_s11 + $0x21b8] sm:$0xff]  ;;  %v10721_v55 = vpack.c.bf16 %v1542_v49, %v1541_v1  ;;  %v1529_v62 = vld [vmem:[%s12026_s11 + $0x20c0] sm:$0xff]  ;;  %v10737_v47 = vpack.c.bf16 %v1550_v34, %v1549_v31 }
 0x238   : > { %v10723_v60 = vpack.c.bf16 %v1560_v7, %v1559_v53  ;;  %v1544_v61 = vld [vmem:[%s12026_s11 + $0x2138] sm:$0xff]  ;;  %v1513_v5 = vld [vmem:[%s12026_s11 + $0x2040] sm:$0xff]  ;;  %v10707_v1 = vpack.c.bf16 %v1536_v36, %v1535_v35 }
 0x239   : > { %v13153_v13 = vadd.f32 %v7958_v0, %v3716_v6  ;;  %10642 = vmatpush3.bf16.msra.mxu0 %v10641_v63  ;;  %v1530_v63 = vld [vmem:[%s12026_s11 + $0x20c8] sm:$0xff]  ;;  %v1561_v0 = vld [vmem:[%s12026_s11 + $0x21c0] sm:$0xff]  ;;  %v10725_v3 = vpack.c.bf16 %v1544_v61, %v1543_v59  ;;  %v1520_v49 = vld [vmem:[%s12026_s11 + $0x2078] sm:$0xff] }
 0x23a   : > { %10674 = vmatpush3.bf16.msra.mxu1 %v10673_v2  ;;  %10644 = vmatprep.subr.bf16.mxu0 %v10643_v20  ;;  %v1562_v2 = vld [vmem:[%s12026_s11 + $0x21c8] sm:$0xff]  ;;  %v10693_v20 = vpack.c.bf16 %v1512_v58, %v1511_v57  ;;  %v10695_v4 = vpack.c.bf16 %v1530_v63, %v1529_v62  ;;  %v1552_v7 = vld [vmem:[%s12026_s11 + $0x2178] sm:$0xff]  ;;  %v1569_v61 = vld [vmem:[%s12026_s11 + $0x2200] sm:$0xff] }
 0x23b   : > { %10676 = vmatprep.subr.bf16.mxu1 %v10675_v8  ;;  %v1514_v6 = vld [vmem:[%s12026_s11 + $0x2048] sm:$0xff]  ;;  %v1545_v8 = vld [vmem:[%s12026_s11 + $0x2140] sm:$0xff]  ;;  %v10727_v26 = vpack.c.bf16 %v1562_v2, %v1561_v0  ;;  %v1592_v31 = vld [vmem:[%s12026_s11 + $0x22b8] sm:$0xff] }
 0x23c   : > { %v1618_v57 = vld [vmem:[%s12026_s11 + $0x2388] sm:$0xff]  ;;  %v1601_v63 = vld [vmem:[%s12026_s11 + $0x2300] sm:$0xff] }
 0x23d   : > { %10646 = vmatpush3.bf16.msra.mxu0 %v10645_v14  ;;  %v1564_v14 = vld [vmem:[%s12026_s11 + $0x21d8] sm:$0xff]  ;;  %v1570_v62 = vld [vmem:[%s12026_s11 + $0x2208] sm:$0xff] }
 0x23e   : > { %10678 = vmatpush3.bf16.msra.mxu1 %v10677_v32  ;;  %10680 = vmatprep.subr.bf16.mxu0 %v10679_v15  ;;  %v10697_v32 = vpack.c.bf16 %v1514_v6, %v1513_v5  ;;  %v10729_v15 = vpack.c.bf16 %v1546_v9, %v1545_v8  ;;  %v10731_v21 = vpack.c.bf16 %v1564_v14, %v1563_v12  ;;  %v1602_v2 = vld [vmem:[%s12026_s11 + $0x2308] sm:$0xff]  ;;  %v1620_v5 = vld [vmem:[%s12026_s11 + $0x2398] sm:$0xff]  ;;  %v1603_v14 = vld [vmem:[%s12026_s11 + $0x2310] sm:$0xff] }
 0x23f   : > { %10712 = vmatprep.subr.bf16.mxu1 %v10711_v19  ;;  %v1547_v19 = vld [vmem:[%s12026_s11 + $0x2150] sm:$0xff]  ;;  %v417_v6 = vld [vmem:[%s12036_s23 + $0x200] sm:$0xff]  ;;  %v10745_v8 = vpack.c.bf16 %v1570_v62, %v1569_v61  ;;  %v10777_v9 = vpack.c.bf16 %v1602_v2, %v1601_v63 }
 0x240   : > { %4694 = vmatmul.mubr.f32.vlgmr.msra.gmra.mrb[30].mxu0 %v413_v25  ;;  %v1566_v25 = vld [vmem:[%s12026_s11 + $0x21e8] sm:$0xff]  ;;  %v1572_v12 = vld [vmem:[%s12026_s11 + $0x2218] sm:$0xff]  ;;  %v1579_v62 = vld [vmem:[%s12026_s11 + $0x2250] sm:$0xff] }
 0x241   : > { %10682 = vmatpush3.bf16.msra.mxu0 %v10681_v27  ;;  %4764 = vmatmul.mubr.f32.vlgmr.msra.gmra.mrb[30].mxu1 %v415_v46  ;;  %v10701_v27 = vpack.c.bf16 %v1516_v18, %v1515_v17  ;;  %v10733_v46 = vpack.c.bf16 %v1548_v37, %v1547_v19  ;;  %v1590_v17 = vld [vmem:[%s12026_s11 + $0x22a8] sm:$0xff]  ;;  %v1621_v18 = vld [vmem:[%s12026_s11 + $0x23a0] sm:$0xff]  ;;  %v10749_v37 = vpack.c.bf16 %v1572_v12, %v1571_v11  ;;  %v1580_v63 = vld [vmem:[%s12026_s11 + $0x2258] sm:$0xff] }
 0x242   : > { %10714 = vmatpush3.bf16.msra.mxu1 %v10713_v28  ;;  %10684 = vmatprep.subr.bf16.mxu0 %v10683_v29  ;;  %v10703_v28 = vpack.c.bf16 %v1534_v23, %v1533_v22  ;;  %v1517_v29 = vld [vmem:[%s12026_s11 + $0x2060] sm:$0xff]  ;;  %v1622_v19 = vld [vmem:[%s12026_s11 + $0x23a8] sm:$0xff]  ;;  %v424_v22 = vld [vmem:[%s12036_s23 + $0x238] sm:$0xff] }
 0x243   : > { %10716 = vmatprep.subr.bf16.mxu1 %v10715_v52  ;;  %4833 = vmatprep.mubr.f32.mxu0 %v418_v40  ;;  %v10735_v52 = vpack.c.bf16 %v1566_v25, %v1565_v24  ;;  %v1567_v40 = vld [vmem:[%s12026_s11 + $0x21f0] sm:$0xff]  ;;  %v1573_v25 = vld [vmem:[%s12026_s11 + $0x2220] sm:$0xff]  ;;  %v1582_v11 = vld [vmem:[%s12026_s11 + $0x2268] sm:$0xff] }
 0x244   : > { %4903 = vmatprep.mubr.f32.mxu1 %v420_v42  ;;  %v1613_v12 = vld [vmem:[%s12026_s11 + $0x2360] sm:$0xff] }
 0x245   : > { %10686 = vmatpush3.bf16.msra.mxu0 %v10685_v41  ;;  %v1568_v41 = vld [vmem:[%s12026_s11 + $0x21f8] sm:$0xff] }
 0x246   : > { %10718 = vmatpush3.bf16.msra.mxu1 %v10717_v43  ;;  %10688 = vmatprep.subr.bf16.mxu0 %v10687_v44  ;;  %v10705_v44 = vpack.c.bf16 %v1518_v30, %v1517_v29  ;;  %v10739_v53 = vpack.c.bf16 %v1568_v41, %v1567_v40  ;;  %v1606_v29 = vld [vmem:[%s12026_s11 + $0x2328] sm:$0xff]  ;;  %v1591_v30 = vld [vmem:[%s12026_s11 + $0x22b0] sm:$0xff] }
 0x247   : > { %10720 = vmatprep.subr.bf16.mxu1 %v10719_v48  ;;  %v1519_v48 = vld [vmem:[%s12026_s11 + $0x2070] sm:$0xff]  ;;  %v10755_v36 = vpack.c.bf16 %v1592_v31, %v1591_v30 }
 0x248   : > { %v10709_v59 = vpack.c.bf16 %v1520_v49, %v1519_v48  ;;  %v1607_v40 = vld [vmem:[%s12026_s11 + $0x2330] sm:$0xff] }
 0x249   : > { %10690 = vmatpush3.bf16.msra.mxu0 %v10689_v54  ;;  %v1585_v54 = vld [vmem:[%s12026_s11 + $0x2280] sm:$0xff]  ;;  %v1615_v30 = vld [vmem:[%s12026_s11 + $0x2370] sm:$0xff] }
 0x24a   : > { %10722 = vmatpush3.bf16.msra.mxu1 %v10721_v55  ;;  %10692 = vmatprep.subr.bf16.mxu0 %v10691_v56  ;;  %v1586_v55 = vld [vmem:[%s12026_s11 + $0x2288] sm:$0xff]  ;;  %v1617_v56 = vld [vmem:[%s12026_s11 + $0x2380] sm:$0xff] }
 0x24b   : > { %10724 = vmatprep.subr.bf16.mxu1 %v10723_v60  ;;  %v10743_v60 = vpack.c.bf16 %v1586_v55, %v1585_v54  ;;  %v10775_v0 = vpack.c.bf16 %v1618_v57, %v1617_v56  ;;  %v1610_v54 = vld [vmem:[%s12026_s11 + $0x2348] sm:$0xff]  ;;  %v1595_v55 = vld [vmem:[%s12026_s11 + $0x22d0] sm:$0xff]  ;;  %v1596_v56 = vld [vmem:[%s12026_s11 + $0x22d8] sm:$0xff] }
 0x24c   : > { %v1627_v57 = vld [vmem:[%s12026_s11 + $0x23d0] sm:$0xff]  ;;  %v10763_v61 = vpack.c.bf16 %v1596_v56, %v1595_v55 }
 0x24d   : > { %10694 = vmatpush3.bf16.msra.mxu0 %v10693_v20  ;;  %v1587_v20 = vld [vmem:[%s12026_s11 + $0x2290] sm:$0xff] }
 0x24e   : > { %10726 = vmatpush3.bf16.msra.mxu1 %v10725_v3  ;;  %10696 = vmatprep.subr.bf16.mxu0 %v10695_v4  ;;  %v1588_v3 = vld [vmem:[%s12026_s11 + $0x2298] sm:$0xff]  ;;  %v1619_v4 = vld [vmem:[%s12026_s11 + $0x2390] sm:$0xff] }
 0x24f   : > { %10728 = vmatprep.subr.bf16.mxu1 %v10727_v26  ;;  %v419_v26 = vld [vmem:[%s12036_s23 + $0x210] sm:$0xff]  ;;  %v10747_v10 = vpack.c.bf16 %v1588_v3, %v1587_v20  ;;  %v1612_v20 = vld [vmem:[%s12026_s11 + $0x2358] sm:$0xff]  ;;  %v1597_v3 = vld [vmem:[%s12026_s11 + $0x22e0] sm:$0xff] }
 0x250   : > { %v1635_v56 = vld [vmem:[%s12026_s11 + $0x2410] sm:$0xff] }
 0x251   : > { %10698 = vmatpush3.bf16.msra.mxu0 %v10697_v32  ;;  %v10779_v32 = vpack.c.bf16 %v1620_v5, %v1619_v4  ;;  %v1598_v4 = vld [vmem:[%s12026_s11 + $0x22e8] sm:$0xff]  ;;  %v1629_v5 = vld [vmem:[%s12026_s11 + $0x23e0] sm:$0xff] }
 0x252   : > { %10730 = vmatpush3.bf16.msra.mxu1 %v10729_v15  ;;  %10700 = vmatprep.subr.bf16.mxu0 %v10699_v16  ;;  %v1604_v15 = vld [vmem:[%s12026_s11 + $0x2318] sm:$0xff]  ;;  %v1589_v16 = vld [vmem:[%s12026_s11 + $0x22a0] sm:$0xff] }
 0x253   : > { %v7991_v33 = vpop.f32.mrb[18].mxu0  ;;  %10732 = vmatprep.subr.bf16.mxu1 %v10731_v21  ;;  %v422_v21 = vld [vmem:[%s12036_s23 + $0x228] sm:$0xff]  ;;  %v10781_v23 = vpack.c.bf16 %v1604_v15, %v1603_v14  ;;  %v10751_v24 = vpack.c.bf16 %v1590_v17, %v1589_v16  ;;  %v1614_v15 = vld [vmem:[%s12026_s11 + $0x2368] sm:$0xff]  ;;  %v1599_v16 = vld [vmem:[%s12026_s11 + $0x22f0] sm:$0xff] }
 0x254   : > { %v7992_v38 = vpop.f32.mrb[19].mxu0  ;;  %v8026_v39 = vpop.f32.mrb[18].mxu1  ;;  %v1600_v17 = vld [vmem:[%s12026_s11 + $0x22f8] sm:$0xff] }
 0x255   : > { %v7993_v42 = vadd.f32 %v7992_v38, %v7991_v33  ;;  %10702 = vmatpush3.bf16.msra.mxu0 %v10701_v27  ;;  %v8027_v43 = vpop.f32.mrb[19].mxu1  ;;  %v1574_v27 = vld [vmem:[%s12026_s11 + $0x2228] sm:$0xff]  ;;  %v1623_v33 = vld [vmem:[%s12026_s11 + $0x23b0] sm:$0xff] }
 0x256   : > { %v8028_v45 = vadd.f32 %v8027_v43, %v8026_v39  ;;  %10734 = vmatpush3.bf16.msra.mxu1 %v10733_v46  ;;  %10704 = vmatprep.subr.bf16.mxu0 %v10703_v28  ;;  %v1605_v46 = vld [vmem:[%s12026_s11 + $0x2320] sm:$0xff]  ;;  %v10783_v28 = vpack.c.bf16 %v1622_v19, %v1621_v18  ;;  %v10753_v34 = vpack.c.bf16 %v1574_v27, %v1573_v25  ;;  %v1575_v38 = vld [vmem:[%s12026_s11 + $0x2230] sm:$0xff]  ;;  %v1576_v39 = vld [vmem:[%s12026_s11 + $0x2238] sm:$0xff] }
 0x257   : > { %v3856_v51 = vadd.f32 %v7993_v42, %v13153_v13  ;;  %10736 = vmatprep.subr.bf16.mxu1 %v10735_v52  ;;  %v10741_v13 = vpack.c.bf16 %v1552_v7, %v1551_v50  ;;  %v1624_v52 = vld [vmem:[%s12026_s11 + $0x23b8] sm:$0xff]  ;;  %v10785_v35 = vpack.c.bf16 %v1606_v29, %v1605_v46  ;;  %v1593_v43 = vld [vmem:[%s12026_s11 + $0x22c0] sm:$0xff]  ;;  %v10801_v27 = vpack.c.bf16 %v1614_v15, %v1613_v12 }
 0x258   : > { %v10787_v41 = vpack.c.bf16 %v1624_v52, %v1623_v33  ;;  %v1608_v42 = vld [vmem:[%s12026_s11 + $0x2338] sm:$0xff]  ;;  %v1577_v50 = vld [vmem:[%s12026_s11 + $0x2240] sm:$0xff]  ;;  %v10771_v46 = vpack.c.bf16 %v1600_v17, %v1599_v16 }
 0x259   : > { %v13224_v58 = vadd.f32 %v8028_v45, %v3856_v51  ;;  %10706 = vmatpush3.bf16.msra.mxu0 %v10705_v44  ;;  %v1594_v44 = vld [vmem:[%s12026_s11 + $0x22c8] sm:$0xff]  ;;  %v1625_v45 = vld [vmem:[%s12026_s11 + $0x23c0] sm:$0xff]  ;;  %v10789_v48 = vpack.c.bf16 %v1608_v42, %v1607_v40  ;;  %v1584_v29 = vld [vmem:[%s12026_s11 + $0x2278] sm:$0xff] }
 0x25a   : > { %10738 = vmatpush3.bf16.msra.mxu1 %v10737_v47  ;;  %10708 = vmatprep.subr.bf16.mxu0 %v10707_v1  ;;  %v1626_v47 = vld [vmem:[%s12026_s11 + $0x23c8] sm:$0xff]  ;;  %v10757_v1 = vpack.c.bf16 %v1576_v39, %v1575_v38  ;;  %v10759_v49 = vpack.c.bf16 %v1594_v44, %v1593_v43  ;;  %v1616_v52 = vld [vmem:[%s12026_s11 + $0x2378] sm:$0xff]  ;;  %v1633_v42 = vld [vmem:[%s12026_s11 + $0x2400] sm:$0xff] }
 0x25b   : > { %10740 = vmatprep.subr.bf16.mxu1 %v10739_v53  ;;  %v1578_v51 = vld [vmem:[%s12026_s11 + $0x2248] sm:$0xff]  ;;  %v1609_v53 = vld [vmem:[%s12026_s11 + $0x2340] sm:$0xff]  ;;  %v10791_v7 = vpack.c.bf16 %v1626_v47, %v1625_v45  ;;  %v1656_v12 = vld [vmem:[%s12026_s11 + $0x24b8] sm:$0xff] }
 0x25c   : > { %v1682_v38 = vld [vmem:[%s12026_s11 + $0x2588] sm:$0xff]  ;;  %v1665_v44 = vld [vmem:[%s12026_s11 + $0x2500] sm:$0xff] }
 0x25d   : > { %10710 = vmatpush3.bf16.msra.mxu0 %v10709_v59  ;;  %v1628_v59 = vld [vmem:[%s12026_s11 + $0x23d8] sm:$0xff]  ;;  %v1634_v43 = vld [vmem:[%s12026_s11 + $0x2408] sm:$0xff] }
 0x25e   : > { %10742 = vmatpush3.bf16.msra.mxu1 %v10741_v13  ;;  %10744 = vmatprep.subr.bf16.mxu0 %v10743_v60  ;;  %v10761_v13 = vpack.c.bf16 %v1578_v51, %v1577_v50  ;;  %v10793_v60 = vpack.c.bf16 %v1610_v54, %v1609_v53  ;;  %v10795_v2 = vpack.c.bf16 %v1628_v59, %v1627_v57  ;;  %v1666_v47 = vld [vmem:[%s12026_s11 + $0x2508] sm:$0xff]  ;;  %v1684_v50 = vld [vmem:[%s12026_s11 + $0x2598] sm:$0xff]  ;;  %v1667_v59 = vld [vmem:[%s12026_s11 + $0x2510] sm:$0xff] }
 0x25f   : > { %10776 = vmatprep.subr.bf16.mxu1 %v10775_v0  ;;  %v1611_v0 = vld [vmem:[%s12026_s11 + $0x2350] sm:$0xff]  ;;  %v421_v51 = vld [vmem:[%s12036_s23 + $0x220] sm:$0xff]  ;;  %v10809_v53 = vpack.c.bf16 %v1634_v43, %v1633_v42  ;;  %v10841_v54 = vpack.c.bf16 %v1666_v47, %v1665_v44 }
 0x260   : > { %4834 = vmatmul.mubr.f32.vlgmr.msra.gmra.mrb[32].mxu0 %v417_v6  ;;  %v1630_v6 = vld [vmem:[%s12026_s11 + $0x23e8] sm:$0xff]  ;;  %v1636_v57 = vld [vmem:[%s12026_s11 + $0x2418] sm:$0xff]  ;;  %v1643_v43 = vld [vmem:[%s12026_s11 + $0x2450] sm:$0xff] }
 0x261   : > { %10746 = vmatpush3.bf16.msra.mxu0 %v10745_v8  ;;  %4904 = vmatmul.mubr.f32.vlgmr.msra.gmra.mrb[32].mxu1 %v419_v26  ;;  %v10765_v8 = vpack.c.bf16 %v1580_v63, %v1579_v62  ;;  %v10797_v26 = vpack.c.bf16 %v1612_v20, %v1611_v0  ;;  %v1654_v62 = vld [vmem:[%s12026_s11 + $0x24a8] sm:$0xff]  ;;  %v1685_v63 = vld [vmem:[%s12026_s11 + $0x25a0] sm:$0xff]  ;;  %v10813_v20 = vpack.c.bf16 %v1636_v57, %v1635_v56  ;;  %v1644_v44 = vld [vmem:[%s12026_s11 + $0x2458] sm:$0xff] }
 0x262   : > { %10778 = vmatpush3.bf16.msra.mxu1 %v10777_v9  ;;  %10748 = vmatprep.subr.bf16.mxu0 %v10747_v10  ;;  %v10767_v9 = vpack.c.bf16 %v1598_v4, %v1597_v3  ;;  %v1581_v10 = vld [vmem:[%s12026_s11 + $0x2260] sm:$0xff]  ;;  %v1686_v0 = vld [vmem:[%s12026_s11 + $0x25a8] sm:$0xff]  ;;  %v428_v3 = vld [vmem:[%s12036_s23 + $0x258] sm:$0xff] }
 0x263   : > { %10780 = vmatprep.subr.bf16.mxu1 %v10779_v32  ;;  %4973 = vmatprep.mubr.f32.mxu0 %v422_v21  ;;  %v10799_v32 = vpack.c.bf16 %v1630_v6, %v1629_v5  ;;  %v1631_v21 = vld [vmem:[%s12026_s11 + $0x23f0] sm:$0xff]  ;;  %v1637_v6 = vld [vmem:[%s12026_s11 + $0x2420] sm:$0xff]  ;;  %v1646_v56 = vld [vmem:[%s12026_s11 + $0x2468] sm:$0xff] }
 0x264   : > { %5043 = vmatprep.mubr.f32.mxu1 %v424_v22  ;;  %v1677_v57 = vld [vmem:[%s12026_s11 + $0x2560] sm:$0xff] }
 0x265   : > { %10750 = vmatpush3.bf16.msra.mxu0 %v10749_v37  ;;  %v1632_v37 = vld [vmem:[%s12026_s11 + $0x23f8] sm:$0xff] }
 0x266   : > { %10782 = vmatpush3.bf16.msra.mxu1 %v10781_v23  ;;  %10752 = vmatprep.subr.bf16.mxu0 %v10751_v24  ;;  %v10769_v24 = vpack.c.bf16 %v1582_v11, %v1581_v10  ;;  %v10803_v33 = vpack.c.bf16 %v1632_v37, %v1631_v21  ;;  %v1670_v10 = vld [vmem:[%s12026_s11 + $0x2528] sm:$0xff]  ;;  %v1655_v11 = vld [vmem:[%s12026_s11 + $0x24b0] sm:$0xff] }
 0x267   : > { %10784 = vmatprep.subr.bf16.mxu1 %v10783_v28  ;;  %v1583_v28 = vld [vmem:[%s12026_s11 + $0x2270] sm:$0xff]  ;;  %v10819_v17 = vpack.c.bf16 %v1656_v12, %v1655_v11 }
 0x268   : > { %v10773_v40 = vpack.c.bf16 %v1584_v29, %v1583_v28  ;;  %v1671_v21 = vld [vmem:[%s12026_s11 + $0x2530] sm:$0xff] }
 0x269   : > { %10754 = vmatpush3.bf16.msra.mxu0 %v10753_v34  ;;  %v1649_v34 = vld [vmem:[%s12026_s11 + $0x2480] sm:$0xff]  ;;  %v1679_v11 = vld [vmem:[%s12026_s11 + $0x2570] sm:$0xff] }
 0x26a   : > { %10786 = vmatpush3.bf16.msra.mxu1 %v10785_v35  ;;  %10756 = vmatprep.subr.bf16.mxu0 %v10755_v36  ;;  %v1650_v35 = vld [vmem:[%s12026_s11 + $0x2488] sm:$0xff]  ;;  %v1681_v36 = vld [vmem:[%s12026_s11 + $0x2580] sm:$0xff] }
 0x26b   : > { %10788 = vmatprep.subr.bf16.mxu1 %v10787_v41  ;;  %v10807_v41 = vpack.c.bf16 %v1650_v35, %v1649_v34  ;;  %v10839_v45 = vpack.c.bf16 %v1682_v38, %v1681_v36  ;;  %v1674_v34 = vld [vmem:[%s12026_s11 + $0x2548] sm:$0xff]  ;;  %v1659_v35 = vld [vmem:[%s12026_s11 + $0x24d0] sm:$0xff]  ;;  %v1660_v36 = vld [vmem:[%s12026_s11 + $0x24d8] sm:$0xff] }
 0x26c   : > { %v1691_v38 = vld [vmem:[%s12026_s11 + $0x25d0] sm:$0xff]  ;;  %v10827_v42 = vpack.c.bf16 %v1660_v36, %v1659_v35 }
 0x26d   : > { %10758 = vmatpush3.bf16.msra.mxu0 %v10757_v1  ;;  %v1651_v1 = vld [vmem:[%s12026_s11 + $0x2490] sm:$0xff] }
 0x26e   : > { %10790 = vmatpush3.bf16.msra.mxu1 %v10789_v48  ;;  %10760 = vmatprep.subr.bf16.mxu0 %v10759_v49  ;;  %v1652_v48 = vld [vmem:[%s12026_s11 + $0x2498] sm:$0xff]  ;;  %v1683_v49 = vld [vmem:[%s12026_s11 + $0x2590] sm:$0xff] }
 0x26f   : > { %10792 = vmatprep.subr.bf16.mxu1 %v10791_v7  ;;  %v423_v7 = vld [vmem:[%s12036_s23 + $0x230] sm:$0xff]  ;;  %v10811_v55 = vpack.c.bf16 %v1652_v48, %v1651_v1  ;;  %v1676_v1 = vld [vmem:[%s12026_s11 + $0x2558] sm:$0xff]  ;;  %v1661_v48 = vld [vmem:[%s12026_s11 + $0x24e0] sm:$0xff] }
 0x270   : > { %v1699_v36 = vld [vmem:[%s12026_s11 + $0x2610] sm:$0xff] }
 0x271   : > { %10762 = vmatpush3.bf16.msra.mxu0 %v10761_v13  ;;  %v10843_v13 = vpack.c.bf16 %v1684_v50, %v1683_v49  ;;  %v1662_v49 = vld [vmem:[%s12026_s11 + $0x24e8] sm:$0xff]  ;;  %v1693_v50 = vld [vmem:[%s12026_s11 + $0x25e0] sm:$0xff] }
 0x272   : > { %10794 = vmatpush3.bf16.msra.mxu1 %v10793_v60  ;;  %10764 = vmatprep.subr.bf16.mxu0 %v10763_v61  ;;  %v1668_v60 = vld [vmem:[%s12026_s11 + $0x2518] sm:$0xff]  ;;  %v1653_v61 = vld [vmem:[%s12026_s11 + $0x24a0] sm:$0xff] }
 0x273   : > { %v8061_v14 = vpop.f32.mrb[20].mxu0  ;;  %10796 = vmatprep.subr.bf16.mxu1 %v10795_v2  ;;  %v426_v2 = vld [vmem:[%s12036_s23 + $0x248] sm:$0xff]  ;;  %v10845_v4 = vpack.c.bf16 %v1668_v60, %v1667_v59  ;;  %v10815_v5 = vpack.c.bf16 %v1654_v62, %v1653_v61  ;;  %v1678_v60 = vld [vmem:[%s12026_s11 + $0x2568] sm:$0xff]  ;;  %v1663_v61 = vld [vmem:[%s12026_s11 + $0x24f0] sm:$0xff] }
 0x274   : > { %v8062_v18 = vpop.f32.mrb[21].mxu0  ;;  %v8096_v19 = vpop.f32.mrb[20].mxu1  ;;  %v1664_v62 = vld [vmem:[%s12026_s11 + $0x24f8] sm:$0xff] }
 0x275   : > { %v8063_v22 = vadd.f32 %v8062_v18, %v8061_v14  ;;  %10766 = vmatpush3.bf16.msra.mxu0 %v10765_v8  ;;  %v8097_v23 = vpop.f32.mrb[21].mxu1  ;;  %v1638_v8 = vld [vmem:[%s12026_s11 + $0x2428] sm:$0xff]  ;;  %v1687_v14 = vld [vmem:[%s12026_s11 + $0x25b0] sm:$0xff] }
 0x276   : > { %v8098_v25 = vadd.f32 %v8097_v23, %v8096_v19  ;;  %10798 = vmatpush3.bf16.msra.mxu1 %v10797_v26  ;;  %10768 = vmatprep.subr.bf16.mxu0 %v10767_v9  ;;  %v1669_v26 = vld [vmem:[%s12026_s11 + $0x2520] sm:$0xff]  ;;  %v10847_v9 = vpack.c.bf16 %v1686_v0, %v1685_v63  ;;  %v10817_v15 = vpack.c.bf16 %v1638_v8, %v1637_v6  ;;  %v1639_v18 = vld [vmem:[%s12026_s11 + $0x2430] sm:$0xff]  ;;  %v1640_v19 = vld [vmem:[%s12026_s11 + $0x2438] sm:$0xff] }
 0x277   : > { %v3996_v31 = vadd.f32 %v8063_v22, %v13224_v58  ;;  %10800 = vmatprep.subr.bf16.mxu1 %v10799_v32  ;;  %v10805_v58 = vpack.c.bf16 %v1616_v52, %v1615_v30  ;;  %v1688_v32 = vld [vmem:[%s12026_s11 + $0x25b8] sm:$0xff]  ;;  %v10849_v16 = vpack.c.bf16 %v1670_v10, %v1669_v26  ;;  %v1657_v23 = vld [vmem:[%s12026_s11 + $0x24c0] sm:$0xff]  ;;  %v10865_v8 = vpack.c.bf16 %v1678_v60, %v1677_v57 }
 0x278   : > { %v10851_v37 = vpack.c.bf16 %v1688_v32, %v1687_v14  ;;  %v1672_v22 = vld [vmem:[%s12026_s11 + $0x2538] sm:$0xff]  ;;  %v1641_v30 = vld [vmem:[%s12026_s11 + $0x2440] sm:$0xff]  ;;  %v10835_v26 = vpack.c.bf16 %v1664_v62, %v1663_v61 }
 0x279   : > { %v13295_v39 = vadd.f32 %v8098_v25, %v3996_v31  ;;  %10770 = vmatpush3.bf16.msra.mxu0 %v10769_v24  ;;  %v1658_v24 = vld [vmem:[%s12026_s11 + $0x24c8] sm:$0xff]  ;;  %v1689_v25 = vld [vmem:[%s12026_s11 + $0x25c0] sm:$0xff]  ;;  %v10853_v28 = vpack.c.bf16 %v1672_v22, %v1671_v21  ;;  %v1648_v10 = vld [vmem:[%s12026_s11 + $0x2478] sm:$0xff] }
 0x27a   : > { %10802 = vmatpush3.bf16.msra.mxu1 %v10801_v27  ;;  %10772 = vmatprep.subr.bf16.mxu0 %v10771_v46  ;;  %v1690_v27 = vld [vmem:[%s12026_s11 + $0x25c8] sm:$0xff]  ;;  %v10821_v46 = vpack.c.bf16 %v1640_v19, %v1639_v18  ;;  %v10823_v29 = vpack.c.bf16 %v1658_v24, %v1657_v23  ;;  %v1680_v32 = vld [vmem:[%s12026_s11 + $0x2578] sm:$0xff]  ;;  %v1697_v22 = vld [vmem:[%s12026_s11 + $0x2600] sm:$0xff] }
 0x27b   : > { %10804 = vmatprep.subr.bf16.mxu1 %v10803_v33  ;;  %v1642_v31 = vld [vmem:[%s12026_s11 + $0x2448] sm:$0xff]  ;;  %v1673_v33 = vld [vmem:[%s12026_s11 + $0x2540] sm:$0xff]  ;;  %v10855_v52 = vpack.c.bf16 %v1690_v27, %v1689_v25  ;;  %v1720_v57 = vld [vmem:[%s12026_s11 + $0x26b8] sm:$0xff] }
 0x27c   : > { %v1746_v18 = vld [vmem:[%s12026_s11 + $0x2788] sm:$0xff]  ;;  %v1729_v24 = vld [vmem:[%s12026_s11 + $0x2700] sm:$0xff] }
 0x27d   : > { %10774 = vmatpush3.bf16.msra.mxu0 %v10773_v40  ;;  %v1692_v40 = vld [vmem:[%s12026_s11 + $0x25d8] sm:$0xff]  ;;  %v1698_v23 = vld [vmem:[%s12026_s11 + $0x2608] sm:$0xff] }
 0x27e   : > { %10806 = vmatpush3.bf16.msra.mxu1 %v10805_v58  ;;  %10808 = vmatprep.subr.bf16.mxu0 %v10807_v41  ;;  %v10825_v58 = vpack.c.bf16 %v1642_v31, %v1641_v30  ;;  %v10857_v41 = vpack.c.bf16 %v1674_v34, %v1673_v33  ;;  %v10859_v47 = vpack.c.bf16 %v1692_v40, %v1691_v38  ;;  %v1730_v27 = vld [vmem:[%s12026_s11 + $0x2708] sm:$0xff]  ;;  %v1748_v30 = vld [vmem:[%s12026_s11 + $0x2798] sm:$0xff]  ;;  %v1731_v40 = vld [vmem:[%s12026_s11 + $0x2710] sm:$0xff] }
 0x27f   : > { %10840 = vmatprep.subr.bf16.mxu1 %v10839_v45  ;;  %v1675_v45 = vld [vmem:[%s12026_s11 + $0x2550] sm:$0xff]  ;;  %v425_v31 = vld [vmem:[%s12036_s23 + $0x240] sm:$0xff]  ;;  %v10873_v33 = vpack.c.bf16 %v1698_v23, %v1697_v22  ;;  %v10905_v34 = vpack.c.bf16 %v1730_v27, %v1729_v24 }
 0x280   : > { %4974 = vmatmul.mubr.f32.vlgmr.msra.gmra.mrb[34].mxu0 %v421_v51  ;;  %v1694_v51 = vld [vmem:[%s12026_s11 + $0x25e8] sm:$0xff]  ;;  %v1700_v38 = vld [vmem:[%s12026_s11 + $0x2618] sm:$0xff]  ;;  %v1707_v23 = vld [vmem:[%s12026_s11 + $0x2650] sm:$0xff] }
 0x281   : > { %10810 = vmatpush3.bf16.msra.mxu0 %v10809_v53  ;;  %5044 = vmatmul.mubr.f32.vlgmr.msra.gmra.mrb[34].mxu1 %v423_v7  ;;  %v10829_v53 = vpack.c.bf16 %v1644_v44, %v1643_v43  ;;  %v10861_v7 = vpack.c.bf16 %v1676_v1, %v1675_v45  ;;  %v1718_v43 = vld [vmem:[%s12026_s11 + $0x26a8] sm:$0xff]  ;;  %v1749_v44 = vld [vmem:[%s12026_s11 + $0x27a0] sm:$0xff]  ;;  %v10877_v1 = vpack.c.bf16 %v1700_v38, %v1699_v36  ;;  %v1708_v24 = vld [vmem:[%s12026_s11 + $0x2658] sm:$0xff] }
 0x282   : > { %10842 = vmatpush3.bf16.msra.mxu1 %v10841_v54  ;;  %10812 = vmatprep.subr.bf16.mxu0 %v10811_v55  ;;  %v10831_v54 = vpack.c.bf16 %v1662_v49, %v1661_v48  ;;  %v1645_v55 = vld [vmem:[%s12026_s11 + $0x2460] sm:$0xff]  ;;  %v1750_v45 = vld [vmem:[%s12026_s11 + $0x27a8] sm:$0xff]  ;;  %v432_v48 = vld [vmem:[%s12036_s23 + $0x278] sm:$0xff] }
 0x283   : > { %10844 = vmatprep.subr.bf16.mxu1 %v10843_v13  ;;  %5113 = vmatprep.mubr.f32.mxu0 %v426_v2  ;;  %v10863_v13 = vpack.c.bf16 %v1694_v51, %v1693_v50  ;;  %v1695_v2 = vld [vmem:[%s12026_s11 + $0x25f0] sm:$0xff]  ;;  %v1701_v51 = vld [vmem:[%s12026_s11 + $0x2620] sm:$0xff]  ;;  %v1710_v36 = vld [vmem:[%s12026_s11 + $0x2668] sm:$0xff] }
 0x284   : > { %5183 = vmatprep.mubr.f32.mxu1 %v428_v3  ;;  %v1741_v38 = vld [vmem:[%s12026_s11 + $0x2760] sm:$0xff] }
 0x285   : > { %10814 = vmatpush3.bf16.msra.mxu0 %v10813_v20  ;;  %v1696_v20 = vld [vmem:[%s12026_s11 + $0x25f8] sm:$0xff] }
 0x286   : > { %10846 = vmatpush3.bf16.msra.mxu1 %v10845_v4  ;;  %10816 = vmatprep.subr.bf16.mxu0 %v10815_v5  ;;  %v10833_v5 = vpack.c.bf16 %v1646_v56, %v1645_v55  ;;  %v10867_v14 = vpack.c.bf16 %v1696_v20, %v1695_v2  ;;  %v1734_v55 = vld [vmem:[%s12026_s11 + $0x2728] sm:$0xff]  ;;  %v1719_v56 = vld [vmem:[%s12026_s11 + $0x26b0] sm:$0xff] }
 0x287   : > { %10848 = vmatprep.subr.bf16.mxu1 %v10847_v9  ;;  %v1647_v9 = vld [vmem:[%s12026_s11 + $0x2470] sm:$0xff]  ;;  %v10883_v62 = vpack.c.bf16 %v1720_v57, %v1719_v56 }
 0x288   : > { %v10837_v21 = vpack.c.bf16 %v1648_v10, %v1647_v9  ;;  %v1735_v2 = vld [vmem:[%s12026_s11 + $0x2730] sm:$0xff] }
 0x289   : > { %10818 = vmatpush3.bf16.msra.mxu0 %v10817_v15  ;;  %v1713_v15 = vld [vmem:[%s12026_s11 + $0x2680] sm:$0xff]  ;;  %v1743_v56 = vld [vmem:[%s12026_s11 + $0x2770] sm:$0xff] }
 0x28a   : > { %10850 = vmatpush3.bf16.msra.mxu1 %v10849_v16  ;;  %10820 = vmatprep.subr.bf16.mxu0 %v10819_v17  ;;  %v1714_v16 = vld [vmem:[%s12026_s11 + $0x2688] sm:$0xff]  ;;  %v1745_v17 = vld [vmem:[%s12026_s11 + $0x2780] sm:$0xff] }
 0x28b   : > { %10852 = vmatprep.subr.bf16.mxu1 %v10851_v37  ;;  %v10871_v37 = vpack.c.bf16 %v1714_v16, %v1713_v15  ;;  %v10903_v25 = vpack.c.bf16 %v1746_v18, %v1745_v17  ;;  %v1738_v15 = vld [vmem:[%s12026_s11 + $0x2748] sm:$0xff]  ;;  %v1723_v16 = vld [vmem:[%s12026_s11 + $0x26d0] sm:$0xff]  ;;  %v1724_v17 = vld [vmem:[%s12026_s11 + $0x26d8] sm:$0xff] }
 0x28c   : > { %v1755_v18 = vld [vmem:[%s12026_s11 + $0x27d0] sm:$0xff]  ;;  %v10891_v22 = vpack.c.bf16 %v1724_v17, %v1723_v16 }
 0x28d   : > { %10822 = vmatpush3.bf16.msra.mxu0 %v10821_v46  ;;  %v1715_v46 = vld [vmem:[%s12026_s11 + $0x2690] sm:$0xff] }
 0x28e   : > { %10854 = vmatpush3.bf16.msra.mxu1 %v10853_v28  ;;  %10824 = vmatprep.subr.bf16.mxu0 %v10823_v29  ;;  %v1716_v28 = vld [vmem:[%s12026_s11 + $0x2698] sm:$0xff]  ;;  %v1747_v29 = vld [vmem:[%s12026_s11 + $0x2790] sm:$0xff] }
 0x28f   : > { %10856 = vmatprep.subr.bf16.mxu1 %v10855_v52  ;;  %v427_v52 = vld [vmem:[%s12036_s23 + $0x250] sm:$0xff]  ;;  %v10875_v35 = vpack.c.bf16 %v1716_v28, %v1715_v46  ;;  %v1740_v46 = vld [vmem:[%s12026_s11 + $0x2758] sm:$0xff]  ;;  %v1725_v28 = vld [vmem:[%s12026_s11 + $0x26e0] sm:$0xff] }
 0x290   : > { %v1763_v17 = vld [vmem:[%s12026_s11 + $0x2810] sm:$0xff] }
 0x291   : > { %10826 = vmatpush3.bf16.msra.mxu0 %v10825_v58  ;;  %v10907_v58 = vpack.c.bf16 %v1748_v30, %v1747_v29  ;;  %v1726_v29 = vld [vmem:[%s12026_s11 + $0x26e8] sm:$0xff]  ;;  %v1757_v30 = vld [vmem:[%s12026_s11 + $0x27e0] sm:$0xff] }
 0x292   : > { %10858 = vmatpush3.bf16.msra.mxu1 %v10857_v41  ;;  %10828 = vmatprep.subr.bf16.mxu0 %v10827_v42  ;;  %v1732_v41 = vld [vmem:[%s12026_s11 + $0x2718] sm:$0xff]  ;;  %v1717_v42 = vld [vmem:[%s12026_s11 + $0x26a0] sm:$0xff] }
 0x293   : > { %v8131_v59 = vpop.f32.mrb[22].mxu0  ;;  %10860 = vmatprep.subr.bf16.mxu1 %v10859_v47  ;;  %v430_v47 = vld [vmem:[%s12036_s23 + $0x268] sm:$0xff]  ;;  %v10909_v49 = vpack.c.bf16 %v1732_v41, %v1731_v40  ;;  %v10879_v50 = vpack.c.bf16 %v1718_v43, %v1717_v42  ;;  %v1742_v41 = vld [vmem:[%s12026_s11 + $0x2768] sm:$0xff]  ;;  %v1727_v42 = vld [vmem:[%s12026_s11 + $0x26f0] sm:$0xff] }
 0x294   : > { %v8132_v63 = vpop.f32.mrb[23].mxu0  ;;  %v8166_v0 = vpop.f32.mrb[22].mxu1  ;;  %v1728_v43 = vld [vmem:[%s12026_s11 + $0x26f8] sm:$0xff] }
 0x295   : > { %v8133_v3 = vadd.f32 %v8132_v63, %v8131_v59  ;;  %10830 = vmatpush3.bf16.msra.mxu0 %v10829_v53  ;;  %v8167_v4 = vpop.f32.mrb[23].mxu1  ;;  %v1702_v53 = vld [vmem:[%s12026_s11 + $0x2628] sm:$0xff]  ;;  %v1751_v59 = vld [vmem:[%s12026_s11 + $0x27b0] sm:$0xff] }
 0x296   : > { %v8168_v6 = vadd.f32 %v8167_v4, %v8166_v0  ;;  %10862 = vmatpush3.bf16.msra.mxu1 %v10861_v7  ;;  %10832 = vmatprep.subr.bf16.mxu0 %v10831_v54  ;;  %v1733_v7 = vld [vmem:[%s12026_s11 + $0x2720] sm:$0xff]  ;;  %v10911_v54 = vpack.c.bf16 %v1750_v45, %v1749_v44  ;;  %v10881_v60 = vpack.c.bf16 %v1702_v53, %v1701_v51  ;;  %v1703_v63 = vld [vmem:[%s12026_s11 + $0x2630] sm:$0xff]  ;;  %v1704_v0 = vld [vmem:[%s12026_s11 + $0x2638] sm:$0xff] }
 0x297   : > { %v4136_v12 = vadd.f32 %v8133_v3, %v13295_v39  ;;  %10864 = vmatprep.subr.bf16.mxu1 %v10863_v13  ;;  %v10869_v39 = vpack.c.bf16 %v1680_v32, %v1679_v11  ;;  %v1752_v13 = vld [vmem:[%s12026_s11 + $0x27b8] sm:$0xff]  ;;  %v10913_v61 = vpack.c.bf16 %v1734_v55, %v1733_v7  ;;  %v1721_v4 = vld [vmem:[%s12026_s11 + $0x26c0] sm:$0xff]  ;;  %v10929_v53 = vpack.c.bf16 %v1742_v41, %v1741_v38 }
 0x298   : > { %v10915_v20 = vpack.c.bf16 %v1752_v13, %v1751_v59  ;;  %v1736_v3 = vld [vmem:[%s12026_s11 + $0x2738] sm:$0xff]  ;;  %v1705_v11 = vld [vmem:[%s12026_s11 + $0x2640] sm:$0xff]  ;;  %v10899_v7 = vpack.c.bf16 %v1728_v43, %v1727_v42 }
 0x299   : > { %v13366_v19 = vadd.f32 %v8168_v6, %v4136_v12  ;;  %10834 = vmatpush3.bf16.msra.mxu0 %v10833_v5  ;;  %v1722_v5 = vld [vmem:[%s12026_s11 + $0x26c8] sm:$0xff]  ;;  %v1753_v6 = vld [vmem:[%s12026_s11 + $0x27c0] sm:$0xff]  ;;  %v10917_v9 = vpack.c.bf16 %v1736_v3, %v1735_v2  ;;  %v1712_v55 = vld [vmem:[%s12026_s11 + $0x2678] sm:$0xff] }
 0x29a   : > { %10866 = vmatpush3.bf16.msra.mxu1 %v10865_v8  ;;  %10836 = vmatprep.subr.bf16.mxu0 %v10835_v26  ;;  %v1754_v8 = vld [vmem:[%s12026_s11 + $0x27c8] sm:$0xff]  ;;  %v10885_v26 = vpack.c.bf16 %v1704_v0, %v1703_v63  ;;  %v10887_v10 = vpack.c.bf16 %v1722_v5, %v1721_v4  ;;  %v1744_v13 = vld [vmem:[%s12026_s11 + $0x2778] sm:$0xff]  ;;  %v1761_v3 = vld [vmem:[%s12026_s11 + $0x2800] sm:$0xff] }
 0x29b   : > { %10868 = vmatprep.subr.bf16.mxu1 %v10867_v14  ;;  %v1706_v12 = vld [vmem:[%s12026_s11 + $0x2648] sm:$0xff]  ;;  %v1737_v14 = vld [vmem:[%s12026_s11 + $0x2740] sm:$0xff]  ;;  %v10919_v32 = vpack.c.bf16 %v1754_v8, %v1753_v6  ;;  %v1784_v38 = vld [vmem:[%s12026_s11 + $0x28b8] sm:$0xff] }
 0x29c   : > { %v1810_v63 = vld [vmem:[%s12026_s11 + $0x2988] sm:$0xff]  ;;  %v1793_v5 = vld [vmem:[%s12026_s11 + $0x2900] sm:$0xff] }
 0x29d   : > { %10838 = vmatpush3.bf16.msra.mxu0 %v10837_v21  ;;  %v1756_v21 = vld [vmem:[%s12026_s11 + $0x27d8] sm:$0xff]  ;;  %v1762_v4 = vld [vmem:[%s12026_s11 + $0x2808] sm:$0xff] }
 0x29e   : > { %10870 = vmatpush3.bf16.msra.mxu1 %v10869_v39  ;;  %10872 = vmatprep.subr.bf16.mxu0 %v10871_v37  ;;  %v10889_v39 = vpack.c.bf16 %v1706_v12, %v1705_v11  ;;  %v10921_v37 = vpack.c.bf16 %v1738_v15, %v1737_v14  ;;  %v10923_v27 = vpack.c.bf16 %v1756_v21, %v1755_v18  ;;  %v1794_v8 = vld [vmem:[%s12026_s11 + $0x2908] sm:$0xff]  ;;  %v1812_v11 = vld [vmem:[%s12026_s11 + $0x2998] sm:$0xff]  ;;  %v1795_v21 = vld [vmem:[%s12026_s11 + $0x2910] sm:$0xff] }
 0x29f   : > { %10904 = vmatprep.subr.bf16.mxu1 %v10903_v25  ;;  %v1739_v25 = vld [vmem:[%s12026_s11 + $0x2750] sm:$0xff]  ;;  %v429_v12 = vld [vmem:[%s12036_s23 + $0x260] sm:$0xff]  ;;  %v10937_v14 = vpack.c.bf16 %v1762_v4, %v1761_v3  ;;  %v10969_v15 = vpack.c.bf16 %v1794_v8, %v1793_v5 }
 0x2a0   : > { %5114 = vmatmul.mubr.f32.vlgmr.msra.gmra.mrb[36].mxu0 %v425_v31  ;;  %v1758_v31 = vld [vmem:[%s12026_s11 + $0x27e8] sm:$0xff]  ;;  %v1764_v18 = vld [vmem:[%s12026_s11 + $0x2818] sm:$0xff]  ;;  %v1771_v4 = vld [vmem:[%s12026_s11 + $0x2850] sm:$0xff] }
 0x2a1   : > { %10874 = vmatpush3.bf16.msra.mxu0 %v10873_v33  ;;  %5184 = vmatmul.mubr.f32.vlgmr.msra.gmra.mrb[36].mxu1 %v427_v52  ;;  %v10893_v33 = vpack.c.bf16 %v1708_v24, %v1707_v23  ;;  %v10925_v52 = vpack.c.bf16 %v1740_v46, %v1739_v25  ;;  %v1782_v23 = vld [vmem:[%s12026_s11 + $0x28a8] sm:$0xff]  ;;  %v1813_v24 = vld [vmem:[%s12026_s11 + $0x29a0] sm:$0xff]  ;;  %v10941_v46 = vpack.c.bf16 %v1764_v18, %v1763_v17  ;;  %v1772_v5 = vld [vmem:[%s12026_s11 + $0x2858] sm:$0xff] }
 0x2a2   : > { %10906 = vmatpush3.bf16.msra.mxu1 %v10905_v34  ;;  %10876 = vmatprep.subr.bf16.mxu0 %v10875_v35  ;;  %v10895_v34 = vpack.c.bf16 %v1726_v29, %v1725_v28  ;;  %v1709_v35 = vld [vmem:[%s12026_s11 + $0x2660] sm:$0xff]  ;;  %v1814_v25 = vld [vmem:[%s12026_s11 + $0x29a8] sm:$0xff]  ;;  %v436_v28 = vld [vmem:[%s12036_s23 + $0x298] sm:$0xff] }
 0x2a3   : > { %10908 = vmatprep.subr.bf16.mxu1 %v10907_v58  ;;  %5253 = vmatprep.mubr.f32.mxu0 %v430_v47  ;;  %v10927_v58 = vpack.c.bf16 %v1758_v31, %v1757_v30  ;;  %v1759_v47 = vld [vmem:[%s12026_s11 + $0x27f0] sm:$0xff]  ;;  %v1765_v31 = vld [vmem:[%s12026_s11 + $0x2820] sm:$0xff]  ;;  %v1774_v17 = vld [vmem:[%s12026_s11 + $0x2868] sm:$0xff] }
 0x2a4   : > { %5323 = vmatprep.mubr.f32.mxu1 %v432_v48  ;;  %v1805_v18 = vld [vmem:[%s12026_s11 + $0x2960] sm:$0xff] }
 0x2a5   : > { %10878 = vmatpush3.bf16.msra.mxu0 %v10877_v1  ;;  %v1760_v1 = vld [vmem:[%s12026_s11 + $0x27f8] sm:$0xff] }
 0x2a6   : > { %10910 = vmatpush3.bf16.msra.mxu1 %v10909_v49  ;;  %10880 = vmatprep.subr.bf16.mxu0 %v10879_v50  ;;  %v10897_v50 = vpack.c.bf16 %v1710_v36, %v1709_v35  ;;  %v10931_v59 = vpack.c.bf16 %v1760_v1, %v1759_v47  ;;  %v1798_v35 = vld [vmem:[%s12026_s11 + $0x2928] sm:$0xff]  ;;  %v1783_v36 = vld [vmem:[%s12026_s11 + $0x28b0] sm:$0xff] }
 0x2a7   : > { %10912 = vmatprep.subr.bf16.mxu1 %v10911_v54  ;;  %v1711_v54 = vld [vmem:[%s12026_s11 + $0x2670] sm:$0xff]  ;;  %v10947_v43 = vpack.c.bf16 %v1784_v38, %v1783_v36 }
 0x2a8   : > { %v10901_v2 = vpack.c.bf16 %v1712_v55, %v1711_v54  ;;  %v1799_v47 = vld [vmem:[%s12026_s11 + $0x2930] sm:$0xff] }
 0x2a9   : > { %10882 = vmatpush3.bf16.msra.mxu0 %v10881_v60  ;;  %v1777_v60 = vld [vmem:[%s12026_s11 + $0x2880] sm:$0xff]  ;;  %v1807_v36 = vld [vmem:[%s12026_s11 + $0x2970] sm:$0xff] }
 0x2aa   : > { %10914 = vmatpush3.bf16.msra.mxu1 %v10913_v61  ;;  %10884 = vmatprep.subr.bf16.mxu0 %v10883_v62  ;;  %v1778_v61 = vld [vmem:[%s12026_s11 + $0x2888] sm:$0xff]  ;;  %v1809_v62 = vld [vmem:[%s12026_s11 + $0x2980] sm:$0xff] }
 0x2ab   : > { %10916 = vmatprep.subr.bf16.mxu1 %v10915_v20  ;;  %v10935_v20 = vpack.c.bf16 %v1778_v61, %v1777_v60  ;;  %v10967_v6 = vpack.c.bf16 %v1810_v63, %v1809_v62  ;;  %v1802_v60 = vld [vmem:[%s12026_s11 + $0x2948] sm:$0xff]  ;;  %v1787_v61 = vld [vmem:[%s12026_s11 + $0x28d0] sm:$0xff]  ;;  %v1788_v62 = vld [vmem:[%s12026_s11 + $0x28d8] sm:$0xff] }
 0x2ac   : > { %v1819_v63 = vld [vmem:[%s12026_s11 + $0x29d0] sm:$0xff]  ;;  %v10955_v3 = vpack.c.bf16 %v1788_v62, %v1787_v61 }
 0x2ad   : > { %10886 = vmatpush3.bf16.msra.mxu0 %v10885_v26  ;;  %v1779_v26 = vld [vmem:[%s12026_s11 + $0x2890] sm:$0xff] }
 0x2ae   : > { %10918 = vmatpush3.bf16.msra.mxu1 %v10917_v9  ;;  %10888 = vmatprep.subr.bf16.mxu0 %v10887_v10  ;;  %v1780_v9 = vld [vmem:[%s12026_s11 + $0x2898] sm:$0xff]  ;;  %v1811_v10 = vld [vmem:[%s12026_s11 + $0x2990] sm:$0xff] }
 0x2af   : > { %10920 = vmatprep.subr.bf16.mxu1 %v10919_v32  ;;  %v431_v32 = vld [vmem:[%s12036_s23 + $0x270] sm:$0xff]  ;;  %v10939_v16 = vpack.c.bf16 %v1780_v9, %v1779_v26  ;;  %v1804_v26 = vld [vmem:[%s12026_s11 + $0x2958] sm:$0xff]  ;;  %v1789_v9 = vld [vmem:[%s12026_s11 + $0x28e0] sm:$0xff] }
 0x2b0   : > { %v1827_v62 = vld [vmem:[%s12026_s11 + $0x2a10] sm:$0xff] }
 0x2b1   : > { %10890 = vmatpush3.bf16.msra.mxu0 %v10889_v39  ;;  %v10971_v39 = vpack.c.bf16 %v1812_v11, %v1811_v10  ;;  %v1790_v10 = vld [vmem:[%s12026_s11 + $0x28e8] sm:$0xff]  ;;  %v1821_v11 = vld [vmem:[%s12026_s11 + $0x29e0] sm:$0xff] }
 0x2b2   : > { %10922 = vmatpush3.bf16.msra.mxu1 %v10921_v37  ;;  %10892 = vmatprep.subr.bf16.mxu0 %v10891_v22  ;;  %v1796_v37 = vld [vmem:[%s12026_s11 + $0x2918] sm:$0xff]  ;;  %v1781_v22 = vld [vmem:[%s12026_s11 + $0x28a0] sm:$0xff] }
 0x2b3   : > { %v8201_v40 = vpop.f32.mrb[24].mxu0  ;;  %10924 = vmatprep.subr.bf16.mxu1 %v10923_v27  ;;  %v434_v27 = vld [vmem:[%s12036_s23 + $0x288] sm:$0xff]  ;;  %v10973_v29 = vpack.c.bf16 %v1796_v37, %v1795_v21  ;;  %v10943_v30 = vpack.c.bf16 %v1782_v23, %v1781_v22  ;;  %v1806_v37 = vld [vmem:[%s12026_s11 + $0x2968] sm:$0xff]  ;;  %v1791_v22 = vld [vmem:[%s12026_s11 + $0x28f0] sm:$0xff] }
 0x2b4   : > { %v8202_v44 = vpop.f32.mrb[25].mxu0  ;;  %v8236_v45 = vpop.f32.mrb[24].mxu1  ;;  %v1792_v23 = vld [vmem:[%s12026_s11 + $0x28f8] sm:$0xff] }
 0x2b5   : > { %v8203_v48 = vadd.f32 %v8202_v44, %v8201_v40  ;;  %10894 = vmatpush3.bf16.msra.mxu0 %v10893_v33  ;;  %v8237_v49 = vpop.f32.mrb[25].mxu1  ;;  %v1766_v33 = vld [vmem:[%s12026_s11 + $0x2828] sm:$0xff]  ;;  %v1815_v40 = vld [vmem:[%s12026_s11 + $0x29b0] sm:$0xff] }
 0x2b6   : > { %v8238_v51 = vadd.f32 %v8237_v49, %v8236_v45  ;;  %10926 = vmatpush3.bf16.msra.mxu1 %v10925_v52  ;;  %10896 = vmatprep.subr.bf16.mxu0 %v10895_v34  ;;  %v1797_v52 = vld [vmem:[%s12026_s11 + $0x2920] sm:$0xff]  ;;  %v10975_v34 = vpack.c.bf16 %v1814_v25, %v1813_v24  ;;  %v10945_v41 = vpack.c.bf16 %v1766_v33, %v1765_v31  ;;  %v1767_v44 = vld [vmem:[%s12026_s11 + $0x2830] sm:$0xff]  ;;  %v1768_v45 = vld [vmem:[%s12026_s11 + $0x2838] sm:$0xff] }
 0x2b7   : > { %v4276_v57 = vadd.f32 %v8203_v48, %v13366_v19  ;;  %10928 = vmatprep.subr.bf16.mxu1 %v10927_v58  ;;  %v10933_v19 = vpack.c.bf16 %v1744_v13, %v1743_v56  ;;  %v1816_v58 = vld [vmem:[%s12026_s11 + $0x29b8] sm:$0xff]  ;;  %v10977_v42 = vpack.c.bf16 %v1798_v35, %v1797_v52  ;;  %v1785_v49 = vld [vmem:[%s12026_s11 + $0x28c0] sm:$0xff]  ;;  %v10993_v33 = vpack.c.bf16 %v1806_v37, %v1805_v18 }
 0x2b8   : > { %v10979_v1 = vpack.c.bf16 %v1816_v58, %v1815_v40  ;;  %v1800_v48 = vld [vmem:[%s12026_s11 + $0x2938] sm:$0xff]  ;;  %v1769_v56 = vld [vmem:[%s12026_s11 + $0x2840] sm:$0xff]  ;;  %v10963_v52 = vpack.c.bf16 %v1792_v23, %v1791_v22 }
 0x2b9   : > { %v13437_v0 = vadd.f32 %v8238_v51, %v4276_v57  ;;  %10898 = vmatpush3.bf16.msra.mxu0 %v10897_v50  ;;  %v1786_v50 = vld [vmem:[%s12026_s11 + $0x28c8] sm:$0xff]  ;;  %v1817_v51 = vld [vmem:[%s12026_s11 + $0x29c0] sm:$0xff]  ;;  %v10981_v54 = vpack.c.bf16 %v1800_v48, %v1799_v47  ;;  %v1776_v35 = vld [vmem:[%s12026_s11 + $0x2878] sm:$0xff] }
 0x2ba   : > { %10930 = vmatpush3.bf16.msra.mxu1 %v10929_v53  ;;  %10900 = vmatprep.subr.bf16.mxu0 %v10899_v7  ;;  %v1818_v53 = vld [vmem:[%s12026_s11 + $0x29c8] sm:$0xff]  ;;  %v10949_v7 = vpack.c.bf16 %v1768_v45, %v1767_v44  ;;  %v10951_v55 = vpack.c.bf16 %v1786_v50, %v1785_v49  ;;  %v1808_v58 = vld [vmem:[%s12026_s11 + $0x2978] sm:$0xff]  ;;  %v1825_v48 = vld [vmem:[%s12026_s11 + $0x2a00] sm:$0xff] }
 0x2bb   : > { %10932 = vmatprep.subr.bf16.mxu1 %v10931_v59  ;;  %v1770_v57 = vld [vmem:[%s12026_s11 + $0x2848] sm:$0xff]  ;;  %v1801_v59 = vld [vmem:[%s12026_s11 + $0x2940] sm:$0xff]  ;;  %v10983_v13 = vpack.c.bf16 %v1818_v53, %v1817_v51  ;;  %v1848_v18 = vld [vmem:[%s12026_s11 + $0x2ab8] sm:$0xff] }
 0x2bc   : > { %v1874_v44 = vld [vmem:[%s12026_s11 + $0x2b88] sm:$0xff]  ;;  %v1857_v50 = vld [vmem:[%s12026_s11 + $0x2b00] sm:$0xff] }
 0x2bd   : > { %10902 = vmatpush3.bf16.msra.mxu0 %v10901_v2  ;;  %v1820_v2 = vld [vmem:[%s12026_s11 + $0x29d8] sm:$0xff]  ;;  %v1826_v49 = vld [vmem:[%s12026_s11 + $0x2a08] sm:$0xff] }
 0x2be   : > { %10934 = vmatpush3.bf16.msra.mxu1 %v10933_v19  ;;  %10936 = vmatprep.subr.bf16.mxu0 %v10935_v20  ;;  %v10953_v19 = vpack.c.bf16 %v1770_v57, %v1769_v56  ;;  %v10985_v20 = vpack.c.bf16 %v1802_v60, %v1801_v59  ;;  %v10987_v8 = vpack.c.bf16 %v1820_v2, %v1819_v63  ;;  %v1858_v53 = vld [vmem:[%s12026_s11 + $0x2b08] sm:$0xff]  ;;  %v1876_v56 = vld [vmem:[%s12026_s11 + $0x2b98] sm:$0xff]  ;;  %v1859_v2 = vld [vmem:[%s12026_s11 + $0x2b10] sm:$0xff] }
 0x2bf   : > { %10968 = vmatprep.subr.bf16.mxu1 %v10967_v6  ;;  %v1803_v6 = vld [vmem:[%s12026_s11 + $0x2950] sm:$0xff]  ;;  %v433_v57 = vld [vmem:[%s12036_s23 + $0x280] sm:$0xff]  ;;  %v11001_v59 = vpack.c.bf16 %v1826_v49, %v1825_v48  ;;  %v11033_v60 = vpack.c.bf16 %v1858_v53, %v1857_v50 }
 0x2c0   : > { %5254 = vmatmul.mubr.f32.vlgmr.msra.gmra.mrb[38].mxu0 %v429_v12  ;;  %v1822_v12 = vld [vmem:[%s12026_s11 + $0x29e8] sm:$0xff]  ;;  %v1828_v63 = vld [vmem:[%s12026_s11 + $0x2a18] sm:$0xff]  ;;  %v1835_v49 = vld [vmem:[%s12026_s11 + $0x2a50] sm:$0xff] }
 0x2c1   : > { %10938 = vmatpush3.bf16.msra.mxu0 %v10937_v14  ;;  %5324 = vmatmul.mubr.f32.vlgmr.msra.gmra.mrb[38].mxu1 %v431_v32  ;;  %v10957_v14 = vpack.c.bf16 %v1772_v5, %v1771_v4  ;;  %v10989_v32 = vpack.c.bf16 %v1804_v26, %v1803_v6  ;;  %v1846_v4 = vld [vmem:[%s12026_s11 + $0x2aa8] sm:$0xff]  ;;  %v1877_v5 = vld [vmem:[%s12026_s11 + $0x2ba0] sm:$0xff]  ;;  %v11005_v26 = vpack.c.bf16 %v1828_v63, %v1827_v62  ;;  %v1836_v50 = vld [vmem:[%s12026_s11 + $0x2a58] sm:$0xff] }
 0x2c2   : > { %10970 = vmatpush3.bf16.msra.mxu1 %v10969_v15  ;;  %10940 = vmatprep.subr.bf16.mxu0 %v10939_v16  ;;  %v10959_v15 = vpack.c.bf16 %v1790_v10, %v1789_v9  ;;  %v1773_v16 = vld [vmem:[%s12026_s11 + $0x2860] sm:$0xff]  ;;  %v1878_v6 = vld [vmem:[%s12026_s11 + $0x2ba8] sm:$0xff]  ;;  %v440_v9 = vld [vmem:[%s12036_s23 + $0x2b8] sm:$0xff] }
 0x2c3   : > { %10972 = vmatprep.subr.bf16.mxu1 %v10971_v39  ;;  %5393 = vmatprep.mubr.f32.mxu0 %v434_v27  ;;  %v10991_v39 = vpack.c.bf16 %v1822_v12, %v1821_v11  ;;  %v1823_v27 = vld [vmem:[%s12026_s11 + $0x29f0] sm:$0xff]  ;;  %v1829_v12 = vld [vmem:[%s12026_s11 + $0x2a20] sm:$0xff]  ;;  %v1838_v62 = vld [vmem:[%s12026_s11 + $0x2a68] sm:$0xff] }
 0x2c4   : > { %5463 = vmatprep.mubr.f32.mxu1 %v436_v28  ;;  %v1869_v63 = vld [vmem:[%s12026_s11 + $0x2b60] sm:$0xff] }
 0x2c5   : > { %10942 = vmatpush3.bf16.msra.mxu0 %v10941_v46  ;;  %v1824_v46 = vld [vmem:[%s12026_s11 + $0x29f8] sm:$0xff] }
 0x2c6   : > { %10974 = vmatpush3.bf16.msra.mxu1 %v10973_v29  ;;  %10944 = vmatprep.subr.bf16.mxu0 %v10943_v30  ;;  %v10961_v30 = vpack.c.bf16 %v1774_v17, %v1773_v16  ;;  %v10995_v40 = vpack.c.bf16 %v1824_v46, %v1823_v27  ;;  %v1862_v16 = vld [vmem:[%s12026_s11 + $0x2b28] sm:$0xff]  ;;  %v1847_v17 = vld [vmem:[%s12026_s11 + $0x2ab0] sm:$0xff] }
 0x2c7   : > { %10976 = vmatprep.subr.bf16.mxu1 %v10975_v34  ;;  %v1775_v34 = vld [vmem:[%s12026_s11 + $0x2870] sm:$0xff]  ;;  %v11011_v23 = vpack.c.bf16 %v1848_v18, %v1847_v17 }
 0x2c8   : > { %v10965_v47 = vpack.c.bf16 %v1776_v35, %v1775_v34  ;;  %v1863_v27 = vld [vmem:[%s12026_s11 + $0x2b30] sm:$0xff] }
 0x2c9   : > { %10946 = vmatpush3.bf16.msra.mxu0 %v10945_v41  ;;  %v1841_v41 = vld [vmem:[%s12026_s11 + $0x2a80] sm:$0xff]  ;;  %v1871_v17 = vld [vmem:[%s12026_s11 + $0x2b70] sm:$0xff] }
 0x2ca   : > { %10978 = vmatpush3.bf16.msra.mxu1 %v10977_v42  ;;  %10948 = vmatprep.subr.bf16.mxu0 %v10947_v43  ;;  %v1842_v42 = vld [vmem:[%s12026_s11 + $0x2a88] sm:$0xff]  ;;  %v1873_v43 = vld [vmem:[%s12026_s11 + $0x2b80] sm:$0xff] }
 0x2cb   : > { %10980 = vmatprep.subr.bf16.mxu1 %v10979_v1  ;;  %v10999_v1 = vpack.c.bf16 %v1842_v42, %v1841_v41  ;;  %v11031_v51 = vpack.c.bf16 %v1874_v44, %v1873_v43  ;;  %v1866_v41 = vld [vmem:[%s12026_s11 + $0x2b48] sm:$0xff]  ;;  %v1851_v42 = vld [vmem:[%s12026_s11 + $0x2ad0] sm:$0xff]  ;;  %v1852_v43 = vld [vmem:[%s12026_s11 + $0x2ad8] sm:$0xff] }
 0x2cc   : > { %v1883_v44 = vld [vmem:[%s12026_s11 + $0x2bd0] sm:$0xff]  ;;  %v11019_v48 = vpack.c.bf16 %v1852_v43, %v1851_v42 }
 0x2cd   : > { %10950 = vmatpush3.bf16.msra.mxu0 %v10949_v7  ;;  %v1843_v7 = vld [vmem:[%s12026_s11 + $0x2a90] sm:$0xff] }
 0x2ce   : > { %10982 = vmatpush3.bf16.msra.mxu1 %v10981_v54  ;;  %10952 = vmatprep.subr.bf16.mxu0 %v10951_v55  ;;  %v1844_v54 = vld [vmem:[%s12026_s11 + $0x2a98] sm:$0xff]  ;;  %v1875_v55 = vld [vmem:[%s12026_s11 + $0x2b90] sm:$0xff] }
 0x2cf   : > { %10984 = vmatprep.subr.bf16.mxu1 %v10983_v13  ;;  %v435_v13 = vld [vmem:[%s12036_s23 + $0x290] sm:$0xff]  ;;  %v11003_v61 = vpack.c.bf16 %v1844_v54, %v1843_v7  ;;  %v1868_v7 = vld [vmem:[%s12026_s11 + $0x2b58] sm:$0xff]  ;;  %v1853_v54 = vld [vmem:[%s12026_s11 + $0x2ae0] sm:$0xff] }
 0x2d0   : > { %v1891_v43 = vld [vmem:[%s12026_s11 + $0x2c10] sm:$0xff] }
 0x2d1   : > { %10954 = vmatpush3.bf16.msra.mxu0 %v10953_v19  ;;  %v11035_v19 = vpack.c.bf16 %v1876_v56, %v1875_v55  ;;  %v1854_v55 = vld [vmem:[%s12026_s11 + $0x2ae8] sm:$0xff]  ;;  %v1885_v56 = vld [vmem:[%s12026_s11 + $0x2be0] sm:$0xff] }
 0x2d2   : > { %10986 = vmatpush3.bf16.msra.mxu1 %v10985_v20  ;;  %10956 = vmatprep.subr.bf16.mxu0 %v10955_v3  ;;  %v1860_v20 = vld [vmem:[%s12026_s11 + $0x2b18] sm:$0xff]  ;;  %v1845_v3 = vld [vmem:[%s12026_s11 + $0x2aa0] sm:$0xff] }
 0x2d3   : > { %v8271_v21 = vpop.f32.mrb[26].mxu0  ;;  %10988 = vmatprep.subr.bf16.mxu1 %v10987_v8  ;;  %v438_v8 = vld [vmem:[%s12036_s23 + $0x2a8] sm:$0xff]  ;;  %v11037_v10 = vpack.c.bf16 %v1860_v20, %v1859_v2  ;;  %v11007_v11 = vpack.c.bf16 %v1846_v4, %v1845_v3  ;;  %v1870_v20 = vld [vmem:[%s12026_s11 + $0x2b68] sm:$0xff]  ;;  %v1855_v3 = vld [vmem:[%s12026_s11 + $0x2af0] sm:$0xff] }
 0x2d4   : > { %v8272_v24 = vpop.f32.mrb[27].mxu0  ;;  %v8306_v25 = vpop.f32.mrb[26].mxu1  ;;  %v1856_v4 = vld [vmem:[%s12026_s11 + $0x2af8] sm:$0xff] }
 0x2d5   : > { %v8273_v28 = vadd.f32 %v8272_v24, %v8271_v21  ;;  %10958 = vmatpush3.bf16.msra.mxu0 %v10957_v14  ;;  %v8307_v29 = vpop.f32.mrb[27].mxu1  ;;  %v1830_v14 = vld [vmem:[%s12026_s11 + $0x2a28] sm:$0xff]  ;;  %v1879_v21 = vld [vmem:[%s12026_s11 + $0x2bb0] sm:$0xff] }
 0x2d6   : > { %v8308_v31 = vadd.f32 %v8307_v29, %v8306_v25  ;;  %10990 = vmatpush3.bf16.msra.mxu1 %v10989_v32  ;;  %10960 = vmatprep.subr.bf16.mxu0 %v10959_v15  ;;  %v1861_v32 = vld [vmem:[%s12026_s11 + $0x2b20] sm:$0xff]  ;;  %v11039_v15 = vpack.c.bf16 %v1878_v6, %v1877_v5  ;;  %v11009_v37 = vpack.c.bf16 %v1830_v14, %v1829_v12  ;;  %v1831_v24 = vld [vmem:[%s12026_s11 + $0x2a30] sm:$0xff]  ;;  %v1832_v25 = vld [vmem:[%s12026_s11 + $0x2a38] sm:$0xff] }
 0x2d7   : > { %v4416_v38 = vadd.f32 %v8273_v28, %v13437_v0  ;;  %10992 = vmatprep.subr.bf16.mxu1 %v10991_v39  ;;  %v10997_v0 = vpack.c.bf16 %v1808_v58, %v1807_v36  ;;  %v1880_v39 = vld [vmem:[%s12026_s11 + $0x2bb8] sm:$0xff]  ;;  %v11041_v22 = vpack.c.bf16 %v1862_v16, %v1861_v32  ;;  %v1849_v29 = vld [vmem:[%s12026_s11 + $0x2ac0] sm:$0xff]  ;;  %v11057_v14 = vpack.c.bf16 %v1870_v20, %v1869_v63 }
 0x2d8   : > { %v11043_v46 = vpack.c.bf16 %v1880_v39, %v1879_v21  ;;  %v1864_v28 = vld [vmem:[%s12026_s11 + $0x2b38] sm:$0xff]  ;;  %v1833_v36 = vld [vmem:[%s12026_s11 + $0x2a40] sm:$0xff]  ;;  %v11027_v32 = vpack.c.bf16 %v1856_v4, %v1855_v3 }
 0x2d9   : > { %v13508_v45 = vadd.f32 %v8308_v31, %v4416_v38  ;;  %10962 = vmatpush3.bf16.msra.mxu0 %v10961_v30  ;;  %v1850_v30 = vld [vmem:[%s12026_s11 + $0x2ac8] sm:$0xff]  ;;  %v1881_v31 = vld [vmem:[%s12026_s11 + $0x2bc0] sm:$0xff]  ;;  %v11045_v34 = vpack.c.bf16 %v1864_v28, %v1863_v27  ;;  %v1840_v16 = vld [vmem:[%s12026_s11 + $0x2a78] sm:$0xff] }
 0x2da   : > { %10994 = vmatpush3.bf16.msra.mxu1 %v10993_v33  ;;  %10964 = vmatprep.subr.bf16.mxu0 %v10963_v52  ;;  %v1882_v33 = vld [vmem:[%s12026_s11 + $0x2bc8] sm:$0xff]  ;;  %v11013_v52 = vpack.c.bf16 %v1832_v25, %v1831_v24  ;;  %v11015_v35 = vpack.c.bf16 %v1850_v30, %v1849_v29  ;;  %v1872_v39 = vld [vmem:[%s12026_s11 + $0x2b78] sm:$0xff]  ;;  %v1889_v28 = vld [vmem:[%s12026_s11 + $0x2c00] sm:$0xff] }
 0x2db   : > { %10996 = vmatprep.subr.bf16.mxu1 %v10995_v40  ;;  %v1834_v38 = vld [vmem:[%s12026_s11 + $0x2a48] sm:$0xff]  ;;  %v1865_v40 = vld [vmem:[%s12026_s11 + $0x2b40] sm:$0xff]  ;;  %v11047_v58 = vpack.c.bf16 %v1882_v33, %v1881_v31  ;;  %v1912_v63 = vld [vmem:[%s12026_s11 + $0x2cb8] sm:$0xff] }
 0x2dc   : > { %v1938_v24 = vld [vmem:[%s12026_s11 + $0x2d88] sm:$0xff]  ;;  %v1921_v30 = vld [vmem:[%s12026_s11 + $0x2d00] sm:$0xff] }
 0x2dd   : > { %10966 = vmatpush3.bf16.msra.mxu0 %v10965_v47  ;;  %v1884_v47 = vld [vmem:[%s12026_s11 + $0x2bd8] sm:$0xff]  ;;  %v1890_v29 = vld [vmem:[%s12026_s11 + $0x2c08] sm:$0xff] }
 0x2de   : > { %10998 = vmatpush3.bf16.msra.mxu1 %v10997_v0  ;;  %11000 = vmatprep.subr.bf16.mxu0 %v10999_v1  ;;  %v11017_v0 = vpack.c.bf16 %v1834_v38, %v1833_v36  ;;  %v11049_v1 = vpack.c.bf16 %v1866_v41, %v1865_v40  ;;  %v11051_v53 = vpack.c.bf16 %v1884_v47, %v1883_v44  ;;  %v1922_v33 = vld [vmem:[%s12026_s11 + $0x2d08] sm:$0xff]  ;;  %v1940_v36 = vld [vmem:[%s12026_s11 + $0x2d98] sm:$0xff]  ;;  %v1923_v47 = vld [vmem:[%s12026_s11 + $0x2d10] sm:$0xff] }
 0x2df   : > { %11032 = vmatprep.subr.bf16.mxu1 %v11031_v51  ;;  %v1867_v51 = vld [vmem:[%s12026_s11 + $0x2b50] sm:$0xff]  ;;  %v437_v38 = vld [vmem:[%s12036_s23 + $0x2a0] sm:$0xff]  ;;  %v11065_v40 = vpack.c.bf16 %v1890_v29, %v1889_v28  ;;  %v11097_v41 = vpack.c.bf16 %v1922_v33, %v1921_v30 }
 0x2e0   : > { %5394 = vmatmul.mubr.f32.vlgmr.msra.gmra.mrb[40].mxu0 %v433_v57  ;;  %v1886_v57 = vld [vmem:[%s12026_s11 + $0x2be8] sm:$0xff]  ;;  %v1892_v44 = vld [vmem:[%s12026_s11 + $0x2c18] sm:$0xff]  ;;  %v1899_v29 = vld [vmem:[%s12026_s11 + $0x2c50] sm:$0xff] }
 0x2e1   : > { %11002 = vmatpush3.bf16.msra.mxu0 %v11001_v59  ;;  %5464 = vmatmul.mubr.f32.vlgmr.msra.gmra.mrb[40].mxu1 %v435_v13  ;;  %v11021_v59 = vpack.c.bf16 %v1836_v50, %v1835_v49  ;;  %v11053_v13 = vpack.c.bf16 %v1868_v7, %v1867_v51  ;;  %v1910_v49 = vld [vmem:[%s12026_s11 + $0x2ca8] sm:$0xff]  ;;  %v1941_v50 = vld [vmem:[%s12026_s11 + $0x2da0] sm:$0xff]  ;;  %v11069_v7 = vpack.c.bf16 %v1892_v44, %v1891_v43  ;;  %v1900_v30 = vld [vmem:[%s12026_s11 + $0x2c58] sm:$0xff] }
 0x2e2   : > { %11034 = vmatpush3.bf16.msra.mxu1 %v11033_v60  ;;  %11004 = vmatprep.subr.bf16.mxu0 %v11003_v61  ;;  %v11023_v60 = vpack.c.bf16 %v1854_v55, %v1853_v54  ;;  %v1837_v61 = vld [vmem:[%s12026_s11 + $0x2a60] sm:$0xff]  ;;  %v1942_v51 = vld [vmem:[%s12026_s11 + $0x2da8] sm:$0xff]  ;;  %v444_v54 = vld [vmem:[%s12036_s23 + $0x2d8] sm:$0xff] }
 0x2e3   : > { %11036 = vmatprep.subr.bf16.mxu1 %v11035_v19  ;;  %5533 = vmatprep.mubr.f32.mxu0 %v438_v8  ;;  %v11055_v19 = vpack.c.bf16 %v1886_v57, %v1885_v56  ;;  %v1887_v8 = vld [vmem:[%s12026_s11 + $0x2bf0] sm:$0xff]  ;;  %v1893_v57 = vld [vmem:[%s12026_s11 + $0x2c20] sm:$0xff]  ;;  %v1902_v43 = vld [vmem:[%s12026_s11 + $0x2c68] sm:$0xff] }
 0x2e4   : > { %5603 = vmatprep.mubr.f32.mxu1 %v440_v9  ;;  %v1933_v44 = vld [vmem:[%s12026_s11 + $0x2d60] sm:$0xff] }
 0x2e5   : > { %11006 = vmatpush3.bf16.msra.mxu0 %v11005_v26  ;;  %v1888_v26 = vld [vmem:[%s12026_s11 + $0x2bf8] sm:$0xff] }
 0x2e6   : > { %11038 = vmatpush3.bf16.msra.mxu1 %v11037_v10  ;;  %11008 = vmatprep.subr.bf16.mxu0 %v11007_v11  ;;  %v11025_v11 = vpack.c.bf16 %v1838_v62, %v1837_v61  ;;  %v11059_v21 = vpack.c.bf16 %v1888_v26, %v1887_v8  ;;  %v1926_v61 = vld [vmem:[%s12026_s11 + $0x2d28] sm:$0xff]  ;;  %v1911_v62 = vld [vmem:[%s12026_s11 + $0x2cb0] sm:$0xff] }
 0x2e7   : > { %11040 = vmatprep.subr.bf16.mxu1 %v11039_v15  ;;  %v1839_v15 = vld [vmem:[%s12026_s11 + $0x2a70] sm:$0xff]  ;;  %v11075_v4 = vpack.c.bf16 %v1912_v63, %v1911_v62 }
 0x2e8   : > { %v11029_v27 = vpack.c.bf16 %v1840_v16, %v1839_v15  ;;  %v1927_v8 = vld [vmem:[%s12026_s11 + $0x2d30] sm:$0xff] }
 0x2e9   : > { %11010 = vmatpush3.bf16.msra.mxu0 %v11009_v37  ;;  %v1905_v37 = vld [vmem:[%s12026_s11 + $0x2c80] sm:$0xff]  ;;  %v1935_v62 = vld [vmem:[%s12026_s11 + $0x2d70] sm:$0xff] }
 0x2ea   : > { %11042 = vmatpush3.bf16.msra.mxu1 %v11041_v22  ;;  %11012 = vmatprep.subr.bf16.mxu0 %v11011_v23  ;;  %v1906_v22 = vld [vmem:[%s12026_s11 + $0x2c88] sm:$0xff]  ;;  %v1937_v23 = vld [vmem:[%s12026_s11 + $0x2d80] sm:$0xff] }
 0x2eb   : > { %11044 = vmatprep.subr.bf16.mxu1 %v11043_v46  ;;  %v11063_v46 = vpack.c.bf16 %v1906_v22, %v1905_v37  ;;  %v11095_v31 = vpack.c.bf16 %v1938_v24, %v1937_v23  ;;  %v1930_v37 = vld [vmem:[%s12026_s11 + $0x2d48] sm:$0xff]  ;;  %v1915_v22 = vld [vmem:[%s12026_s11 + $0x2cd0] sm:$0xff]  ;;  %v1916_v23 = vld [vmem:[%s12026_s11 + $0x2cd8] sm:$0xff] }
 0x2ec   : > { %v1947_v24 = vld [vmem:[%s12026_s11 + $0x2dd0] sm:$0xff]  ;;  %v11083_v28 = vpack.c.bf16 %v1916_v23, %v1915_v22 }
 0x2ed   : > { %11014 = vmatpush3.bf16.msra.mxu0 %v11013_v52  ;;  %v1907_v52 = vld [vmem:[%s12026_s11 + $0x2c90] sm:$0xff] }
 0x2ee   : > { %11046 = vmatpush3.bf16.msra.mxu1 %v11045_v34  ;;  %11016 = vmatprep.subr.bf16.mxu0 %v11015_v35  ;;  %v1908_v34 = vld [vmem:[%s12026_s11 + $0x2c98] sm:$0xff]  ;;  %v1939_v35 = vld [vmem:[%s12026_s11 + $0x2d90] sm:$0xff] }
 0x2ef   : > { %11048 = vmatprep.subr.bf16.mxu1 %v11047_v58  ;;  %v439_v58 = vld [vmem:[%s12036_s23 + $0x2b0] sm:$0xff]  ;;  %v11067_v42 = vpack.c.bf16 %v1908_v34, %v1907_v52  ;;  %v1932_v52 = vld [vmem:[%s12026_s11 + $0x2d58] sm:$0xff]  ;;  %v1917_v34 = vld [vmem:[%s12026_s11 + $0x2ce0] sm:$0xff] }
 0x2f0   : > { %v1955_v23 = vld [vmem:[%s12026_s11 + $0x2e10] sm:$0xff] }
 0x2f1   : > { %11018 = vmatpush3.bf16.msra.mxu0 %v11017_v0  ;;  %v11099_v0 = vpack.c.bf16 %v1940_v36, %v1939_v35  ;;  %v1918_v35 = vld [vmem:[%s12026_s11 + $0x2ce8] sm:$0xff]  ;;  %v1949_v36 = vld [vmem:[%s12026_s11 + $0x2de0] sm:$0xff] }
 0x2f2   : > { %11050 = vmatpush3.bf16.msra.mxu1 %v11049_v1  ;;  %11020 = vmatprep.subr.bf16.mxu0 %v11019_v48  ;;  %v1924_v1 = vld [vmem:[%s12026_s11 + $0x2d18] sm:$0xff]  ;;  %v1909_v48 = vld [vmem:[%s12026_s11 + $0x2ca0] sm:$0xff] }
 0x2f3   : > { %v8341_v2 = vpop.f32.mrb[28].mxu0  ;;  %11052 = vmatprep.subr.bf16.mxu1 %v11051_v53  ;;  %v442_v53 = vld [vmem:[%s12036_s23 + $0x2c8] sm:$0xff]  ;;  %v11101_v55 = vpack.c.bf16 %v1924_v1, %v1923_v47  ;;  %v11071_v56 = vpack.c.bf16 %v1910_v49, %v1909_v48  ;;  %v1934_v1 = vld [vmem:[%s12026_s11 + $0x2d68] sm:$0xff]  ;;  %v1919_v48 = vld [vmem:[%s12026_s11 + $0x2cf0] sm:$0xff] }
 0x2f4   : > { %v8342_v5 = vpop.f32.mrb[29].mxu0  ;;  %v8376_v6 = vpop.f32.mrb[28].mxu1  ;;  %v1920_v49 = vld [vmem:[%s12026_s11 + $0x2cf8] sm:$0xff] }
 0x2f5   : > { %v8343_v9 = vadd.f32 %v8342_v5, %v8341_v2  ;;  %11022 = vmatpush3.bf16.msra.mxu0 %v11021_v59  ;;  %v8377_v10 = vpop.f32.mrb[29].mxu1  ;;  %v1894_v59 = vld [vmem:[%s12026_s11 + $0x2c28] sm:$0xff]  ;;  %v1943_v2 = vld [vmem:[%s12026_s11 + $0x2db0] sm:$0xff] }
 0x2f6   : > { %v8378_v12 = vadd.f32 %v8377_v10, %v8376_v6  ;;  %11054 = vmatpush3.bf16.msra.mxu1 %v11053_v13  ;;  %11024 = vmatprep.subr.bf16.mxu0 %v11023_v60  ;;  %v1925_v13 = vld [vmem:[%s12026_s11 + $0x2d20] sm:$0xff]  ;;  %v11103_v60 = vpack.c.bf16 %v1942_v51, %v1941_v50  ;;  %v11073_v20 = vpack.c.bf16 %v1894_v59, %v1893_v57  ;;  %v1895_v5 = vld [vmem:[%s12026_s11 + $0x2c30] sm:$0xff]  ;;  %v1896_v6 = vld [vmem:[%s12026_s11 + $0x2c38] sm:$0xff] }
 0x2f7   : > { %v4556_v18 = vadd.f32 %v8343_v9, %v13508_v45  ;;  %11056 = vmatprep.subr.bf16.mxu1 %v11055_v19  ;;  %v11061_v45 = vpack.c.bf16 %v1872_v39, %v1871_v17  ;;  %v1944_v19 = vld [vmem:[%s12026_s11 + $0x2db8] sm:$0xff]  ;;  %v11105_v3 = vpack.c.bf16 %v1926_v61, %v1925_v13  ;;  %v1913_v10 = vld [vmem:[%s12026_s11 + $0x2cc0] sm:$0xff]  ;;  %v11121_v59 = vpack.c.bf16 %v1934_v1, %v1933_v44 }
 0x2f8   : > { %v11107_v26 = vpack.c.bf16 %v1944_v19, %v1943_v2  ;;  %v1928_v9 = vld [vmem:[%s12026_s11 + $0x2d38] sm:$0xff]  ;;  %v1897_v17 = vld [vmem:[%s12026_s11 + $0x2c40] sm:$0xff]  ;;  %v11091_v13 = vpack.c.bf16 %v1920_v49, %v1919_v48 }
 0x2f9   : > { %v13579_v25 = vadd.f32 %v8378_v12, %v4556_v18  ;;  %11026 = vmatpush3.bf16.msra.mxu0 %v11025_v11  ;;  %v1914_v11 = vld [vmem:[%s12026_s11 + $0x2cc8] sm:$0xff]  ;;  %v1945_v12 = vld [vmem:[%s12026_s11 + $0x2dc0] sm:$0xff]  ;;  %v11109_v15 = vpack.c.bf16 %v1928_v9, %v1927_v8  ;;  %v1904_v61 = vld [vmem:[%s12026_s11 + $0x2c78] sm:$0xff] }
 0x2fa   : > { %11058 = vmatpush3.bf16.msra.mxu1 %v11057_v14  ;;  %11028 = vmatprep.subr.bf16.mxu0 %v11027_v32  ;;  %v1946_v14 = vld [vmem:[%s12026_s11 + $0x2dc8] sm:$0xff]  ;;  %v11077_v32 = vpack.c.bf16 %v1896_v6, %v1895_v5  ;;  %v11079_v16 = vpack.c.bf16 %v1914_v11, %v1913_v10  ;;  %v1936_v19 = vld [vmem:[%s12026_s11 + $0x2d78] sm:$0xff]  ;;  %v1953_v9 = vld [vmem:[%s12026_s11 + $0x2e00] sm:$0xff] }
 0x2fb   : > { %11060 = vmatprep.subr.bf16.mxu1 %v11059_v21  ;;  %v1898_v18 = vld [vmem:[%s12026_s11 + $0x2c48] sm:$0xff]  ;;  %v1929_v21 = vld [vmem:[%s12026_s11 + $0x2d40] sm:$0xff]  ;;  %v11111_v39 = vpack.c.bf16 %v1946_v14, %v1945_v12  ;;  %v1976_v44 = vld [vmem:[%s12026_s11 + $0x2eb8] sm:$0xff] }
 0x2fc   : > { %v2002_v5 = vld [vmem:[%s12026_s11 + $0x2f88] sm:$0xff]  ;;  %v1985_v11 = vld [vmem:[%s12026_s11 + $0x2f00] sm:$0xff] }
 0x2fd   : > { %11030 = vmatpush3.bf16.msra.mxu0 %v11029_v27  ;;  %v1948_v27 = vld [vmem:[%s12026_s11 + $0x2dd8] sm:$0xff]  ;;  %v1954_v10 = vld [vmem:[%s12026_s11 + $0x2e08] sm:$0xff] }
 0x2fe   : > { %11062 = vmatpush3.bf16.msra.mxu1 %v11061_v45  ;;  %11064 = vmatprep.subr.bf16.mxu0 %v11063_v46  ;;  %v11081_v45 = vpack.c.bf16 %v1898_v18, %v1897_v17  ;;  %v11113_v46 = vpack.c.bf16 %v1930_v37, %v1929_v21  ;;  %v11115_v33 = vpack.c.bf16 %v1948_v27, %v1947_v24  ;;  %v1986_v14 = vld [vmem:[%s12026_s11 + $0x2f08] sm:$0xff]  ;;  %v2004_v17 = vld [vmem:[%s12026_s11 + $0x2f98] sm:$0xff]  ;;  %v1987_v27 = vld [vmem:[%s12026_s11 + $0x2f10] sm:$0xff] }
 0x2ff   : > { %11096 = vmatprep.subr.bf16.mxu1 %v11095_v31  ;;  %v1931_v31 = vld [vmem:[%s12026_s11 + $0x2d50] sm:$0xff]  ;;  %v441_v18 = vld [vmem:[%s12036_s23 + $0x2c0] sm:$0xff]  ;;  %v11129_v21 = vpack.c.bf16 %v1954_v10, %v1953_v9  ;;  %v11161_v37 = vpack.c.bf16 %v1986_v14, %v1985_v11 }
 0x300   : > { %5534 = vmatmul.mubr.f32.vlgmr.msra.gmra.mrb[42].mxu0 %v437_v38  ;;  %v1950_v38 = vld [vmem:[%s12026_s11 + $0x2de8] sm:$0xff]  ;;  %v1956_v24 = vld [vmem:[%s12026_s11 + $0x2e18] sm:$0xff]  ;;  %v1963_v10 = vld [vmem:[%s12026_s11 + $0x2e50] sm:$0xff] }
 0x301   : > { %11066 = vmatpush3.bf16.msra.mxu0 %v11065_v40  ;;  %5604 = vmatmul.mubr.f32.vlgmr.msra.gmra.mrb[42].mxu1 %v439_v58  ;;  %v11085_v40 = vpack.c.bf16 %v1900_v30, %v1899_v29  ;;  %v11117_v58 = vpack.c.bf16 %v1932_v52, %v1931_v31  ;;  %v1974_v29 = vld [vmem:[%s12026_s11 + $0x2ea8] sm:$0xff]  ;;  %v2005_v30 = vld [vmem:[%s12026_s11 + $0x2fa0] sm:$0xff]  ;;  %v11133_v52 = vpack.c.bf16 %v1956_v24, %v1955_v23  ;;  %v1964_v11 = vld [vmem:[%s12026_s11 + $0x2e58] sm:$0xff] }
 0x302   : > { %11098 = vmatpush3.bf16.msra.mxu1 %v11097_v41  ;;  %11068 = vmatprep.subr.bf16.mxu0 %v11067_v42  ;;  %v11087_v41 = vpack.c.bf16 %v1918_v35, %v1917_v34  ;;  %v1901_v42 = vld [vmem:[%s12026_s11 + $0x2c60] sm:$0xff]  ;;  %v2006_v31 = vld [vmem:[%s12026_s11 + $0x2fa8] sm:$0xff]  ;;  %v448_v34 = vld [vmem:[%s12036_s23 + $0x2f8] sm:$0xff] }
 0x303   : > { %11100 = vmatprep.subr.bf16.mxu1 %v11099_v0  ;;  %5673 = vmatprep.mubr.f32.mxu0 %v442_v53  ;;  %v11119_v0 = vpack.c.bf16 %v1950_v38, %v1949_v36  ;;  %v1951_v53 = vld [vmem:[%s12026_s11 + $0x2df0] sm:$0xff]  ;;  %v1957_v38 = vld [vmem:[%s12026_s11 + $0x2e20] sm:$0xff]  ;;  %v1966_v23 = vld [vmem:[%s12026_s11 + $0x2e68] sm:$0xff] }
 0x304   : > { %5743 = vmatprep.mubr.f32.mxu1 %v444_v54  ;;  %v1997_v24 = vld [vmem:[%s12026_s11 + $0x2f60] sm:$0xff] }
 0x305   : > { %11070 = vmatpush3.bf16.msra.mxu0 %v11069_v7  ;;  %v1952_v7 = vld [vmem:[%s12026_s11 + $0x2df8] sm:$0xff] }
 0x306   : > { %11102 = vmatpush3.bf16.msra.mxu1 %v11101_v55  ;;  %11072 = vmatprep.subr.bf16.mxu0 %v11071_v56  ;;  %v11089_v56 = vpack.c.bf16 %v1902_v43, %v1901_v42  ;;  %v11123_v2 = vpack.c.bf16 %v1952_v7, %v1951_v53  ;;  %v1990_v42 = vld [vmem:[%s12026_s11 + $0x2f28] sm:$0xff]  ;;  %v1975_v43 = vld [vmem:[%s12026_s11 + $0x2eb0] sm:$0xff] }
 0x307   : > { %11104 = vmatprep.subr.bf16.mxu1 %v11103_v60  ;;  %v1903_v60 = vld [vmem:[%s12026_s11 + $0x2c70] sm:$0xff]  ;;  %v11139_v49 = vpack.c.bf16 %v1976_v44, %v1975_v43 }
 0x308   : > { %v11093_v8 = vpack.c.bf16 %v1904_v61, %v1903_v60  ;;  %v1991_v53 = vld [vmem:[%s12026_s11 + $0x2f30] sm:$0xff] }
 0x309   : > { %11074 = vmatpush3.bf16.msra.mxu0 %v11073_v20  ;;  %v1969_v20 = vld [vmem:[%s12026_s11 + $0x2e80] sm:$0xff]  ;;  %v1999_v43 = vld [vmem:[%s12026_s11 + $0x2f70] sm:$0xff] }
 0x30a   : > { %11106 = vmatpush3.bf16.msra.mxu1 %v11105_v3  ;;  %11076 = vmatprep.subr.bf16.mxu0 %v11075_v4  ;;  %v1970_v3 = vld [vmem:[%s12026_s11 + $0x2e88] sm:$0xff]  ;;  %v2001_v4 = vld [vmem:[%s12026_s11 + $0x2f80] sm:$0xff] }
 0x30b   : > { %11108 = vmatprep.subr.bf16.mxu1 %v11107_v26  ;;  %v11127_v26 = vpack.c.bf16 %v1970_v3, %v1969_v20  ;;  %v11159_v12 = vpack.c.bf16 %v2002_v5, %v2001_v4  ;;  %v1994_v20 = vld [vmem:[%s12026_s11 + $0x2f48] sm:$0xff]  ;;  %v1979_v3 = vld [vmem:[%s12026_s11 + $0x2ed0] sm:$0xff]  ;;  %v1980_v4 = vld [vmem:[%s12026_s11 + $0x2ed8] sm:$0xff] }
 0x30c   : > { %v2011_v5 = vld [vmem:[%s12026_s11 + $0x2fd0] sm:$0xff]  ;;  %v11147_v9 = vpack.c.bf16 %v1980_v4, %v1979_v3 }
 0x30d   : > { %11078 = vmatpush3.bf16.msra.mxu0 %v11077_v32  ;;  %v1971_v32 = vld [vmem:[%s12026_s11 + $0x2e90] sm:$0xff] }
 0x30e   : > { %11110 = vmatpush3.bf16.msra.mxu1 %v11109_v15  ;;  %11080 = vmatprep.subr.bf16.mxu0 %v11079_v16  ;;  %v1972_v15 = vld [vmem:[%s12026_s11 + $0x2e98] sm:$0xff]  ;;  %v2003_v16 = vld [vmem:[%s12026_s11 + $0x2f90] sm:$0xff] }
 0x30f   : > { %11112 = vmatprep.subr.bf16.mxu1 %v11111_v39  ;;  %v443_v39 = vld [vmem:[%s12036_s23 + $0x2d0] sm:$0xff]  ;;  %v11131_v22 = vpack.c.bf16 %v1972_v15, %v1971_v32  ;;  %v1996_v32 = vld [vmem:[%s12026_s11 + $0x2f58] sm:$0xff]  ;;  %v1981_v15 = vld [vmem:[%s12026_s11 + $0x2ee0] sm:$0xff] }
 0x310   : > { %v2019_v4 = vld [vmem:[%s12026_s11 + $0x3010] sm:$0xff] }
 0x311   : > { %11082 = vmatpush3.bf16.msra.mxu0 %v11081_v45  ;;  %v11163_v45 = vpack.c.bf16 %v2004_v17, %v2003_v16  ;;  %v1982_v16 = vld [vmem:[%s12026_s11 + $0x2ee8] sm:$0xff]  ;;  %v2013_v17 = vld [vmem:[%s12026_s11 + $0x2fe0] sm:$0xff] }
 0x312   : > { %11114 = vmatpush3.bf16.msra.mxu1 %v11113_v46  ;;  %11084 = vmatprep.subr.bf16.mxu0 %v11083_v28  ;;  %v1988_v46 = vld [vmem:[%s12026_s11 + $0x2f18] sm:$0xff]  ;;  %v1973_v28 = vld [vmem:[%s12026_s11 + $0x2ea0] sm:$0xff] }
 0x313   : > { %v8411_v47 = vpop.f32.mrb[30].mxu0  ;;  %11116 = vmatprep.subr.bf16.mxu1 %v11115_v33  ;;  %v446_v33 = vld [vmem:[%s12036_s23 + $0x2e8] sm:$0xff]  ;;  %v11165_v35 = vpack.c.bf16 %v1988_v46, %v1987_v27  ;;  %v11135_v36 = vpack.c.bf16 %v1974_v29, %v1973_v28  ;;  %v1998_v46 = vld [vmem:[%s12026_s11 + $0x2f68] sm:$0xff]  ;;  %v1983_v28 = vld [vmem:[%s12026_s11 + $0x2ef0] sm:$0xff] }
 0x314   : > { %v8412_v50 = vpop.f32.mrb[31].mxu0  ;;  %v8446_v51 = vpop.f32.mrb[30].mxu1  ;;  %v1984_v29 = vld [vmem:[%s12026_s11 + $0x2ef8] sm:$0xff] }
 0x315   : > { %v8413_v54 = vadd.f32 %v8412_v50, %v8411_v47  ;;  %11086 = vmatpush3.bf16.msra.mxu0 %v11085_v40  ;;  %v8447_v55 = vpop.f32.mrb[31].mxu1  ;;  %v1958_v40 = vld [vmem:[%s12026_s11 + $0x2e28] sm:$0xff]  ;;  %v2007_v47 = vld [vmem:[%s12026_s11 + $0x2fb0] sm:$0xff] }
 0x316   : > { %v8448_v57 = vadd.f32 %v8447_v55, %v8446_v51  ;;  %11118 = vmatpush3.bf16.msra.mxu1 %v11117_v58  ;;  %11088 = vmatprep.subr.bf16.mxu0 %v11087_v41  ;;  %v1989_v58 = vld [vmem:[%s12026_s11 + $0x2f20] sm:$0xff]  ;;  %v11167_v41 = vpack.c.bf16 %v2006_v31, %v2005_v30  ;;  %v11137_v1 = vpack.c.bf16 %v1958_v40, %v1957_v38  ;;  %v1959_v50 = vld [vmem:[%s12026_s11 + $0x2e30] sm:$0xff]  ;;  %v1960_v51 = vld [vmem:[%s12026_s11 + $0x2e38] sm:$0xff] }
 0x317   : > { %v4696_v63 = vadd.f32 %v8413_v54, %v13579_v25  ;;  %11120 = vmatprep.subr.bf16.mxu1 %v11119_v0  ;;  %v11125_v25 = vpack.c.bf16 %v1936_v19, %v1935_v62  ;;  %v2008_v0 = vld [vmem:[%s12026_s11 + $0x2fb8] sm:$0xff]  ;;  %v11169_v48 = vpack.c.bf16 %v1990_v42, %v1989_v58  ;;  %v1977_v55 = vld [vmem:[%s12026_s11 + $0x2ec0] sm:$0xff]  ;;  %v11185_v40 = vpack.c.bf16 %v1998_v46, %v1997_v24 }
 0x318   : > { %v11171_v7 = vpack.c.bf16 %v2008_v0, %v2007_v47  ;;  %v1992_v54 = vld [vmem:[%s12026_s11 + $0x2f38] sm:$0xff]  ;;  %v1961_v62 = vld [vmem:[%s12026_s11 + $0x2e40] sm:$0xff]  ;;  %v11155_v58 = vpack.c.bf16 %v1984_v29, %v1983_v28 }
 0x319   : > { %v13650_v6 = vadd.f32 %v8448_v57, %v4696_v63  ;;  %11090 = vmatpush3.bf16.msra.mxu0 %v11089_v56  ;;  %v1978_v56 = vld [vmem:[%s12026_s11 + $0x2ec8] sm:$0xff]  ;;  %v2009_v57 = vld [vmem:[%s12026_s11 + $0x2fc0] sm:$0xff]  ;;  %v11173_v60 = vpack.c.bf16 %v1992_v54, %v1991_v53  ;;  %v1968_v42 = vld [vmem:[%s12026_s11 + $0x2e78] sm:$0xff] }
 0x31a   : > { %11122 = vmatpush3.bf16.msra.mxu1 %v11121_v59  ;;  %11092 = vmatprep.subr.bf16.mxu0 %v11091_v13  ;;  %v2010_v59 = vld [vmem:[%s12026_s11 + $0x2fc8] sm:$0xff]  ;;  %v11141_v13 = vpack.c.bf16 %v1960_v51, %v1959_v50  ;;  %v11143_v61 = vpack.c.bf16 %v1978_v56, %v1977_v55  ;;  %v2000_v0 = vld [vmem:[%s12026_s11 + $0x2f78] sm:$0xff]  ;;  %v2017_v54 = vld [vmem:[%s12026_s11 + $0x3000] sm:$0xff] }
 0x31b   : > { %11124 = vmatprep.subr.bf16.mxu1 %v11123_v2  ;;  %v1962_v63 = vld [vmem:[%s12026_s11 + $0x2e48] sm:$0xff]  ;;  %v1993_v2 = vld [vmem:[%s12026_s11 + $0x2f40] sm:$0xff]  ;;  %v11175_v19 = vpack.c.bf16 %v2010_v59, %v2009_v57  ;;  %v2040_v24 = vld [vmem:[%s12026_s11 + $0x30b8] sm:$0xff] }
 0x31c   : > { %v2066_v50 = vld [vmem:[%s12026_s11 + $0x3188] sm:$0xff]  ;;  %v2049_v56 = vld [vmem:[%s12026_s11 + $0x3100] sm:$0xff] }
 0x31d   : > { %11094 = vmatpush3.bf16.msra.mxu0 %v11093_v8  ;;  %v2012_v8 = vld [vmem:[%s12026_s11 + $0x2fd8] sm:$0xff]  ;;  %v2018_v55 = vld [vmem:[%s12026_s11 + $0x3008] sm:$0xff] }
 0x31e   : > { %11126 = vmatpush3.bf16.msra.mxu1 %v11125_v25  ;;  %11128 = vmatprep.subr.bf16.mxu0 %v11127_v26  ;;  %v11145_v25 = vpack.c.bf16 %v1962_v63, %v1961_v62  ;;  %v11177_v26 = vpack.c.bf16 %v1994_v20, %v1993_v2  ;;  %v11179_v14 = vpack.c.bf16 %v2012_v8, %v2011_v5  ;;  %v2050_v59 = vld [vmem:[%s12026_s11 + $0x3108] sm:$0xff]  ;;  %v2068_v62 = vld [vmem:[%s12026_s11 + $0x3198] sm:$0xff]  ;;  %v2051_v8 = vld [vmem:[%s12026_s11 + $0x3110] sm:$0xff] }
 0x31f   : > { %11160 = vmatprep.subr.bf16.mxu1 %v11159_v12  ;;  %v1995_v12 = vld [vmem:[%s12026_s11 + $0x2f50] sm:$0xff]  ;;  %v445_v63 = vld [vmem:[%s12036_s23 + $0x2e0] sm:$0xff]  ;;  %v11193_v2 = vpack.c.bf16 %v2018_v55, %v2017_v54  ;;  %v11225_v20 = vpack.c.bf16 %v2050_v59, %v2049_v56 }
 0x320   : > { %5674 = vmatmul.mubr.f32.vlgmr.msra.gmra.mrb[44].mxu0 %v441_v18  ;;  %v2014_v18 = vld [vmem:[%s12026_s11 + $0x2fe8] sm:$0xff]  ;;  %v2020_v5 = vld [vmem:[%s12026_s11 + $0x3018] sm:$0xff]  ;;  %v2027_v55 = vld [vmem:[%s12026_s11 + $0x3050] sm:$0xff] }
 0x321   : > { %11130 = vmatpush3.bf16.msra.mxu0 %v11129_v21  ;;  %5744 = vmatmul.mubr.f32.vlgmr.msra.gmra.mrb[44].mxu1 %v443_v39  ;;  %v11149_v21 = vpack.c.bf16 %v1964_v11, %v1963_v10  ;;  %v11181_v39 = vpack.c.bf16 %v1996_v32, %v1995_v12  ;;  %v2038_v10 = vld [vmem:[%s12026_s11 + $0x30a8] sm:$0xff]  ;;  %v2069_v11 = vld [vmem:[%s12026_s11 + $0x31a0] sm:$0xff]  ;;  %v11197_v32 = vpack.c.bf16 %v2020_v5, %v2019_v4  ;;  %v2028_v56 = vld [vmem:[%s12026_s11 + $0x3058] sm:$0xff] }
 0x322   : > { %11162 = vmatpush3.bf16.msra.mxu1 %v11161_v37  ;;  %11132 = vmatprep.subr.bf16.mxu0 %v11131_v22  ;;  %v11151_v37 = vpack.c.bf16 %v1982_v16, %v1981_v15  ;;  %v1965_v22 = vld [vmem:[%s12026_s11 + $0x2e60] sm:$0xff]  ;;  %v2070_v12 = vld [vmem:[%s12026_s11 + $0x31a8] sm:$0xff]  ;;  %v452_v15 = vld [vmem:[%s12036_s23 + $0x318] sm:$0xff] }
 0x323   : > { %11164 = vmatprep.subr.bf16.mxu1 %v11163_v45  ;;  %5813 = vmatprep.mubr.f32.mxu0 %v446_v33  ;;  %v11183_v45 = vpack.c.bf16 %v2014_v18, %v2013_v17  ;;  %v2015_v33 = vld [vmem:[%s12026_s11 + $0x2ff0] sm:$0xff]  ;;  %v2021_v18 = vld [vmem:[%s12026_s11 + $0x3020] sm:$0xff]  ;;  %v2030_v4 = vld [vmem:[%s12026_s11 + $0x3068] sm:$0xff] }
 0x324   : > { %5883 = vmatprep.mubr.f32.mxu1 %v448_v34  ;;  %v2061_v5 = vld [vmem:[%s12026_s11 + $0x3160] sm:$0xff] }
 0x325   : > { %11134 = vmatpush3.bf16.msra.mxu0 %v11133_v52  ;;  %v2016_v52 = vld [vmem:[%s12026_s11 + $0x2ff8] sm:$0xff] }
 0x326   : > { %11166 = vmatpush3.bf16.msra.mxu1 %v11165_v35  ;;  %11136 = vmatprep.subr.bf16.mxu0 %v11135_v36  ;;  %v11153_v36 = vpack.c.bf16 %v1966_v23, %v1965_v22  ;;  %v11187_v47 = vpack.c.bf16 %v2016_v52, %v2015_v33  ;;  %v2054_v22 = vld [vmem:[%s12026_s11 + $0x3128] sm:$0xff]  ;;  %v2039_v23 = vld [vmem:[%s12026_s11 + $0x30b0] sm:$0xff] }
 0x327   : > { %11168 = vmatprep.subr.bf16.mxu1 %v11167_v41  ;;  %v1967_v41 = vld [vmem:[%s12026_s11 + $0x2e70] sm:$0xff]  ;;  %v11203_v29 = vpack.c.bf16 %v2040_v24, %v2039_v23 }
 0x328   : > { %v11157_v53 = vpack.c.bf16 %v1968_v42, %v1967_v41  ;;  %v2055_v33 = vld [vmem:[%s12026_s11 + $0x3130] sm:$0xff] }
 0x329   : > { %11138 = vmatpush3.bf16.msra.mxu0 %v11137_v1  ;;  %v2033_v1 = vld [vmem:[%s12026_s11 + $0x3080] sm:$0xff]  ;;  %v2063_v23 = vld [vmem:[%s12026_s11 + $0x3170] sm:$0xff] }
 0x32a   : > { %11170 = vmatpush3.bf16.msra.mxu1 %v11169_v48  ;;  %11140 = vmatprep.subr.bf16.mxu0 %v11139_v49  ;;  %v2034_v48 = vld [vmem:[%s12026_s11 + $0x3088] sm:$0xff]  ;;  %v2065_v49 = vld [vmem:[%s12026_s11 + $0x3180] sm:$0xff] }
 0x32b   : > { %11172 = vmatprep.subr.bf16.mxu1 %v11171_v7  ;;  %v11191_v7 = vpack.c.bf16 %v2034_v48, %v2033_v1  ;;  %v11223_v57 = vpack.c.bf16 %v2066_v50, %v2065_v49  ;;  %v2058_v1 = vld [vmem:[%s12026_s11 + $0x3148] sm:$0xff]  ;;  %v2043_v48 = vld [vmem:[%s12026_s11 + $0x30d0] sm:$0xff]  ;;  %v2044_v49 = vld [vmem:[%s12026_s11 + $0x30d8] sm:$0xff] }
 0x32c   : > { %v2075_v50 = vld [vmem:[%s12026_s11 + $0x31d0] sm:$0xff]  ;;  %v11211_v54 = vpack.c.bf16 %v2044_v49, %v2043_v48 }
 0x32d   : > { %11142 = vmatpush3.bf16.msra.mxu0 %v11141_v13  ;;  %v2035_v13 = vld [vmem:[%s12026_s11 + $0x3090] sm:$0xff] }
 0x32e   : > { %11174 = vmatpush3.bf16.msra.mxu1 %v11173_v60  ;;  %11144 = vmatprep.subr.bf16.mxu0 %v11143_v61  ;;  %v2036_v60 = vld [vmem:[%s12026_s11 + $0x3098] sm:$0xff]  ;;  %v2067_v61 = vld [vmem:[%s12026_s11 + $0x3190] sm:$0xff] }
 0x32f   : > { %11176 = vmatprep.subr.bf16.mxu1 %v11175_v19  ;;  %v447_v19 = vld [vmem:[%s12036_s23 + $0x2f0] sm:$0xff]  ;;  %v11195_v3 = vpack.c.bf16 %v2036_v60, %v2035_v13  ;;  %v2060_v13 = vld [vmem:[%s12026_s11 + $0x3158] sm:$0xff]  ;;  %v2045_v60 = vld [vmem:[%s12026_s11 + $0x30e0] sm:$0xff] }
 0x330   : > { %v2083_v49 = vld [vmem:[%s12026_s11 + $0x3210] sm:$0xff] }
 0x331   : > { %11146 = vmatpush3.bf16.msra.mxu0 %v11145_v25  ;;  %v11227_v25 = vpack.c.bf16 %v2068_v62, %v2067_v61  ;;  %v2046_v61 = vld [vmem:[%s12026_s11 + $0x30e8] sm:$0xff]  ;;  %v2077_v62 = vld [vmem:[%s12026_s11 + $0x31e0] sm:$0xff] }
 0x332   : > { %11178 = vmatpush3.bf16.msra.mxu1 %v11177_v26  ;;  %11148 = vmatprep.subr.bf16.mxu0 %v11147_v9  ;;  %v2052_v26 = vld [vmem:[%s12026_s11 + $0x3118] sm:$0xff]  ;;  %v2037_v9 = vld [vmem:[%s12026_s11 + $0x30a0] sm:$0xff] }
 0x333   : > { %v8481_v27 = vpop.f32.mrb[32].mxu0  ;;  %11180 = vmatprep.subr.bf16.mxu1 %v11179_v14  ;;  %v450_v14 = vld [vmem:[%s12036_s23 + $0x308] sm:$0xff]  ;;  %v11229_v16 = vpack.c.bf16 %v2052_v26, %v2051_v8  ;;  %v11199_v17 = vpack.c.bf16 %v2038_v10, %v2037_v9  ;;  %v2062_v26 = vld [vmem:[%s12026_s11 + $0x3168] sm:$0xff]  ;;  %v2047_v9 = vld [vmem:[%s12026_s11 + $0x30f0] sm:$0xff] }
 0x334   : > { %v8482_v30 = vpop.f32.mrb[33].mxu0  ;;  %v8516_v31 = vpop.f32.mrb[32].mxu1  ;;  %v2048_v10 = vld [vmem:[%s12026_s11 + $0x30f8] sm:$0xff] }
 0x335   : > { %v8483_v34 = vadd.f32 %v8482_v30, %v8481_v27  ;;  %11150 = vmatpush3.bf16.msra.mxu0 %v11149_v21  ;;  %v8517_v35 = vpop.f32.mrb[33].mxu1  ;;  %v2022_v21 = vld [vmem:[%s12026_s11 + $0x3028] sm:$0xff]  ;;  %v2071_v27 = vld [vmem:[%s12026_s11 + $0x31b0] sm:$0xff] }
 0x336   : > { %v8518_v38 = vadd.f32 %v8517_v35, %v8516_v31  ;;  %11182 = vmatpush3.bf16.msra.mxu1 %v11181_v39  ;;  %11152 = vmatprep.subr.bf16.mxu0 %v11151_v37  ;;  %v2053_v39 = vld [vmem:[%s12026_s11 + $0x3120] sm:$0xff]  ;;  %v11231_v37 = vpack.c.bf16 %v2070_v12, %v2069_v11  ;;  %v11201_v46 = vpack.c.bf16 %v2022_v21, %v2021_v18  ;;  %v2023_v30 = vld [vmem:[%s12026_s11 + $0x3030] sm:$0xff]  ;;  %v2024_v31 = vld [vmem:[%s12026_s11 + $0x3038] sm:$0xff] }
 0x337   : > { %v4836_v44 = vadd.f32 %v8483_v34, %v13650_v6  ;;  %11184 = vmatprep.subr.bf16.mxu1 %v11183_v45  ;;  %v11189_v6 = vpack.c.bf16 %v2000_v0, %v1999_v43  ;;  %v2072_v45 = vld [vmem:[%s12026_s11 + $0x31b8] sm:$0xff]  ;;  %v11233_v28 = vpack.c.bf16 %v2054_v22, %v2053_v39  ;;  %v2041_v35 = vld [vmem:[%s12026_s11 + $0x30c0] sm:$0xff]  ;;  %v11249_v21 = vpack.c.bf16 %v2062_v26, %v2061_v5 }
 0x338   : > { %v11235_v52 = vpack.c.bf16 %v2072_v45, %v2071_v27  ;;  %v2056_v34 = vld [vmem:[%s12026_s11 + $0x3138] sm:$0xff]  ;;  %v2025_v43 = vld [vmem:[%s12026_s11 + $0x3040] sm:$0xff]  ;;  %v11219_v39 = vpack.c.bf16 %v2048_v10, %v2047_v9 }
 0x339   : > { %v13721_v51 = vadd.f32 %v8518_v38, %v4836_v44  ;;  %11154 = vmatpush3.bf16.msra.mxu0 %v11153_v36  ;;  %v2042_v36 = vld [vmem:[%s12026_s11 + $0x30c8] sm:$0xff]  ;;  %v2073_v38 = vld [vmem:[%s12026_s11 + $0x31c0] sm:$0xff]  ;;  %v11237_v41 = vpack.c.bf16 %v2056_v34, %v2055_v33  ;;  %v2032_v22 = vld [vmem:[%s12026_s11 + $0x3078] sm:$0xff] }
 0x33a   : > { %11186 = vmatpush3.bf16.msra.mxu1 %v11185_v40  ;;  %11156 = vmatprep.subr.bf16.mxu0 %v11155_v58  ;;  %v2074_v40 = vld [vmem:[%s12026_s11 + $0x31c8] sm:$0xff]  ;;  %v11205_v58 = vpack.c.bf16 %v2024_v31, %v2023_v30  ;;  %v11207_v42 = vpack.c.bf16 %v2042_v36, %v2041_v35  ;;  %v2064_v45 = vld [vmem:[%s12026_s11 + $0x3178] sm:$0xff]  ;;  %v2081_v34 = vld [vmem:[%s12026_s11 + $0x3200] sm:$0xff] }
 0x33b   : > { %11188 = vmatprep.subr.bf16.mxu1 %v11187_v47  ;;  %v2026_v44 = vld [vmem:[%s12026_s11 + $0x3048] sm:$0xff]  ;;  %v2057_v47 = vld [vmem:[%s12026_s11 + $0x3140] sm:$0xff]  ;;  %v11239_v0 = vpack.c.bf16 %v2074_v40, %v2073_v38  ;;  %v2104_v5 = vld [vmem:[%s12026_s11 + $0x32b8] sm:$0xff] }
 0x33c   : > { %v2130_v30 = vld [vmem:[%s12026_s11 + $0x3388] sm:$0xff]  ;;  %v2113_v36 = vld [vmem:[%s12026_s11 + $0x3300] sm:$0xff] }
 0x33d   : > { %11158 = vmatpush3.bf16.msra.mxu0 %v11157_v53  ;;  %v2076_v53 = vld [vmem:[%s12026_s11 + $0x31d8] sm:$0xff]  ;;  %v2082_v35 = vld [vmem:[%s12026_s11 + $0x3208] sm:$0xff] }
 0x33e   : > { %11190 = vmatpush3.bf16.msra.mxu1 %v11189_v6  ;;  %11192 = vmatprep.subr.bf16.mxu0 %v11191_v7  ;;  %v11209_v6 = vpack.c.bf16 %v2026_v44, %v2025_v43  ;;  %v11241_v7 = vpack.c.bf16 %v2058_v1, %v2057_v47  ;;  %v11243_v59 = vpack.c.bf16 %v2076_v53, %v2075_v50  ;;  %v2114_v40 = vld [vmem:[%s12026_s11 + $0x3308] sm:$0xff]  ;;  %v2132_v43 = vld [vmem:[%s12026_s11 + $0x3398] sm:$0xff]  ;;  %v2115_v53 = vld [vmem:[%s12026_s11 + $0x3310] sm:$0xff] }
 0x33f   : > { %11224 = vmatprep.subr.bf16.mxu1 %v11223_v57  ;;  %v2059_v57 = vld [vmem:[%s12026_s11 + $0x3150] sm:$0xff]  ;;  %v449_v44 = vld [vmem:[%s12036_s23 + $0x300] sm:$0xff]  ;;  %v11257_v47 = vpack.c.bf16 %v2082_v35, %v2081_v34  ;;  %v11289_v1 = vpack.c.bf16 %v2114_v40, %v2113_v36 }
 0x340   : > { %5814 = vmatmul.mubr.f32.vlgmr.msra.gmra.mrb[46].mxu0 %v445_v63  ;;  %v2078_v63 = vld [vmem:[%s12026_s11 + $0x31e8] sm:$0xff]  ;;  %v2084_v50 = vld [vmem:[%s12026_s11 + $0x3218] sm:$0xff]  ;;  %v2091_v35 = vld [vmem:[%s12026_s11 + $0x3250] sm:$0xff] }
 0x341   : > { %11194 = vmatpush3.bf16.msra.mxu0 %v11193_v2  ;;  %5884 = vmatmul.mubr.f32.vlgmr.msra.gmra.mrb[46].mxu1 %v447_v19  ;;  %v11213_v2 = vpack.c.bf16 %v2028_v56, %v2027_v55  ;;  %v11245_v19 = vpack.c.bf16 %v2060_v13, %v2059_v57  ;;  %v2102_v55 = vld [vmem:[%s12026_s11 + $0x32a8] sm:$0xff]  ;;  %v2133_v56 = vld [vmem:[%s12026_s11 + $0x33a0] sm:$0xff]  ;;  %v11261_v13 = vpack.c.bf16 %v2084_v50, %v2083_v49  ;;  %v2092_v36 = vld [vmem:[%s12026_s11 + $0x3258] sm:$0xff] }
 0x342   : > { %11226 = vmatpush3.bf16.msra.mxu1 %v11225_v20  ;;  %11196 = vmatprep.subr.bf16.mxu0 %v11195_v3  ;;  %v11215_v20 = vpack.c.bf16 %v2046_v61, %v2045_v60  ;;  %v2029_v3 = vld [vmem:[%s12026_s11 + $0x3060] sm:$0xff]  ;;  %v2134_v57 = vld [vmem:[%s12026_s11 + $0x33a8] sm:$0xff]  ;;  %v456_v60 = vld [vmem:[%s12036_s23 + $0x338] sm:$0xff] }
 0x343   : > { %11228 = vmatprep.subr.bf16.mxu1 %v11227_v25  ;;  %5953 = vmatprep.mubr.f32.mxu0 %v450_v14  ;;  %v11247_v25 = vpack.c.bf16 %v2078_v63, %v2077_v62  ;;  %v2079_v14 = vld [vmem:[%s12026_s11 + $0x31f0] sm:$0xff]  ;;  %v2085_v63 = vld [vmem:[%s12026_s11 + $0x3220] sm:$0xff]  ;;  %v2094_v49 = vld [vmem:[%s12026_s11 + $0x3268] sm:$0xff] }
 0x344   : > { %6023 = vmatprep.mubr.f32.mxu1 %v452_v15  ;;  %v2125_v50 = vld [vmem:[%s12026_s11 + $0x3360] sm:$0xff] }
 0x345   : > { %11198 = vmatpush3.bf16.msra.mxu0 %v11197_v32  ;;  %v2080_v32 = vld [vmem:[%s12026_s11 + $0x31f8] sm:$0xff] }
 0x346   : > { %11230 = vmatpush3.bf16.msra.mxu1 %v11229_v16  ;;  %11200 = vmatprep.subr.bf16.mxu0 %v11199_v17  ;;  %v11217_v17 = vpack.c.bf16 %v2030_v4, %v2029_v3  ;;  %v11251_v27 = vpack.c.bf16 %v2080_v32, %v2079_v14  ;;  %v2118_v3 = vld [vmem:[%s12026_s11 + $0x3328] sm:$0xff]  ;;  %v2103_v4 = vld [vmem:[%s12026_s11 + $0x32b0] sm:$0xff] }
 0x347   : > { %11232 = vmatprep.subr.bf16.mxu1 %v11231_v37  ;;  %v2031_v37 = vld [vmem:[%s12026_s11 + $0x3070] sm:$0xff]  ;;  %v11267_v10 = vpack.c.bf16 %v2104_v5, %v2103_v4 }
 0x348   : > { %v11221_v33 = vpack.c.bf16 %v2032_v22, %v2031_v37  ;;  %v2119_v14 = vld [vmem:[%s12026_s11 + $0x3330] sm:$0xff] }
 0x349   : > { %11202 = vmatpush3.bf16.msra.mxu0 %v11201_v46  ;;  %v2097_v46 = vld [vmem:[%s12026_s11 + $0x3280] sm:$0xff]  ;;  %v2127_v4 = vld [vmem:[%s12026_s11 + $0x3370] sm:$0xff] }
 0x34a   : > { %11234 = vmatpush3.bf16.msra.mxu1 %v11233_v28  ;;  %11204 = vmatprep.subr.bf16.mxu0 %v11203_v29  ;;  %v2098_v28 = vld [vmem:[%s12026_s11 + $0x3288] sm:$0xff]  ;;  %v2129_v29 = vld [vmem:[%s12026_s11 + $0x3380] sm:$0xff] }
 0x34b   : > { %11236 = vmatprep.subr.bf16.mxu1 %v11235_v52  ;;  %v11255_v52 = vpack.c.bf16 %v2098_v28, %v2097_v46  ;;  %v11287_v38 = vpack.c.bf16 %v2130_v30, %v2129_v29  ;;  %v2122_v46 = vld [vmem:[%s12026_s11 + $0x3348] sm:$0xff]  ;;  %v2107_v28 = vld [vmem:[%s12026_s11 + $0x32d0] sm:$0xff]  ;;  %v2108_v29 = vld [vmem:[%s12026_s11 + $0x32d8] sm:$0xff] }
 0x34c   : > { %v2139_v30 = vld [vmem:[%s12026_s11 + $0x33d0] sm:$0xff]  ;;  %v11275_v34 = vpack.c.bf16 %v2108_v29, %v2107_v28 }
 0x34d   : > { %11206 = vmatpush3.bf16.msra.mxu0 %v11205_v58  ;;  %v2099_v58 = vld [vmem:[%s12026_s11 + $0x3290] sm:$0xff] }
 0x34e   : > { %11238 = vmatpush3.bf16.msra.mxu1 %v11237_v41  ;;  %11208 = vmatprep.subr.bf16.mxu0 %v11207_v42  ;;  %v2100_v41 = vld [vmem:[%s12026_s11 + $0x3298] sm:$0xff]  ;;  %v2131_v42 = vld [vmem:[%s12026_s11 + $0x3390] sm:$0xff] }
 0x34f   : > { %11240 = vmatprep.subr.bf16.mxu1 %v11239_v0  ;;  %v451_v0 = vld [vmem:[%s12036_s23 + $0x310] sm:$0xff]  ;;  %v11259_v48 = vpack.c.bf16 %v2100_v41, %v2099_v58  ;;  %v2124_v58 = vld [vmem:[%s12026_s11 + $0x3358] sm:$0xff]  ;;  %v2109_v41 = vld [vmem:[%s12026_s11 + $0x32e0] sm:$0xff] }
 0x350   : > { %v2147_v29 = vld [vmem:[%s12026_s11 + $0x3410] sm:$0xff] }
 0x351   : > { %11210 = vmatpush3.bf16.msra.mxu0 %v11209_v6  ;;  %v11291_v6 = vpack.c.bf16 %v2132_v43, %v2131_v42  ;;  %v2110_v42 = vld [vmem:[%s12026_s11 + $0x32e8] sm:$0xff]  ;;  %v2141_v43 = vld [vmem:[%s12026_s11 + $0x33e0] sm:$0xff] }
 0x352   : > { %11242 = vmatpush3.bf16.msra.mxu1 %v11241_v7  ;;  %11212 = vmatprep.subr.bf16.mxu0 %v11211_v54  ;;  %v2116_v7 = vld [vmem:[%s12026_s11 + $0x3318] sm:$0xff]  ;;  %v2101_v54 = vld [vmem:[%s12026_s11 + $0x32a0] sm:$0xff] }
 0x353   : > { %v8551_v8 = vpop.f32.mrb[34].mxu0  ;;  %11244 = vmatprep.subr.bf16.mxu1 %v11243_v59  ;;  %v454_v59 = vld [vmem:[%s12036_s23 + $0x328] sm:$0xff]  ;;  %v11293_v61 = vpack.c.bf16 %v2116_v7, %v2115_v53  ;;  %v11263_v62 = vpack.c.bf16 %v2102_v55, %v2101_v54  ;;  %v2126_v7 = vld [vmem:[%s12026_s11 + $0x3368] sm:$0xff]  ;;  %v2111_v54 = vld [vmem:[%s12026_s11 + $0x32f0] sm:$0xff] }
 0x354   : > { %v8552_v11 = vpop.f32.mrb[35].mxu0  ;;  %v8586_v12 = vpop.f32.mrb[34].mxu1  ;;  %v2112_v55 = vld [vmem:[%s12026_s11 + $0x32f8] sm:$0xff] }
 0x355   : > { %v8553_v15 = vadd.f32 %v8552_v11, %v8551_v8  ;;  %11214 = vmatpush3.bf16.msra.mxu0 %v11213_v2  ;;  %v8587_v16 = vpop.f32.mrb[35].mxu1  ;;  %v2086_v2 = vld [vmem:[%s12026_s11 + $0x3228] sm:$0xff]  ;;  %v2135_v8 = vld [vmem:[%s12026_s11 + $0x33b0] sm:$0xff] }
 0x356   : > { %v8588_v18 = vadd.f32 %v8587_v16, %v8586_v12  ;;  %11246 = vmatpush3.bf16.msra.mxu1 %v11245_v19  ;;  %11216 = vmatprep.subr.bf16.mxu0 %v11215_v20  ;;  %v2117_v19 = vld [vmem:[%s12026_s11 + $0x3320] sm:$0xff]  ;;  %v11295_v20 = vpack.c.bf16 %v2134_v57, %v2133_v56  ;;  %v11265_v26 = vpack.c.bf16 %v2086_v2, %v2085_v63  ;;  %v2087_v11 = vld [vmem:[%s12026_s11 + $0x3230] sm:$0xff]  ;;  %v2088_v12 = vld [vmem:[%s12026_s11 + $0x3238] sm:$0xff] }
 0x357   : > { %v4976_v24 = vadd.f32 %v8553_v15, %v13721_v51  ;;  %11248 = vmatprep.subr.bf16.mxu1 %v11247_v25  ;;  %v11253_v51 = vpack.c.bf16 %v2064_v45, %v2063_v23  ;;  %v2136_v25 = vld [vmem:[%s12026_s11 + $0x33b8] sm:$0xff]  ;;  %v11297_v9 = vpack.c.bf16 %v2118_v3, %v2117_v19  ;;  %v2105_v16 = vld [vmem:[%s12026_s11 + $0x32c0] sm:$0xff]  ;;  %v11313_v2 = vpack.c.bf16 %v2126_v7, %v2125_v50 }
 0x358   : > { %v11299_v32 = vpack.c.bf16 %v2136_v25, %v2135_v8  ;;  %v2120_v15 = vld [vmem:[%s12026_s11 + $0x3338] sm:$0xff]  ;;  %v2089_v23 = vld [vmem:[%s12026_s11 + $0x3240] sm:$0xff]  ;;  %v11283_v19 = vpack.c.bf16 %v2112_v55, %v2111_v54 }
 0x359   : > { %v13792_v31 = vadd.f32 %v8588_v18, %v4976_v24  ;;  %11218 = vmatpush3.bf16.msra.mxu0 %v11217_v17  ;;  %v2106_v17 = vld [vmem:[%s12026_s11 + $0x32c8] sm:$0xff]  ;;  %v2137_v18 = vld [vmem:[%s12026_s11 + $0x33c0] sm:$0xff]  ;;  %v11301_v37 = vpack.c.bf16 %v2120_v15, %v2119_v14  ;;  %v2096_v3 = vld [vmem:[%s12026_s11 + $0x3278] sm:$0xff] }
 0x35a   : > { %11250 = vmatpush3.bf16.msra.mxu1 %v11249_v21  ;;  %11220 = vmatprep.subr.bf16.mxu0 %v11219_v39  ;;  %v2138_v21 = vld [vmem:[%s12026_s11 + $0x33c8] sm:$0xff]  ;;  %v11269_v39 = vpack.c.bf16 %v2088_v12, %v2087_v11  ;;  %v11271_v22 = vpack.c.bf16 %v2106_v17, %v2105_v16  ;;  %v2128_v25 = vld [vmem:[%s12026_s11 + $0x3378] sm:$0xff]  ;;  %v2145_v15 = vld [vmem:[%s12026_s11 + $0x3400] sm:$0xff] }
 0x35b   : > { %11252 = vmatprep.subr.bf16.mxu1 %v11251_v27  ;;  %v2090_v24 = vld [vmem:[%s12026_s11 + $0x3248] sm:$0xff]  ;;  %v2121_v27 = vld [vmem:[%s12026_s11 + $0x3340] sm:$0xff]  ;;  %v11303_v45 = vpack.c.bf16 %v2138_v21, %v2137_v18  ;;  %v2168_v50 = vld [vmem:[%s12026_s11 + $0x34b8] sm:$0xff] }
 0x35c   : > { %v2194_v11 = vld [vmem:[%s12026_s11 + $0x3588] sm:$0xff]  ;;  %v2177_v17 = vld [vmem:[%s12026_s11 + $0x3500] sm:$0xff] }
 0x35d   : > { %11222 = vmatpush3.bf16.msra.mxu0 %v11221_v33  ;;  %v2140_v33 = vld [vmem:[%s12026_s11 + $0x33d8] sm:$0xff]  ;;  %v2146_v16 = vld [vmem:[%s12026_s11 + $0x3408] sm:$0xff] }
 0x35e   : > { %11254 = vmatpush3.bf16.msra.mxu1 %v11253_v51  ;;  %11256 = vmatprep.subr.bf16.mxu0 %v11255_v52  ;;  %v11273_v51 = vpack.c.bf16 %v2090_v24, %v2089_v23  ;;  %v11305_v52 = vpack.c.bf16 %v2122_v46, %v2121_v27  ;;  %v11307_v40 = vpack.c.bf16 %v2140_v33, %v2139_v30  ;;  %v2178_v21 = vld [vmem:[%s12026_s11 + $0x3508] sm:$0xff]  ;;  %v2196_v23 = vld [vmem:[%s12026_s11 + $0x3598] sm:$0xff]  ;;  %v2179_v33 = vld [vmem:[%s12026_s11 + $0x3510] sm:$0xff] }
 0x35f   : > { %11288 = vmatprep.subr.bf16.mxu1 %v11287_v38  ;;  %v2123_v38 = vld [vmem:[%s12026_s11 + $0x3350] sm:$0xff]  ;;  %v453_v24 = vld [vmem:[%s12036_s23 + $0x320] sm:$0xff]  ;;  %v11321_v27 = vpack.c.bf16 %v2146_v16, %v2145_v15  ;;  %v11353_v46 = vpack.c.bf16 %v2178_v21, %v2177_v17 }
 0x360   : > { %5954 = vmatmul.mubr.f32.vlgmr.msra.gmra.mrb[48].mxu0 %v449_v44  ;;  %v2142_v44 = vld [vmem:[%s12026_s11 + $0x33e8] sm:$0xff]  ;;  %v2148_v30 = vld [vmem:[%s12026_s11 + $0x3418] sm:$0xff]  ;;  %v2155_v16 = vld [vmem:[%s12026_s11 + $0x3450] sm:$0xff] }
 0x361   : > { %11258 = vmatpush3.bf16.msra.mxu0 %v11257_v47  ;;  %6024 = vmatmul.mubr.f32.vlgmr.msra.gmra.mrb[48].mxu1 %v451_v0  ;;  %v11277_v47 = vpack.c.bf16 %v2092_v36, %v2091_v35  ;;  %v11309_v0 = vpack.c.bf16 %v2124_v58, %v2123_v38  ;;  %v2166_v35 = vld [vmem:[%s12026_s11 + $0x34a8] sm:$0xff]  ;;  %v2197_v36 = vld [vmem:[%s12026_s11 + $0x35a0] sm:$0xff]  ;;  %v11325_v58 = vpack.c.bf16 %v2148_v30, %v2147_v29  ;;  %v2156_v17 = vld [vmem:[%s12026_s11 + $0x3458] sm:$0xff] }
 0x362   : > { %11290 = vmatpush3.bf16.msra.mxu1 %v11289_v1  ;;  %11260 = vmatprep.subr.bf16.mxu0 %v11259_v48  ;;  %v11279_v1 = vpack.c.bf16 %v2110_v42, %v2109_v41  ;;  %v2093_v48 = vld [vmem:[%s12026_s11 + $0x3260] sm:$0xff]  ;;  %v2198_v38 = vld [vmem:[%s12026_s11 + $0x35a8] sm:$0xff]  ;;  %v460_v41 = vld [vmem:[%s12036_s23 + $0x358] sm:$0xff] }
 0x363   : > { %11292 = vmatprep.subr.bf16.mxu1 %v11291_v6  ;;  %6093 = vmatprep.mubr.f32.mxu0 %v454_v59  ;;  %v11311_v6 = vpack.c.bf16 %v2142_v44, %v2141_v43  ;;  %v2143_v59 = vld [vmem:[%s12026_s11 + $0x33f0] sm:$0xff]  ;;  %v2149_v44 = vld [vmem:[%s12026_s11 + $0x3420] sm:$0xff]  ;;  %v2158_v29 = vld [vmem:[%s12026_s11 + $0x3468] sm:$0xff] }
 0x364   : > { %6163 = vmatprep.mubr.f32.mxu1 %v456_v60  ;;  %v2189_v30 = vld [vmem:[%s12026_s11 + $0x3560] sm:$0xff] }
 0x365   : > { %11262 = vmatpush3.bf16.msra.mxu0 %v11261_v13  ;;  %v2144_v13 = vld [vmem:[%s12026_s11 + $0x33f8] sm:$0xff] }
 0x366   : > { %11294 = vmatpush3.bf16.msra.mxu1 %v11293_v61  ;;  %11264 = vmatprep.subr.bf16.mxu0 %v11263_v62  ;;  %v11281_v62 = vpack.c.bf16 %v2094_v49, %v2093_v48  ;;  %v11315_v8 = vpack.c.bf16 %v2144_v13, %v2143_v59  ;;  %v2182_v48 = vld [vmem:[%s12026_s11 + $0x3528] sm:$0xff]  ;;  %v2167_v49 = vld [vmem:[%s12026_s11 + $0x34b0] sm:$0xff] }
 0x367   : > { %11296 = vmatprep.subr.bf16.mxu1 %v11295_v20  ;;  %v2095_v20 = vld [vmem:[%s12026_s11 + $0x3270] sm:$0xff]  ;;  %v11331_v55 = vpack.c.bf16 %v2168_v50, %v2167_v49 }
 0x368   : > { %v11285_v14 = vpack.c.bf16 %v2096_v3, %v2095_v20  ;;  %v2183_v59 = vld [vmem:[%s12026_s11 + $0x3530] sm:$0xff] }
 0x369   : > { %11266 = vmatpush3.bf16.msra.mxu0 %v11265_v26  ;;  %v2161_v26 = vld [vmem:[%s12026_s11 + $0x3480] sm:$0xff]  ;;  %v2191_v49 = vld [vmem:[%s12026_s11 + $0x3570] sm:$0xff] }
 0x36a   : > { %11298 = vmatpush3.bf16.msra.mxu1 %v11297_v9  ;;  %11268 = vmatprep.subr.bf16.mxu0 %v11267_v10  ;;  %v2162_v9 = vld [vmem:[%s12026_s11 + $0x3488] sm:$0xff]  ;;  %v2193_v10 = vld [vmem:[%s12026_s11 + $0x3580] sm:$0xff] }
 0x36b   : > { %11300 = vmatprep.subr.bf16.mxu1 %v11299_v32  ;;  %v11319_v32 = vpack.c.bf16 %v2162_v9, %v2161_v26  ;;  %v11351_v18 = vpack.c.bf16 %v2194_v11, %v2193_v10  ;;  %v2186_v26 = vld [vmem:[%s12026_s11 + $0x3548] sm:$0xff]  ;;  %v2171_v9 = vld [vmem:[%s12026_s11 + $0x34d0] sm:$0xff]  ;;  %v2172_v10 = vld [vmem:[%s12026_s11 + $0x34d8] sm:$0xff] }
 0x36c   : > { %v2203_v11 = vld [vmem:[%s12026_s11 + $0x35d0] sm:$0xff]  ;;  %v11339_v15 = vpack.c.bf16 %v2172_v10, %v2171_v9 }
 0x36d   : > { %11270 = vmatpush3.bf16.msra.mxu0 %v11269_v39  ;;  %v2163_v39 = vld [vmem:[%s12026_s11 + $0x3490] sm:$0xff] }
 0x36e   : > { %11302 = vmatpush3.bf16.msra.mxu1 %v11301_v37  ;;  %11272 = vmatprep.subr.bf16.mxu0 %v11271_v22  ;;  %v2164_v37 = vld [vmem:[%s12026_s11 + $0x3498] sm:$0xff]  ;;  %v2195_v22 = vld [vmem:[%s12026_s11 + $0x3590] sm:$0xff] }
 0x36f   : > { %11304 = vmatprep.subr.bf16.mxu1 %v11303_v45  ;;  %v455_v45 = vld [vmem:[%s12036_s23 + $0x330] sm:$0xff]  ;;  %v11323_v28 = vpack.c.bf16 %v2164_v37, %v2163_v39  ;;  %v2188_v39 = vld [vmem:[%s12026_s11 + $0x3558] sm:$0xff]  ;;  %v2173_v37 = vld [vmem:[%s12026_s11 + $0x34e0] sm:$0xff] }
 0x370   : > { %v2211_v10 = vld [vmem:[%s12026_s11 + $0x3610] sm:$0xff] }
 0x371   : > { %11274 = vmatpush3.bf16.msra.mxu0 %v11273_v51  ;;  %v11355_v51 = vpack.c.bf16 %v2196_v23, %v2195_v22  ;;  %v2174_v22 = vld [vmem:[%s12026_s11 + $0x34e8] sm:$0xff]  ;;  %v2205_v23 = vld [vmem:[%s12026_s11 + $0x35e0] sm:$0xff] }
 0x372   : > { %11306 = vmatpush3.bf16.msra.mxu1 %v11305_v52  ;;  %11276 = vmatprep.subr.bf16.mxu0 %v11275_v34  ;;  %v2180_v52 = vld [vmem:[%s12026_s11 + $0x3518] sm:$0xff]  ;;  %v2165_v34 = vld [vmem:[%s12026_s11 + $0x34a0] sm:$0xff] }
 0x373   : > { %v8621_v53 = vpop.f32.mrb[36].mxu0  ;;  %11308 = vmatprep.subr.bf16.mxu1 %v11307_v40  ;;  %v458_v40 = vld [vmem:[%s12036_s23 + $0x348] sm:$0xff]  ;;  %v11357_v42 = vpack.c.bf16 %v2180_v52, %v2179_v33  ;;  %v11327_v43 = vpack.c.bf16 %v2166_v35, %v2165_v34  ;;  %v2190_v52 = vld [vmem:[%s12026_s11 + $0x3568] sm:$0xff]  ;;  %v2175_v34 = vld [vmem:[%s12026_s11 + $0x34f0] sm:$0xff] }
 0x374   : > { %v8622_v56 = vpop.f32.mrb[37].mxu0  ;;  %v8656_v57 = vpop.f32.mrb[36].mxu1  ;;  %v2176_v35 = vld [vmem:[%s12026_s11 + $0x34f8] sm:$0xff] }
 0x375   : > { %v8623_v60 = vadd.f32 %v8622_v56, %v8621_v53  ;;  %11278 = vmatpush3.bf16.msra.mxu0 %v11277_v47  ;;  %v8657_v61 = vpop.f32.mrb[37].mxu1  ;;  %v2150_v47 = vld [vmem:[%s12026_s11 + $0x3428] sm:$0xff]  ;;  %v2199_v53 = vld [vmem:[%s12026_s11 + $0x35b0] sm:$0xff] }
 0x376   : > { %v8658_v63 = vadd.f32 %v8657_v61, %v8656_v57  ;;  %11310 = vmatpush3.bf16.msra.mxu1 %v11309_v0  ;;  %11280 = vmatprep.subr.bf16.mxu0 %v11279_v1  ;;  %v2181_v0 = vld [vmem:[%s12026_s11 + $0x3520] sm:$0xff]  ;;  %v11359_v1 = vpack.c.bf16 %v2198_v38, %v2197_v36  ;;  %v11329_v7 = vpack.c.bf16 %v2150_v47, %v2149_v44  ;;  %v2151_v56 = vld [vmem:[%s12026_s11 + $0x3430] sm:$0xff]  ;;  %v2152_v57 = vld [vmem:[%s12026_s11 + $0x3438] sm:$0xff] }
 0x377   : > { %v5116_v5 = vadd.f32 %v8623_v60, %v13792_v31  ;;  %11312 = vmatprep.subr.bf16.mxu1 %v11311_v6  ;;  %v11317_v31 = vpack.c.bf16 %v2128_v25, %v2127_v4  ;;  %v2200_v6 = vld [vmem:[%s12026_s11 + $0x35b8] sm:$0xff]  ;;  %v11361_v54 = vpack.c.bf16 %v2182_v48, %v2181_v0  ;;  %v2169_v61 = vld [vmem:[%s12026_s11 + $0x34c0] sm:$0xff]  ;;  %v11377_v47 = vpack.c.bf16 %v2190_v52, %v2189_v30 }
 0x378   : > { %v11363_v13 = vpack.c.bf16 %v2200_v6, %v2199_v53  ;;  %v2184_v60 = vld [vmem:[%s12026_s11 + $0x3538] sm:$0xff]  ;;  %v2153_v4 = vld [vmem:[%s12026_s11 + $0x3440] sm:$0xff]  ;;  %v11347_v0 = vpack.c.bf16 %v2176_v35, %v2175_v34 }
 0x379   : > { %v13863_v12 = vadd.f32 %v8658_v63, %v5116_v5  ;;  %11282 = vmatpush3.bf16.msra.mxu0 %v11281_v62  ;;  %v2170_v62 = vld [vmem:[%s12026_s11 + $0x34c8] sm:$0xff]  ;;  %v2201_v63 = vld [vmem:[%s12026_s11 + $0x35c0] sm:$0xff]  ;;  %v11365_v20 = vpack.c.bf16 %v2184_v60, %v2183_v59  ;;  %v2160_v48 = vld [vmem:[%s12026_s11 + $0x3478] sm:$0xff] }
 0x37a   : > { %11314 = vmatpush3.bf16.msra.mxu1 %v11313_v2  ;;  %11284 = vmatprep.subr.bf16.mxu0 %v11283_v19  ;;  %v2202_v2 = vld [vmem:[%s12026_s11 + $0x35c8] sm:$0xff]  ;;  %v11333_v19 = vpack.c.bf16 %v2152_v57, %v2151_v56  ;;  %v11335_v3 = vpack.c.bf16 %v2170_v62, %v2169_v61  ;;  %v2192_v6 = vld [vmem:[%s12026_s11 + $0x3578] sm:$0xff]  ;;  %v2209_v60 = vld [vmem:[%s12026_s11 + $0x3600] sm:$0xff] }
 0x37b   : > { %11316 = vmatprep.subr.bf16.mxu1 %v11315_v8  ;;  %v2154_v5 = vld [vmem:[%s12026_s11 + $0x3448] sm:$0xff]  ;;  %v2185_v8 = vld [vmem:[%s12026_s11 + $0x3540] sm:$0xff]  ;;  %v11367_v25 = vpack.c.bf16 %v2202_v2, %v2201_v63  ;;  %v2232_v30 = vld [vmem:[%s12026_s11 + $0x36b8] sm:$0xff] }
 0x37c   : > { %v2258_v56 = vld [vmem:[%s12026_s11 + $0x3788] sm:$0xff]  ;;  %v2241_v62 = vld [vmem:[%s12026_s11 + $0x3700] sm:$0xff] }
 0x37d   : > { %11286 = vmatpush3.bf16.msra.mxu0 %v11285_v14  ;;  %v2204_v14 = vld [vmem:[%s12026_s11 + $0x35d8] sm:$0xff]  ;;  %v2210_v61 = vld [vmem:[%s12026_s11 + $0x3608] sm:$0xff] }
 0x37e   : > { %11318 = vmatpush3.bf16.msra.mxu1 %v11317_v31  ;;  %11320 = vmatprep.subr.bf16.mxu0 %v11319_v32  ;;  %v11337_v31 = vpack.c.bf16 %v2154_v5, %v2153_v4  ;;  %v11369_v32 = vpack.c.bf16 %v2186_v26, %v2185_v8  ;;  %v11371_v21 = vpack.c.bf16 %v2204_v14, %v2203_v11  ;;  %v2242_v2 = vld [vmem:[%s12026_s11 + $0x3708] sm:$0xff]  ;;  %v2260_v4 = vld [vmem:[%s12026_s11 + $0x3798] sm:$0xff]  ;;  %v2243_v14 = vld [vmem:[%s12026_s11 + $0x3710] sm:$0xff] }
 0x37f   : > { %11352 = vmatprep.subr.bf16.mxu1 %v11351_v18  ;;  %v2187_v18 = vld [vmem:[%s12026_s11 + $0x3550] sm:$0xff]  ;;  %v457_v5 = vld [vmem:[%s12036_s23 + $0x340] sm:$0xff]  ;;  %v11385_v8 = vpack.c.bf16 %v2210_v61, %v2209_v60  ;;  %v11417_v26 = vpack.c.bf16 %v2242_v2, %v2241_v62 }
 0x380   : > { %6094 = vmatmul.mubr.f32.vlgmr.msra.gmra.mrb[50].mxu0 %v453_v24  ;;  %v2206_v24 = vld [vmem:[%s12026_s11 + $0x35e8] sm:$0xff]  ;;  %v2212_v11 = vld [vmem:[%s12026_s11 + $0x3618] sm:$0xff]  ;;  %v2219_v61 = vld [vmem:[%s12026_s11 + $0x3650] sm:$0xff] }
 0x381   : > { %11322 = vmatpush3.bf16.msra.mxu0 %v11321_v27  ;;  %6164 = vmatmul.mubr.f32.vlgmr.msra.gmra.mrb[50].mxu1 %v455_v45  ;;  %v11341_v27 = vpack.c.bf16 %v2156_v17, %v2155_v16  ;;  %v11373_v45 = vpack.c.bf16 %v2188_v39, %v2187_v18  ;;  %v2230_v16 = vld [vmem:[%s12026_s11 + $0x36a8] sm:$0xff]  ;;  %v2261_v17 = vld [vmem:[%s12026_s11 + $0x37a0] sm:$0xff]  ;;  %v11389_v39 = vpack.c.bf16 %v2212_v11, %v2211_v10  ;;  %v2220_v62 = vld [vmem:[%s12026_s11 + $0x3658] sm:$0xff] }
 0x382   : > { %11354 = vmatpush3.bf16.msra.mxu1 %v11353_v46  ;;  %11324 = vmatprep.subr.bf16.mxu0 %v11323_v28  ;;  %v11343_v46 = vpack.c.bf16 %v2174_v22, %v2173_v37  ;;  %v2157_v28 = vld [vmem:[%s12026_s11 + $0x3460] sm:$0xff]  ;;  %v2262_v18 = vld [vmem:[%s12026_s11 + $0x37a8] sm:$0xff]  ;;  %v464_v37 = vld [vmem:[%s12036_s23 + $0x378] sm:$0xff] }
 0x383   : > { %11356 = vmatprep.subr.bf16.mxu1 %v11355_v51  ;;  %6233 = vmatprep.mubr.f32.mxu0 %v458_v40  ;;  %v11375_v51 = vpack.c.bf16 %v2206_v24, %v2205_v23  ;;  %v2207_v40 = vld [vmem:[%s12026_s11 + $0x35f0] sm:$0xff]  ;;  %v2213_v24 = vld [vmem:[%s12026_s11 + $0x3620] sm:$0xff]  ;;  %v2222_v10 = vld [vmem:[%s12026_s11 + $0x3668] sm:$0xff] }
 0x384   : > { %6303 = vmatprep.mubr.f32.mxu1 %v460_v41  ;;  %v2253_v11 = vld [vmem:[%s12026_s11 + $0x3760] sm:$0xff] }
 0x385   : > { %11326 = vmatpush3.bf16.msra.mxu0 %v11325_v58  ;;  %v2208_v58 = vld [vmem:[%s12026_s11 + $0x35f8] sm:$0xff] }
 0x386   : > { %11358 = vmatpush3.bf16.msra.mxu1 %v11357_v42  ;;  %11328 = vmatprep.subr.bf16.mxu0 %v11327_v43  ;;  %v11345_v43 = vpack.c.bf16 %v2158_v29, %v2157_v28  ;;  %v11379_v53 = vpack.c.bf16 %v2208_v58, %v2207_v40  ;;  %v2246_v28 = vld [vmem:[%s12026_s11 + $0x3728] sm:$0xff]  ;;  %v2231_v29 = vld [vmem:[%s12026_s11 + $0x36b0] sm:$0xff] }
 0x387   : > { %11360 = vmatprep.subr.bf16.mxu1 %v11359_v1  ;;  %v2159_v1 = vld [vmem:[%s12026_s11 + $0x3470] sm:$0xff]  ;;  %v11395_v35 = vpack.c.bf16 %v2232_v30, %v2231_v29 }
 0x388   : > { %v11349_v59 = vpack.c.bf16 %v2160_v48, %v2159_v1  ;;  %v2247_v40 = vld [vmem:[%s12026_s11 + $0x3730] sm:$0xff] }
 0x389   : > { %11330 = vmatpush3.bf16.msra.mxu0 %v11329_v7  ;;  %v2225_v7 = vld [vmem:[%s12026_s11 + $0x3680] sm:$0xff]  ;;  %v2255_v29 = vld [vmem:[%s12026_s11 + $0x3770] sm:$0xff] }
 0x38a   : > { %11362 = vmatpush3.bf16.msra.mxu1 %v11361_v54  ;;  %11332 = vmatprep.subr.bf16.mxu0 %v11331_v55  ;;  %v2226_v54 = vld [vmem:[%s12026_s11 + $0x3688] sm:$0xff]  ;;  %v2257_v55 = vld [vmem:[%s12026_s11 + $0x3780] sm:$0xff] }
 0x38b   : > { %11364 = vmatprep.subr.bf16.mxu1 %v11363_v13  ;;  %v11383_v13 = vpack.c.bf16 %v2226_v54, %v2225_v7  ;;  %v11415_v63 = vpack.c.bf16 %v2258_v56, %v2257_v55  ;;  %v2250_v7 = vld [vmem:[%s12026_s11 + $0x3748] sm:$0xff]  ;;  %v2235_v54 = vld [vmem:[%s12026_s11 + $0x36d0] sm:$0xff]  ;;  %v2236_v55 = vld [vmem:[%s12026_s11 + $0x36d8] sm:$0xff] }
 0x38c   : > { %v2267_v56 = vld [vmem:[%s12026_s11 + $0x37d0] sm:$0xff]  ;;  %v11403_v60 = vpack.c.bf16 %v2236_v55, %v2235_v54 }
 0x38d   : > { %11334 = vmatpush3.bf16.msra.mxu0 %v11333_v19  ;;  %v2227_v19 = vld [vmem:[%s12026_s11 + $0x3690] sm:$0xff] }
 0x38e   : > { %11366 = vmatpush3.bf16.msra.mxu1 %v11365_v20  ;;  %11336 = vmatprep.subr.bf16.mxu0 %v11335_v3  ;;  %v2228_v20 = vld [vmem:[%s12026_s11 + $0x3698] sm:$0xff]  ;;  %v2259_v3 = vld [vmem:[%s12026_s11 + $0x3790] sm:$0xff] }
 0x38f   : > { %11368 = vmatprep.subr.bf16.mxu1 %v11367_v25  ;;  %v459_v25 = vld [vmem:[%s12036_s23 + $0x350] sm:$0xff]  ;;  %v11387_v9 = vpack.c.bf16 %v2228_v20, %v2227_v19  ;;  %v2252_v19 = vld [vmem:[%s12026_s11 + $0x3758] sm:$0xff]  ;;  %v2237_v20 = vld [vmem:[%s12026_s11 + $0x36e0] sm:$0xff] }
 0x390   : > { %v2275_v55 = vld [vmem:[%s12026_s11 + $0x3810] sm:$0xff] }
 0x391   : > { %11338 = vmatpush3.bf16.msra.mxu0 %v11337_v31  ;;  %v11419_v31 = vpack.c.bf16 %v2260_v4, %v2259_v3  ;;  %v2238_v3 = vld [vmem:[%s12026_s11 + $0x36e8] sm:$0xff]  ;;  %v2269_v4 = vld [vmem:[%s12026_s11 + $0x37e0] sm:$0xff] }
 0x392   : > { %11370 = vmatpush3.bf16.msra.mxu1 %v11369_v32  ;;  %11340 = vmatprep.subr.bf16.mxu0 %v11339_v15  ;;  %v2244_v32 = vld [vmem:[%s12026_s11 + $0x3718] sm:$0xff]  ;;  %v2229_v15 = vld [vmem:[%s12026_s11 + $0x36a0] sm:$0xff] }
 0x393   : > { %v8691_v33 = vpop.f32.mrb[38].mxu0  ;;  %11372 = vmatprep.subr.bf16.mxu1 %v11371_v21  ;;  %v462_v21 = vld [vmem:[%s12036_s23 + $0x368] sm:$0xff]  ;;  %v11421_v22 = vpack.c.bf16 %v2244_v32, %v2243_v14  ;;  %v11391_v23 = vpack.c.bf16 %v2230_v16, %v2229_v15  ;;  %v2254_v32 = vld [vmem:[%s12026_s11 + $0x3768] sm:$0xff]  ;;  %v2239_v15 = vld [vmem:[%s12026_s11 + $0x36f0] sm:$0xff] }
 0x394   : > { %v8692_v36 = vpop.f32.mrb[39].mxu0  ;;  %v8726_v38 = vpop.f32.mrb[38].mxu1  ;;  %v2240_v16 = vld [vmem:[%s12026_s11 + $0x36f8] sm:$0xff] }
 0x395   : > { %v8693_v41 = vadd.f32 %v8692_v36, %v8691_v33  ;;  %11342 = vmatpush3.bf16.msra.mxu0 %v11341_v27  ;;  %v8727_v42 = vpop.f32.mrb[39].mxu1  ;;  %v2214_v27 = vld [vmem:[%s12026_s11 + $0x3628] sm:$0xff]  ;;  %v2263_v33 = vld [vmem:[%s12026_s11 + $0x37b0] sm:$0xff] }
 0x396   : > { %v8728_v44 = vadd.f32 %v8727_v42, %v8726_v38  ;;  %11374 = vmatpush3.bf16.msra.mxu1 %v11373_v45  ;;  %11344 = vmatprep.subr.bf16.mxu0 %v11343_v46  ;;  %v2245_v45 = vld [vmem:[%s12026_s11 + $0x3720] sm:$0xff]  ;;  %v11423_v46 = vpack.c.bf16 %v2262_v18, %v2261_v17  ;;  %v11393_v52 = vpack.c.bf16 %v2214_v27, %v2213_v24  ;;  %v2215_v36 = vld [vmem:[%s12026_s11 + $0x3630] sm:$0xff]  ;;  %v2216_v38 = vld [vmem:[%s12026_s11 + $0x3638] sm:$0xff] }
 0x397   : > { %v5256_v50 = vadd.f32 %v8693_v41, %v13863_v12  ;;  %11376 = vmatprep.subr.bf16.mxu1 %v11375_v51  ;;  %v11381_v12 = vpack.c.bf16 %v2192_v6, %v2191_v49  ;;  %v2264_v51 = vld [vmem:[%s12026_s11 + $0x37b8] sm:$0xff]  ;;  %v11425_v34 = vpack.c.bf16 %v2246_v28, %v2245_v45  ;;  %v2233_v42 = vld [vmem:[%s12026_s11 + $0x36c0] sm:$0xff]  ;;  %v11441_v27 = vpack.c.bf16 %v2254_v32, %v2253_v11 }
 0x398   : > { %v11427_v58 = vpack.c.bf16 %v2264_v51, %v2263_v33  ;;  %v2248_v41 = vld [vmem:[%s12026_s11 + $0x3738] sm:$0xff]  ;;  %v2217_v49 = vld [vmem:[%s12026_s11 + $0x3640] sm:$0xff]  ;;  %v11411_v45 = vpack.c.bf16 %v2240_v16, %v2239_v15 }
 0x399   : > { %v13934_v57 = vadd.f32 %v8728_v44, %v5256_v50  ;;  %11346 = vmatpush3.bf16.msra.mxu0 %v11345_v43  ;;  %v2234_v43 = vld [vmem:[%s12026_s11 + $0x36c8] sm:$0xff]  ;;  %v2265_v44 = vld [vmem:[%s12026_s11 + $0x37c0] sm:$0xff]  ;;  %v11429_v1 = vpack.c.bf16 %v2248_v41, %v2247_v40  ;;  %v2224_v28 = vld [vmem:[%s12026_s11 + $0x3678] sm:$0xff] }
 0x39a   : > { %11378 = vmatpush3.bf16.msra.mxu1 %v11377_v47  ;;  %11348 = vmatprep.subr.bf16.mxu0 %v11347_v0  ;;  %v2266_v47 = vld [vmem:[%s12026_s11 + $0x37c8] sm:$0xff]  ;;  %v11397_v0 = vpack.c.bf16 %v2216_v38, %v2215_v36  ;;  %v11399_v48 = vpack.c.bf16 %v2234_v43, %v2233_v42  ;;  %v2256_v51 = vld [vmem:[%s12026_s11 + $0x3778] sm:$0xff]  ;;  %v2273_v41 = vld [vmem:[%s12026_s11 + $0x3800] sm:$0xff] }
 0x39b   : > { %11380 = vmatprep.subr.bf16.mxu1 %v11379_v53  ;;  %v2218_v50 = vld [vmem:[%s12026_s11 + $0x3648] sm:$0xff]  ;;  %v2249_v53 = vld [vmem:[%s12026_s11 + $0x3740] sm:$0xff]  ;;  %v11431_v6 = vpack.c.bf16 %v2266_v47, %v2265_v44  ;;  %v2296_v11 = vld [vmem:[%s12026_s11 + $0x38b8] sm:$0xff] }
 0x39c   : > { %v2322_v36 = vld [vmem:[%s12026_s11 + $0x3988] sm:$0xff]  ;;  %v2305_v43 = vld [vmem:[%s12026_s11 + $0x3900] sm:$0xff] }
 0x39d   : > { %11350 = vmatpush3.bf16.msra.mxu0 %v11349_v59  ;;  %v2268_v59 = vld [vmem:[%s12026_s11 + $0x37d8] sm:$0xff]  ;;  %v2274_v42 = vld [vmem:[%s12026_s11 + $0x3808] sm:$0xff] }
 0x39e   : > { %11382 = vmatpush3.bf16.msra.mxu1 %v11381_v12  ;;  %11384 = vmatprep.subr.bf16.mxu0 %v11383_v13  ;;  %v11401_v12 = vpack.c.bf16 %v2218_v50, %v2217_v49  ;;  %v11433_v13 = vpack.c.bf16 %v2250_v7, %v2249_v53  ;;  %v11435_v2 = vpack.c.bf16 %v2268_v59, %v2267_v56  ;;  %v2306_v47 = vld [vmem:[%s12026_s11 + $0x3908] sm:$0xff]  ;;  %v2324_v49 = vld [vmem:[%s12026_s11 + $0x3998] sm:$0xff]  ;;  %v2307_v59 = vld [vmem:[%s12026_s11 + $0x3910] sm:$0xff] }
 0x39f   : > { %11416 = vmatprep.subr.bf16.mxu1 %v11415_v63  ;;  %v2251_v63 = vld [vmem:[%s12026_s11 + $0x3750] sm:$0xff]  ;;  %v461_v50 = vld [vmem:[%s12036_s23 + $0x360] sm:$0xff]  ;;  %v11449_v53 = vpack.c.bf16 %v2274_v42, %v2273_v41  ;;  %v11481_v7 = vpack.c.bf16 %v2306_v47, %v2305_v43 }
 0x3a0   : > { %6234 = vmatmul.mubr.f32.vlgmr.msra.gmra.mrb[52].mxu0 %v457_v5  ;;  %v2270_v5 = vld [vmem:[%s12026_s11 + $0x37e8] sm:$0xff]  ;;  %v2276_v56 = vld [vmem:[%s12026_s11 + $0x3818] sm:$0xff]  ;;  %v2283_v42 = vld [vmem:[%s12026_s11 + $0x3850] sm:$0xff] }
 0x3a1   : > { %11386 = vmatpush3.bf16.msra.mxu0 %v11385_v8  ;;  %6304 = vmatmul.mubr.f32.vlgmr.msra.gmra.mrb[52].mxu1 %v459_v25  ;;  %v11405_v8 = vpack.c.bf16 %v2220_v62, %v2219_v61  ;;  %v11437_v25 = vpack.c.bf16 %v2252_v19, %v2251_v63  ;;  %v2294_v61 = vld [vmem:[%s12026_s11 + $0x38a8] sm:$0xff]  ;;  %v2325_v62 = vld [vmem:[%s12026_s11 + $0x39a0] sm:$0xff]  ;;  %v11453_v19 = vpack.c.bf16 %v2276_v56, %v2275_v55  ;;  %v2284_v43 = vld [vmem:[%s12026_s11 + $0x3858] sm:$0xff] }
 0x3a2   : > { %11418 = vmatpush3.bf16.msra.mxu1 %v11417_v26  ;;  %11388 = vmatprep.subr.bf16.mxu0 %v11387_v9  ;;  %v11407_v26 = vpack.c.bf16 %v2238_v3, %v2237_v20  ;;  %v2221_v9 = vld [vmem:[%s12026_s11 + $0x3660] sm:$0xff]  ;;  %v2326_v63 = vld [vmem:[%s12026_s11 + $0x39a8] sm:$0xff]  ;;  %v468_v20 = vld [vmem:[%s12036_s23 + $0x398] sm:$0xff] }
 0x3a3   : > { %11420 = vmatprep.subr.bf16.mxu1 %v11419_v31  ;;  %6373 = vmatprep.mubr.f32.mxu0 %v462_v21  ;;  %v11439_v31 = vpack.c.bf16 %v2270_v5, %v2269_v4  ;;  %v2271_v21 = vld [vmem:[%s12026_s11 + $0x37f0] sm:$0xff]  ;;  %v2277_v5 = vld [vmem:[%s12026_s11 + $0x3820] sm:$0xff]  ;;  %v2286_v55 = vld [vmem:[%s12026_s11 + $0x3868] sm:$0xff] }
 0x3a4   : > { %6443 = vmatprep.mubr.f32.mxu1 %v464_v37  ;;  %v2317_v56 = vld [vmem:[%s12026_s11 + $0x3960] sm:$0xff] }
 0x3a5   : > { %11390 = vmatpush3.bf16.msra.mxu0 %v11389_v39  ;;  %v2272_v39 = vld [vmem:[%s12026_s11 + $0x37f8] sm:$0xff] }
 0x3a6   : > { %11422 = vmatpush3.bf16.msra.mxu1 %v11421_v22  ;;  %11392 = vmatprep.subr.bf16.mxu0 %v11391_v23  ;;  %v11409_v23 = vpack.c.bf16 %v2222_v10, %v2221_v9  ;;  %v11443_v33 = vpack.c.bf16 %v2272_v39, %v2271_v21  ;;  %v2310_v9 = vld [vmem:[%s12026_s11 + $0x3928] sm:$0xff]  ;;  %v2295_v10 = vld [vmem:[%s12026_s11 + $0x38b0] sm:$0xff] }
 0x3a7   : > { %11424 = vmatprep.subr.bf16.mxu1 %v11423_v46  ;;  %v2223_v46 = vld [vmem:[%s12026_s11 + $0x3670] sm:$0xff]  ;;  %v11459_v16 = vpack.c.bf16 %v2296_v11, %v2295_v10 }
 0x3a8   : > { %v11413_v40 = vpack.c.bf16 %v2224_v28, %v2223_v46  ;;  %v2311_v21 = vld [vmem:[%s12026_s11 + $0x3930] sm:$0xff] }
 0x3a9   : > { %11394 = vmatpush3.bf16.msra.mxu0 %v11393_v52  ;;  %v2289_v52 = vld [vmem:[%s12026_s11 + $0x3880] sm:$0xff]  ;;  %v2319_v10 = vld [vmem:[%s12026_s11 + $0x3970] sm:$0xff] }
 0x3aa   : > { %11426 = vmatpush3.bf16.msra.mxu1 %v11425_v34  ;;  %11396 = vmatprep.subr.bf16.mxu0 %v11395_v35  ;;  %v2290_v34 = vld [vmem:[%s12026_s11 + $0x3888] sm:$0xff]  ;;  %v2321_v35 = vld [vmem:[%s12026_s11 + $0x3980] sm:$0xff] }
 0x3ab   : > { %11428 = vmatprep.subr.bf16.mxu1 %v11427_v58  ;;  %v11447_v58 = vpack.c.bf16 %v2290_v34, %v2289_v52  ;;  %v11479_v44 = vpack.c.bf16 %v2322_v36, %v2321_v35  ;;  %v2314_v52 = vld [vmem:[%s12026_s11 + $0x3948] sm:$0xff]  ;;  %v2299_v34 = vld [vmem:[%s12026_s11 + $0x38d0] sm:$0xff]  ;;  %v2300_v35 = vld [vmem:[%s12026_s11 + $0x38d8] sm:$0xff] }
 0x3ac   : > { %v2331_v36 = vld [vmem:[%s12026_s11 + $0x39d0] sm:$0xff]  ;;  %v11467_v41 = vpack.c.bf16 %v2300_v35, %v2299_v34 }
 0x3ad   : > { %11398 = vmatpush3.bf16.msra.mxu0 %v11397_v0  ;;  %v2291_v0 = vld [vmem:[%s12026_s11 + $0x3890] sm:$0xff] }
 0x3ae   : > { %11430 = vmatpush3.bf16.msra.mxu1 %v11429_v1  ;;  %11400 = vmatprep.subr.bf16.mxu0 %v11399_v48  ;;  %v2292_v1 = vld [vmem:[%s12026_s11 + $0x3898] sm:$0xff]  ;;  %v2323_v48 = vld [vmem:[%s12026_s11 + $0x3990] sm:$0xff] }
 0x3af   : > { %11432 = vmatprep.subr.bf16.mxu1 %v11431_v6  ;;  %v463_v6 = vld [vmem:[%s12036_s23 + $0x370] sm:$0xff]  ;;  %v11451_v54 = vpack.c.bf16 %v2292_v1, %v2291_v0  ;;  %v2316_v0 = vld [vmem:[%s12026_s11 + $0x3958] sm:$0xff]  ;;  %v2301_v1 = vld [vmem:[%s12026_s11 + $0x38e0] sm:$0xff] }
 0x3b0   : > { %v2339_v35 = vld [vmem:[%s12026_s11 + $0x3a10] sm:$0xff] }
 0x3b1   : > { %11402 = vmatpush3.bf16.msra.mxu0 %v11401_v12  ;;  %v11483_v12 = vpack.c.bf16 %v2324_v49, %v2323_v48  ;;  %v2302_v48 = vld [vmem:[%s12026_s11 + $0x38e8] sm:$0xff]  ;;  %v2333_v49 = vld [vmem:[%s12026_s11 + $0x39e0] sm:$0xff] }
 0x3b2   : > { %11434 = vmatpush3.bf16.msra.mxu1 %v11433_v13  ;;  %11404 = vmatprep.subr.bf16.mxu0 %v11403_v60  ;;  %v2308_v13 = vld [vmem:[%s12026_s11 + $0x3918] sm:$0xff]  ;;  %v2293_v60 = vld [vmem:[%s12026_s11 + $0x38a0] sm:$0xff] }
 0x3b3   : > { %v8761_v14 = vpop.f32.mrb[40].mxu0  ;;  %11436 = vmatprep.subr.bf16.mxu1 %v11435_v2  ;;  %v466_v2 = vld [vmem:[%s12036_s23 + $0x388] sm:$0xff]  ;;  %v11485_v3 = vpack.c.bf16 %v2308_v13, %v2307_v59  ;;  %v11455_v4 = vpack.c.bf16 %v2294_v61, %v2293_v60  ;;  %v2318_v13 = vld [vmem:[%s12026_s11 + $0x3968] sm:$0xff]  ;;  %v2303_v60 = vld [vmem:[%s12026_s11 + $0x38f0] sm:$0xff] }
 0x3b4   : > { %v8762_v17 = vpop.f32.mrb[41].mxu0  ;;  %v8796_v18 = vpop.f32.mrb[40].mxu1  ;;  %v2304_v61 = vld [vmem:[%s12026_s11 + $0x38f8] sm:$0xff] }
 0x3b5   : > { %v8763_v37 = vadd.f32 %v8762_v17, %v8761_v14  ;;  %11406 = vmatpush3.bf16.msra.mxu0 %v11405_v8  ;;  %v8797_v22 = vpop.f32.mrb[41].mxu1  ;;  %v2278_v8 = vld [vmem:[%s12026_s11 + $0x3828] sm:$0xff]  ;;  %v2327_v14 = vld [vmem:[%s12026_s11 + $0x39b0] sm:$0xff] }
 0x3b6   : > { %v8798_v24 = vadd.f32 %v8797_v22, %v8796_v18  ;;  %11438 = vmatpush3.bf16.msra.mxu1 %v11437_v25  ;;  %11408 = vmatprep.subr.bf16.mxu0 %v11407_v26  ;;  %v2309_v25 = vld [vmem:[%s12026_s11 + $0x3920] sm:$0xff]  ;;  %v11487_v26 = vpack.c.bf16 %v2326_v63, %v2325_v62  ;;  %v11457_v32 = vpack.c.bf16 %v2278_v8, %v2277_v5  ;;  %v2279_v17 = vld [vmem:[%s12026_s11 + $0x3830] sm:$0xff]  ;;  %v2280_v18 = vld [vmem:[%s12026_s11 + $0x3838] sm:$0xff] }
 0x3b7   : > { %v5396_v30 = vadd.f32 %v8763_v37, %v13934_v57  ;;  %11440 = vmatprep.subr.bf16.mxu1 %v11439_v31  ;;  %v11445_v57 = vpack.c.bf16 %v2256_v51, %v2255_v29  ;;  %v2328_v31 = vld [vmem:[%s12026_s11 + $0x39b8] sm:$0xff]  ;;  %v11489_v15 = vpack.c.bf16 %v2310_v9, %v2309_v25  ;;  %v2297_v22 = vld [vmem:[%s12026_s11 + $0x38c0] sm:$0xff]  ;;  %v11505_v8 = vpack.c.bf16 %v2318_v13, %v2317_v56 }
 0x3b8   : > { %v11491_v39 = vpack.c.bf16 %v2328_v31, %v2327_v14  ;;  %v2312_v37 = vld [vmem:[%s12026_s11 + $0x3938] sm:$0xff]  ;;  %v2281_v29 = vld [vmem:[%s12026_s11 + $0x3840] sm:$0xff]  ;;  %v11475_v25 = vpack.c.bf16 %v2304_v61, %v2303_v60 }
 0x3b9   : > { %v14005_v38 = vadd.f32 %v8798_v24, %v5396_v30  ;;  %11410 = vmatpush3.bf16.msra.mxu0 %v11409_v23  ;;  %v2298_v23 = vld [vmem:[%s12026_s11 + $0x38c8] sm:$0xff]  ;;  %v2329_v24 = vld [vmem:[%s12026_s11 + $0x39c0] sm:$0xff]  ;;  %v11493_v46 = vpack.c.bf16 %v2312_v37, %v2311_v21  ;;  %v2288_v9 = vld [vmem:[%s12026_s11 + $0x3878] sm:$0xff] }
 0x3ba   : > { %11442 = vmatpush3.bf16.msra.mxu1 %v11441_v27  ;;  %11412 = vmatprep.subr.bf16.mxu0 %v11411_v45  ;;  %v2330_v27 = vld [vmem:[%s12026_s11 + $0x39c8] sm:$0xff]  ;;  %v11461_v45 = vpack.c.bf16 %v2280_v18, %v2279_v17  ;;  %v11463_v28 = vpack.c.bf16 %v2298_v23, %v2297_v22  ;;  %v2320_v31 = vld [vmem:[%s12026_s11 + $0x3978] sm:$0xff]  ;;  %v2337_v37 = vld [vmem:[%s12026_s11 + $0x3a00] sm:$0xff] }
 0x3bb   : > { %11444 = vmatprep.subr.bf16.mxu1 %v11443_v33  ;;  %v2282_v30 = vld [vmem:[%s12026_s11 + $0x3848] sm:$0xff]  ;;  %v2313_v33 = vld [vmem:[%s12026_s11 + $0x3940] sm:$0xff]  ;;  %v11495_v51 = vpack.c.bf16 %v2330_v27, %v2329_v24  ;;  %v2360_v56 = vld [vmem:[%s12026_s11 + $0x3ab8] sm:$0xff] }
 0x3bc   : > { %v2386_v17 = vld [vmem:[%s12026_s11 + $0x3b88] sm:$0xff]  ;;  %v2369_v23 = vld [vmem:[%s12026_s11 + $0x3b00] sm:$0xff] }
 0x3bd   : > { %11414 = vmatpush3.bf16.msra.mxu0 %v11413_v40  ;;  %v2332_v40 = vld [vmem:[%s12026_s11 + $0x39d8] sm:$0xff]  ;;  %v2338_v22 = vld [vmem:[%s12026_s11 + $0x3a08] sm:$0xff] }
 0x3be   : > { %11446 = vmatpush3.bf16.msra.mxu1 %v11445_v57  ;;  %11448 = vmatprep.subr.bf16.mxu0 %v11447_v58  ;;  %v11465_v57 = vpack.c.bf16 %v2282_v30, %v2281_v29  ;;  %v11497_v58 = vpack.c.bf16 %v2314_v52, %v2313_v33  ;;  %v11499_v47 = vpack.c.bf16 %v2332_v40, %v2331_v36  ;;  %v2370_v27 = vld [vmem:[%s12026_s11 + $0x3b08] sm:$0xff]  ;;  %v2388_v29 = vld [vmem:[%s12026_s11 + $0x3b98] sm:$0xff]  ;;  %v2371_v40 = vld [vmem:[%s12026_s11 + $0x3b10] sm:$0xff] }
 0x3bf   : > { %11480 = vmatprep.subr.bf16.mxu1 %v11479_v44  ;;  %v2315_v44 = vld [vmem:[%s12026_s11 + $0x3950] sm:$0xff]  ;;  %v465_v30 = vld [vmem:[%s12036_s23 + $0x380] sm:$0xff]  ;;  %v11513_v33 = vpack.c.bf16 %v2338_v22, %v2337_v37  ;;  %v11545_v52 = vpack.c.bf16 %v2370_v27, %v2369_v23 }
 0x3c0   : > { %6374 = vmatmul.mubr.f32.vlgmr.msra.gmra.mrb[54].mxu0 %v461_v50  ;;  %v2334_v50 = vld [vmem:[%s12026_s11 + $0x39e8] sm:$0xff]  ;;  %v2340_v36 = vld [vmem:[%s12026_s11 + $0x3a18] sm:$0xff]  ;;  %v2347_v22 = vld [vmem:[%s12026_s11 + $0x3a50] sm:$0xff] }
 0x3c1   : > { %11450 = vmatpush3.bf16.msra.mxu0 %v11449_v53  ;;  %6444 = vmatmul.mubr.f32.vlgmr.msra.gmra.mrb[54].mxu1 %v463_v6  ;;  %v11469_v53 = vpack.c.bf16 %v2284_v43, %v2283_v42  ;;  %v11501_v6 = vpack.c.bf16 %v2316_v0, %v2315_v44  ;;  %v2358_v42 = vld [vmem:[%s12026_s11 + $0x3aa8] sm:$0xff]  ;;  %v2389_v43 = vld [vmem:[%s12026_s11 + $0x3ba0] sm:$0xff]  ;;  %v11517_v0 = vpack.c.bf16 %v2340_v36, %v2339_v35  ;;  %v2348_v23 = vld [vmem:[%s12026_s11 + $0x3a58] sm:$0xff] }
 0x3c2   : > { %11482 = vmatpush3.bf16.msra.mxu1 %v11481_v7  ;;  %11452 = vmatprep.subr.bf16.mxu0 %v11451_v54  ;;  %v11471_v7 = vpack.c.bf16 %v2302_v48, %v2301_v1  ;;  %v2285_v54 = vld [vmem:[%s12026_s11 + $0x3860] sm:$0xff]  ;;  %v2390_v44 = vld [vmem:[%s12026_s11 + $0x3ba8] sm:$0xff]  ;;  %v472_v1 = vld [vmem:[%s12036_s23 + $0x3b8] sm:$0xff] }
 0x3c3   : > { %11484 = vmatprep.subr.bf16.mxu1 %v11483_v12  ;;  %6513 = vmatprep.mubr.f32.mxu0 %v466_v2  ;;  %v11503_v12 = vpack.c.bf16 %v2334_v50, %v2333_v49  ;;  %v2335_v2 = vld [vmem:[%s12026_s11 + $0x39f0] sm:$0xff]  ;;  %v2341_v50 = vld [vmem:[%s12026_s11 + $0x3a20] sm:$0xff]  ;;  %v2350_v35 = vld [vmem:[%s12026_s11 + $0x3a68] sm:$0xff] }
 0x3c4   : > { %6583 = vmatprep.mubr.f32.mxu1 %v468_v20  ;;  %v2381_v36 = vld [vmem:[%s12026_s11 + $0x3b60] sm:$0xff] }
 0x3c5   : > { %11454 = vmatpush3.bf16.msra.mxu0 %v11453_v19  ;;  %v2336_v19 = vld [vmem:[%s12026_s11 + $0x39f8] sm:$0xff] }
 0x3c6   : > { %11486 = vmatpush3.bf16.msra.mxu1 %v11485_v3  ;;  %11456 = vmatprep.subr.bf16.mxu0 %v11455_v4  ;;  %v11473_v4 = vpack.c.bf16 %v2286_v55, %v2285_v54  ;;  %v11507_v14 = vpack.c.bf16 %v2336_v19, %v2335_v2  ;;  %v2374_v54 = vld [vmem:[%s12026_s11 + $0x3b28] sm:$0xff]  ;;  %v2359_v55 = vld [vmem:[%s12026_s11 + $0x3ab0] sm:$0xff] }
 0x3c7   : > { %11488 = vmatprep.subr.bf16.mxu1 %v11487_v26  ;;  %v2287_v26 = vld [vmem:[%s12026_s11 + $0x3870] sm:$0xff]  ;;  %v11523_v61 = vpack.c.bf16 %v2360_v56, %v2359_v55 }
 0x3c8   : > { %v11477_v21 = vpack.c.bf16 %v2288_v9, %v2287_v26  ;;  %v2375_v2 = vld [vmem:[%s12026_s11 + $0x3b30] sm:$0xff] }
 0x3c9   : > { %11458 = vmatpush3.bf16.msra.mxu0 %v11457_v32  ;;  %v2353_v32 = vld [vmem:[%s12026_s11 + $0x3a80] sm:$0xff]  ;;  %v2383_v55 = vld [vmem:[%s12026_s11 + $0x3b70] sm:$0xff] }
 0x3ca   : > { %11490 = vmatpush3.bf16.msra.mxu1 %v11489_v15  ;;  %11460 = vmatprep.subr.bf16.mxu0 %v11459_v16  ;;  %v2354_v15 = vld [vmem:[%s12026_s11 + $0x3a88] sm:$0xff]  ;;  %v2385_v16 = vld [vmem:[%s12026_s11 + $0x3b80] sm:$0xff] }
 0x3cb   : > { %11492 = vmatprep.subr.bf16.mxu1 %v11491_v39  ;;  %v11511_v39 = vpack.c.bf16 %v2354_v15, %v2353_v32  ;;  %v11543_v24 = vpack.c.bf16 %v2386_v17, %v2385_v16  ;;  %v2378_v32 = vld [vmem:[%s12026_s11 + $0x3b48] sm:$0xff]  ;;  %v2363_v15 = vld [vmem:[%s12026_s11 + $0x3ad0] sm:$0xff]  ;;  %v2364_v16 = vld [vmem:[%s12026_s11 + $0x3ad8] sm:$0xff] }
 0x3cc   : > { %v2395_v17 = vld [vmem:[%s12026_s11 + $0x3bd0] sm:$0xff]  ;;  %v11531_v37 = vpack.c.bf16 %v2364_v16, %v2363_v15 }
 0x3cd   : > { %11462 = vmatpush3.bf16.msra.mxu0 %v11461_v45  ;;  %v2355_v45 = vld [vmem:[%s12026_s11 + $0x3a90] sm:$0xff] }
 0x3ce   : > { %11494 = vmatpush3.bf16.msra.mxu1 %v11493_v46  ;;  %11464 = vmatprep.subr.bf16.mxu0 %v11463_v28  ;;  %v2356_v46 = vld [vmem:[%s12026_s11 + $0x3a98] sm:$0xff]  ;;  %v2387_v28 = vld [vmem:[%s12026_s11 + $0x3b90] sm:$0xff] }
 0x3cf   : > { %11496 = vmatprep.subr.bf16.mxu1 %v11495_v51  ;;  %v467_v51 = vld [vmem:[%s12036_s23 + $0x390] sm:$0xff]  ;;  %v11515_v34 = vpack.c.bf16 %v2356_v46, %v2355_v45  ;;  %v2380_v45 = vld [vmem:[%s12026_s11 + $0x3b58] sm:$0xff]  ;;  %v2365_v46 = vld [vmem:[%s12026_s11 + $0x3ae0] sm:$0xff] }
 0x3d0   : > { %v2403_v16 = vld [vmem:[%s12026_s11 + $0x3c10] sm:$0xff] }
 0x3d1   : > { %11466 = vmatpush3.bf16.msra.mxu0 %v11465_v57  ;;  %v11547_v57 = vpack.c.bf16 %v2388_v29, %v2387_v28  ;;  %v2366_v28 = vld [vmem:[%s12026_s11 + $0x3ae8] sm:$0xff]  ;;  %v2397_v29 = vld [vmem:[%s12026_s11 + $0x3be0] sm:$0xff] }
 0x3d2   : > { %11498 = vmatpush3.bf16.msra.mxu1 %v11497_v58  ;;  %11468 = vmatprep.subr.bf16.mxu0 %v11467_v41  ;;  %v2372_v58 = vld [vmem:[%s12026_s11 + $0x3b18] sm:$0xff]  ;;  %v2357_v41 = vld [vmem:[%s12026_s11 + $0x3aa0] sm:$0xff] }
 0x3d3   : > { %v8831_v59 = vpop.f32.mrb[42].mxu0  ;;  %11500 = vmatprep.subr.bf16.mxu1 %v11499_v47  ;;  %v470_v47 = vld [vmem:[%s12036_s23 + $0x3a8] sm:$0xff]  ;;  %v11549_v48 = vpack.c.bf16 %v2372_v58, %v2371_v40  ;;  %v11519_v49 = vpack.c.bf16 %v2358_v42, %v2357_v41  ;;  %v2382_v58 = vld [vmem:[%s12026_s11 + $0x3b68] sm:$0xff]  ;;  %v2367_v41 = vld [vmem:[%s12026_s11 + $0x3af0] sm:$0xff] }
 0x3d4   : > { %v8832_v62 = vpop.f32.mrb[43].mxu0  ;;  %v8866_v63 = vpop.f32.mrb[42].mxu1  ;;  %v2368_v42 = vld [vmem:[%s12026_s11 + $0x3af8] sm:$0xff] }
 0x3d5   : > { %v8833_v20 = vadd.f32 %v8832_v62, %v8831_v59  ;;  %11470 = vmatpush3.bf16.msra.mxu0 %v11469_v53  ;;  %v8867_v3 = vpop.f32.mrb[43].mxu1  ;;  %v2342_v53 = vld [vmem:[%s12026_s11 + $0x3a28] sm:$0xff]  ;;  %v2391_v59 = vld [vmem:[%s12026_s11 + $0x3bb0] sm:$0xff] }
 0x3d6   : > { %v8868_v5 = vadd.f32 %v8867_v3, %v8866_v63  ;;  %11502 = vmatpush3.bf16.msra.mxu1 %v11501_v6  ;;  %11472 = vmatprep.subr.bf16.mxu0 %v11471_v7  ;;  %v2373_v6 = vld [vmem:[%s12026_s11 + $0x3b20] sm:$0xff]  ;;  %v11551_v7 = vpack.c.bf16 %v2390_v44, %v2389_v43  ;;  %v11521_v13 = vpack.c.bf16 %v2342_v53, %v2341_v50  ;;  %v2343_v62 = vld [vmem:[%s12026_s11 + $0x3a30] sm:$0xff]  ;;  %v2344_v63 = vld [vmem:[%s12026_s11 + $0x3a38] sm:$0xff] }
 0x3d7   : > { %v5536_v11 = vadd.f32 %v8833_v20, %v14005_v38  ;;  %11504 = vmatprep.subr.bf16.mxu1 %v11503_v12  ;;  %v11509_v38 = vpack.c.bf16 %v2320_v31, %v2319_v10  ;;  %v2392_v12 = vld [vmem:[%s12026_s11 + $0x3bb8] sm:$0xff]  ;;  %v11553_v60 = vpack.c.bf16 %v2374_v54, %v2373_v6  ;;  %v2361_v3 = vld [vmem:[%s12026_s11 + $0x3ac0] sm:$0xff]  ;;  %v11569_v53 = vpack.c.bf16 %v2382_v58, %v2381_v36 }
 0x3d8   : > { %v11555_v19 = vpack.c.bf16 %v2392_v12, %v2391_v59  ;;  %v2376_v20 = vld [vmem:[%s12026_s11 + $0x3b38] sm:$0xff]  ;;  %v2345_v10 = vld [vmem:[%s12026_s11 + $0x3a40] sm:$0xff]  ;;  %v11539_v6 = vpack.c.bf16 %v2368_v42, %v2367_v41 }
 0x3d9   : > { %v14076_v18 = vadd.f32 %v8868_v5, %v5536_v11  ;;  %11474 = vmatpush3.bf16.msra.mxu0 %v11473_v4  ;;  %v2362_v4 = vld [vmem:[%s12026_s11 + $0x3ac8] sm:$0xff]  ;;  %v2393_v5 = vld [vmem:[%s12026_s11 + $0x3bc0] sm:$0xff]  ;;  %v11557_v26 = vpack.c.bf16 %v2376_v20, %v2375_v2  ;;  %v2352_v54 = vld [vmem:[%s12026_s11 + $0x3a78] sm:$0xff] }
 0x3da   : > { %11506 = vmatpush3.bf16.msra.mxu1 %v11505_v8  ;;  %11476 = vmatprep.subr.bf16.mxu0 %v11475_v25  ;;  %v2394_v8 = vld [vmem:[%s12026_s11 + $0x3bc8] sm:$0xff]  ;;  %v11525_v25 = vpack.c.bf16 %v2344_v63, %v2343_v62  ;;  %v11527_v9 = vpack.c.bf16 %v2362_v4, %v2361_v3  ;;  %v2384_v12 = vld [vmem:[%s12026_s11 + $0x3b78] sm:$0xff]  ;;  %v2401_v20 = vld [vmem:[%s12026_s11 + $0x3c00] sm:$0xff] }
 0x3db   : > { %11508 = vmatprep.subr.bf16.mxu1 %v11507_v14  ;;  %v2346_v11 = vld [vmem:[%s12026_s11 + $0x3a48] sm:$0xff]  ;;  %v2377_v14 = vld [vmem:[%s12026_s11 + $0x3b40] sm:$0xff]  ;;  %v11559_v31 = vpack.c.bf16 %v2394_v8, %v2393_v5  ;;  %v2424_v36 = vld [vmem:[%s12026_s11 + $0x3cb8] sm:$0xff] }
 0x3dc   : > { %v2450_v62 = vld [vmem:[%s12026_s11 + $0x3d88] sm:$0xff]  ;;  %v2433_v4 = vld [vmem:[%s12026_s11 + $0x3d00] sm:$0xff] }
 0x3dd   : > { %11478 = vmatpush3.bf16.msra.mxu0 %v11477_v21  ;;  %v2396_v21 = vld [vmem:[%s12026_s11 + $0x3bd8] sm:$0xff]  ;;  %v2402_v3 = vld [vmem:[%s12026_s11 + $0x3c08] sm:$0xff] }
 0x3de   : > { %11510 = vmatpush3.bf16.msra.mxu1 %v11509_v38  ;;  %11512 = vmatprep.subr.bf16.mxu0 %v11511_v39  ;;  %v11529_v38 = vpack.c.bf16 %v2346_v11, %v2345_v10  ;;  %v11561_v39 = vpack.c.bf16 %v2378_v32, %v2377_v14  ;;  %v11563_v27 = vpack.c.bf16 %v2396_v21, %v2395_v17  ;;  %v2434_v8 = vld [vmem:[%s12026_s11 + $0x3d08] sm:$0xff]  ;;  %v2452_v10 = vld [vmem:[%s12026_s11 + $0x3d98] sm:$0xff]  ;;  %v2435_v21 = vld [vmem:[%s12026_s11 + $0x3d10] sm:$0xff] }
 0x3df   : > { %11544 = vmatprep.subr.bf16.mxu1 %v11543_v24  ;;  %v2379_v24 = vld [vmem:[%s12026_s11 + $0x3b50] sm:$0xff]  ;;  %v469_v11 = vld [vmem:[%s12036_s23 + $0x3a0] sm:$0xff]  ;;  %v11577_v14 = vpack.c.bf16 %v2402_v3, %v2401_v20  ;;  %v11609_v32 = vpack.c.bf16 %v2434_v8, %v2433_v4 }
 0x3e0   : > { %6514 = vmatmul.mubr.f32.vlgmr.msra.gmra.mrb[56].mxu0 %v465_v30  ;;  %v2398_v30 = vld [vmem:[%s12026_s11 + $0x3be8] sm:$0xff]  ;;  %v2404_v17 = vld [vmem:[%s12026_s11 + $0x3c18] sm:$0xff]  ;;  %v2411_v3 = vld [vmem:[%s12026_s11 + $0x3c50] sm:$0xff] }
 0x3e1   : > { %11514 = vmatpush3.bf16.msra.mxu0 %v11513_v33  ;;  %6584 = vmatmul.mubr.f32.vlgmr.msra.gmra.mrb[56].mxu1 %v467_v51  ;;  %v11533_v33 = vpack.c.bf16 %v2348_v23, %v2347_v22  ;;  %v11565_v51 = vpack.c.bf16 %v2380_v45, %v2379_v24  ;;  %v2422_v22 = vld [vmem:[%s12026_s11 + $0x3ca8] sm:$0xff]  ;;  %v2453_v23 = vld [vmem:[%s12026_s11 + $0x3da0] sm:$0xff]  ;;  %v11581_v45 = vpack.c.bf16 %v2404_v17, %v2403_v16  ;;  %v2412_v4 = vld [vmem:[%s12026_s11 + $0x3c58] sm:$0xff] }
 0x3e2   : > { %11546 = vmatpush3.bf16.msra.mxu1 %v11545_v52  ;;  %11516 = vmatprep.subr.bf16.mxu0 %v11515_v34  ;;  %v11535_v52 = vpack.c.bf16 %v2366_v28, %v2365_v46  ;;  %v2349_v34 = vld [vmem:[%s12026_s11 + $0x3a60] sm:$0xff]  ;;  %v2454_v24 = vld [vmem:[%s12026_s11 + $0x3da8] sm:$0xff]  ;;  %v476_v46 = vld [vmem:[%s12036_s23 + $0x3d8] sm:$0xff] }
 0x3e3   : > { %11548 = vmatprep.subr.bf16.mxu1 %v11547_v57  ;;  %6653 = vmatprep.mubr.f32.mxu0 %v470_v47  ;;  %v11567_v57 = vpack.c.bf16 %v2398_v30, %v2397_v29  ;;  %v2399_v47 = vld [vmem:[%s12026_s11 + $0x3bf0] sm:$0xff]  ;;  %v2405_v30 = vld [vmem:[%s12026_s11 + $0x3c20] sm:$0xff]  ;;  %v2414_v16 = vld [vmem:[%s12026_s11 + $0x3c68] sm:$0xff] }
 0x3e4   : > { %6723 = vmatprep.mubr.f32.mxu1 %v472_v1  ;;  %v2445_v17 = vld [vmem:[%s12026_s11 + $0x3d60] sm:$0xff] }
 0x3e5   : > { %11518 = vmatpush3.bf16.msra.mxu0 %v11517_v0  ;;  %v2400_v0 = vld [vmem:[%s12026_s11 + $0x3bf8] sm:$0xff] }
 0x3e6   : > { %11550 = vmatpush3.bf16.msra.mxu1 %v11549_v48  ;;  %11520 = vmatprep.subr.bf16.mxu0 %v11519_v49  ;;  %v11537_v49 = vpack.c.bf16 %v2350_v35, %v2349_v34  ;;  %v11571_v59 = vpack.c.bf16 %v2400_v0, %v2399_v47  ;;  %v2438_v34 = vld [vmem:[%s12026_s11 + $0x3d28] sm:$0xff]  ;;  %v2423_v35 = vld [vmem:[%s12026_s11 + $0x3cb0] sm:$0xff] }
 0x3e7   : > { %11552 = vmatprep.subr.bf16.mxu1 %v11551_v7  ;;  %v2351_v7 = vld [vmem:[%s12026_s11 + $0x3a70] sm:$0xff]  ;;  %v11587_v42 = vpack.c.bf16 %v2424_v36, %v2423_v35 }
 0x3e8   : > { %v11541_v2 = vpack.c.bf16 %v2352_v54, %v2351_v7  ;;  %v2439_v47 = vld [vmem:[%s12026_s11 + $0x3d30] sm:$0xff] }
 0x3e9   : > { %11522 = vmatpush3.bf16.msra.mxu0 %v11521_v13  ;;  %v2417_v13 = vld [vmem:[%s12026_s11 + $0x3c80] sm:$0xff]  ;;  %v2447_v35 = vld [vmem:[%s12026_s11 + $0x3d70] sm:$0xff] }
 0x3ea   : > { %11554 = vmatpush3.bf16.msra.mxu1 %v11553_v60  ;;  %11524 = vmatprep.subr.bf16.mxu0 %v11523_v61  ;;  %v2418_v60 = vld [vmem:[%s12026_s11 + $0x3c88] sm:$0xff]  ;;  %v2449_v61 = vld [vmem:[%s12026_s11 + $0x3d80] sm:$0xff] }
 0x3eb   : > { %11556 = vmatprep.subr.bf16.mxu1 %v11555_v19  ;;  %v11575_v19 = vpack.c.bf16 %v2418_v60, %v2417_v13  ;;  %v11607_v5 = vpack.c.bf16 %v2450_v62, %v2449_v61  ;;  %v2442_v13 = vld [vmem:[%s12026_s11 + $0x3d48] sm:$0xff]  ;;  %v2427_v60 = vld [vmem:[%s12026_s11 + $0x3cd0] sm:$0xff]  ;;  %v2428_v61 = vld [vmem:[%s12026_s11 + $0x3cd8] sm:$0xff] }
 0x3ec   : > { %v2459_v62 = vld [vmem:[%s12026_s11 + $0x3dd0] sm:$0xff]  ;;  %v11595_v20 = vpack.c.bf16 %v2428_v61, %v2427_v60 }
 0x3ed   : > { %11526 = vmatpush3.bf16.msra.mxu0 %v11525_v25  ;;  %v2419_v25 = vld [vmem:[%s12026_s11 + $0x3c90] sm:$0xff] }
 0x3ee   : > { %11558 = vmatpush3.bf16.msra.mxu1 %v11557_v26  ;;  %11528 = vmatprep.subr.bf16.mxu0 %v11527_v9  ;;  %v2420_v26 = vld [vmem:[%s12026_s11 + $0x3c98] sm:$0xff]  ;;  %v2451_v9 = vld [vmem:[%s12026_s11 + $0x3d90] sm:$0xff] }
 0x3ef   : > { %11560 = vmatprep.subr.bf16.mxu1 %v11559_v31  ;;  %v471_v31 = vld [vmem:[%s12036_s23 + $0x3b0] sm:$0xff]  ;;  %v11579_v15 = vpack.c.bf16 %v2420_v26, %v2419_v25  ;;  %v2444_v25 = vld [vmem:[%s12026_s11 + $0x3d58] sm:$0xff]  ;;  %v2429_v26 = vld [vmem:[%s12026_s11 + $0x3ce0] sm:$0xff] }
 0x3f0   : > { %v2467_v61 = vld [vmem:[%s12026_s11 + $0x3e10] sm:$0xff] }
 0x3f1   : > { %11530 = vmatpush3.bf16.msra.mxu0 %v11529_v38  ;;  %v11611_v38 = vpack.c.bf16 %v2452_v10, %v2451_v9  ;;  %v2430_v9 = vld [vmem:[%s12026_s11 + $0x3ce8] sm:$0xff]  ;;  %v2461_v10 = vld [vmem:[%s12026_s11 + $0x3de0] sm:$0xff] }
 0x3f2   : > { %11562 = vmatpush3.bf16.msra.mxu1 %v11561_v39  ;;  %11532 = vmatprep.subr.bf16.mxu0 %v11531_v37  ;;  %v2436_v39 = vld [vmem:[%s12026_s11 + $0x3d18] sm:$0xff]  ;;  %v2421_v37 = vld [vmem:[%s12026_s11 + $0x3ca0] sm:$0xff] }
 0x3f3   : > { %v8901_v40 = vpop.f32.mrb[44].mxu0  ;;  %11564 = vmatprep.subr.bf16.mxu1 %v11563_v27  ;;  %v474_v27 = vld [vmem:[%s12036_s23 + $0x3c8] sm:$0xff]  ;;  %v11613_v28 = vpack.c.bf16 %v2436_v39, %v2435_v21  ;;  %v11583_v29 = vpack.c.bf16 %v2422_v22, %v2421_v37  ;;  %v2446_v39 = vld [vmem:[%s12026_s11 + $0x3d68] sm:$0xff]  ;;  %v2431_v37 = vld [vmem:[%s12026_s11 + $0x3cf0] sm:$0xff] }
 0x3f4   : > { %v8902_v43 = vpop.f32.mrb[45].mxu0  ;;  %v8936_v44 = vpop.f32.mrb[44].mxu1  ;;  %v2432_v22 = vld [vmem:[%s12026_s11 + $0x3cf8] sm:$0xff] }
 0x3f5   : > { %v8903_v1 = vadd.f32 %v8902_v43, %v8901_v40  ;;  %11534 = vmatpush3.bf16.msra.mxu0 %v11533_v33  ;;  %v8937_v48 = vpop.f32.mrb[45].mxu1  ;;  %v2406_v33 = vld [vmem:[%s12026_s11 + $0x3c28] sm:$0xff]  ;;  %v2455_v40 = vld [vmem:[%s12026_s11 + $0x3db0] sm:$0xff] }
 0x3f6   : > { %v8938_v50 = vadd.f32 %v8937_v48, %v8936_v44  ;;  %11566 = vmatpush3.bf16.msra.mxu1 %v11565_v51  ;;  %11536 = vmatprep.subr.bf16.mxu0 %v11535_v52  ;;  %v2437_v51 = vld [vmem:[%s12026_s11 + $0x3d20] sm:$0xff]  ;;  %v11615_v52 = vpack.c.bf16 %v2454_v24, %v2453_v23  ;;  %v11585_v58 = vpack.c.bf16 %v2406_v33, %v2405_v30  ;;  %v2407_v43 = vld [vmem:[%s12026_s11 + $0x3c30] sm:$0xff]  ;;  %v2408_v44 = vld [vmem:[%s12026_s11 + $0x3c38] sm:$0xff] }
 0x3f7   : > { %v5676_v56 = vadd.f32 %v8903_v1, %v14076_v18  ;;  %11568 = vmatprep.subr.bf16.mxu1 %v11567_v57  ;;  %v11573_v18 = vpack.c.bf16 %v2384_v12, %v2383_v55  ;;  %v2456_v57 = vld [vmem:[%s12026_s11 + $0x3db8] sm:$0xff]  ;;  %v11617_v41 = vpack.c.bf16 %v2438_v34, %v2437_v51  ;;  %v2425_v48 = vld [vmem:[%s12026_s11 + $0x3cc0] sm:$0xff]  ;;  %v11633_v33 = vpack.c.bf16 %v2446_v39, %v2445_v17 }
 0x3f8   : > { %v11619_v0 = vpack.c.bf16 %v2456_v57, %v2455_v40  ;;  %v2440_v1 = vld [vmem:[%s12026_s11 + $0x3d38] sm:$0xff]  ;;  %v2409_v55 = vld [vmem:[%s12026_s11 + $0x3c40] sm:$0xff]  ;;  %v11603_v51 = vpack.c.bf16 %v2432_v22, %v2431_v37 }
 0x3f9   : > { %v14147_v63 = vadd.f32 %v8938_v50, %v5676_v56  ;;  %11538 = vmatpush3.bf16.msra.mxu0 %v11537_v49  ;;  %v2426_v49 = vld [vmem:[%s12026_s11 + $0x3cc8] sm:$0xff]  ;;  %v2457_v50 = vld [vmem:[%s12026_s11 + $0x3dc0] sm:$0xff]  ;;  %v11621_v7 = vpack.c.bf16 %v2440_v1, %v2439_v47  ;;  %v2416_v34 = vld [vmem:[%s12026_s11 + $0x3c78] sm:$0xff] }
 0x3fa   : > { %11570 = vmatpush3.bf16.msra.mxu1 %v11569_v53  ;;  %11540 = vmatprep.subr.bf16.mxu0 %v11539_v6  ;;  %v2458_v53 = vld [vmem:[%s12026_s11 + $0x3dc8] sm:$0xff]  ;;  %v11589_v6 = vpack.c.bf16 %v2408_v44, %v2407_v43  ;;  %v11591_v54 = vpack.c.bf16 %v2426_v49, %v2425_v48  ;;  %v2448_v57 = vld [vmem:[%s12026_s11 + $0x3d78] sm:$0xff]  ;;  %v2465_v1 = vld [vmem:[%s12026_s11 + $0x3e00] sm:$0xff] }
 0x3fb   : > { %11572 = vmatprep.subr.bf16.mxu1 %v11571_v59  ;;  %v2410_v56 = vld [vmem:[%s12026_s11 + $0x3c48] sm:$0xff]  ;;  %v2441_v59 = vld [vmem:[%s12026_s11 + $0x3d40] sm:$0xff]  ;;  %v11623_v12 = vpack.c.bf16 %v2458_v53, %v2457_v50  ;;  %v2488_v17 = vld [vmem:[%s12026_s11 + $0x3eb8] sm:$0xff] }
 0x3fc   : > { %v2514_v43 = vld [vmem:[%s12026_s11 + $0x3f88] sm:$0xff]  ;;  %v2497_v49 = vld [vmem:[%s12026_s11 + $0x3f00] sm:$0xff] }
 0x3fd   : > { %11542 = vmatpush3.bf16.msra.mxu0 %v11541_v2  ;;  %v2460_v2 = vld [vmem:[%s12026_s11 + $0x3dd8] sm:$0xff]  ;;  %v2466_v48 = vld [vmem:[%s12026_s11 + $0x3e08] sm:$0xff] }
 0x3fe   : > { %11574 = vmatpush3.bf16.msra.mxu1 %v11573_v18  ;;  %11576 = vmatprep.subr.bf16.mxu0 %v11575_v19  ;;  %v11593_v18 = vpack.c.bf16 %v2410_v56, %v2409_v55  ;;  %v11625_v19 = vpack.c.bf16 %v2442_v13, %v2441_v59  ;;  %v11627_v8 = vpack.c.bf16 %v2460_v2, %v2459_v62  ;;  %v2498_v53 = vld [vmem:[%s12026_s11 + $0x3f08] sm:$0xff]  ;;  %v2516_v55 = vld [vmem:[%s12026_s11 + $0x3f98] sm:$0xff]  ;;  %v2499_v2 = vld [vmem:[%s12026_s11 + $0x3f10] sm:$0xff] }
 0x3ff   : > { %11608 = vmatprep.subr.bf16.mxu1 %v11607_v5  ;;  %v2443_v5 = vld [vmem:[%s12026_s11 + $0x3d50] sm:$0xff]  ;;  %v473_v56 = vld [vmem:[%s12036_s23 + $0x3c0] sm:$0xff]  ;;  %v11641_v59 = vpack.c.bf16 %v2466_v48, %v2465_v1  ;;  %v11673_v13 = vpack.c.bf16 %v2498_v53, %v2497_v49 }
 0x400   : > { %6654 = vmatmul.mubr.f32.vlgmr.msra.gmra.mrb[58].mxu0 %v469_v11  ;;  %v2462_v11 = vld [vmem:[%s12026_s11 + $0x3de8] sm:$0xff]  ;;  %v2468_v62 = vld [vmem:[%s12026_s11 + $0x3e18] sm:$0xff]  ;;  %v2475_v48 = vld [vmem:[%s12026_s11 + $0x3e50] sm:$0xff] }
 0x401   : > { %11578 = vmatpush3.bf16.msra.mxu0 %v11577_v14  ;;  %6724 = vmatmul.mubr.f32.vlgmr.msra.gmra.mrb[58].mxu1 %v471_v31  ;;  %v11597_v14 = vpack.c.bf16 %v2412_v4, %v2411_v3  ;;  %v11629_v31 = vpack.c.bf16 %v2444_v25, %v2443_v5  ;;  %v2486_v3 = vld [vmem:[%s12026_s11 + $0x3ea8] sm:$0xff]  ;;  %v2517_v4 = vld [vmem:[%s12026_s11 + $0x3fa0] sm:$0xff]  ;;  %v11645_v25 = vpack.c.bf16 %v2468_v62, %v2467_v61  ;;  %v2476_v49 = vld [vmem:[%s12026_s11 + $0x3e58] sm:$0xff] }
 0x402   : > { %11610 = vmatpush3.bf16.msra.mxu1 %v11609_v32  ;;  %11580 = vmatprep.subr.bf16.mxu0 %v11579_v15  ;;  %v11599_v32 = vpack.c.bf16 %v2430_v9, %v2429_v26  ;;  %v2413_v15 = vld [vmem:[%s12026_s11 + $0x3c60] sm:$0xff]  ;;  %v2518_v5 = vld [vmem:[%s12026_s11 + $0x3fa8] sm:$0xff]  ;;  %v480_v26 = vld [vmem:[%s12036_s23 + $0x3f8] sm:$0xff] }
 0x403   : > { %11612 = vmatprep.subr.bf16.mxu1 %v11611_v38  ;;  %6793 = vmatprep.mubr.f32.mxu0 %v474_v27  ;;  %v11631_v38 = vpack.c.bf16 %v2462_v11, %v2461_v10  ;;  %v2463_v27 = vld [vmem:[%s12026_s11 + $0x3df0] sm:$0xff]  ;;  %v2469_v11 = vld [vmem:[%s12026_s11 + $0x3e20] sm:$0xff]  ;;  %v2478_v61 = vld [vmem:[%s12026_s11 + $0x3e68] sm:$0xff] }
 0x404   : > { %6863 = vmatprep.mubr.f32.mxu1 %v476_v46  ;;  %v2509_v62 = vld [vmem:[%s12026_s11 + $0x3f60] sm:$0xff] }
 0x405   : > { %11582 = vmatpush3.bf16.msra.mxu0 %v11581_v45  ;;  %v2464_v45 = vld [vmem:[%s12026_s11 + $0x3df8] sm:$0xff] }
 0x406   : > { %11614 = vmatpush3.bf16.msra.mxu1 %v11613_v28  ;;  %11584 = vmatprep.subr.bf16.mxu0 %v11583_v29  ;;  %v11601_v29 = vpack.c.bf16 %v2414_v16, %v2413_v15  ;;  %v11635_v40 = vpack.c.bf16 %v2464_v45, %v2463_v27  ;;  %v2502_v15 = vld [vmem:[%s12026_s11 + $0x3f28] sm:$0xff]  ;;  %v2487_v16 = vld [vmem:[%s12026_s11 + $0x3eb0] sm:$0xff] }
 0x407   : > { %11616 = vmatprep.subr.bf16.mxu1 %v11615_v52  ;;  %v2415_v52 = vld [vmem:[%s12026_s11 + $0x3c70] sm:$0xff]  ;;  %v11651_v22 = vpack.c.bf16 %v2488_v17, %v2487_v16 }
 0x408   : > { %v11605_v47 = vpack.c.bf16 %v2416_v34, %v2415_v52  ;;  %v2503_v27 = vld [vmem:[%s12026_s11 + $0x3f30] sm:$0xff] }
 0x409   : > { %11586 = vmatpush3.bf16.msra.mxu0 %v11585_v58  ;;  %v2481_v58 = vld [vmem:[%s12026_s11 + $0x3e80] sm:$0xff] }
 0x40a   : > { %11618 = vmatpush3.bf16.msra.mxu1 %v11617_v41  ;;  %11588 = vmatprep.subr.bf16.mxu0 %v11587_v42  ;;  %v2482_v41 = vld [vmem:[%s12026_s11 + $0x3e88] sm:$0xff]  ;;  %v2513_v42 = vld [vmem:[%s12026_s11 + $0x3f80] sm:$0xff] }
 0x40b   : > { %11620 = vmatprep.subr.bf16.mxu1 %v11619_v0  ;;  %v11639_v0 = vpack.c.bf16 %v2482_v41, %v2481_v58  ;;  %v11671_v50 = vpack.c.bf16 %v2514_v43, %v2513_v42  ;;  %v2506_v58 = vld [vmem:[%s12026_s11 + $0x3f48] sm:$0xff]  ;;  %v2491_v41 = vld [vmem:[%s12026_s11 + $0x3ed0] sm:$0xff]  ;;  %v2492_v42 = vld [vmem:[%s12026_s11 + $0x3ed8] sm:$0xff] }
 0x40c   : > { %v2523_v43 = vld [vmem:[%s12026_s11 + $0x3fd0] sm:$0xff]  ;;  %v11659_v1 = vpack.c.bf16 %v2492_v42, %v2491_v41 }
 0x40d   : > { %11590 = vmatpush3.bf16.msra.mxu0 %v11589_v6  ;;  %v2483_v6 = vld [vmem:[%s12026_s11 + $0x3e90] sm:$0xff] }
 0x40e   : > { %11622 = vmatpush3.bf16.msra.mxu1 %v11621_v7  ;;  %11592 = vmatprep.subr.bf16.mxu0 %v11591_v54  ;;  %v2484_v7 = vld [vmem:[%s12026_s11 + $0x3e98] sm:$0xff]  ;;  %v2515_v54 = vld [vmem:[%s12026_s11 + $0x3f90] sm:$0xff] }
 0x40f   : > { %11624 = vmatprep.subr.bf16.mxu1 %v11623_v12  ;;  %v475_v12 = vld [vmem:[%s12036_s23 + $0x3d0] sm:$0xff]  ;;  %v11643_v60 = vpack.c.bf16 %v2484_v7, %v2483_v6  ;;  %v2508_v6 = vld [vmem:[%s12026_s11 + $0x3f58] sm:$0xff]  ;;  %v2493_v7 = vld [vmem:[%s12026_s11 + $0x3ee0] sm:$0xff] }
 0x411   : > { %11594 = vmatpush3.bf16.msra.mxu0 %v11593_v18  ;;  %v11675_v18 = vpack.c.bf16 %v2516_v55, %v2515_v54  ;;  %v2494_v54 = vld [vmem:[%s12026_s11 + $0x3ee8] sm:$0xff]  ;;  %v2525_v55 = vld [vmem:[%s12026_s11 + $0x3fe0] sm:$0xff] }
 0x412   : > { %11626 = vmatpush3.bf16.msra.mxu1 %v11625_v19  ;;  %11596 = vmatprep.subr.bf16.mxu0 %v11595_v20  ;;  %v2500_v19 = vld [vmem:[%s12026_s11 + $0x3f18] sm:$0xff]  ;;  %v2485_v20 = vld [vmem:[%s12026_s11 + $0x3ea0] sm:$0xff] }
 0x413   : > { %v8971_v21 = vpop.f32.mrb[46].mxu0  ;;  %11628 = vmatprep.subr.bf16.mxu1 %v11627_v8  ;;  %v478_v8 = vld [vmem:[%s12036_s23 + $0x3e8] sm:$0xff]  ;;  %v11677_v9 = vpack.c.bf16 %v2500_v19, %v2499_v2  ;;  %v11647_v10 = vpack.c.bf16 %v2486_v3, %v2485_v20  ;;  %v2510_v19 = vld [vmem:[%s12026_s11 + $0x3f68] sm:$0xff]  ;;  %v2495_v20 = vld [vmem:[%s12026_s11 + $0x3ef0] sm:$0xff] }
 0x414   : > { %v8972_v23 = vpop.f32.mrb[47].mxu0  ;;  %v9006_v24 = vpop.f32.mrb[46].mxu1  ;;  %v2496_v3 = vld [vmem:[%s12026_s11 + $0x3ef8] sm:$0xff] }
 0x415   : > { %v8973_v46 = vadd.f32 %v8972_v23, %v8971_v21  ;;  %11598 = vmatpush3.bf16.msra.mxu0 %v11597_v14  ;;  %v9007_v28 = vpop.f32.mrb[47].mxu1  ;;  %v2470_v14 = vld [vmem:[%s12026_s11 + $0x3e28] sm:$0xff]  ;;  %v2519_v21 = vld [vmem:[%s12026_s11 + $0x3fb0] sm:$0xff] }
 0x416   : > { %v9008_v30 = vadd.f32 %v9007_v28, %v9006_v24  ;;  %11630 = vmatpush3.bf16.msra.mxu1 %v11629_v31  ;;  %11600 = vmatprep.subr.bf16.mxu0 %v11599_v32  ;;  %v2501_v31 = vld [vmem:[%s12026_s11 + $0x3f20] sm:$0xff]  ;;  %v11679_v32 = vpack.c.bf16 %v2518_v5, %v2517_v4  ;;  %v11649_v39 = vpack.c.bf16 %v2470_v14, %v2469_v11  ;;  %v2471_v23 = vld [vmem:[%s12026_s11 + $0x3e30] sm:$0xff]  ;;  %v2472_v24 = vld [vmem:[%s12026_s11 + $0x3e38] sm:$0xff] }
 0x417   : > { %v5816_v36 = vadd.f32 %v8973_v46, %v14147_v63  ;;  %11632 = vmatprep.subr.bf16.mxu1 %v11631_v38  ;;  %v11637_v63 = vpack.c.bf16 %v2448_v57, %v2447_v35  ;;  %v2520_v38 = vld [vmem:[%s12026_s11 + $0x3fb8] sm:$0xff]  ;;  %v11681_v37 = vpack.c.bf16 %v2502_v15, %v2501_v31  ;;  %v2489_v28 = vld [vmem:[%s12026_s11 + $0x3ec0] sm:$0xff]  ;;  %v11697_v14 = vpack.c.bf16 %v2510_v19, %v2509_v62 }
 0x418   : > { %v11683_v45 = vpack.c.bf16 %v2520_v38, %v2519_v21  ;;  %v2504_v46 = vld [vmem:[%s12026_s11 + $0x3f38] sm:$0xff]  ;;  %v2473_v35 = vld [vmem:[%s12026_s11 + $0x3e40] sm:$0xff]  ;;  %v11667_v31 = vpack.c.bf16 %v2496_v3, %v2495_v20  ;;  %v2511_v21 = vld [vmem:[%s12026_s11 + $0x3f70] sm:$0xff] }
 0x419   : > { %v14218_v44 = vadd.f32 %v9008_v30, %v5816_v36  ;;  %11602 = vmatpush3.bf16.msra.mxu0 %v11601_v29  ;;  %v2490_v29 = vld [vmem:[%s12026_s11 + $0x3ec8] sm:$0xff]  ;;  %v2521_v30 = vld [vmem:[%s12026_s11 + $0x3fc0] sm:$0xff]  ;;  %v11685_v52 = vpack.c.bf16 %v2504_v46, %v2503_v27  ;;  %v2480_v15 = vld [vmem:[%s12026_s11 + $0x3e78] sm:$0xff] }
 0x41a   : > { %11634 = vmatpush3.bf16.msra.mxu1 %v11633_v33  ;;  %11604 = vmatprep.subr.bf16.mxu0 %v11603_v51  ;;  %v2522_v33 = vld [vmem:[%s12026_s11 + $0x3fc8] sm:$0xff]  ;;  %v11653_v51 = vpack.c.bf16 %v2472_v24, %v2471_v23  ;;  %v11655_v34 = vpack.c.bf16 %v2490_v29, %v2489_v28  ;;  %v2512_v38 = vld [vmem:[%s12026_s11 + $0x3f78] sm:$0xff] }
 0x41b   : > { %11636 = vmatprep.subr.bf16.mxu1 %v11635_v40  ;;  %v2474_v36 = vld [vmem:[%s12026_s11 + $0x3e48] sm:$0xff]  ;;  %v2505_v40 = vld [vmem:[%s12026_s11 + $0x3f40] sm:$0xff]  ;;  %v11687_v57 = vpack.c.bf16 %v2522_v33, %v2521_v30  ;;  %v477_v23 = vld [vmem:[%s12036_s23 + $0x3e0] sm:$0xff] }
 0x41c   : > { %v479_v24 = vld [vmem:[%s12036_s23 + $0x3f0] sm:$0xff] }
 0x41d   : > { %11606 = vmatpush3.bf16.msra.mxu0 %v11605_v47  ;;  %v2524_v47 = vld [vmem:[%s12026_s11 + $0x3fd8] sm:$0xff] }
 0x41e   : > { %11638 = vmatpush3.bf16.msra.mxu1 %v11637_v63  ;;  %11640 = vmatprep.subr.bf16.mxu0 %v11639_v0  ;;  %v11657_v63 = vpack.c.bf16 %v2474_v36, %v2473_v35  ;;  %v11689_v0 = vpack.c.bf16 %v2506_v58, %v2505_v40  ;;  %v11691_v53 = vpack.c.bf16 %v2524_v47, %v2523_v43 }
 0x41f   : > { %11672 = vmatprep.subr.bf16.mxu1 %v11671_v50  ;;  %v2507_v50 = vld [vmem:[%s12026_s11 + $0x3f50] sm:$0xff] }
 0x420   : > { %6794 = vmatmul.mubr.f32.vlgmr.msra.gmra.mrb[60].mxu0 %v473_v56  ;;  %v2526_v56 = vld [vmem:[%s12026_s11 + $0x3fe8] sm:$0xff] }
 0x421   : > { %11642 = vmatpush3.bf16.msra.mxu0 %v11641_v59  ;;  %6864 = vmatmul.mubr.f32.vlgmr.msra.gmra.mrb[60].mxu1 %v475_v12  ;;  %v11661_v59 = vpack.c.bf16 %v2476_v49, %v2475_v48  ;;  %v11693_v12 = vpack.c.bf16 %v2508_v6, %v2507_v50 }
 0x422   : > { %11674 = vmatpush3.bf16.msra.mxu1 %v11673_v13  ;;  %11644 = vmatprep.subr.bf16.mxu0 %v11643_v60  ;;  %v11663_v13 = vpack.c.bf16 %v2494_v54, %v2493_v7  ;;  %v2477_v60 = vld [vmem:[%s12026_s11 + $0x3e60] sm:$0xff] }
 0x423   : > { %11676 = vmatprep.subr.bf16.mxu1 %v11675_v18  ;;  %6933 = vmatprep.mubr.f32.mxu0 %v478_v8  ;;  %v11695_v18 = vpack.c.bf16 %v2526_v56, %v2525_v55  ;;  %v2527_v8 = vld [vmem:[%s12026_s11 + $0x3ff0] sm:$0xff] }
 0x424   : > { %7003 = vmatprep.mubr.f32.mxu1 %v480_v26 }
 0x425   : > { %11646 = vmatpush3.bf16.msra.mxu0 %v11645_v25  ;;  %v2528_v25 = vld [vmem:[%s12026_s11 + $0x3ff8] sm:$0xff] }
 0x426   : > { %11678 = vmatpush3.bf16.msra.mxu1 %v11677_v9  ;;  %11648 = vmatprep.subr.bf16.mxu0 %v11647_v10  ;;  %v11665_v10 = vpack.c.bf16 %v2478_v61, %v2477_v60  ;;  %v11699_v17 = vpack.c.bf16 %v2528_v25, %v2527_v8 }
 0x427   : > { %11680 = vmatprep.subr.bf16.mxu1 %v11679_v32  ;;  %v2479_v32 = vld [vmem:[%s12026_s11 + $0x3e70] sm:$0xff] }
 0x429   : > { %11650 = vmatpush3.bf16.msra.mxu0 %v11649_v39 }
 0x42a   : > { %11682 = vmatpush3.bf16.msra.mxu1 %v11681_v37  ;;  %11652 = vmatprep.subr.bf16.mxu0 %v11651_v22  ;;  %v11669_v37 = vpack.c.bf16 %v2480_v15, %v2479_v32  ;;  %v11701_v22 = vpack.c.bf16 %v2512_v38, %v2511_v21  ;;  %v7026_v38 = vld [vmem:[%s14405_s3] sm:$0xff] (!%p7318_p7) }
 0x42b   : > { %11684 = vmatprep.subr.bf16.mxu1 %v11683_v45 }
 0x42d   : > { %11654 = vmatpush3.bf16.msra.mxu0 %v11653_v51 }
 0x42e   : > { %11686 = vmatpush3.bf16.msra.mxu1 %v11685_v52  ;;  %11656 = vmatprep.subr.bf16.mxu0 %v11655_v34 }
 0x42f   : > { %11688 = vmatprep.subr.bf16.mxu1 %v11687_v57 }
 0x431   : > { %11658 = vmatpush3.bf16.msra.mxu0 %v11657_v63 }
 0x432   : > { %11690 = vmatpush3.bf16.msra.mxu1 %v11689_v0  ;;  %11660 = vmatprep.subr.bf16.mxu0 %v11659_v1 }
 0x433   : > { %v9041_v2 = vpop.f32.mrb[48].mxu0  ;;  %11692 = vmatprep.subr.bf16.mxu1 %v11691_v53 }
 0x434   : > { %v9042_v4 = vpop.f32.mrb[49].mxu0  ;;  %v9076_v5 = vpop.f32.mrb[48].mxu1 }
 0x435   : > { %v9043_v26 = vadd.f32 %v9042_v4, %v9041_v2  ;;  %11662 = vmatpush3.bf16.msra.mxu0 %v11661_v59  ;;  %v9077_v9 = vpop.f32.mrb[49].mxu1 }
 0x436   : > { %v9078_v11 = vadd.f32 %v9077_v9, %v9076_v5  ;;  %11694 = vmatpush3.bf16.msra.mxu1 %v11693_v12  ;;  %11664 = vmatprep.subr.bf16.mxu0 %v11663_v13 }
 0x437   : > { %v5956_v16 = vadd.f32 %v9043_v26, %v14218_v44  ;;  %11696 = vmatprep.subr.bf16.mxu1 %v11695_v18 }
 0x439   : > { %v6026_v39 = vadd.f32 %v9078_v11, %v5956_v16  ;;  %11666 = vmatpush3.bf16.msra.mxu0 %v11665_v10  ;;  %v352_v16 = vld [vmem:[#allocation2] sm:$0xff] }
 0x43a   : > { %11698 = vmatpush3.bf16.msra.mxu1 %v11697_v14  ;;  %11668 = vmatprep.subr.bf16.mxu0 %v11667_v31 }
 0x43b   : > { %11700 = vmatprep.subr.bf16.mxu1 %v11699_v17 }
 0x43d   : > { %11670 = vmatpush3.bf16.msra.mxu0 %v11669_v37  ;;  %v7028_v37 = vld [vmem:[%s14405_s3 + $0x10] sm:$0xff] (!%p7318_p7) }
 0x43e   : > { %11702 = vmatpush3.bf16.msra.mxu1 %v11701_v22  ;;  %v11886_v22 = vmov (!%p7318_p7), 0.0|0.0  }
 0x43f   : > { %11703 = vmatprep.subr.bf16.mxu0 (!%p7318_p7), %v11886_v22  ;;  %11724 = vmatprep.subr.bf16.mxu1 (!%p7318_p7), %v11886_v22 }
 0x440   : > { %6934 = vmatmul.mubr.f32.vlgmr.msra.gmra.mrb[62].mxu0 %v477_v23 }
 0x441   : > { %7004 = vmatmul.mubr.f32.vlgmr.msra.gmra.mrb[62].mxu1 %v479_v24  ;;  %v7029_v24 = vld [vmem:[%s14405_s3 + $0x18] sm:$0xff] (!%p7318_p7) }
 0x453   : > { %v9111_v27 = vpop.f32.mrb[50].mxu0 }
 0x454   : > { %v9112_v45 = vpop.f32.mrb[51].mxu0  ;;  %v9146_v44 = vpop.f32.mrb[50].mxu1 }
 0x455   : > { %v9113_v46 = vadd.f32 %v9112_v45, %v9111_v27  ;;  %v9147_v28 = vpop.f32.mrb[51].mxu1  ;;  %v11888_v27 = vmov (!%p7318_p7), 0.0   ;;  %v11707_v45 = vpack.c.bf16 (!%p7318_p7), %v7029_v24, %v7028_v37 }
 0x456   : > { %v9148_v29 = vadd.f32 %v9147_v28, %v9146_v44  ;;  %9627 = vmatprep.mubr.msk.f32.mxu0 (!%p7318_p7), %vm11887_vm2, %v11888_v27  ;;  %9652 = vmatprep.mubr.msk.f32.mxu1 (!%p7318_p7), %vm11887_vm2, %v11888_v27  ;;  %v7030_v44 = vld [vmem:[%s14405_s3 + $0x20] sm:$0xff] (!%p7318_p7) }
 0x457   : > { %v6096_v30 = vadd.f32 %v9113_v46, %v6026_v39  ;;  %v7027_v39 = vld [vmem:[%s14405_s3 + $0x8] sm:$0xff] (!%p7318_p7)  ;;  %v7122_v28 = vld [vmem:[%s14407_s5] sm:$0xff] (!%p7318_p7) }
 0x458   : > { %v11704_v23 = vpack.c.bf16 (!%p7318_p7), %v7027_v39, %v7026_v38  ;;  %v7031_v46 = vld [vmem:[%s14405_s3 + $0x28] sm:$0xff] (!%p7318_p7) }
 0x459   : > { %v6166_v33 = vadd.f32 %v9148_v29, %v6096_v30  ;;  %v7123_v29 = vld [vmem:[%s14407_s5 + $0x8] sm:$0xff] (!%p7318_p7)  ;;  %v7124_v30 = vld [vmem:[%s14407_s5 + $0x10] sm:$0xff] (!%p7318_p7) }
 0x45a   : > { %11705 = vmatpush3.bf16.msra.mxu0 (!%p7318_p7), %v11704_v23 }
 0x45b   : > { %11706 = vmatprep.subr.bf16.mxu0 (!%p7318_p7), %v11886_v22 }
 0x45e   : > { %11708 = vmatpush3.bf16.msra.mxu0 (!%p7318_p7), %v11707_v45 }
 0x45f   : > { %11709 = vmatprep.subr.bf16.mxu0 (!%p7318_p7), %v11886_v22 }
 0x473   : > { %v9181_v51 = vpop.f32.mrb[52].mxu0 }
 0x474   : > { %v9182_v52 = vpop.f32.mrb[53].mxu0  ;;  %v9216_v34 = vpop.f32.mrb[52].mxu1 }
 0x475   : > { %v9183_v35 = vadd.f32 %v9182_v52, %v9181_v51  ;;  %v9217_v36 = vpop.f32.mrb[53].mxu1  ;;  %v11710_v51 = vpack.c.bf16 (!%p7318_p7), %v7031_v46, %v7030_v44  ;;  %v11725_v52 = vpack.c.bf16 (!%p7318_p7), %v7123_v29, %v7122_v28 }
 0x476   : > { %v9218_v40 = vadd.f32 %v9217_v36, %v9216_v34  ;;  %v7032_v34 = vld [vmem:[%s14405_s3 + $0x30] sm:$0xff] (!%p7318_p7) }
 0x477   : > { %v6236_v57 = vadd.f32 %v9183_v35, %v6166_v33  ;;  %v7125_v33 = vld [vmem:[%s14407_s5 + $0x18] sm:$0xff] (!%p7318_p7)  ;;  %11726 = vmatpush3.bf16.msra.mxu1 (!%p7318_p7), %v11725_v52  ;;  %11711 = vmatpush3.bf16.msra.mxu0 (!%p7318_p7), %v11710_v51 }
 0x478   : > { %v7033_v35 = vld [vmem:[%s14405_s3 + $0x38] sm:$0xff] (!%p7318_p7)  ;;  %v11728_v36 = vpack.c.bf16 (!%p7318_p7), %v7125_v33, %v7124_v30  ;;  %11727 = vmatprep.subr.bf16.mxu1 (!%p7318_p7), %v11886_v22  ;;  %11712 = vmatprep.subr.bf16.mxu0 (!%p7318_p7), %v11886_v22 }
 0x479   : > { %v6306_v58 = vadd.f32 %v9218_v40, %v6236_v57  ;;  %v7126_v40 = vld [vmem:[%s14407_s5 + $0x20] sm:$0xff] (!%p7318_p7)  ;;  %v7127_v57 = vld [vmem:[%s14407_s5 + $0x28] sm:$0xff] (!%p7318_p7) }
 0x47b   : > { %11729 = vmatpush3.bf16.msra.mxu1 (!%p7318_p7), %v11728_v36 }
 0x47c   : > { %11730 = vmatprep.subr.bf16.mxu1 (!%p7318_p7), %v11886_v22 }
 0x493   : > { %v9251_v41 = vpop.f32.mrb[54].mxu0 }
 0x494   : > { %v9252_v42 = vpop.f32.mrb[55].mxu0  ;;  %v9286_v43 = vpop.f32.mrb[54].mxu1 }
 0x495   : > { %v9253_v47 = vadd.f32 %v9252_v42, %v9251_v41  ;;  %v9287_v63 = vpop.f32.mrb[55].mxu1  ;;  %v7034_v41 = vld [vmem:[%s14405_s3 + $0x40] sm:$0xff] (!%p7318_p7)  ;;  %v7035_v42 = vld [vmem:[%s14405_s3 + $0x48] sm:$0xff] (!%p7318_p7) }
 0x496   : > { %v9288_v0 = vadd.f32 %v9287_v63, %v9286_v43  ;;  %v11731_v43 = vpack.c.bf16 (!%p7318_p7), %v7127_v57, %v7126_v40  ;;  %v7129_v63 = vld [vmem:[%s14407_s5 + $0x38] sm:$0xff] (!%p7318_p7) }
 0x497   : > { %v6376_v1 = vadd.f32 %v9253_v47, %v6306_v58  ;;  %v11713_v58 = vpack.c.bf16 (!%p7318_p7), %v7033_v35, %v7032_v34  ;;  %v7128_v47 = vld [vmem:[%s14407_s5 + $0x30] sm:$0xff] (!%p7318_p7) }
 0x498   : > { %11732 = vmatpush3.bf16.msra.mxu1 (!%p7318_p7), %v11731_v43 }
 0x499   : > { %v6446_v48 = vadd.f32 %v9288_v0, %v6376_v1  ;;  %11714 = vmatpush3.bf16.msra.mxu0 (!%p7318_p7), %v11713_v58  ;;  %v11716_v0 = vpack.c.bf16 (!%p7318_p7), %v7035_v42, %v7034_v41  ;;  %v7036_v1 = vld [vmem:[%s14405_s3 + $0x50] sm:$0xff] (!%p7318_p7)  ;;  %11733 = vmatprep.subr.bf16.mxu1 (!%p7318_p7), %v11886_v22 }
 0x49a   : > { %11715 = vmatprep.subr.bf16.mxu0 (!%p7318_p7), %v11886_v22 }
 0x49d   : > { %11717 = vmatpush3.bf16.msra.mxu0 (!%p7318_p7), %v11716_v0 }
 0x49e   : > { %11718 = vmatprep.subr.bf16.mxu0 (!%p7318_p7), %v11886_v22 }
 0x4b3   : > { %v9321_v49 = vpop.f32.mrb[56].mxu0 }
 0x4b4   : > { %v9322_v50 = vpop.f32.mrb[57].mxu0  ;;  %v9356_v53 = vpop.f32.mrb[56].mxu1 }
 0x4b5   : > { %v9323_v6 = vadd.f32 %v9322_v50, %v9321_v49  ;;  %v9357_v7 = vpop.f32.mrb[57].mxu1  ;;  %v11734_v49 = vpack.c.bf16 (!%p7318_p7), %v7129_v63, %v7128_v47 }
 0x4b6   : > { %v9358_v54 = vadd.f32 %v9357_v7, %v9356_v53  ;;  %v7038_v53 = vld [vmem:[%s14405_s3 + $0x60] sm:$0xff] (!%p7318_p7) }
 0x4b7   : > { %v6516_v55 = vadd.f32 %v9323_v6, %v6446_v48  ;;  %v7037_v48 = vld [vmem:[%s14405_s3 + $0x58] sm:$0xff] (!%p7318_p7)  ;;  %v7039_v6 = vld [vmem:[%s14405_s3 + $0x68] sm:$0xff] (!%p7318_p7)  ;;  %11735 = vmatpush3.bf16.msra.mxu1 (!%p7318_p7), %v11734_v49 }
 0x4b8   : > { %v11719_v50 = vpack.c.bf16 (!%p7318_p7), %v7037_v48, %v7036_v1  ;;  %11736 = vmatprep.subr.bf16.mxu1 (!%p7318_p7), %v11886_v22 }
 0x4b9   : > { %v6586_v56 = vadd.f32 %v9358_v54, %v6516_v55  ;;  %v7319_v54 = vld [vmem:[%s14404_s2] ss:$0 sm:$0xff] (!%p7318_p7)  ;;  %v11722_v55 = vpack.c.bf16 (!%p7318_p7), %v7039_v6, %v7038_v53 }
 0x4ba   : > { %11720 = vmatpush3.bf16.msra.mxu0 (!%p7318_p7), %v11719_v50 }
 0x4bb   : > { %11721 = vmatprep.subr.bf16.mxu0 (!%p7318_p7), %v11886_v22 }
 0x4be   : > { %11723 = vmatpush3.bf16.msra.mxu0 (!%p7318_p7), %v11722_v55 }
 0x4bf   : > { %9625 = vmatprep.subr.mxu0 (!%p7318_p7), %v11888_v27 }
 0x4d3   : > { %v9391_v59 = vpop.f32.mrb[58].mxu0 }
 0x4d4   : > { %v9392_v12 = vpop.f32.mrb[59].mxu0  ;;  %v9426_v13 = vpop.f32.mrb[58].mxu1 }
 0x4d5   : > { %v9393_v60 = vadd.f32 %v9392_v12, %v9391_v59  ;;  %v9427_v61 = vpop.f32.mrb[59].mxu1  ;;  %v7040_v59 = vld [vmem:[%s14405_s3 + $0x70] sm:$0xff] (!%p7318_p7) }
 0x4d6   : > { %v9428_v62 = vadd.f32 %v9427_v61, %v9426_v13  ;;  %9626 = vmatpush3.msra.mxu0 (!%p7318_p7), %v7040_v59  ;;  %v7130_v13 = vld [vmem:[%s14407_s5 + $0x40] sm:$0xff] (!%p7318_p7) }
 0x4d7   : > { %v6656_v2 = vadd.f32 %v9393_v60, %v6586_v56  ;;  %v7131_v60 = vld [vmem:[%s14407_s5 + $0x48] sm:$0xff] (!%p7318_p7) }
 0x4d8   : > { %v11737_v61 = vpack.c.bf16 (!%p7318_p7), %v7131_v60, %v7130_v13 }
 0x4d9   : > { %v6726_v18 = vadd.f32 %v9428_v62, %v6656_v2  ;;  %v7132_v62 = vld [vmem:[%s14407_s5 + $0x50] sm:$0xf] (!%p7318_p7)  ;;  %v7320_v2 = vld [vmem:[%s14406_s4] ss:$0 sm:$0xff] (!%p7318_p7) }
 0x4da   : > { %11738 = vmatpush3.bf16.msra.mxu1 (!%p7318_p7), %v11737_v61 }
 0x4db   : > { %9650 = vmatprep.subr.mxu1 (!%p7318_p7), %v11888_v27 }
 0x4de   : > { %9651 = vmatpush3.msk.msra.mxu1 (!%p7318_p7), %vm7144_vm3, %v7132_v62 }
 0x4f3   : > { %v9461_v19 = vpop.f32.mrb[60].mxu0 }
 0x4f4   : > { %v9462_v20 = vpop.f32.mrb[61].mxu0  ;;  %v9496_v3 = vpop.f32.mrb[60].mxu1 }
 0x4f5   : > { %v9463_v4 = vadd.f32 %v9462_v20, %v9461_v19  ;;  %v9497_v5 = vpop.f32.mrb[61].mxu1 }
 0x4f6   : > { %v9498_v8 = vadd.f32 %v9497_v5, %v9496_v3 }
 0x4f7   : > { %v6796_v25 = vadd.f32 %v9463_v4, %v6726_v18  ;;  %v7322_v4 = vld [vmem:[%s14408_s6] ss:$0 sm:$0xff] (!%p7318_p7) }
 0x4f9   : > { %v6866_v26 = vadd.f32 %v9498_v8, %v6796_v25 }
 0x513   : > { %v9531_v9 = vpop.f32.mrb[62].mxu0 }
 0x514   : > { %v9532_v10 = vpop.f32.mrb[63].mxu0  ;;  %v9566_v11 = vpop.f32.mrb[62].mxu1 }
 0x515   : > { %v9533_v14 = vadd.f32 %v9532_v10, %v9531_v9  ;;  %v9567_v31 = vpop.f32.mrb[63].mxu1 }
 0x516   : > { %v9568_v32 = vadd.f32 %v9567_v31, %v9566_v11 }
 0x517   : > { %v6936_v15 = vadd.f32 %v9533_v14, %v6866_v26  ;;  %7015 = sbr.rel (%p7318_p7) target bundleno = 1752 (0x6d8), region = 60 }
 0x519   : > { %v7006_v17 = vadd.f32 %v9568_v32, %v6936_v15 }
 0x51b   : > { %v7009_v21 = vadd.f32 %v7006_v17, %v352_v16 }
 0x51d   : > { %7011 = vst.msk [vmem:[#allocation2] sm:$0xff] %vm7010_vm1, %v7009_v21 }
 0x524   : > { %v7016_v7 = vld [vmem:[#allocation2] sm:$0xff] }
 0x525   : > { %v7024_v56 = vadd.f32 %v7319_v54, %v7016_v7 }
 0x527   : > { %v7025_v12 = vmax.f32 %v7024_v56, 0.0 }
 0x529   : > { %9628 = vmatmul.mubr.msk.f32.vlgmr.msra.gmra.mrb[0].mxu0 %vm7010_vm1, %v7025_v12 }
 0x5fc   : > { %v7117_v18 = vpop.f32.mrb[0].mxu0 }
 0x5fd   : > { %v7118_v19 = vadd.f32 %v7320_v2, %v7117_v18  ;;  %v9629_v20 = vpop.f32.mrb[1].mxu0 }
 0x5ff   : > { %v7121_v3 = vmax.f32 %v7118_v19, 0.0 }
 0x601   : > { %9653 = vmatmul.mubr.msk.f32.vlgmr.msra.gmra.mrb[0].mxu1 %vm7140_vm4, %v7121_v3 }
 0x6d4   : > { %v7214_v5 = vpop.f32.mrb[0].mxu1 }
 0x6d5   : > { %v7215_v8 = vadd.f32 %v7322_v4, %v7214_v5  ;;  %v9654_v25 = vpop.f32.mrb[1].mxu1 }
 0x6d7   : > { %7218 = vst [vmem:[%s14409_s7] sm:$0xff] %v7215_v8 }
 0x6d8 PF: > { %s20_s29 = sadd.s32 1, %s11880_s29   ;;  %s14413_s24 = smov %s11864_s25 }
 0x6d9   : > { %p17_p5 = scmp.ge.s32.totalorder %s20_s29, 43   ;;  %s14414_s25 = smov %s11868_s26 }
 0x6da   : > { %s14415_s26 = smov %s11978_s13  ;;  %s14416_s27 = smov %s11876_s28 }
 0x6db   : > { %s14417_s28 = smov %s14419_s8  ;;  %19 = sbr.rel (!%p17_p5) target bundleno = 4 (0x4), region = 99 }
 0x6e2   :  { %7238 = vsyncpa [#allocation4], 1 }
 0x6e3   :  { %7240 = vsyncpa [#allocation4 + $0x1], 1 }

</bundles_post_ra>
